<compile_context>
chip_gen: v7x
topology: tpu7x:2x2x1
jax: 0.10.0
libtpu: 0.0.40
codegen_flags: <defaults>
</compile_context>

<pallas_src>
import jax
import jax.numpy as jnp
from jax import lax
from jax.experimental import pallas as pl
from jax.experimental.pallas import tpu as pltpu


# ------------------------------ Pallas kernel ------------------------------- #

def _make_encoder_kernel(in_ch, h1):
    """Build the fused whole-network kernel for a (h1 x h1) input image."""
    chans = (in_ch, 32, 64, 128, 256)
    sizes = (h1, h1 // 2, h1 // 4, h1 // 8)   # per-block input spatial size

    def kernel(x_ref, w1, b1, w2, b2, w3, b3, w4, b4, fcw_ref, fcb_ref,
               out_ref, pad2, pad3, pad4):
        # Zero the padded VMEM feature-map scratch so SAME-conv halo reads are zero.
        # Re-done every grid step: with a "parallel" batch grid each core owns its
        # own scratch, so nothing is assumed to persist across steps.
        for p in (pad2, pad3, pad4):
            p[...] = jnp.zeros_like(p)

        feat_rows = []   # block-4 pooled rows, pre-summed over sublanes -> (1, 256)

        def run_block(b, load_row, w_ref, b_ref, store_row):
            h = w = sizes[b]
            cin, cout = chans[b], chans[b + 1]
            ho_n, wo_n = h // 2, w // 2

            wmat = w_ref[...]                 # (9*cin, cout) bf16, BN scale folded
            bias = b_ref[...]                 # (1, cout)     f32

            # Load every padded input row once: (w+2, cin), sublane = x, lane = ch.
            prows = [load_row(r) for r in range(h + 2)]

            # Merged-K im2col: per output row, 9 shifted lane-slices of 3 padded
            # rows are concatenated on the lane axis -> (w, 9*cin) bf16; all rows
            # then stack on the sublane axis.  Single MXU GEMM per block.
            patch_rows = []
            for hh in range(h):
                taps = [prows[hh + ky][kx:kx + w]
                        for ky in range(3) for kx in range(3)]
                patch_rows.append(
                    jnp.concatenate(taps, axis=-1).astype(jnp.bfloat16))
            pm = jnp.concatenate(patch_rows, axis=0)             # (h*w, 9*cin)

            y = jnp.dot(pm, wmat, preferred_element_type=jnp.float32)
            y = jnp.maximum(y + bias, 0.0)                       # (h*w, cout) f32

            # 2x2 / stride-2 max pool on the post-ReLU tile; one store per pooled row.
            for ho in range(ho_n):
                r0 = y[(2 * ho) * w:(2 * ho + 1) * w]            # (w, cout)
                r1 = y[(2 * ho + 1) * w:(2 * ho + 2) * w]        # (w, cout)
                vm = jnp.maximum(r0, r1)
                pix = [jnp.maximum(vm[2 * wo:2 * wo + 1],
                                   vm[2 * wo + 1:2 * wo + 2])
                       for wo in range(wo_n)]
                store_row(ho, jnp.concatenate(pix, axis=0))      # (wo_n, cout)

        def rows_from_input(r):
            return x_ref[0, r]

        def rows_from_scratch(p):
            return lambda r: p[r]

        def store_into_scratch(p, wo_n):
            def f(ho, row):                                      # row: (wo_n, cout)
                p[1 + ho, 1:1 + wo_n, :] = row
            return f

        def store_feature(ho, row):                              # row: (wo_n, 256)
            feat_rows.append(jnp.sum(row, axis=0, keepdims=True))

        run_block(0, rows_from_input,         w1, b1, store_into_scratch(pad2, sizes[0] // 2))
        run_block(1, rows_from_scratch(pad2), w2, b2, store_into_scratch(pad3, sizes[1] // 2))
        run_block(2, rows_from_scratch(pad3), w3, b3, store_into_scratch(pad4, sizes[2] // 2))
        run_block(3, rows_from_scratch(pad4), w4, b4, store_feature)

        # AdaptiveAvgPool2d((1,1)) + flatten + Linear (fused head, fc padded to 128).
        n_pix = (sizes[3] // 2) * (sizes[3] // 2)
        feats = feat_rows[0]
        for v in feat_rows[1:]:
            feats = feats + v
        feats = feats * (1.0 / float(n_pix))                     # (1, 256) f32
        logits = jnp.dot(feats.astype(jnp.bfloat16), fcw_ref[...],
                         preferred_element_type=jnp.float32) + fcb_ref[...]
        out_ref[0] = logits                                      # (1, Fpad)

    return kernel


def encoder_forward(x_nchw, params):
    """Forward pass matching Encoder.forward (BatchNorm in eval mode)."""
    x = jnp.transpose(x_nchw, (0, 2, 3, 1)).astype(jnp.float32)   # NCHW -> NHWC
    n, h1, w1_, in_ch = x.shape
    assert h1 == w1_ and h1 % 16 == 0, "spatial size must survive four 2x2 pools"
    xp = jnp.pad(x, ((0, 0), (1, 1), (1, 1), (0, 0)))             # SAME halo, block 1

    blocks = params["blocks_kernel"]           # [(w (9*cin, cout) bf16, bias (1, cout) f32)]
    fcw, fcb = params["fc_w_pad"], params["fc_b_pad"]
    fpad = fcw.shape[-1]
    chans = (in_ch, 32, 64, 128, 256)
    sizes = (h1, h1 // 2, h1 // 4, h1 // 8)

    flat_args = [xp]
    in_specs = [pl.BlockSpec((1, h1 + 2, h1 + 2, in_ch), lambda i: (i, 0, 0, 0))]
    for (wm, bm) in blocks:
        flat_args += [wm, bm]
        in_specs += [pl.BlockSpec(wm.shape, lambda i: (0, 0)),
                     pl.BlockSpec(bm.shape, lambda i: (0, 0))]
    flat_args += [fcw, fcb]
    in_specs += [pl.BlockSpec(fcw.shape, lambda i: (0, 0)),
                 pl.BlockSpec(fcb.shape, lambda i: (0, 0))]

    # Padded inter-block feature maps live entirely in VMEM scratch (~150 KiB).
    scratch = [pltpu.VMEM((sizes[b] // 2 + 2, sizes[b] // 2 + 2, chans[b + 1]),
                          jnp.float32) for b in range(3)]

    out = pl.pallas_call(
        _make_encoder_kernel(in_ch, h1),
        out_shape=jax.ShapeDtypeStruct((n, 1, fpad), jnp.float32),
        grid=(n,),
        in_specs=in_specs,
        out_specs=pl.BlockSpec((1, 1, fpad), lambda i: (i, 0, 0)),
        scratch_shapes=scratch,
        compiler_params=pltpu.CompilerParams(
            dimension_semantics=("parallel",)),   # batch axis -> megacore split
    )(*flat_args)
    return out[:, 0, :params["fc_w"].shape[-1]]


# ------------------------- deterministic parameters ------------------------- #

def init_params(key, in_ch, out_features):
    chans = [in_ch, 32, 64, 128, 256]
    eps = 1e-5
    blocks_kernel, blocks_ref = [], []
    for li in range(4):
        cin, cout = chans[li], chans[li + 1]
        key, kw, kb, kg, kbe, km, kv = jax.random.split(key, 7)
        bound = 1.0 / jnp.sqrt(cin * 9.0)
        w33 = jax.random.uniform(kw, (3, 3, cin, cout), jnp.float32, -bound, bound)
        cbias = jax.random.uniform(kb, (cout,), jnp.float32, -bound, bound)
        gamma = 1.0 + 0.1 * jax.random.normal(kg, (cout,), jnp.float32)
        beta = 0.1 * jax.random.normal(kbe, (cout,), jnp.float32)
        mean = 0.1 * jax.random.normal(km, (cout,), jnp.float32)
        var = jax.random.uniform(kv, (cout,), jnp.float32, 0.5, 1.5)
        scale = gamma / jnp.sqrt(var + eps)               # eval-mode BN fold ...
        bias = (cbias - mean) * scale + beta              # ... conv bias + BN shift
        w_folded = w33 * scale.reshape(1, 1, 1, cout)     # fold BN scale into weights
        w_merged = w_folded.reshape(9 * cin, cout).astype(jnp.bfloat16)
        blocks_kernel.append((w_merged, bias.reshape(1, cout)))
        blocks_ref.append((w33, scale, bias))
    key, kfw, kfb = jax.random.split(key, 3)
    fb = 1.0 / jnp.sqrt(256.0)
    fc_w = jax.random.uniform(kfw, (256, out_features), jnp.float32, -fb, fb)
    fc_b = jax.random.uniform(kfb, (out_features,), jnp.float32, -fb, fb)
    fpad = ((out_features + 127) // 128) * 128            # lane-dense head output
    fc_w_pad = (jnp.zeros((256, fpad), jnp.float32)
                .at[:, :out_features].set(fc_w).astype(jnp.bfloat16))
    fc_b_pad = jnp.zeros((1, fpad), jnp.float32).at[0, :out_features].set(fc_b)
    return {"blocks_kernel": blocks_kernel, "blocks_ref": blocks_ref,
            "fc_w": fc_w, "fc_b": fc_b,
            "fc_w_pad": fc_w_pad, "fc_b_pad": fc_b_pad}


# ------------------------------ pure-JAX reference --------------------------- #

def encoder_reference(x_nchw, params):
    x = jnp.transpose(x_nchw, (0, 2, 3, 1)).astype(jnp.float32)
    for (w33, scale, bias) in params["blocks_ref"]:
        y = lax.conv_general_dilated(
            x, w33, window_strides=(1, 1), padding="SAME",
            dimension_numbers=("NHWC", "HWIO", "NHWC"),
            precision=lax.Precision.HIGHEST)
        y = jnp.maximum(y * scale.reshape(1, 1, 1, -1) + bias.reshape(1, 1, 1, -1), 0.0)
        n, h, w, c = y.shape
        x = y.reshape(n, h // 2, 2, w // 2, 2, c).max(axis=(2, 4))
    feats = jnp.mean(x, axis=(1, 2))
    return jnp.dot(feats, params["fc_w"], precision=lax.Precision.HIGHEST) + params["fc_b"]


if __name__ == "__main__":
    key = jax.random.PRNGKey(0)
    kx, kp = jax.random.split(key)
    x = jax.random.normal(kx, (2, 4, 16, 16), jnp.float32)   # NCHW, as in PyTorch
    params = init_params(kp, in_ch=4, out_features=10)

    out = jax.jit(encoder_forward)(x, params)
    out = jax.block_until_ready(out)
    ref = encoder_reference(x, params)

    assert out.shape == (2, 10), out.shape
    assert bool(jnp.all(jnp.isfinite(out)))
    # bf16 matmul operands with f32 accumulation vs HIGHEST-precision f32 reference.
    assert jnp.allclose(out, ref, rtol=2e-2, atol=2e-2), (out, ref)
    print("KERNEL_OK")
</pallas_src>

<mosaic_0001>
module attributes {stable_mosaic.version = 11 : i64} {
  func.func @kernel(%arg0: i32, %arg1: memref<1x18x18x4xf32, #tpu.memory_space<vmem>>, %arg2: memref<36x32xbf16, #tpu.memory_space<vmem>>, %arg3: memref<1x32xf32, #tpu.memory_space<vmem>>, %arg4: memref<288x64xbf16, #tpu.memory_space<vmem>>, %arg5: memref<1x64xf32, #tpu.memory_space<vmem>>, %arg6: memref<576x128xbf16, #tpu.memory_space<vmem>>, %arg7: memref<1x128xf32, #tpu.memory_space<vmem>>, %arg8: memref<1152x256xbf16, #tpu.memory_space<vmem>>, %arg9: memref<1x256xf32, #tpu.memory_space<vmem>>, %arg10: memref<256x128xbf16, #tpu.memory_space<vmem>>, %arg11: memref<1x128xf32, #tpu.memory_space<vmem>>, %arg12: memref<1x1x128xf32, #tpu.memory_space<vmem>>, %arg13: memref<10x10x32xf32, #tpu.memory_space<vmem>>, %arg14: memref<6x6x64xf32, #tpu.memory_space<vmem>>, %arg15: memref<4x4x128xf32, #tpu.memory_space<vmem>>) attributes {dimension_semantics = [#tpu.dimension_semantics<parallel>], iteration_bounds = array<i64: 2>, scalar_prefetch = 0 : i64, scratch_operands = 3 : i64, tpu.core_type = #tpu.core_type<tc>, window_params = [{transform_indices = @transform_0, window_bounds = array<i64: 1, 18, 18, 4>}, {pipeline_mode = #tpu.pipeline_mode<synchronous>, transform_indices = @transform_1, window_bounds = array<i64: 36, 32>}, {pipeline_mode = #tpu.pipeline_mode<synchronous>, transform_indices = @transform_2, window_bounds = array<i64: 1, 32>}, {pipeline_mode = #tpu.pipeline_mode<synchronous>, transform_indices = @transform_3, window_bounds = array<i64: 288, 64>}, {pipeline_mode = #tpu.pipeline_mode<synchronous>, transform_indices = @transform_4, window_bounds = array<i64: 1, 64>}, {pipeline_mode = #tpu.pipeline_mode<synchronous>, transform_indices = @transform_5, window_bounds = array<i64: 576, 128>}, {pipeline_mode = #tpu.pipeline_mode<synchronous>, transform_indices = @transform_6, window_bounds = array<i64: 1, 128>}, {pipeline_mode = #tpu.pipeline_mode<synchronous>, transform_indices = @transform_7, window_bounds = array<i64: 1152, 256>}, {pipeline_mode = #tpu.pipeline_mode<synchronous>, transform_indices = @transform_8, window_bounds = array<i64: 1, 256>}, {pipeline_mode = #tpu.pipeline_mode<synchronous>, transform_indices = @transform_9, window_bounds = array<i64: 256, 128>}, {pipeline_mode = #tpu.pipeline_mode<synchronous>, transform_indices = @transform_10, window_bounds = array<i64: 1, 128>}, {transform_indices = @transform_11, window_bounds = array<i64: 1, 1, 128>}]} {
    %cst = arith.constant 0.000000e+00 : f32
    %0 = vector.broadcast %cst : f32 to vector<10x10x32xf32>
    %c0 = arith.constant 0 : index
    %c0_0 = arith.constant 0 : index
    %c0_1 = arith.constant 0 : index
    %1 = vector.load %arg13[%c0, %c0_0, %c0_1] : memref<10x10x32xf32, #tpu.memory_space<vmem>>, vector<10x10x32xf32>
    tpu.vector_store %arg13[%c0, %c0_0, %c0_1], %0 {strides = array<i32>} : memref<10x10x32xf32, #tpu.memory_space<vmem>>, vector<10x10x32xf32>,
    %cst_2 = arith.constant 0.000000e+00 : f32
    %2 = vector.broadcast %cst_2 : f32 to vector<6x6x64xf32>
    %c0_3 = arith.constant 0 : index
    %c0_4 = arith.constant 0 : index
    %c0_5 = arith.constant 0 : index
    %3 = vector.load %arg14[%c0_3, %c0_4, %c0_5] : memref<6x6x64xf32, #tpu.memory_space<vmem>>, vector<6x6x64xf32>
    tpu.vector_store %arg14[%c0_3, %c0_4, %c0_5], %2 {strides = array<i32>} : memref<6x6x64xf32, #tpu.memory_space<vmem>>, vector<6x6x64xf32>,
    %cst_6 = arith.constant 0.000000e+00 : f32
    %4 = vector.broadcast %cst_6 : f32 to vector<4x4x128xf32>
    %c0_7 = arith.constant 0 : index
    %c0_8 = arith.constant 0 : index
    %c0_9 = arith.constant 0 : index
    %5 = vector.load %arg15[%c0_7, %c0_8, %c0_9] : memref<4x4x128xf32, #tpu.memory_space<vmem>>, vector<4x4x128xf32>
    tpu.vector_store %arg15[%c0_7, %c0_8, %c0_9], %4 {strides = array<i32>} : memref<4x4x128xf32, #tpu.memory_space<vmem>>, vector<4x4x128xf32>,
    %c0_10 = arith.constant 0 : index
    %c0_11 = arith.constant 0 : index
    %6 = vector.load %arg2[%c0_10, %c0_11] : memref<36x32xbf16, #tpu.memory_space<vmem>>, vector<36x32xbf16>
    %c0_12 = arith.constant 0 : index
    %c0_13 = arith.constant 0 : index
    %7 = vector.load %arg3[%c0_12, %c0_13] : memref<1x32xf32, #tpu.memory_space<vmem>>, vector<1x32xf32>
    %c0_14 = arith.constant 0 : index
    %c0_15 = arith.constant 0 : index
    %c0_16 = arith.constant 0 : index
    %c0_17 = arith.constant 0 : index
    %8 = vector.load %arg1[%c0_14, %c0_15, %c0_16, %c0_17] : memref<1x18x18x4xf32, #tpu.memory_space<vmem>>, vector<1x1x18x4xf32>
    %9 = vector.shape_cast %8 : vector<1x1x18x4xf32> to vector<18x4xf32>
    %c0_18 = arith.constant 0 : index
    %c1 = arith.constant 1 : index
    %c0_19 = arith.constant 0 : index
    %c0_20 = arith.constant 0 : index
    %10 = vector.load %arg1[%c0_18, %c1, %c0_19, %c0_20] : memref<1x18x18x4xf32, #tpu.memory_space<vmem>>, vector<1x1x18x4xf32>
    %11 = vector.shape_cast %10 : vector<1x1x18x4xf32> to vector<18x4xf32>
    %c0_21 = arith.constant 0 : index
    %c2 = arith.constant 2 : index
    %c0_22 = arith.constant 0 : index
    %c0_23 = arith.constant 0 : index
    %12 = vector.load %arg1[%c0_21, %c2, %c0_22, %c0_23] : memref<1x18x18x4xf32, #tpu.memory_space<vmem>>, vector<1x1x18x4xf32>
    %13 = vector.shape_cast %12 : vector<1x1x18x4xf32> to vector<18x4xf32>
    %c0_24 = arith.constant 0 : index
    %c3 = arith.constant 3 : index
    %c0_25 = arith.constant 0 : index
    %c0_26 = arith.constant 0 : index
    %14 = vector.load %arg1[%c0_24, %c3, %c0_25, %c0_26] : memref<1x18x18x4xf32, #tpu.memory_space<vmem>>, vector<1x1x18x4xf32>
    %15 = vector.shape_cast %14 : vector<1x1x18x4xf32> to vector<18x4xf32>
    %c0_27 = arith.constant 0 : index
    %c4 = arith.constant 4 : index
    %c0_28 = arith.constant 0 : index
    %c0_29 = arith.constant 0 : index
    %16 = vector.load %arg1[%c0_27, %c4, %c0_28, %c0_29] : memref<1x18x18x4xf32, #tpu.memory_space<vmem>>, vector<1x1x18x4xf32>
    %17 = vector.shape_cast %16 : vector<1x1x18x4xf32> to vector<18x4xf32>
    %c0_30 = arith.constant 0 : index
    %c5 = arith.constant 5 : index
    %c0_31 = arith.constant 0 : index
    %c0_32 = arith.constant 0 : index
    %18 = vector.load %arg1[%c0_30, %c5, %c0_31, %c0_32] : memref<1x18x18x4xf32, #tpu.memory_space<vmem>>, vector<1x1x18x4xf32>
    %19 = vector.shape_cast %18 : vector<1x1x18x4xf32> to vector<18x4xf32>
    %c0_33 = arith.constant 0 : index
    %c6 = arith.constant 6 : index
    %c0_34 = arith.constant 0 : index
    %c0_35 = arith.constant 0 : index
    %20 = vector.load %arg1[%c0_33, %c6, %c0_34, %c0_35] : memref<1x18x18x4xf32, #tpu.memory_space<vmem>>, vector<1x1x18x4xf32>
    %21 = vector.shape_cast %20 : vector<1x1x18x4xf32> to vector<18x4xf32>
    %c0_36 = arith.constant 0 : index
    %c7 = arith.constant 7 : index
    %c0_37 = arith.constant 0 : index
    %c0_38 = arith.constant 0 : index
    %22 = vector.load %arg1[%c0_36, %c7, %c0_37, %c0_38] : memref<1x18x18x4xf32, #tpu.memory_space<vmem>>, vector<1x1x18x4xf32>
    %23 = vector.shape_cast %22 : vector<1x1x18x4xf32> to vector<18x4xf32>
    %c0_39 = arith.constant 0 : index
    %c8 = arith.constant 8 : index
    %c0_40 = arith.constant 0 : index
    %c0_41 = arith.constant 0 : index
    %24 = vector.load %arg1[%c0_39, %c8, %c0_40, %c0_41] : memref<1x18x18x4xf32, #tpu.memory_space<vmem>>, vector<1x1x18x4xf32>
    %25 = vector.shape_cast %24 : vector<1x1x18x4xf32> to vector<18x4xf32>
    %c0_42 = arith.constant 0 : index
    %c9 = arith.constant 9 : index
    %c0_43 = arith.constant 0 : index
    %c0_44 = arith.constant 0 : index
    %26 = vector.load %arg1[%c0_42, %c9, %c0_43, %c0_44] : memref<1x18x18x4xf32, #tpu.memory_space<vmem>>, vector<1x1x18x4xf32>
    %27 = vector.shape_cast %26 : vector<1x1x18x4xf32> to vector<18x4xf32>
    %c0_45 = arith.constant 0 : index
    %c10 = arith.constant 10 : index
    %c0_46 = arith.constant 0 : index
    %c0_47 = arith.constant 0 : index
    %28 = vector.load %arg1[%c0_45, %c10, %c0_46, %c0_47] : memref<1x18x18x4xf32, #tpu.memory_space<vmem>>, vector<1x1x18x4xf32>
    %29 = vector.shape_cast %28 : vector<1x1x18x4xf32> to vector<18x4xf32>
    %c0_48 = arith.constant 0 : index
    %c11 = arith.constant 11 : index
    %c0_49 = arith.constant 0 : index
    %c0_50 = arith.constant 0 : index
    %30 = vector.load %arg1[%c0_48, %c11, %c0_49, %c0_50] : memref<1x18x18x4xf32, #tpu.memory_space<vmem>>, vector<1x1x18x4xf32>
    %31 = vector.shape_cast %30 : vector<1x1x18x4xf32> to vector<18x4xf32>
    %c0_51 = arith.constant 0 : index
    %c12 = arith.constant 12 : index
    %c0_52 = arith.constant 0 : index
    %c0_53 = arith.constant 0 : index
    %32 = vector.load %arg1[%c0_51, %c12, %c0_52, %c0_53] : memref<1x18x18x4xf32, #tpu.memory_space<vmem>>, vector<1x1x18x4xf32>
    %33 = vector.shape_cast %32 : vector<1x1x18x4xf32> to vector<18x4xf32>
    %c0_54 = arith.constant 0 : index
    %c13 = arith.constant 13 : index
    %c0_55 = arith.constant 0 : index
    %c0_56 = arith.constant 0 : index
    %34 = vector.load %arg1[%c0_54, %c13, %c0_55, %c0_56] : memref<1x18x18x4xf32, #tpu.memory_space<vmem>>, vector<1x1x18x4xf32>
    %35 = vector.shape_cast %34 : vector<1x1x18x4xf32> to vector<18x4xf32>
    %c0_57 = arith.constant 0 : index
    %c14 = arith.constant 14 : index
    %c0_58 = arith.constant 0 : index
    %c0_59 = arith.constant 0 : index
    %36 = vector.load %arg1[%c0_57, %c14, %c0_58, %c0_59] : memref<1x18x18x4xf32, #tpu.memory_space<vmem>>, vector<1x1x18x4xf32>
    %37 = vector.shape_cast %36 : vector<1x1x18x4xf32> to vector<18x4xf32>
    %c0_60 = arith.constant 0 : index
    %c15 = arith.constant 15 : index
    %c0_61 = arith.constant 0 : index
    %c0_62 = arith.constant 0 : index
    %38 = vector.load %arg1[%c0_60, %c15, %c0_61, %c0_62] : memref<1x18x18x4xf32, #tpu.memory_space<vmem>>, vector<1x1x18x4xf32>
    %39 = vector.shape_cast %38 : vector<1x1x18x4xf32> to vector<18x4xf32>
    %c0_63 = arith.constant 0 : index
    %c16 = arith.constant 16 : index
    %c0_64 = arith.constant 0 : index
    %c0_65 = arith.constant 0 : index
    %40 = vector.load %arg1[%c0_63, %c16, %c0_64, %c0_65] : memref<1x18x18x4xf32, #tpu.memory_space<vmem>>, vector<1x1x18x4xf32>
    %41 = vector.shape_cast %40 : vector<1x1x18x4xf32> to vector<18x4xf32>
    %c0_66 = arith.constant 0 : index
    %c17 = arith.constant 17 : index
    %c0_67 = arith.constant 0 : index
    %c0_68 = arith.constant 0 : index
    %42 = vector.load %arg1[%c0_66, %c17, %c0_67, %c0_68] : memref<1x18x18x4xf32, #tpu.memory_space<vmem>>, vector<1x1x18x4xf32>
    %43 = vector.shape_cast %42 : vector<1x1x18x4xf32> to vector<18x4xf32>
    %44 = vector.extract_strided_slice %9 {offsets = [0, 0], sizes = [16, 4], strides = [1, 1]} : vector<18x4xf32> to vector<16x4xf32>
    %45 = vector.extract_strided_slice %9 {offsets = [1, 0], sizes = [16, 4], strides = [1, 1]} : vector<18x4xf32> to vector<16x4xf32>
    %46 = vector.extract_strided_slice %9 {offsets = [2, 0], sizes = [16, 4], strides = [1, 1]} : vector<18x4xf32> to vector<16x4xf32>
    %47 = vector.extract_strided_slice %11 {offsets = [0, 0], sizes = [16, 4], strides = [1, 1]} : vector<18x4xf32> to vector<16x4xf32>
    %48 = vector.extract_strided_slice %11 {offsets = [1, 0], sizes = [16, 4], strides = [1, 1]} : vector<18x4xf32> to vector<16x4xf32>
    %49 = vector.extract_strided_slice %11 {offsets = [2, 0], sizes = [16, 4], strides = [1, 1]} : vector<18x4xf32> to vector<16x4xf32>
    %50 = vector.extract_strided_slice %13 {offsets = [0, 0], sizes = [16, 4], strides = [1, 1]} : vector<18x4xf32> to vector<16x4xf32>
    %51 = vector.extract_strided_slice %13 {offsets = [1, 0], sizes = [16, 4], strides = [1, 1]} : vector<18x4xf32> to vector<16x4xf32>
    %52 = vector.extract_strided_slice %13 {offsets = [2, 0], sizes = [16, 4], strides = [1, 1]} : vector<18x4xf32> to vector<16x4xf32>
    %53 = tpu.concatenate %44, %45, %46, %47, %48, %49, %50, %51, %52 in 1 : vector<16x4xf32>, vector<16x4xf32>, vector<16x4xf32>, vector<16x4xf32>, vector<16x4xf32>, vector<16x4xf32>, vector<16x4xf32>, vector<16x4xf32>, vector<16x4xf32> -> vector<16x36xf32>
    %54 = arith.truncf %53 : vector<16x36xf32> to vector<16x36xbf16>
    %55 = vector.extract_strided_slice %11 {offsets = [0, 0], sizes = [16, 4], strides = [1, 1]} : vector<18x4xf32> to vector<16x4xf32>
    %56 = vector.extract_strided_slice %11 {offsets = [1, 0], sizes = [16, 4], strides = [1, 1]} : vector<18x4xf32> to vector<16x4xf32>
    %57 = vector.extract_strided_slice %11 {offsets = [2, 0], sizes = [16, 4], strides = [1, 1]} : vector<18x4xf32> to vector<16x4xf32>
    %58 = vector.extract_strided_slice %13 {offsets = [0, 0], sizes = [16, 4], strides = [1, 1]} : vector<18x4xf32> to vector<16x4xf32>
    %59 = vector.extract_strided_slice %13 {offsets = [1, 0], sizes = [16, 4], strides = [1, 1]} : vector<18x4xf32> to vector<16x4xf32>
    %60 = vector.extract_strided_slice %13 {offsets = [2, 0], sizes = [16, 4], strides = [1, 1]} : vector<18x4xf32> to vector<16x4xf32>
    %61 = vector.extract_strided_slice %15 {offsets = [0, 0], sizes = [16, 4], strides = [1, 1]} : vector<18x4xf32> to vector<16x4xf32>
    %62 = vector.extract_strided_slice %15 {offsets = [1, 0], sizes = [16, 4], strides = [1, 1]} : vector<18x4xf32> to vector<16x4xf32>
    %63 = vector.extract_strided_slice %15 {offsets = [2, 0], sizes = [16, 4], strides = [1, 1]} : vector<18x4xf32> to vector<16x4xf32>
    %64 = tpu.concatenate %55, %56, %57, %58, %59, %60, %61, %62, %63 in 1 : vector<16x4xf32>, vector<16x4xf32>, vector<16x4xf32>, vector<16x4xf32>, vector<16x4xf32>, vector<16x4xf32>, vector<16x4xf32>, vector<16x4xf32>, vector<16x4xf32> -> vector<16x36xf32>
    %65 = arith.truncf %64 : vector<16x36xf32> to vector<16x36xbf16>
    %66 = vector.extract_strided_slice %13 {offsets = [0, 0], sizes = [16, 4], strides = [1, 1]} : vector<18x4xf32> to vector<16x4xf32>
    %67 = vector.extract_strided_slice %13 {offsets = [1, 0], sizes = [16, 4], strides = [1, 1]} : vector<18x4xf32> to vector<16x4xf32>
    %68 = vector.extract_strided_slice %13 {offsets = [2, 0], sizes = [16, 4], strides = [1, 1]} : vector<18x4xf32> to vector<16x4xf32>
    %69 = vector.extract_strided_slice %15 {offsets = [0, 0], sizes = [16, 4], strides = [1, 1]} : vector<18x4xf32> to vector<16x4xf32>
    %70 = vector.extract_strided_slice %15 {offsets = [1, 0], sizes = [16, 4], strides = [1, 1]} : vector<18x4xf32> to vector<16x4xf32>
    %71 = vector.extract_strided_slice %15 {offsets = [2, 0], sizes = [16, 4], strides = [1, 1]} : vector<18x4xf32> to vector<16x4xf32>
    %72 = vector.extract_strided_slice %17 {offsets = [0, 0], sizes = [16, 4], strides = [1, 1]} : vector<18x4xf32> to vector<16x4xf32>
    %73 = vector.extract_strided_slice %17 {offsets = [1, 0], sizes = [16, 4], strides = [1, 1]} : vector<18x4xf32> to vector<16x4xf32>
    %74 = vector.extract_strided_slice %17 {offsets = [2, 0], sizes = [16, 4], strides = [1, 1]} : vector<18x4xf32> to vector<16x4xf32>
    %75 = tpu.concatenate %66, %67, %68, %69, %70, %71, %72, %73, %74 in 1 : vector<16x4xf32>, vector<16x4xf32>, vector<16x4xf32>, vector<16x4xf32>, vector<16x4xf32>, vector<16x4xf32>, vector<16x4xf32>, vector<16x4xf32>, vector<16x4xf32> -> vector<16x36xf32>
    %76 = arith.truncf %75 : vector<16x36xf32> to vector<16x36xbf16>
    %77 = vector.extract_strided_slice %15 {offsets = [0, 0], sizes = [16, 4], strides = [1, 1]} : vector<18x4xf32> to vector<16x4xf32>
    %78 = vector.extract_strided_slice %15 {offsets = [1, 0], sizes = [16, 4], strides = [1, 1]} : vector<18x4xf32> to vector<16x4xf32>
    %79 = vector.extract_strided_slice %15 {offsets = [2, 0], sizes = [16, 4], strides = [1, 1]} : vector<18x4xf32> to vector<16x4xf32>
    %80 = vector.extract_strided_slice %17 {offsets = [0, 0], sizes = [16, 4], strides = [1, 1]} : vector<18x4xf32> to vector<16x4xf32>
    %81 = vector.extract_strided_slice %17 {offsets = [1, 0], sizes = [16, 4], strides = [1, 1]} : vector<18x4xf32> to vector<16x4xf32>
    %82 = vector.extract_strided_slice %17 {offsets = [2, 0], sizes = [16, 4], strides = [1, 1]} : vector<18x4xf32> to vector<16x4xf32>
    %83 = vector.extract_strided_slice %19 {offsets = [0, 0], sizes = [16, 4], strides = [1, 1]} : vector<18x4xf32> to vector<16x4xf32>
    %84 = vector.extract_strided_slice %19 {offsets = [1, 0], sizes = [16, 4], strides = [1, 1]} : vector<18x4xf32> to vector<16x4xf32>
    %85 = vector.extract_strided_slice %19 {offsets = [2, 0], sizes = [16, 4], strides = [1, 1]} : vector<18x4xf32> to vector<16x4xf32>
    %86 = tpu.concatenate %77, %78, %79, %80, %81, %82, %83, %84, %85 in 1 : vector<16x4xf32>, vector<16x4xf32>, vector<16x4xf32>, vector<16x4xf32>, vector<16x4xf32>, vector<16x4xf32>, vector<16x4xf32>, vector<16x4xf32>, vector<16x4xf32> -> vector<16x36xf32>
    %87 = arith.truncf %86 : vector<16x36xf32> to vector<16x36xbf16>
    %88 = vector.extract_strided_slice %17 {offsets = [0, 0], sizes = [16, 4], strides = [1, 1]} : vector<18x4xf32> to vector<16x4xf32>
    %89 = vector.extract_strided_slice %17 {offsets = [1, 0], sizes = [16, 4], strides = [1, 1]} : vector<18x4xf32> to vector<16x4xf32>
    %90 = vector.extract_strided_slice %17 {offsets = [2, 0], sizes = [16, 4], strides = [1, 1]} : vector<18x4xf32> to vector<16x4xf32>
    %91 = vector.extract_strided_slice %19 {offsets = [0, 0], sizes = [16, 4], strides = [1, 1]} : vector<18x4xf32> to vector<16x4xf32>
    %92 = vector.extract_strided_slice %19 {offsets = [1, 0], sizes = [16, 4], strides = [1, 1]} : vector<18x4xf32> to vector<16x4xf32>
    %93 = vector.extract_strided_slice %19 {offsets = [2, 0], sizes = [16, 4], strides = [1, 1]} : vector<18x4xf32> to vector<16x4xf32>
    %94 = vector.extract_strided_slice %21 {offsets = [0, 0], sizes = [16, 4], strides = [1, 1]} : vector<18x4xf32> to vector<16x4xf32>
    %95 = vector.extract_strided_slice %21 {offsets = [1, 0], sizes = [16, 4], strides = [1, 1]} : vector<18x4xf32> to vector<16x4xf32>
    %96 = vector.extract_strided_slice %21 {offsets = [2, 0], sizes = [16, 4], strides = [1, 1]} : vector<18x4xf32> to vector<16x4xf32>
    %97 = tpu.concatenate %88, %89, %90, %91, %92, %93, %94, %95, %96 in 1 : vector<16x4xf32>, vector<16x4xf32>, vector<16x4xf32>, vector<16x4xf32>, vector<16x4xf32>, vector<16x4xf32>, vector<16x4xf32>, vector<16x4xf32>, vector<16x4xf32> -> vector<16x36xf32>
    %98 = arith.truncf %97 : vector<16x36xf32> to vector<16x36xbf16>
    %99 = vector.extract_strided_slice %19 {offsets = [0, 0], sizes = [16, 4], strides = [1, 1]} : vector<18x4xf32> to vector<16x4xf32>
    %100 = vector.extract_strided_slice %19 {offsets = [1, 0], sizes = [16, 4], strides = [1, 1]} : vector<18x4xf32> to vector<16x4xf32>
    %101 = vector.extract_strided_slice %19 {offsets = [2, 0], sizes = [16, 4], strides = [1, 1]} : vector<18x4xf32> to vector<16x4xf32>
    %102 = vector.extract_strided_slice %21 {offsets = [0, 0], sizes = [16, 4], strides = [1, 1]} : vector<18x4xf32> to vector<16x4xf32>
    %103 = vector.extract_strided_slice %21 {offsets = [1, 0], sizes = [16, 4], strides = [1, 1]} : vector<18x4xf32> to vector<16x4xf32>
    %104 = vector.extract_strided_slice %21 {offsets = [2, 0], sizes = [16, 4], strides = [1, 1]} : vector<18x4xf32> to vector<16x4xf32>
    %105 = vector.extract_strided_slice %23 {offsets = [0, 0], sizes = [16, 4], strides = [1, 1]} : vector<18x4xf32> to vector<16x4xf32>
    %106 = vector.extract_strided_slice %23 {offsets = [1, 0], sizes = [16, 4], strides = [1, 1]} : vector<18x4xf32> to vector<16x4xf32>
    %107 = vector.extract_strided_slice %23 {offsets = [2, 0], sizes = [16, 4], strides = [1, 1]} : vector<18x4xf32> to vector<16x4xf32>
    %108 = tpu.concatenate %99, %100, %101, %102, %103, %104, %105, %106, %107 in 1 : vector<16x4xf32>, vector<16x4xf32>, vector<16x4xf32>, vector<16x4xf32>, vector<16x4xf32>, vector<16x4xf32>, vector<16x4xf32>, vector<16x4xf32>, vector<16x4xf32> -> vector<16x36xf32>
    %109 = arith.truncf %108 : vector<16x36xf32> to vector<16x36xbf16>
    %110 = vector.extract_strided_slice %21 {offsets = [0, 0], sizes = [16, 4], strides = [1, 1]} : vector<18x4xf32> to vector<16x4xf32>
    %111 = vector.extract_strided_slice %21 {offsets = [1, 0], sizes = [16, 4], strides = [1, 1]} : vector<18x4xf32> to vector<16x4xf32>
    %112 = vector.extract_strided_slice %21 {offsets = [2, 0], sizes = [16, 4], strides = [1, 1]} : vector<18x4xf32> to vector<16x4xf32>
    %113 = vector.extract_strided_slice %23 {offsets = [0, 0], sizes = [16, 4], strides = [1, 1]} : vector<18x4xf32> to vector<16x4xf32>
    %114 = vector.extract_strided_slice %23 {offsets = [1, 0], sizes = [16, 4], strides = [1, 1]} : vector<18x4xf32> to vector<16x4xf32>
    %115 = vector.extract_strided_slice %23 {offsets = [2, 0], sizes = [16, 4], strides = [1, 1]} : vector<18x4xf32> to vector<16x4xf32>
    %116 = vector.extract_strided_slice %25 {offsets = [0, 0], sizes = [16, 4], strides = [1, 1]} : vector<18x4xf32> to vector<16x4xf32>
    %117 = vector.extract_strided_slice %25 {offsets = [1, 0], sizes = [16, 4], strides = [1, 1]} : vector<18x4xf32> to vector<16x4xf32>
    %118 = vector.extract_strided_slice %25 {offsets = [2, 0], sizes = [16, 4], strides = [1, 1]} : vector<18x4xf32> to vector<16x4xf32>
    %119 = tpu.concatenate %110, %111, %112, %113, %114, %115, %116, %117, %118 in 1 : vector<16x4xf32>, vector<16x4xf32>, vector<16x4xf32>, vector<16x4xf32>, vector<16x4xf32>, vector<16x4xf32>, vector<16x4xf32>, vector<16x4xf32>, vector<16x4xf32> -> vector<16x36xf32>
    %120 = arith.truncf %119 : vector<16x36xf32> to vector<16x36xbf16>
    %121 = vector.extract_strided_slice %23 {offsets = [0, 0], sizes = [16, 4], strides = [1, 1]} : vector<18x4xf32> to vector<16x4xf32>
    %122 = vector.extract_strided_slice %23 {offsets = [1, 0], sizes = [16, 4], strides = [1, 1]} : vector<18x4xf32> to vector<16x4xf32>
    %123 = vector.extract_strided_slice %23 {offsets = [2, 0], sizes = [16, 4], strides = [1, 1]} : vector<18x4xf32> to vector<16x4xf32>
    %124 = vector.extract_strided_slice %25 {offsets = [0, 0], sizes = [16, 4], strides = [1, 1]} : vector<18x4xf32> to vector<16x4xf32>
    %125 = vector.extract_strided_slice %25 {offsets = [1, 0], sizes = [16, 4], strides = [1, 1]} : vector<18x4xf32> to vector<16x4xf32>
    %126 = vector.extract_strided_slice %25 {offsets = [2, 0], sizes = [16, 4], strides = [1, 1]} : vector<18x4xf32> to vector<16x4xf32>
    %127 = vector.extract_strided_slice %27 {offsets = [0, 0], sizes = [16, 4], strides = [1, 1]} : vector<18x4xf32> to vector<16x4xf32>
    %128 = vector.extract_strided_slice %27 {offsets = [1, 0], sizes = [16, 4], strides = [1, 1]} : vector<18x4xf32> to vector<16x4xf32>
    %129 = vector.extract_strided_slice %27 {offsets = [2, 0], sizes = [16, 4], strides = [1, 1]} : vector<18x4xf32> to vector<16x4xf32>
    %130 = tpu.concatenate %121, %122, %123, %124, %125, %126, %127, %128, %129 in 1 : vector<16x4xf32>, vector<16x4xf32>, vector<16x4xf32>, vector<16x4xf32>, vector<16x4xf32>, vector<16x4xf32>, vector<16x4xf32>, vector<16x4xf32>, vector<16x4xf32> -> vector<16x36xf32>
    %131 = arith.truncf %130 : vector<16x36xf32> to vector<16x36xbf16>
    %132 = vector.extract_strided_slice %25 {offsets = [0, 0], sizes = [16, 4], strides = [1, 1]} : vector<18x4xf32> to vector<16x4xf32>
    %133 = vector.extract_strided_slice %25 {offsets = [1, 0], sizes = [16, 4], strides = [1, 1]} : vector<18x4xf32> to vector<16x4xf32>
    %134 = vector.extract_strided_slice %25 {offsets = [2, 0], sizes = [16, 4], strides = [1, 1]} : vector<18x4xf32> to vector<16x4xf32>
    %135 = vector.extract_strided_slice %27 {offsets = [0, 0], sizes = [16, 4], strides = [1, 1]} : vector<18x4xf32> to vector<16x4xf32>
    %136 = vector.extract_strided_slice %27 {offsets = [1, 0], sizes = [16, 4], strides = [1, 1]} : vector<18x4xf32> to vector<16x4xf32>
    %137 = vector.extract_strided_slice %27 {offsets = [2, 0], sizes = [16, 4], strides = [1, 1]} : vector<18x4xf32> to vector<16x4xf32>
    %138 = vector.extract_strided_slice %29 {offsets = [0, 0], sizes = [16, 4], strides = [1, 1]} : vector<18x4xf32> to vector<16x4xf32>
    %139 = vector.extract_strided_slice %29 {offsets = [1, 0], sizes = [16, 4], strides = [1, 1]} : vector<18x4xf32> to vector<16x4xf32>
    %140 = vector.extract_strided_slice %29 {offsets = [2, 0], sizes = [16, 4], strides = [1, 1]} : vector<18x4xf32> to vector<16x4xf32>
    %141 = tpu.concatenate %132, %133, %134, %135, %136, %137, %138, %139, %140 in 1 : vector<16x4xf32>, vector<16x4xf32>, vector<16x4xf32>, vector<16x4xf32>, vector<16x4xf32>, vector<16x4xf32>, vector<16x4xf32>, vector<16x4xf32>, vector<16x4xf32> -> vector<16x36xf32>
    %142 = arith.truncf %141 : vector<16x36xf32> to vector<16x36xbf16>
    %143 = vector.extract_strided_slice %27 {offsets = [0, 0], sizes = [16, 4], strides = [1, 1]} : vector<18x4xf32> to vector<16x4xf32>
    %144 = vector.extract_strided_slice %27 {offsets = [1, 0], sizes = [16, 4], strides = [1, 1]} : vector<18x4xf32> to vector<16x4xf32>
    %145 = vector.extract_strided_slice %27 {offsets = [2, 0], sizes = [16, 4], strides = [1, 1]} : vector<18x4xf32> to vector<16x4xf32>
    %146 = vector.extract_strided_slice %29 {offsets = [0, 0], sizes = [16, 4], strides = [1, 1]} : vector<18x4xf32> to vector<16x4xf32>
    %147 = vector.extract_strided_slice %29 {offsets = [1, 0], sizes = [16, 4], strides = [1, 1]} : vector<18x4xf32> to vector<16x4xf32>
    %148 = vector.extract_strided_slice %29 {offsets = [2, 0], sizes = [16, 4], strides = [1, 1]} : vector<18x4xf32> to vector<16x4xf32>
    %149 = vector.extract_strided_slice %31 {offsets = [0, 0], sizes = [16, 4], strides = [1, 1]} : vector<18x4xf32> to vector<16x4xf32>
    %150 = vector.extract_strided_slice %31 {offsets = [1, 0], sizes = [16, 4], strides = [1, 1]} : vector<18x4xf32> to vector<16x4xf32>
    %151 = vector.extract_strided_slice %31 {offsets = [2, 0], sizes = [16, 4], strides = [1, 1]} : vector<18x4xf32> to vector<16x4xf32>
    %152 = tpu.concatenate %143, %144, %145, %146, %147, %148, %149, %150, %151 in 1 : vector<16x4xf32>, vector<16x4xf32>, vector<16x4xf32>, vector<16x4xf32>, vector<16x4xf32>, vector<16x4xf32>, vector<16x4xf32>, vector<16x4xf32>, vector<16x4xf32> -> vector<16x36xf32>
    %153 = arith.truncf %152 : vector<16x36xf32> to vector<16x36xbf16>
    %154 = vector.extract_strided_slice %29 {offsets = [0, 0], sizes = [16, 4], strides = [1, 1]} : vector<18x4xf32> to vector<16x4xf32>
    %155 = vector.extract_strided_slice %29 {offsets = [1, 0], sizes = [16, 4], strides = [1, 1]} : vector<18x4xf32> to vector<16x4xf32>
    %156 = vector.extract_strided_slice %29 {offsets = [2, 0], sizes = [16, 4], strides = [1, 1]} : vector<18x4xf32> to vector<16x4xf32>
    %157 = vector.extract_strided_slice %31 {offsets = [0, 0], sizes = [16, 4], strides = [1, 1]} : vector<18x4xf32> to vector<16x4xf32>
    %158 = vector.extract_strided_slice %31 {offsets = [1, 0], sizes = [16, 4], strides = [1, 1]} : vector<18x4xf32> to vector<16x4xf32>
    %159 = vector.extract_strided_slice %31 {offsets = [2, 0], sizes = [16, 4], strides = [1, 1]} : vector<18x4xf32> to vector<16x4xf32>
    %160 = vector.extract_strided_slice %33 {offsets = [0, 0], sizes = [16, 4], strides = [1, 1]} : vector<18x4xf32> to vector<16x4xf32>
    %161 = vector.extract_strided_slice %33 {offsets = [1, 0], sizes = [16, 4], strides = [1, 1]} : vector<18x4xf32> to vector<16x4xf32>
    %162 = vector.extract_strided_slice %33 {offsets = [2, 0], sizes = [16, 4], strides = [1, 1]} : vector<18x4xf32> to vector<16x4xf32>
    %163 = tpu.concatenate %154, %155, %156, %157, %158, %159, %160, %161, %162 in 1 : vector<16x4xf32>, vector<16x4xf32>, vector<16x4xf32>, vector<16x4xf32>, vector<16x4xf32>, vector<16x4xf32>, vector<16x4xf32>, vector<16x4xf32>, vector<16x4xf32> -> vector<16x36xf32>
    %164 = arith.truncf %163 : vector<16x36xf32> to vector<16x36xbf16>
    %165 = vector.extract_strided_slice %31 {offsets = [0, 0], sizes = [16, 4], strides = [1, 1]} : vector<18x4xf32> to vector<16x4xf32>
    %166 = vector.extract_strided_slice %31 {offsets = [1, 0], sizes = [16, 4], strides = [1, 1]} : vector<18x4xf32> to vector<16x4xf32>
    %167 = vector.extract_strided_slice %31 {offsets = [2, 0], sizes = [16, 4], strides = [1, 1]} : vector<18x4xf32> to vector<16x4xf32>
    %168 = vector.extract_strided_slice %33 {offsets = [0, 0], sizes = [16, 4], strides = [1, 1]} : vector<18x4xf32> to vector<16x4xf32>
    %169 = vector.extract_strided_slice %33 {offsets = [1, 0], sizes = [16, 4], strides = [1, 1]} : vector<18x4xf32> to vector<16x4xf32>
    %170 = vector.extract_strided_slice %33 {offsets = [2, 0], sizes = [16, 4], strides = [1, 1]} : vector<18x4xf32> to vector<16x4xf32>
    %171 = vector.extract_strided_slice %35 {offsets = [0, 0], sizes = [16, 4], strides = [1, 1]} : vector<18x4xf32> to vector<16x4xf32>
    %172 = vector.extract_strided_slice %35 {offsets = [1, 0], sizes = [16, 4], strides = [1, 1]} : vector<18x4xf32> to vector<16x4xf32>
    %173 = vector.extract_strided_slice %35 {offsets = [2, 0], sizes = [16, 4], strides = [1, 1]} : vector<18x4xf32> to vector<16x4xf32>
    %174 = tpu.concatenate %165, %166, %167, %168, %169, %170, %171, %172, %173 in 1 : vector<16x4xf32>, vector<16x4xf32>, vector<16x4xf32>, vector<16x4xf32>, vector<16x4xf32>, vector<16x4xf32>, vector<16x4xf32>, vector<16x4xf32>, vector<16x4xf32> -> vector<16x36xf32>
    %175 = arith.truncf %174 : vector<16x36xf32> to vector<16x36xbf16>
    %176 = vector.extract_strided_slice %33 {offsets = [0, 0], sizes = [16, 4], strides = [1, 1]} : vector<18x4xf32> to vector<16x4xf32>
    %177 = vector.extract_strided_slice %33 {offsets = [1, 0], sizes = [16, 4], strides = [1, 1]} : vector<18x4xf32> to vector<16x4xf32>
    %178 = vector.extract_strided_slice %33 {offsets = [2, 0], sizes = [16, 4], strides = [1, 1]} : vector<18x4xf32> to vector<16x4xf32>
    %179 = vector.extract_strided_slice %35 {offsets = [0, 0], sizes = [16, 4], strides = [1, 1]} : vector<18x4xf32> to vector<16x4xf32>
    %180 = vector.extract_strided_slice %35 {offsets = [1, 0], sizes = [16, 4], strides = [1, 1]} : vector<18x4xf32> to vector<16x4xf32>
    %181 = vector.extract_strided_slice %35 {offsets = [2, 0], sizes = [16, 4], strides = [1, 1]} : vector<18x4xf32> to vector<16x4xf32>
    %182 = vector.extract_strided_slice %37 {offsets = [0, 0], sizes = [16, 4], strides = [1, 1]} : vector<18x4xf32> to vector<16x4xf32>
    %183 = vector.extract_strided_slice %37 {offsets = [1, 0], sizes = [16, 4], strides = [1, 1]} : vector<18x4xf32> to vector<16x4xf32>
    %184 = vector.extract_strided_slice %37 {offsets = [2, 0], sizes = [16, 4], strides = [1, 1]} : vector<18x4xf32> to vector<16x4xf32>
    %185 = tpu.concatenate %176, %177, %178, %179, %180, %181, %182, %183, %184 in 1 : vector<16x4xf32>, vector<16x4xf32>, vector<16x4xf32>, vector<16x4xf32>, vector<16x4xf32>, vector<16x4xf32>, vector<16x4xf32>, vector<16x4xf32>, vector<16x4xf32> -> vector<16x36xf32>
    %186 = arith.truncf %185 : vector<16x36xf32> to vector<16x36xbf16>
    %187 = vector.extract_strided_slice %35 {offsets = [0, 0], sizes = [16, 4], strides = [1, 1]} : vector<18x4xf32> to vector<16x4xf32>
    %188 = vector.extract_strided_slice %35 {offsets = [1, 0], sizes = [16, 4], strides = [1, 1]} : vector<18x4xf32> to vector<16x4xf32>
    %189 = vector.extract_strided_slice %35 {offsets = [2, 0], sizes = [16, 4], strides = [1, 1]} : vector<18x4xf32> to vector<16x4xf32>
    %190 = vector.extract_strided_slice %37 {offsets = [0, 0], sizes = [16, 4], strides = [1, 1]} : vector<18x4xf32> to vector<16x4xf32>
    %191 = vector.extract_strided_slice %37 {offsets = [1, 0], sizes = [16, 4], strides = [1, 1]} : vector<18x4xf32> to vector<16x4xf32>
    %192 = vector.extract_strided_slice %37 {offsets = [2, 0], sizes = [16, 4], strides = [1, 1]} : vector<18x4xf32> to vector<16x4xf32>
    %193 = vector.extract_strided_slice %39 {offsets = [0, 0], sizes = [16, 4], strides = [1, 1]} : vector<18x4xf32> to vector<16x4xf32>
    %194 = vector.extract_strided_slice %39 {offsets = [1, 0], sizes = [16, 4], strides = [1, 1]} : vector<18x4xf32> to vector<16x4xf32>
    %195 = vector.extract_strided_slice %39 {offsets = [2, 0], sizes = [16, 4], strides = [1, 1]} : vector<18x4xf32> to vector<16x4xf32>
    %196 = tpu.concatenate %187, %188, %189, %190, %191, %192, %193, %194, %195 in 1 : vector<16x4xf32>, vector<16x4xf32>, vector<16x4xf32>, vector<16x4xf32>, vector<16x4xf32>, vector<16x4xf32>, vector<16x4xf32>, vector<16x4xf32>, vector<16x4xf32> -> vector<16x36xf32>
    %197 = arith.truncf %196 : vector<16x36xf32> to vector<16x36xbf16>
    %198 = vector.extract_strided_slice %37 {offsets = [0, 0], sizes = [16, 4], strides = [1, 1]} : vector<18x4xf32> to vector<16x4xf32>
    %199 = vector.extract_strided_slice %37 {offsets = [1, 0], sizes = [16, 4], strides = [1, 1]} : vector<18x4xf32> to vector<16x4xf32>
    %200 = vector.extract_strided_slice %37 {offsets = [2, 0], sizes = [16, 4], strides = [1, 1]} : vector<18x4xf32> to vector<16x4xf32>
    %201 = vector.extract_strided_slice %39 {offsets = [0, 0], sizes = [16, 4], strides = [1, 1]} : vector<18x4xf32> to vector<16x4xf32>
    %202 = vector.extract_strided_slice %39 {offsets = [1, 0], sizes = [16, 4], strides = [1, 1]} : vector<18x4xf32> to vector<16x4xf32>
    %203 = vector.extract_strided_slice %39 {offsets = [2, 0], sizes = [16, 4], strides = [1, 1]} : vector<18x4xf32> to vector<16x4xf32>
    %204 = vector.extract_strided_slice %41 {offsets = [0, 0], sizes = [16, 4], strides = [1, 1]} : vector<18x4xf32> to vector<16x4xf32>
    %205 = vector.extract_strided_slice %41 {offsets = [1, 0], sizes = [16, 4], strides = [1, 1]} : vector<18x4xf32> to vector<16x4xf32>
    %206 = vector.extract_strided_slice %41 {offsets = [2, 0], sizes = [16, 4], strides = [1, 1]} : vector<18x4xf32> to vector<16x4xf32>
    %207 = tpu.concatenate %198, %199, %200, %201, %202, %203, %204, %205, %206 in 1 : vector<16x4xf32>, vector<16x4xf32>, vector<16x4xf32>, vector<16x4xf32>, vector<16x4xf32>, vector<16x4xf32>, vector<16x4xf32>, vector<16x4xf32>, vector<16x4xf32> -> vector<16x36xf32>
    %208 = arith.truncf %207 : vector<16x36xf32> to vector<16x36xbf16>
    %209 = vector.extract_strided_slice %39 {offsets = [0, 0], sizes = [16, 4], strides = [1, 1]} : vector<18x4xf32> to vector<16x4xf32>
    %210 = vector.extract_strided_slice %39 {offsets = [1, 0], sizes = [16, 4], strides = [1, 1]} : vector<18x4xf32> to vector<16x4xf32>
    %211 = vector.extract_strided_slice %39 {offsets = [2, 0], sizes = [16, 4], strides = [1, 1]} : vector<18x4xf32> to vector<16x4xf32>
    %212 = vector.extract_strided_slice %41 {offsets = [0, 0], sizes = [16, 4], strides = [1, 1]} : vector<18x4xf32> to vector<16x4xf32>
    %213 = vector.extract_strided_slice %41 {offsets = [1, 0], sizes = [16, 4], strides = [1, 1]} : vector<18x4xf32> to vector<16x4xf32>
    %214 = vector.extract_strided_slice %41 {offsets = [2, 0], sizes = [16, 4], strides = [1, 1]} : vector<18x4xf32> to vector<16x4xf32>
    %215 = vector.extract_strided_slice %43 {offsets = [0, 0], sizes = [16, 4], strides = [1, 1]} : vector<18x4xf32> to vector<16x4xf32>
    %216 = vector.extract_strided_slice %43 {offsets = [1, 0], sizes = [16, 4], strides = [1, 1]} : vector<18x4xf32> to vector<16x4xf32>
    %217 = vector.extract_strided_slice %43 {offsets = [2, 0], sizes = [16, 4], strides = [1, 1]} : vector<18x4xf32> to vector<16x4xf32>
    %218 = tpu.concatenate %209, %210, %211, %212, %213, %214, %215, %216, %217 in 1 : vector<16x4xf32>, vector<16x4xf32>, vector<16x4xf32>, vector<16x4xf32>, vector<16x4xf32>, vector<16x4xf32>, vector<16x4xf32>, vector<16x4xf32>, vector<16x4xf32> -> vector<16x36xf32>
    %219 = arith.truncf %218 : vector<16x36xf32> to vector<16x36xbf16>
    %220 = tpu.concatenate %54, %65, %76, %87, %98, %109, %120, %131, %142, %153, %164, %175, %186, %197, %208, %219 in 0 : vector<16x36xbf16>, vector<16x36xbf16>, vector<16x36xbf16>, vector<16x36xbf16>, vector<16x36xbf16>, vector<16x36xbf16>, vector<16x36xbf16>, vector<16x36xbf16>, vector<16x36xbf16>, vector<16x36xbf16>, vector<16x36xbf16>, vector<16x36xbf16>, vector<16x36xbf16>, vector<16x36xbf16>, vector<16x36xbf16>, vector<16x36xbf16> -> vector<256x36xbf16>
    %cst_69 = arith.constant dense<0.000000e+00> : vector<256x32xf32>
    %221 = tpu.matmul %220, %6, %cst_69 {dimension_numbers = #tpu.dot_dimension_numbers<[1], [0], [0], [1], [0, 0, 1, 1], [], []>} : vector<256x36xbf16>, vector<36x32xbf16>, vector<256x32xf32> -> vector<256x32xf32>
    %222 = vector.broadcast %7 : vector<1x32xf32> to vector<256x32xf32>
    %223 = arith.addf %221, %222 : vector<256x32xf32>
    %cst_70 = arith.constant 0.000000e+00 : f32
    %224 = vector.broadcast %cst_70 : f32 to vector<256x32xf32>
    %225 = arith.maximumf %223, %224 : vector<256x32xf32>
    %226 = vector.extract_strided_slice %225 {offsets = [0, 0], sizes = [16, 32], strides = [1, 1]} : vector<256x32xf32> to vector<16x32xf32>
    %227 = vector.extract_strided_slice %225 {offsets = [16, 0], sizes = [16, 32], strides = [1, 1]} : vector<256x32xf32> to vector<16x32xf32>
    %228 = arith.maximumf %226, %227 : vector<16x32xf32>
    %229 = vector.extract_strided_slice %228 {offsets = [0, 0], sizes = [1, 32], strides = [1, 1]} : vector<16x32xf32> to vector<1x32xf32>
    %230 = vector.extract_strided_slice %228 {offsets = [1, 0], sizes = [1, 32], strides = [1, 1]} : vector<16x32xf32> to vector<1x32xf32>
    %231 = arith.maximumf %229, %230 : vector<1x32xf32>
    %232 = vector.extract_strided_slice %228 {offsets = [2, 0], sizes = [1, 32], strides = [1, 1]} : vector<16x32xf32> to vector<1x32xf32>
    %233 = vector.extract_strided_slice %228 {offsets = [3, 0], sizes = [1, 32], strides = [1, 1]} : vector<16x32xf32> to vector<1x32xf32>
    %234 = arith.maximumf %232, %233 : vector<1x32xf32>
    %235 = vector.extract_strided_slice %228 {offsets = [4, 0], sizes = [1, 32], strides = [1, 1]} : vector<16x32xf32> to vector<1x32xf32>
    %236 = vector.extract_strided_slice %228 {offsets = [5, 0], sizes = [1, 32], strides = [1, 1]} : vector<16x32xf32> to vector<1x32xf32>
    %237 = arith.maximumf %235, %236 : vector<1x32xf32>
    %238 = vector.extract_strided_slice %228 {offsets = [6, 0], sizes = [1, 32], strides = [1, 1]} : vector<16x32xf32> to vector<1x32xf32>
    %239 = vector.extract_strided_slice %228 {offsets = [7, 0], sizes = [1, 32], strides = [1, 1]} : vector<16x32xf32> to vector<1x32xf32>
    %240 = arith.maximumf %238, %239 : vector<1x32xf32>
    %241 = vector.extract_strided_slice %228 {offsets = [8, 0], sizes = [1, 32], strides = [1, 1]} : vector<16x32xf32> to vector<1x32xf32>
    %242 = vector.extract_strided_slice %228 {offsets = [9, 0], sizes = [1, 32], strides = [1, 1]} : vector<16x32xf32> to vector<1x32xf32>
    %243 = arith.maximumf %241, %242 : vector<1x32xf32>
    %244 = vector.extract_strided_slice %228 {offsets = [10, 0], sizes = [1, 32], strides = [1, 1]} : vector<16x32xf32> to vector<1x32xf32>
    %245 = vector.extract_strided_slice %228 {offsets = [11, 0], sizes = [1, 32], strides = [1, 1]} : vector<16x32xf32> to vector<1x32xf32>
    %246 = arith.maximumf %244, %245 : vector<1x32xf32>
    %247 = vector.extract_strided_slice %228 {offsets = [12, 0], sizes = [1, 32], strides = [1, 1]} : vector<16x32xf32> to vector<1x32xf32>
    %248 = vector.extract_strided_slice %228 {offsets = [13, 0], sizes = [1, 32], strides = [1, 1]} : vector<16x32xf32> to vector<1x32xf32>
    %249 = arith.maximumf %247, %248 : vector<1x32xf32>
    %250 = vector.extract_strided_slice %228 {offsets = [14, 0], sizes = [1, 32], strides = [1, 1]} : vector<16x32xf32> to vector<1x32xf32>
    %251 = vector.extract_strided_slice %228 {offsets = [15, 0], sizes = [1, 32], strides = [1, 1]} : vector<16x32xf32> to vector<1x32xf32>
    %252 = arith.maximumf %250, %251 : vector<1x32xf32>
    %253 = tpu.concatenate %231, %234, %237, %240, %243, %246, %249, %252 in 0 : vector<1x32xf32>, vector<1x32xf32>, vector<1x32xf32>, vector<1x32xf32>, vector<1x32xf32>, vector<1x32xf32>, vector<1x32xf32>, vector<1x32xf32> -> vector<8x32xf32>
    %c1_71 = arith.constant 1 : index
    %c1_72 = arith.constant 1 : index
    %c0_73 = arith.constant 0 : index
    %254 = vector.load %arg13[%c1_71, %c1_72, %c0_73] : memref<10x10x32xf32, #tpu.memory_space<vmem>>, vector<1x8x32xf32>
    %255 = vector.shape_cast %254 : vector<1x8x32xf32> to vector<8x32xf32>
    %256 = vector.shape_cast %253 : vector<8x32xf32> to vector<1x8x32xf32>
    tpu.vector_store %arg13[%c1_71, %c1_72, %c0_73], %256 {strides = array<i32>} : memref<10x10x32xf32, #tpu.memory_space<vmem>>, vector<1x8x32xf32>,
    %257 = vector.extract_strided_slice %225 {offsets = [32, 0], sizes = [16, 32], strides = [1, 1]} : vector<256x32xf32> to vector<16x32xf32>
    %258 = vector.extract_strided_slice %225 {offsets = [48, 0], sizes = [16, 32], strides = [1, 1]} : vector<256x32xf32> to vector<16x32xf32>
    %259 = arith.maximumf %257, %258 : vector<16x32xf32>
    %260 = vector.extract_strided_slice %259 {offsets = [0, 0], sizes = [1, 32], strides = [1, 1]} : vector<16x32xf32> to vector<1x32xf32>
    %261 = vector.extract_strided_slice %259 {offsets = [1, 0], sizes = [1, 32], strides = [1, 1]} : vector<16x32xf32> to vector<1x32xf32>
    %262 = arith.maximumf %260, %261 : vector<1x32xf32>
    %263 = vector.extract_strided_slice %259 {offsets = [2, 0], sizes = [1, 32], strides = [1, 1]} : vector<16x32xf32> to vector<1x32xf32>
    %264 = vector.extract_strided_slice %259 {offsets = [3, 0], sizes = [1, 32], strides = [1, 1]} : vector<16x32xf32> to vector<1x32xf32>
    %265 = arith.maximumf %263, %264 : vector<1x32xf32>
    %266 = vector.extract_strided_slice %259 {offsets = [4, 0], sizes = [1, 32], strides = [1, 1]} : vector<16x32xf32> to vector<1x32xf32>
    %267 = vector.extract_strided_slice %259 {offsets = [5, 0], sizes = [1, 32], strides = [1, 1]} : vector<16x32xf32> to vector<1x32xf32>
    %268 = arith.maximumf %266, %267 : vector<1x32xf32>
    %269 = vector.extract_strided_slice %259 {offsets = [6, 0], sizes = [1, 32], strides = [1, 1]} : vector<16x32xf32> to vector<1x32xf32>
    %270 = vector.extract_strided_slice %259 {offsets = [7, 0], sizes = [1, 32], strides = [1, 1]} : vector<16x32xf32> to vector<1x32xf32>
    %271 = arith.maximumf %269, %270 : vector<1x32xf32>
    %272 = vector.extract_strided_slice %259 {offsets = [8, 0], sizes = [1, 32], strides = [1, 1]} : vector<16x32xf32> to vector<1x32xf32>
    %273 = vector.extract_strided_slice %259 {offsets = [9, 0], sizes = [1, 32], strides = [1, 1]} : vector<16x32xf32> to vector<1x32xf32>
    %274 = arith.maximumf %272, %273 : vector<1x32xf32>
    %275 = vector.extract_strided_slice %259 {offsets = [10, 0], sizes = [1, 32], strides = [1, 1]} : vector<16x32xf32> to vector<1x32xf32>
    %276 = vector.extract_strided_slice %259 {offsets = [11, 0], sizes = [1, 32], strides = [1, 1]} : vector<16x32xf32> to vector<1x32xf32>
    %277 = arith.maximumf %275, %276 : vector<1x32xf32>
    %278 = vector.extract_strided_slice %259 {offsets = [12, 0], sizes = [1, 32], strides = [1, 1]} : vector<16x32xf32> to vector<1x32xf32>
    %279 = vector.extract_strided_slice %259 {offsets = [13, 0], sizes = [1, 32], strides = [1, 1]} : vector<16x32xf32> to vector<1x32xf32>
    %280 = arith.maximumf %278, %279 : vector<1x32xf32>
    %281 = vector.extract_strided_slice %259 {offsets = [14, 0], sizes = [1, 32], strides = [1, 1]} : vector<16x32xf32> to vector<1x32xf32>
    %282 = vector.extract_strided_slice %259 {offsets = [15, 0], sizes = [1, 32], strides = [1, 1]} : vector<16x32xf32> to vector<1x32xf32>
    %283 = arith.maximumf %281, %282 : vector<1x32xf32>
    %284 = tpu.concatenate %262, %265, %268, %271, %274, %277, %280, %283 in 0 : vector<1x32xf32>, vector<1x32xf32>, vector<1x32xf32>, vector<1x32xf32>, vector<1x32xf32>, vector<1x32xf32>, vector<1x32xf32>, vector<1x32xf32> -> vector<8x32xf32>
    %c2_74 = arith.constant 2 : index
    %c1_75 = arith.constant 1 : index
    %c0_76 = arith.constant 0 : index
    %285 = vector.load %arg13[%c2_74, %c1_75, %c0_76] : memref<10x10x32xf32, #tpu.memory_space<vmem>>, vector<1x8x32xf32>
    %286 = vector.shape_cast %285 : vector<1x8x32xf32> to vector<8x32xf32>
    %287 = vector.shape_cast %284 : vector<8x32xf32> to vector<1x8x32xf32>
    tpu.vector_store %arg13[%c2_74, %c1_75, %c0_76], %287 {strides = array<i32>} : memref<10x10x32xf32, #tpu.memory_space<vmem>>, vector<1x8x32xf32>,
    %288 = vector.extract_strided_slice %225 {offsets = [64, 0], sizes = [16, 32], strides = [1, 1]} : vector<256x32xf32> to vector<16x32xf32>
    %289 = vector.extract_strided_slice %225 {offsets = [80, 0], sizes = [16, 32], strides = [1, 1]} : vector<256x32xf32> to vector<16x32xf32>
    %290 = arith.maximumf %288, %289 : vector<16x32xf32>
    %291 = vector.extract_strided_slice %290 {offsets = [0, 0], sizes = [1, 32], strides = [1, 1]} : vector<16x32xf32> to vector<1x32xf32>
    %292 = vector.extract_strided_slice %290 {offsets = [1, 0], sizes = [1, 32], strides = [1, 1]} : vector<16x32xf32> to vector<1x32xf32>
    %293 = arith.maximumf %291, %292 : vector<1x32xf32>
    %294 = vector.extract_strided_slice %290 {offsets = [2, 0], sizes = [1, 32], strides = [1, 1]} : vector<16x32xf32> to vector<1x32xf32>
    %295 = vector.extract_strided_slice %290 {offsets = [3, 0], sizes = [1, 32], strides = [1, 1]} : vector<16x32xf32> to vector<1x32xf32>
    %296 = arith.maximumf %294, %295 : vector<1x32xf32>
    %297 = vector.extract_strided_slice %290 {offsets = [4, 0], sizes = [1, 32], strides = [1, 1]} : vector<16x32xf32> to vector<1x32xf32>
    %298 = vector.extract_strided_slice %290 {offsets = [5, 0], sizes = [1, 32], strides = [1, 1]} : vector<16x32xf32> to vector<1x32xf32>
    %299 = arith.maximumf %297, %298 : vector<1x32xf32>
    %300 = vector.extract_strided_slice %290 {offsets = [6, 0], sizes = [1, 32], strides = [1, 1]} : vector<16x32xf32> to vector<1x32xf32>
    %301 = vector.extract_strided_slice %290 {offsets = [7, 0], sizes = [1, 32], strides = [1, 1]} : vector<16x32xf32> to vector<1x32xf32>
    %302 = arith.maximumf %300, %301 : vector<1x32xf32>
    %303 = vector.extract_strided_slice %290 {offsets = [8, 0], sizes = [1, 32], strides = [1, 1]} : vector<16x32xf32> to vector<1x32xf32>
    %304 = vector.extract_strided_slice %290 {offsets = [9, 0], sizes = [1, 32], strides = [1, 1]} : vector<16x32xf32> to vector<1x32xf32>
    %305 = arith.maximumf %303, %304 : vector<1x32xf32>
    %306 = vector.extract_strided_slice %290 {offsets = [10, 0], sizes = [1, 32], strides = [1, 1]} : vector<16x32xf32> to vector<1x32xf32>
    %307 = vector.extract_strided_slice %290 {offsets = [11, 0], sizes = [1, 32], strides = [1, 1]} : vector<16x32xf32> to vector<1x32xf32>
    %308 = arith.maximumf %306, %307 : vector<1x32xf32>
    %309 = vector.extract_strided_slice %290 {offsets = [12, 0], sizes = [1, 32], strides = [1, 1]} : vector<16x32xf32> to vector<1x32xf32>
    %310 = vector.extract_strided_slice %290 {offsets = [13, 0], sizes = [1, 32], strides = [1, 1]} : vector<16x32xf32> to vector<1x32xf32>
    %311 = arith.maximumf %309, %310 : vector<1x32xf32>
    %312 = vector.extract_strided_slice %290 {offsets = [14, 0], sizes = [1, 32], strides = [1, 1]} : vector<16x32xf32> to vector<1x32xf32>
    %313 = vector.extract_strided_slice %290 {offsets = [15, 0], sizes = [1, 32], strides = [1, 1]} : vector<16x32xf32> to vector<1x32xf32>
    %314 = arith.maximumf %312, %313 : vector<1x32xf32>
    %315 = tpu.concatenate %293, %296, %299, %302, %305, %308, %311, %314 in 0 : vector<1x32xf32>, vector<1x32xf32>, vector<1x32xf32>, vector<1x32xf32>, vector<1x32xf32>, vector<1x32xf32>, vector<1x32xf32>, vector<1x32xf32> -> vector<8x32xf32>
    %c3_77 = arith.constant 3 : index
    %c1_78 = arith.constant 1 : index
    %c0_79 = arith.constant 0 : index
    %316 = vector.load %arg13[%c3_77, %c1_78, %c0_79] : memref<10x10x32xf32, #tpu.memory_space<vmem>>, vector<1x8x32xf32>
    %317 = vector.shape_cast %316 : vector<1x8x32xf32> to vector<8x32xf32>
    %318 = vector.shape_cast %315 : vector<8x32xf32> to vector<1x8x32xf32>
    tpu.vector_store %arg13[%c3_77, %c1_78, %c0_79], %318 {strides = array<i32>} : memref<10x10x32xf32, #tpu.memory_space<vmem>>, vector<1x8x32xf32>,
    %319 = vector.extract_strided_slice %225 {offsets = [96, 0], sizes = [16, 32], strides = [1, 1]} : vector<256x32xf32> to vector<16x32xf32>
    %320 = vector.extract_strided_slice %225 {offsets = [112, 0], sizes = [16, 32], strides = [1, 1]} : vector<256x32xf32> to vector<16x32xf32>
    %321 = arith.maximumf %319, %320 : vector<16x32xf32>
    %322 = vector.extract_strided_slice %321 {offsets = [0, 0], sizes = [1, 32], strides = [1, 1]} : vector<16x32xf32> to vector<1x32xf32>
    %323 = vector.extract_strided_slice %321 {offsets = [1, 0], sizes = [1, 32], strides = [1, 1]} : vector<16x32xf32> to vector<1x32xf32>
    %324 = arith.maximumf %322, %323 : vector<1x32xf32>
    %325 = vector.extract_strided_slice %321 {offsets = [2, 0], sizes = [1, 32], strides = [1, 1]} : vector<16x32xf32> to vector<1x32xf32>
    %326 = vector.extract_strided_slice %321 {offsets = [3, 0], sizes = [1, 32], strides = [1, 1]} : vector<16x32xf32> to vector<1x32xf32>
    %327 = arith.maximumf %325, %326 : vector<1x32xf32>
    %328 = vector.extract_strided_slice %321 {offsets = [4, 0], sizes = [1, 32], strides = [1, 1]} : vector<16x32xf32> to vector<1x32xf32>
    %329 = vector.extract_strided_slice %321 {offsets = [5, 0], sizes = [1, 32], strides = [1, 1]} : vector<16x32xf32> to vector<1x32xf32>
    %330 = arith.maximumf %328, %329 : vector<1x32xf32>
    %331 = vector.extract_strided_slice %321 {offsets = [6, 0], sizes = [1, 32], strides = [1, 1]} : vector<16x32xf32> to vector<1x32xf32>
    %332 = vector.extract_strided_slice %321 {offsets = [7, 0], sizes = [1, 32], strides = [1, 1]} : vector<16x32xf32> to vector<1x32xf32>
    %333 = arith.maximumf %331, %332 : vector<1x32xf32>
    %334 = vector.extract_strided_slice %321 {offsets = [8, 0], sizes = [1, 32], strides = [1, 1]} : vector<16x32xf32> to vector<1x32xf32>
    %335 = vector.extract_strided_slice %321 {offsets = [9, 0], sizes = [1, 32], strides = [1, 1]} : vector<16x32xf32> to vector<1x32xf32>
    %336 = arith.maximumf %334, %335 : vector<1x32xf32>
    %337 = vector.extract_strided_slice %321 {offsets = [10, 0], sizes = [1, 32], strides = [1, 1]} : vector<16x32xf32> to vector<1x32xf32>
    %338 = vector.extract_strided_slice %321 {offsets = [11, 0], sizes = [1, 32], strides = [1, 1]} : vector<16x32xf32> to vector<1x32xf32>
    %339 = arith.maximumf %337, %338 : vector<1x32xf32>
    %340 = vector.extract_strided_slice %321 {offsets = [12, 0], sizes = [1, 32], strides = [1, 1]} : vector<16x32xf32> to vector<1x32xf32>
    %341 = vector.extract_strided_slice %321 {offsets = [13, 0], sizes = [1, 32], strides = [1, 1]} : vector<16x32xf32> to vector<1x32xf32>
    %342 = arith.maximumf %340, %341 : vector<1x32xf32>
    %343 = vector.extract_strided_slice %321 {offsets = [14, 0], sizes = [1, 32], strides = [1, 1]} : vector<16x32xf32> to vector<1x32xf32>
    %344 = vector.extract_strided_slice %321 {offsets = [15, 0], sizes = [1, 32], strides = [1, 1]} : vector<16x32xf32> to vector<1x32xf32>
    %345 = arith.maximumf %343, %344 : vector<1x32xf32>
    %346 = tpu.concatenate %324, %327, %330, %333, %336, %339, %342, %345 in 0 : vector<1x32xf32>, vector<1x32xf32>, vector<1x32xf32>, vector<1x32xf32>, vector<1x32xf32>, vector<1x32xf32>, vector<1x32xf32>, vector<1x32xf32> -> vector<8x32xf32>
    %c4_80 = arith.constant 4 : index
    %c1_81 = arith.constant 1 : index
    %c0_82 = arith.constant 0 : index
    %347 = vector.load %arg13[%c4_80, %c1_81, %c0_82] : memref<10x10x32xf32, #tpu.memory_space<vmem>>, vector<1x8x32xf32>
    %348 = vector.shape_cast %347 : vector<1x8x32xf32> to vector<8x32xf32>
    %349 = vector.shape_cast %346 : vector<8x32xf32> to vector<1x8x32xf32>
    tpu.vector_store %arg13[%c4_80, %c1_81, %c0_82], %349 {strides = array<i32>} : memref<10x10x32xf32, #tpu.memory_space<vmem>>, vector<1x8x32xf32>,
    %350 = vector.extract_strided_slice %225 {offsets = [128, 0], sizes = [16, 32], strides = [1, 1]} : vector<256x32xf32> to vector<16x32xf32>
    %351 = vector.extract_strided_slice %225 {offsets = [144, 0], sizes = [16, 32], strides = [1, 1]} : vector<256x32xf32> to vector<16x32xf32>
    %352 = arith.maximumf %350, %351 : vector<16x32xf32>
    %353 = vector.extract_strided_slice %352 {offsets = [0, 0], sizes = [1, 32], strides = [1, 1]} : vector<16x32xf32> to vector<1x32xf32>
    %354 = vector.extract_strided_slice %352 {offsets = [1, 0], sizes = [1, 32], strides = [1, 1]} : vector<16x32xf32> to vector<1x32xf32>
    %355 = arith.maximumf %353, %354 : vector<1x32xf32>
    %356 = vector.extract_strided_slice %352 {offsets = [2, 0], sizes = [1, 32], strides = [1, 1]} : vector<16x32xf32> to vector<1x32xf32>
    %357 = vector.extract_strided_slice %352 {offsets = [3, 0], sizes = [1, 32], strides = [1, 1]} : vector<16x32xf32> to vector<1x32xf32>
    %358 = arith.maximumf %356, %357 : vector<1x32xf32>
    %359 = vector.extract_strided_slice %352 {offsets = [4, 0], sizes = [1, 32], strides = [1, 1]} : vector<16x32xf32> to vector<1x32xf32>
    %360 = vector.extract_strided_slice %352 {offsets = [5, 0], sizes = [1, 32], strides = [1, 1]} : vector<16x32xf32> to vector<1x32xf32>
    %361 = arith.maximumf %359, %360 : vector<1x32xf32>
    %362 = vector.extract_strided_slice %352 {offsets = [6, 0], sizes = [1, 32], strides = [1, 1]} : vector<16x32xf32> to vector<1x32xf32>
    %363 = vector.extract_strided_slice %352 {offsets = [7, 0], sizes = [1, 32], strides = [1, 1]} : vector<16x32xf32> to vector<1x32xf32>
    %364 = arith.maximumf %362, %363 : vector<1x32xf32>
    %365 = vector.extract_strided_slice %352 {offsets = [8, 0], sizes = [1, 32], strides = [1, 1]} : vector<16x32xf32> to vector<1x32xf32>
    %366 = vector.extract_strided_slice %352 {offsets = [9, 0], sizes = [1, 32], strides = [1, 1]} : vector<16x32xf32> to vector<1x32xf32>
    %367 = arith.maximumf %365, %366 : vector<1x32xf32>
    %368 = vector.extract_strided_slice %352 {offsets = [10, 0], sizes = [1, 32], strides = [1, 1]} : vector<16x32xf32> to vector<1x32xf32>
    %369 = vector.extract_strided_slice %352 {offsets = [11, 0], sizes = [1, 32], strides = [1, 1]} : vector<16x32xf32> to vector<1x32xf32>
    %370 = arith.maximumf %368, %369 : vector<1x32xf32>
    %371 = vector.extract_strided_slice %352 {offsets = [12, 0], sizes = [1, 32], strides = [1, 1]} : vector<16x32xf32> to vector<1x32xf32>
    %372 = vector.extract_strided_slice %352 {offsets = [13, 0], sizes = [1, 32], strides = [1, 1]} : vector<16x32xf32> to vector<1x32xf32>
    %373 = arith.maximumf %371, %372 : vector<1x32xf32>
    %374 = vector.extract_strided_slice %352 {offsets = [14, 0], sizes = [1, 32], strides = [1, 1]} : vector<16x32xf32> to vector<1x32xf32>
    %375 = vector.extract_strided_slice %352 {offsets = [15, 0], sizes = [1, 32], strides = [1, 1]} : vector<16x32xf32> to vector<1x32xf32>
    %376 = arith.maximumf %374, %375 : vector<1x32xf32>
    %377 = tpu.concatenate %355, %358, %361, %364, %367, %370, %373, %376 in 0 : vector<1x32xf32>, vector<1x32xf32>, vector<1x32xf32>, vector<1x32xf32>, vector<1x32xf32>, vector<1x32xf32>, vector<1x32xf32>, vector<1x32xf32> -> vector<8x32xf32>
    %c5_83 = arith.constant 5 : index
    %c1_84 = arith.constant 1 : index
    %c0_85 = arith.constant 0 : index
    %378 = vector.load %arg13[%c5_83, %c1_84, %c0_85] : memref<10x10x32xf32, #tpu.memory_space<vmem>>, vector<1x8x32xf32>
    %379 = vector.shape_cast %378 : vector<1x8x32xf32> to vector<8x32xf32>
    %380 = vector.shape_cast %377 : vector<8x32xf32> to vector<1x8x32xf32>
    tpu.vector_store %arg13[%c5_83, %c1_84, %c0_85], %380 {strides = array<i32>} : memref<10x10x32xf32, #tpu.memory_space<vmem>>, vector<1x8x32xf32>,
    %381 = vector.extract_strided_slice %225 {offsets = [160, 0], sizes = [16, 32], strides = [1, 1]} : vector<256x32xf32> to vector<16x32xf32>
    %382 = vector.extract_strided_slice %225 {offsets = [176, 0], sizes = [16, 32], strides = [1, 1]} : vector<256x32xf32> to vector<16x32xf32>
    %383 = arith.maximumf %381, %382 : vector<16x32xf32>
    %384 = vector.extract_strided_slice %383 {offsets = [0, 0], sizes = [1, 32], strides = [1, 1]} : vector<16x32xf32> to vector<1x32xf32>
    %385 = vector.extract_strided_slice %383 {offsets = [1, 0], sizes = [1, 32], strides = [1, 1]} : vector<16x32xf32> to vector<1x32xf32>
    %386 = arith.maximumf %384, %385 : vector<1x32xf32>
    %387 = vector.extract_strided_slice %383 {offsets = [2, 0], sizes = [1, 32], strides = [1, 1]} : vector<16x32xf32> to vector<1x32xf32>
    %388 = vector.extract_strided_slice %383 {offsets = [3, 0], sizes = [1, 32], strides = [1, 1]} : vector<16x32xf32> to vector<1x32xf32>
    %389 = arith.maximumf %387, %388 : vector<1x32xf32>
    %390 = vector.extract_strided_slice %383 {offsets = [4, 0], sizes = [1, 32], strides = [1, 1]} : vector<16x32xf32> to vector<1x32xf32>
    %391 = vector.extract_strided_slice %383 {offsets = [5, 0], sizes = [1, 32], strides = [1, 1]} : vector<16x32xf32> to vector<1x32xf32>
    %392 = arith.maximumf %390, %391 : vector<1x32xf32>
    %393 = vector.extract_strided_slice %383 {offsets = [6, 0], sizes = [1, 32], strides = [1, 1]} : vector<16x32xf32> to vector<1x32xf32>
    %394 = vector.extract_strided_slice %383 {offsets = [7, 0], sizes = [1, 32], strides = [1, 1]} : vector<16x32xf32> to vector<1x32xf32>
    %395 = arith.maximumf %393, %394 : vector<1x32xf32>
    %396 = vector.extract_strided_slice %383 {offsets = [8, 0], sizes = [1, 32], strides = [1, 1]} : vector<16x32xf32> to vector<1x32xf32>
    %397 = vector.extract_strided_slice %383 {offsets = [9, 0], sizes = [1, 32], strides = [1, 1]} : vector<16x32xf32> to vector<1x32xf32>
    %398 = arith.maximumf %396, %397 : vector<1x32xf32>
    %399 = vector.extract_strided_slice %383 {offsets = [10, 0], sizes = [1, 32], strides = [1, 1]} : vector<16x32xf32> to vector<1x32xf32>
    %400 = vector.extract_strided_slice %383 {offsets = [11, 0], sizes = [1, 32], strides = [1, 1]} : vector<16x32xf32> to vector<1x32xf32>
    %401 = arith.maximumf %399, %400 : vector<1x32xf32>
    %402 = vector.extract_strided_slice %383 {offsets = [12, 0], sizes = [1, 32], strides = [1, 1]} : vector<16x32xf32> to vector<1x32xf32>
    %403 = vector.extract_strided_slice %383 {offsets = [13, 0], sizes = [1, 32], strides = [1, 1]} : vector<16x32xf32> to vector<1x32xf32>
    %404 = arith.maximumf %402, %403 : vector<1x32xf32>
    %405 = vector.extract_strided_slice %383 {offsets = [14, 0], sizes = [1, 32], strides = [1, 1]} : vector<16x32xf32> to vector<1x32xf32>
    %406 = vector.extract_strided_slice %383 {offsets = [15, 0], sizes = [1, 32], strides = [1, 1]} : vector<16x32xf32> to vector<1x32xf32>
    %407 = arith.maximumf %405, %406 : vector<1x32xf32>
    %408 = tpu.concatenate %386, %389, %392, %395, %398, %401, %404, %407 in 0 : vector<1x32xf32>, vector<1x32xf32>, vector<1x32xf32>, vector<1x32xf32>, vector<1x32xf32>, vector<1x32xf32>, vector<1x32xf32>, vector<1x32xf32> -> vector<8x32xf32>
    %c6_86 = arith.constant 6 : index
    %c1_87 = arith.constant 1 : index
    %c0_88 = arith.constant 0 : index
    %409 = vector.load %arg13[%c6_86, %c1_87, %c0_88] : memref<10x10x32xf32, #tpu.memory_space<vmem>>, vector<1x8x32xf32>
    %410 = vector.shape_cast %409 : vector<1x8x32xf32> to vector<8x32xf32>
    %411 = vector.shape_cast %408 : vector<8x32xf32> to vector<1x8x32xf32>
    tpu.vector_store %arg13[%c6_86, %c1_87, %c0_88], %411 {strides = array<i32>} : memref<10x10x32xf32, #tpu.memory_space<vmem>>, vector<1x8x32xf32>,
    %412 = vector.extract_strided_slice %225 {offsets = [192, 0], sizes = [16, 32], strides = [1, 1]} : vector<256x32xf32> to vector<16x32xf32>
    %413 = vector.extract_strided_slice %225 {offsets = [208, 0], sizes = [16, 32], strides = [1, 1]} : vector<256x32xf32> to vector<16x32xf32>
    %414 = arith.maximumf %412, %413 : vector<16x32xf32>
    %415 = vector.extract_strided_slice %414 {offsets = [0, 0], sizes = [1, 32], strides = [1, 1]} : vector<16x32xf32> to vector<1x32xf32>
    %416 = vector.extract_strided_slice %414 {offsets = [1, 0], sizes = [1, 32], strides = [1, 1]} : vector<16x32xf32> to vector<1x32xf32>
    %417 = arith.maximumf %415, %416 : vector<1x32xf32>
    %418 = vector.extract_strided_slice %414 {offsets = [2, 0], sizes = [1, 32], strides = [1, 1]} : vector<16x32xf32> to vector<1x32xf32>
    %419 = vector.extract_strided_slice %414 {offsets = [3, 0], sizes = [1, 32], strides = [1, 1]} : vector<16x32xf32> to vector<1x32xf32>
    %420 = arith.maximumf %418, %419 : vector<1x32xf32>
    %421 = vector.extract_strided_slice %414 {offsets = [4, 0], sizes = [1, 32], strides = [1, 1]} : vector<16x32xf32> to vector<1x32xf32>
    %422 = vector.extract_strided_slice %414 {offsets = [5, 0], sizes = [1, 32], strides = [1, 1]} : vector<16x32xf32> to vector<1x32xf32>
    %423 = arith.maximumf %421, %422 : vector<1x32xf32>
    %424 = vector.extract_strided_slice %414 {offsets = [6, 0], sizes = [1, 32], strides = [1, 1]} : vector<16x32xf32> to vector<1x32xf32>
    %425 = vector.extract_strided_slice %414 {offsets = [7, 0], sizes = [1, 32], strides = [1, 1]} : vector<16x32xf32> to vector<1x32xf32>
    %426 = arith.maximumf %424, %425 : vector<1x32xf32>
    %427 = vector.extract_strided_slice %414 {offsets = [8, 0], sizes = [1, 32], strides = [1, 1]} : vector<16x32xf32> to vector<1x32xf32>
    %428 = vector.extract_strided_slice %414 {offsets = [9, 0], sizes = [1, 32], strides = [1, 1]} : vector<16x32xf32> to vector<1x32xf32>
    %429 = arith.maximumf %427, %428 : vector<1x32xf32>
    %430 = vector.extract_strided_slice %414 {offsets = [10, 0], sizes = [1, 32], strides = [1, 1]} : vector<16x32xf32> to vector<1x32xf32>
    %431 = vector.extract_strided_slice %414 {offsets = [11, 0], sizes = [1, 32], strides = [1, 1]} : vector<16x32xf32> to vector<1x32xf32>
    %432 = arith.maximumf %430, %431 : vector<1x32xf32>
    %433 = vector.extract_strided_slice %414 {offsets = [12, 0], sizes = [1, 32], strides = [1, 1]} : vector<16x32xf32> to vector<1x32xf32>
    %434 = vector.extract_strided_slice %414 {offsets = [13, 0], sizes = [1, 32], strides = [1, 1]} : vector<16x32xf32> to vector<1x32xf32>
    %435 = arith.maximumf %433, %434 : vector<1x32xf32>
    %436 = vector.extract_strided_slice %414 {offsets = [14, 0], sizes = [1, 32], strides = [1, 1]} : vector<16x32xf32> to vector<1x32xf32>
    %437 = vector.extract_strided_slice %414 {offsets = [15, 0], sizes = [1, 32], strides = [1, 1]} : vector<16x32xf32> to vector<1x32xf32>
    %438 = arith.maximumf %436, %437 : vector<1x32xf32>
    %439 = tpu.concatenate %417, %420, %423, %426, %429, %432, %435, %438 in 0 : vector<1x32xf32>, vector<1x32xf32>, vector<1x32xf32>, vector<1x32xf32>, vector<1x32xf32>, vector<1x32xf32>, vector<1x32xf32>, vector<1x32xf32> -> vector<8x32xf32>
    %c7_89 = arith.constant 7 : index
    %c1_90 = arith.constant 1 : index
    %c0_91 = arith.constant 0 : index
    %440 = vector.load %arg13[%c7_89, %c1_90, %c0_91] : memref<10x10x32xf32, #tpu.memory_space<vmem>>, vector<1x8x32xf32>
    %441 = vector.shape_cast %440 : vector<1x8x32xf32> to vector<8x32xf32>
    %442 = vector.shape_cast %439 : vector<8x32xf32> to vector<1x8x32xf32>
    tpu.vector_store %arg13[%c7_89, %c1_90, %c0_91], %442 {strides = array<i32>} : memref<10x10x32xf32, #tpu.memory_space<vmem>>, vector<1x8x32xf32>,
    %443 = vector.extract_strided_slice %225 {offsets = [224, 0], sizes = [16, 32], strides = [1, 1]} : vector<256x32xf32> to vector<16x32xf32>
    %444 = vector.extract_strided_slice %225 {offsets = [240, 0], sizes = [16, 32], strides = [1, 1]} : vector<256x32xf32> to vector<16x32xf32>
    %445 = arith.maximumf %443, %444 : vector<16x32xf32>
    %446 = vector.extract_strided_slice %445 {offsets = [0, 0], sizes = [1, 32], strides = [1, 1]} : vector<16x32xf32> to vector<1x32xf32>
    %447 = vector.extract_strided_slice %445 {offsets = [1, 0], sizes = [1, 32], strides = [1, 1]} : vector<16x32xf32> to vector<1x32xf32>
    %448 = arith.maximumf %446, %447 : vector<1x32xf32>
    %449 = vector.extract_strided_slice %445 {offsets = [2, 0], sizes = [1, 32], strides = [1, 1]} : vector<16x32xf32> to vector<1x32xf32>
    %450 = vector.extract_strided_slice %445 {offsets = [3, 0], sizes = [1, 32], strides = [1, 1]} : vector<16x32xf32> to vector<1x32xf32>
    %451 = arith.maximumf %449, %450 : vector<1x32xf32>
    %452 = vector.extract_strided_slice %445 {offsets = [4, 0], sizes = [1, 32], strides = [1, 1]} : vector<16x32xf32> to vector<1x32xf32>
    %453 = vector.extract_strided_slice %445 {offsets = [5, 0], sizes = [1, 32], strides = [1, 1]} : vector<16x32xf32> to vector<1x32xf32>
    %454 = arith.maximumf %452, %453 : vector<1x32xf32>
    %455 = vector.extract_strided_slice %445 {offsets = [6, 0], sizes = [1, 32], strides = [1, 1]} : vector<16x32xf32> to vector<1x32xf32>
    %456 = vector.extract_strided_slice %445 {offsets = [7, 0], sizes = [1, 32], strides = [1, 1]} : vector<16x32xf32> to vector<1x32xf32>
    %457 = arith.maximumf %455, %456 : vector<1x32xf32>
    %458 = vector.extract_strided_slice %445 {offsets = [8, 0], sizes = [1, 32], strides = [1, 1]} : vector<16x32xf32> to vector<1x32xf32>
    %459 = vector.extract_strided_slice %445 {offsets = [9, 0], sizes = [1, 32], strides = [1, 1]} : vector<16x32xf32> to vector<1x32xf32>
    %460 = arith.maximumf %458, %459 : vector<1x32xf32>
    %461 = vector.extract_strided_slice %445 {offsets = [10, 0], sizes = [1, 32], strides = [1, 1]} : vector<16x32xf32> to vector<1x32xf32>
    %462 = vector.extract_strided_slice %445 {offsets = [11, 0], sizes = [1, 32], strides = [1, 1]} : vector<16x32xf32> to vector<1x32xf32>
    %463 = arith.maximumf %461, %462 : vector<1x32xf32>
    %464 = vector.extract_strided_slice %445 {offsets = [12, 0], sizes = [1, 32], strides = [1, 1]} : vector<16x32xf32> to vector<1x32xf32>
    %465 = vector.extract_strided_slice %445 {offsets = [13, 0], sizes = [1, 32], strides = [1, 1]} : vector<16x32xf32> to vector<1x32xf32>
    %466 = arith.maximumf %464, %465 : vector<1x32xf32>
    %467 = vector.extract_strided_slice %445 {offsets = [14, 0], sizes = [1, 32], strides = [1, 1]} : vector<16x32xf32> to vector<1x32xf32>
    %468 = vector.extract_strided_slice %445 {offsets = [15, 0], sizes = [1, 32], strides = [1, 1]} : vector<16x32xf32> to vector<1x32xf32>
    %469 = arith.maximumf %467, %468 : vector<1x32xf32>
    %470 = tpu.concatenate %448, %451, %454, %457, %460, %463, %466, %469 in 0 : vector<1x32xf32>, vector<1x32xf32>, vector<1x32xf32>, vector<1x32xf32>, vector<1x32xf32>, vector<1x32xf32>, vector<1x32xf32>, vector<1x32xf32> -> vector<8x32xf32>
    %c8_92 = arith.constant 8 : index
    %c1_93 = arith.constant 1 : index
    %c0_94 = arith.constant 0 : index
    %471 = vector.load %arg13[%c8_92, %c1_93, %c0_94] : memref<10x10x32xf32, #tpu.memory_space<vmem>>, vector<1x8x32xf32>
    %472 = vector.shape_cast %471 : vector<1x8x32xf32> to vector<8x32xf32>
    %473 = vector.shape_cast %470 : vector<8x32xf32> to vector<1x8x32xf32>
    tpu.vector_store %arg13[%c8_92, %c1_93, %c0_94], %473 {strides = array<i32>} : memref<10x10x32xf32, #tpu.memory_space<vmem>>, vector<1x8x32xf32>,
    %c0_95 = arith.constant 0 : index
    %c0_96 = arith.constant 0 : index
    %474 = vector.load %arg4[%c0_95, %c0_96] : memref<288x64xbf16, #tpu.memory_space<vmem>>, vector<288x64xbf16>
    %c0_97 = arith.constant 0 : index
    %c0_98 = arith.constant 0 : index
    %475 = vector.load %arg5[%c0_97, %c0_98] : memref<1x64xf32, #tpu.memory_space<vmem>>, vector<1x64xf32>
    %c0_99 = arith.constant 0 : index
    %c0_100 = arith.constant 0 : index
    %c0_101 = arith.constant 0 : index
    %476 = vector.load %arg13[%c0_99, %c0_100, %c0_101] : memref<10x10x32xf32, #tpu.memory_space<vmem>>, vector<1x10x32xf32>
    %477 = vector.shape_cast %476 : vector<1x10x32xf32> to vector<10x32xf32>
    %c1_102 = arith.constant 1 : index
    %c0_103 = arith.constant 0 : index
    %c0_104 = arith.constant 0 : index
    %478 = vector.load %arg13[%c1_102, %c0_103, %c0_104] : memref<10x10x32xf32, #tpu.memory_space<vmem>>, vector<1x10x32xf32>
    %479 = vector.shape_cast %478 : vector<1x10x32xf32> to vector<10x32xf32>
    %c2_105 = arith.constant 2 : index
    %c0_106 = arith.constant 0 : index
    %c0_107 = arith.constant 0 : index
    %480 = vector.load %arg13[%c2_105, %c0_106, %c0_107] : memref<10x10x32xf32, #tpu.memory_space<vmem>>, vector<1x10x32xf32>
    %481 = vector.shape_cast %480 : vector<1x10x32xf32> to vector<10x32xf32>
    %c3_108 = arith.constant 3 : index
    %c0_109 = arith.constant 0 : index
    %c0_110 = arith.constant 0 : index
    %482 = vector.load %arg13[%c3_108, %c0_109, %c0_110] : memref<10x10x32xf32, #tpu.memory_space<vmem>>, vector<1x10x32xf32>
    %483 = vector.shape_cast %482 : vector<1x10x32xf32> to vector<10x32xf32>
    %c4_111 = arith.constant 4 : index
    %c0_112 = arith.constant 0 : index
    %c0_113 = arith.constant 0 : index
    %484 = vector.load %arg13[%c4_111, %c0_112, %c0_113] : memref<10x10x32xf32, #tpu.memory_space<vmem>>, vector<1x10x32xf32>
    %485 = vector.shape_cast %484 : vector<1x10x32xf32> to vector<10x32xf32>
    %c5_114 = arith.constant 5 : index
    %c0_115 = arith.constant 0 : index
    %c0_116 = arith.constant 0 : index
    %486 = vector.load %arg13[%c5_114, %c0_115, %c0_116] : memref<10x10x32xf32, #tpu.memory_space<vmem>>, vector<1x10x32xf32>
    %487 = vector.shape_cast %486 : vector<1x10x32xf32> to vector<10x32xf32>
    %c6_117 = arith.constant 6 : index
    %c0_118 = arith.constant 0 : index
    %c0_119 = arith.constant 0 : index
    %488 = vector.load %arg13[%c6_117, %c0_118, %c0_119] : memref<10x10x32xf32, #tpu.memory_space<vmem>>, vector<1x10x32xf32>
    %489 = vector.shape_cast %488 : vector<1x10x32xf32> to vector<10x32xf32>
    %c7_120 = arith.constant 7 : index
    %c0_121 = arith.constant 0 : index
    %c0_122 = arith.constant 0 : index
    %490 = vector.load %arg13[%c7_120, %c0_121, %c0_122] : memref<10x10x32xf32, #tpu.memory_space<vmem>>, vector<1x10x32xf32>
    %491 = vector.shape_cast %490 : vector<1x10x32xf32> to vector<10x32xf32>
    %c8_123 = arith.constant 8 : index
    %c0_124 = arith.constant 0 : index
    %c0_125 = arith.constant 0 : index
    %492 = vector.load %arg13[%c8_123, %c0_124, %c0_125] : memref<10x10x32xf32, #tpu.memory_space<vmem>>, vector<1x10x32xf32>
    %493 = vector.shape_cast %492 : vector<1x10x32xf32> to vector<10x32xf32>
    %c9_126 = arith.constant 9 : index
    %c0_127 = arith.constant 0 : index
    %c0_128 = arith.constant 0 : index
    %494 = vector.load %arg13[%c9_126, %c0_127, %c0_128] : memref<10x10x32xf32, #tpu.memory_space<vmem>>, vector<1x10x32xf32>
    %495 = vector.shape_cast %494 : vector<1x10x32xf32> to vector<10x32xf32>
    %496 = vector.extract_strided_slice %477 {offsets = [0, 0], sizes = [8, 32], strides = [1, 1]} : vector<10x32xf32> to vector<8x32xf32>
    %497 = vector.extract_strided_slice %477 {offsets = [1, 0], sizes = [8, 32], strides = [1, 1]} : vector<10x32xf32> to vector<8x32xf32>
    %498 = vector.extract_strided_slice %477 {offsets = [2, 0], sizes = [8, 32], strides = [1, 1]} : vector<10x32xf32> to vector<8x32xf32>
    %499 = vector.extract_strided_slice %479 {offsets = [0, 0], sizes = [8, 32], strides = [1, 1]} : vector<10x32xf32> to vector<8x32xf32>
    %500 = vector.extract_strided_slice %479 {offsets = [1, 0], sizes = [8, 32], strides = [1, 1]} : vector<10x32xf32> to vector<8x32xf32>
    %501 = vector.extract_strided_slice %479 {offsets = [2, 0], sizes = [8, 32], strides = [1, 1]} : vector<10x32xf32> to vector<8x32xf32>
    %502 = vector.extract_strided_slice %481 {offsets = [0, 0], sizes = [8, 32], strides = [1, 1]} : vector<10x32xf32> to vector<8x32xf32>
    %503 = vector.extract_strided_slice %481 {offsets = [1, 0], sizes = [8, 32], strides = [1, 1]} : vector<10x32xf32> to vector<8x32xf32>
    %504 = vector.extract_strided_slice %481 {offsets = [2, 0], sizes = [8, 32], strides = [1, 1]} : vector<10x32xf32> to vector<8x32xf32>
    %505 = tpu.concatenate %496, %497, %498, %499, %500, %501, %502, %503, %504 in 1 : vector<8x32xf32>, vector<8x32xf32>, vector<8x32xf32>, vector<8x32xf32>, vector<8x32xf32>, vector<8x32xf32>, vector<8x32xf32>, vector<8x32xf32>, vector<8x32xf32> -> vector<8x288xf32>
    %506 = arith.truncf %505 : vector<8x288xf32> to vector<8x288xbf16>
    %507 = vector.extract_strided_slice %479 {offsets = [0, 0], sizes = [8, 32], strides = [1, 1]} : vector<10x32xf32> to vector<8x32xf32>
    %508 = vector.extract_strided_slice %479 {offsets = [1, 0], sizes = [8, 32], strides = [1, 1]} : vector<10x32xf32> to vector<8x32xf32>
    %509 = vector.extract_strided_slice %479 {offsets = [2, 0], sizes = [8, 32], strides = [1, 1]} : vector<10x32xf32> to vector<8x32xf32>
    %510 = vector.extract_strided_slice %481 {offsets = [0, 0], sizes = [8, 32], strides = [1, 1]} : vector<10x32xf32> to vector<8x32xf32>
    %511 = vector.extract_strided_slice %481 {offsets = [1, 0], sizes = [8, 32], strides = [1, 1]} : vector<10x32xf32> to vector<8x32xf32>
    %512 = vector.extract_strided_slice %481 {offsets = [2, 0], sizes = [8, 32], strides = [1, 1]} : vector<10x32xf32> to vector<8x32xf32>
    %513 = vector.extract_strided_slice %483 {offsets = [0, 0], sizes = [8, 32], strides = [1, 1]} : vector<10x32xf32> to vector<8x32xf32>
    %514 = vector.extract_strided_slice %483 {offsets = [1, 0], sizes = [8, 32], strides = [1, 1]} : vector<10x32xf32> to vector<8x32xf32>
    %515 = vector.extract_strided_slice %483 {offsets = [2, 0], sizes = [8, 32], strides = [1, 1]} : vector<10x32xf32> to vector<8x32xf32>
    %516 = tpu.concatenate %507, %508, %509, %510, %511, %512, %513, %514, %515 in 1 : vector<8x32xf32>, vector<8x32xf32>, vector<8x32xf32>, vector<8x32xf32>, vector<8x32xf32>, vector<8x32xf32>, vector<8x32xf32>, vector<8x32xf32>, vector<8x32xf32> -> vector<8x288xf32>
    %517 = arith.truncf %516 : vector<8x288xf32> to vector<8x288xbf16>
    %518 = vector.extract_strided_slice %481 {offsets = [0, 0], sizes = [8, 32], strides = [1, 1]} : vector<10x32xf32> to vector<8x32xf32>
    %519 = vector.extract_strided_slice %481 {offsets = [1, 0], sizes = [8, 32], strides = [1, 1]} : vector<10x32xf32> to vector<8x32xf32>
    %520 = vector.extract_strided_slice %481 {offsets = [2, 0], sizes = [8, 32], strides = [1, 1]} : vector<10x32xf32> to vector<8x32xf32>
    %521 = vector.extract_strided_slice %483 {offsets = [0, 0], sizes = [8, 32], strides = [1, 1]} : vector<10x32xf32> to vector<8x32xf32>
    %522 = vector.extract_strided_slice %483 {offsets = [1, 0], sizes = [8, 32], strides = [1, 1]} : vector<10x32xf32> to vector<8x32xf32>
    %523 = vector.extract_strided_slice %483 {offsets = [2, 0], sizes = [8, 32], strides = [1, 1]} : vector<10x32xf32> to vector<8x32xf32>
    %524 = vector.extract_strided_slice %485 {offsets = [0, 0], sizes = [8, 32], strides = [1, 1]} : vector<10x32xf32> to vector<8x32xf32>
    %525 = vector.extract_strided_slice %485 {offsets = [1, 0], sizes = [8, 32], strides = [1, 1]} : vector<10x32xf32> to vector<8x32xf32>
    %526 = vector.extract_strided_slice %485 {offsets = [2, 0], sizes = [8, 32], strides = [1, 1]} : vector<10x32xf32> to vector<8x32xf32>
    %527 = tpu.concatenate %518, %519, %520, %521, %522, %523, %524, %525, %526 in 1 : vector<8x32xf32>, vector<8x32xf32>, vector<8x32xf32>, vector<8x32xf32>, vector<8x32xf32>, vector<8x32xf32>, vector<8x32xf32>, vector<8x32xf32>, vector<8x32xf32> -> vector<8x288xf32>
    %528 = arith.truncf %527 : vector<8x288xf32> to vector<8x288xbf16>
    %529 = vector.extract_strided_slice %483 {offsets = [0, 0], sizes = [8, 32], strides = [1, 1]} : vector<10x32xf32> to vector<8x32xf32>
    %530 = vector.extract_strided_slice %483 {offsets = [1, 0], sizes = [8, 32], strides = [1, 1]} : vector<10x32xf32> to vector<8x32xf32>
    %531 = vector.extract_strided_slice %483 {offsets = [2, 0], sizes = [8, 32], strides = [1, 1]} : vector<10x32xf32> to vector<8x32xf32>
    %532 = vector.extract_strided_slice %485 {offsets = [0, 0], sizes = [8, 32], strides = [1, 1]} : vector<10x32xf32> to vector<8x32xf32>
    %533 = vector.extract_strided_slice %485 {offsets = [1, 0], sizes = [8, 32], strides = [1, 1]} : vector<10x32xf32> to vector<8x32xf32>
    %534 = vector.extract_strided_slice %485 {offsets = [2, 0], sizes = [8, 32], strides = [1, 1]} : vector<10x32xf32> to vector<8x32xf32>
    %535 = vector.extract_strided_slice %487 {offsets = [0, 0], sizes = [8, 32], strides = [1, 1]} : vector<10x32xf32> to vector<8x32xf32>
    %536 = vector.extract_strided_slice %487 {offsets = [1, 0], sizes = [8, 32], strides = [1, 1]} : vector<10x32xf32> to vector<8x32xf32>
    %537 = vector.extract_strided_slice %487 {offsets = [2, 0], sizes = [8, 32], strides = [1, 1]} : vector<10x32xf32> to vector<8x32xf32>
    %538 = tpu.concatenate %529, %530, %531, %532, %533, %534, %535, %536, %537 in 1 : vector<8x32xf32>, vector<8x32xf32>, vector<8x32xf32>, vector<8x32xf32>, vector<8x32xf32>, vector<8x32xf32>, vector<8x32xf32>, vector<8x32xf32>, vector<8x32xf32> -> vector<8x288xf32>
    %539 = arith.truncf %538 : vector<8x288xf32> to vector<8x288xbf16>
    %540 = vector.extract_strided_slice %485 {offsets = [0, 0], sizes = [8, 32], strides = [1, 1]} : vector<10x32xf32> to vector<8x32xf32>
    %541 = vector.extract_strided_slice %485 {offsets = [1, 0], sizes = [8, 32], strides = [1, 1]} : vector<10x32xf32> to vector<8x32xf32>
    %542 = vector.extract_strided_slice %485 {offsets = [2, 0], sizes = [8, 32], strides = [1, 1]} : vector<10x32xf32> to vector<8x32xf32>
    %543 = vector.extract_strided_slice %487 {offsets = [0, 0], sizes = [8, 32], strides = [1, 1]} : vector<10x32xf32> to vector<8x32xf32>
    %544 = vector.extract_strided_slice %487 {offsets = [1, 0], sizes = [8, 32], strides = [1, 1]} : vector<10x32xf32> to vector<8x32xf32>
    %545 = vector.extract_strided_slice %487 {offsets = [2, 0], sizes = [8, 32], strides = [1, 1]} : vector<10x32xf32> to vector<8x32xf32>
    %546 = vector.extract_strided_slice %489 {offsets = [0, 0], sizes = [8, 32], strides = [1, 1]} : vector<10x32xf32> to vector<8x32xf32>
    %547 = vector.extract_strided_slice %489 {offsets = [1, 0], sizes = [8, 32], strides = [1, 1]} : vector<10x32xf32> to vector<8x32xf32>
    %548 = vector.extract_strided_slice %489 {offsets = [2, 0], sizes = [8, 32], strides = [1, 1]} : vector<10x32xf32> to vector<8x32xf32>
    %549 = tpu.concatenate %540, %541, %542, %543, %544, %545, %546, %547, %548 in 1 : vector<8x32xf32>, vector<8x32xf32>, vector<8x32xf32>, vector<8x32xf32>, vector<8x32xf32>, vector<8x32xf32>, vector<8x32xf32>, vector<8x32xf32>, vector<8x32xf32> -> vector<8x288xf32>
    %550 = arith.truncf %549 : vector<8x288xf32> to vector<8x288xbf16>
    %551 = vector.extract_strided_slice %487 {offsets = [0, 0], sizes = [8, 32], strides = [1, 1]} : vector<10x32xf32> to vector<8x32xf32>
    %552 = vector.extract_strided_slice %487 {offsets = [1, 0], sizes = [8, 32], strides = [1, 1]} : vector<10x32xf32> to vector<8x32xf32>
    %553 = vector.extract_strided_slice %487 {offsets = [2, 0], sizes = [8, 32], strides = [1, 1]} : vector<10x32xf32> to vector<8x32xf32>
    %554 = vector.extract_strided_slice %489 {offsets = [0, 0], sizes = [8, 32], strides = [1, 1]} : vector<10x32xf32> to vector<8x32xf32>
    %555 = vector.extract_strided_slice %489 {offsets = [1, 0], sizes = [8, 32], strides = [1, 1]} : vector<10x32xf32> to vector<8x32xf32>
    %556 = vector.extract_strided_slice %489 {offsets = [2, 0], sizes = [8, 32], strides = [1, 1]} : vector<10x32xf32> to vector<8x32xf32>
    %557 = vector.extract_strided_slice %491 {offsets = [0, 0], sizes = [8, 32], strides = [1, 1]} : vector<10x32xf32> to vector<8x32xf32>
    %558 = vector.extract_strided_slice %491 {offsets = [1, 0], sizes = [8, 32], strides = [1, 1]} : vector<10x32xf32> to vector<8x32xf32>
    %559 = vector.extract_strided_slice %491 {offsets = [2, 0], sizes = [8, 32], strides = [1, 1]} : vector<10x32xf32> to vector<8x32xf32>
    %560 = tpu.concatenate %551, %552, %553, %554, %555, %556, %557, %558, %559 in 1 : vector<8x32xf32>, vector<8x32xf32>, vector<8x32xf32>, vector<8x32xf32>, vector<8x32xf32>, vector<8x32xf32>, vector<8x32xf32>, vector<8x32xf32>, vector<8x32xf32> -> vector<8x288xf32>
    %561 = arith.truncf %560 : vector<8x288xf32> to vector<8x288xbf16>
    %562 = vector.extract_strided_slice %489 {offsets = [0, 0], sizes = [8, 32], strides = [1, 1]} : vector<10x32xf32> to vector<8x32xf32>
    %563 = vector.extract_strided_slice %489 {offsets = [1, 0], sizes = [8, 32], strides = [1, 1]} : vector<10x32xf32> to vector<8x32xf32>
    %564 = vector.extract_strided_slice %489 {offsets = [2, 0], sizes = [8, 32], strides = [1, 1]} : vector<10x32xf32> to vector<8x32xf32>
    %565 = vector.extract_strided_slice %491 {offsets = [0, 0], sizes = [8, 32], strides = [1, 1]} : vector<10x32xf32> to vector<8x32xf32>
    %566 = vector.extract_strided_slice %491 {offsets = [1, 0], sizes = [8, 32], strides = [1, 1]} : vector<10x32xf32> to vector<8x32xf32>
    %567 = vector.extract_strided_slice %491 {offsets = [2, 0], sizes = [8, 32], strides = [1, 1]} : vector<10x32xf32> to vector<8x32xf32>
    %568 = vector.extract_strided_slice %493 {offsets = [0, 0], sizes = [8, 32], strides = [1, 1]} : vector<10x32xf32> to vector<8x32xf32>
    %569 = vector.extract_strided_slice %493 {offsets = [1, 0], sizes = [8, 32], strides = [1, 1]} : vector<10x32xf32> to vector<8x32xf32>
    %570 = vector.extract_strided_slice %493 {offsets = [2, 0], sizes = [8, 32], strides = [1, 1]} : vector<10x32xf32> to vector<8x32xf32>
    %571 = tpu.concatenate %562, %563, %564, %565, %566, %567, %568, %569, %570 in 1 : vector<8x32xf32>, vector<8x32xf32>, vector<8x32xf32>, vector<8x32xf32>, vector<8x32xf32>, vector<8x32xf32>, vector<8x32xf32>, vector<8x32xf32>, vector<8x32xf32> -> vector<8x288xf32>
    %572 = arith.truncf %571 : vector<8x288xf32> to vector<8x288xbf16>
    %573 = vector.extract_strided_slice %491 {offsets = [0, 0], sizes = [8, 32], strides = [1, 1]} : vector<10x32xf32> to vector<8x32xf32>
    %574 = vector.extract_strided_slice %491 {offsets = [1, 0], sizes = [8, 32], strides = [1, 1]} : vector<10x32xf32> to vector<8x32xf32>
    %575 = vector.extract_strided_slice %491 {offsets = [2, 0], sizes = [8, 32], strides = [1, 1]} : vector<10x32xf32> to vector<8x32xf32>
    %576 = vector.extract_strided_slice %493 {offsets = [0, 0], sizes = [8, 32], strides = [1, 1]} : vector<10x32xf32> to vector<8x32xf32>
    %577 = vector.extract_strided_slice %493 {offsets = [1, 0], sizes = [8, 32], strides = [1, 1]} : vector<10x32xf32> to vector<8x32xf32>
    %578 = vector.extract_strided_slice %493 {offsets = [2, 0], sizes = [8, 32], strides = [1, 1]} : vector<10x32xf32> to vector<8x32xf32>
    %579 = vector.extract_strided_slice %495 {offsets = [0, 0], sizes = [8, 32], strides = [1, 1]} : vector<10x32xf32> to vector<8x32xf32>
    %580 = vector.extract_strided_slice %495 {offsets = [1, 0], sizes = [8, 32], strides = [1, 1]} : vector<10x32xf32> to vector<8x32xf32>
    %581 = vector.extract_strided_slice %495 {offsets = [2, 0], sizes = [8, 32], strides = [1, 1]} : vector<10x32xf32> to vector<8x32xf32>
    %582 = tpu.concatenate %573, %574, %575, %576, %577, %578, %579, %580, %581 in 1 : vector<8x32xf32>, vector<8x32xf32>, vector<8x32xf32>, vector<8x32xf32>, vector<8x32xf32>, vector<8x32xf32>, vector<8x32xf32>, vector<8x32xf32>, vector<8x32xf32> -> vector<8x288xf32>
    %583 = arith.truncf %582 : vector<8x288xf32> to vector<8x288xbf16>
    %584 = tpu.concatenate %506, %517, %528, %539, %550, %561, %572, %583 in 0 : vector<8x288xbf16>, vector<8x288xbf16>, vector<8x288xbf16>, vector<8x288xbf16>, vector<8x288xbf16>, vector<8x288xbf16>, vector<8x288xbf16>, vector<8x288xbf16> -> vector<64x288xbf16>
    %cst_129 = arith.constant dense<0.000000e+00> : vector<64x64xf32>
    %585 = tpu.matmul %584, %474, %cst_129 {dimension_numbers = #tpu.dot_dimension_numbers<[1], [0], [0], [1], [0, 0, 1, 1], [], []>} : vector<64x288xbf16>, vector<288x64xbf16>, vector<64x64xf32> -> vector<64x64xf32>
    %586 = vector.broadcast %475 : vector<1x64xf32> to vector<64x64xf32>
    %587 = arith.addf %585, %586 : vector<64x64xf32>
    %cst_130 = arith.constant 0.000000e+00 : f32
    %588 = vector.broadcast %cst_130 : f32 to vector<64x64xf32>
    %589 = arith.maximumf %587, %588 : vector<64x64xf32>
    %590 = vector.extract_strided_slice %589 {offsets = [0, 0], sizes = [8, 64], strides = [1, 1]} : vector<64x64xf32> to vector<8x64xf32>
    %591 = vector.extract_strided_slice %589 {offsets = [8, 0], sizes = [8, 64], strides = [1, 1]} : vector<64x64xf32> to vector<8x64xf32>
    %592 = arith.maximumf %590, %591 : vector<8x64xf32>
    %593 = vector.extract_strided_slice %592 {offsets = [0, 0], sizes = [1, 64], strides = [1, 1]} : vector<8x64xf32> to vector<1x64xf32>
    %594 = vector.extract_strided_slice %592 {offsets = [1, 0], sizes = [1, 64], strides = [1, 1]} : vector<8x64xf32> to vector<1x64xf32>
    %595 = arith.maximumf %593, %594 : vector<1x64xf32>
    %596 = vector.extract_strided_slice %592 {offsets = [2, 0], sizes = [1, 64], strides = [1, 1]} : vector<8x64xf32> to vector<1x64xf32>
    %597 = vector.extract_strided_slice %592 {offsets = [3, 0], sizes = [1, 64], strides = [1, 1]} : vector<8x64xf32> to vector<1x64xf32>
    %598 = arith.maximumf %596, %597 : vector<1x64xf32>
    %599 = vector.extract_strided_slice %592 {offsets = [4, 0], sizes = [1, 64], strides = [1, 1]} : vector<8x64xf32> to vector<1x64xf32>
    %600 = vector.extract_strided_slice %592 {offsets = [5, 0], sizes = [1, 64], strides = [1, 1]} : vector<8x64xf32> to vector<1x64xf32>
    %601 = arith.maximumf %599, %600 : vector<1x64xf32>
    %602 = vector.extract_strided_slice %592 {offsets = [6, 0], sizes = [1, 64], strides = [1, 1]} : vector<8x64xf32> to vector<1x64xf32>
    %603 = vector.extract_strided_slice %592 {offsets = [7, 0], sizes = [1, 64], strides = [1, 1]} : vector<8x64xf32> to vector<1x64xf32>
    %604 = arith.maximumf %602, %603 : vector<1x64xf32>
    %605 = tpu.concatenate %595, %598, %601, %604 in 0 : vector<1x64xf32>, vector<1x64xf32>, vector<1x64xf32>, vector<1x64xf32> -> vector<4x64xf32>
    %c1_131 = arith.constant 1 : index
    %c1_132 = arith.constant 1 : index
    %c0_133 = arith.constant 0 : index
    %606 = vector.load %arg14[%c1_131, %c1_132, %c0_133] : memref<6x6x64xf32, #tpu.memory_space<vmem>>, vector<1x4x64xf32>
    %607 = vector.shape_cast %606 : vector<1x4x64xf32> to vector<4x64xf32>
    %608 = vector.shape_cast %605 : vector<4x64xf32> to vector<1x4x64xf32>
    tpu.vector_store %arg14[%c1_131, %c1_132, %c0_133], %608 {strides = array<i32>} : memref<6x6x64xf32, #tpu.memory_space<vmem>>, vector<1x4x64xf32>,
    %609 = vector.extract_strided_slice %589 {offsets = [16, 0], sizes = [8, 64], strides = [1, 1]} : vector<64x64xf32> to vector<8x64xf32>
    %610 = vector.extract_strided_slice %589 {offsets = [24, 0], sizes = [8, 64], strides = [1, 1]} : vector<64x64xf32> to vector<8x64xf32>
    %611 = arith.maximumf %609, %610 : vector<8x64xf32>
    %612 = vector.extract_strided_slice %611 {offsets = [0, 0], sizes = [1, 64], strides = [1, 1]} : vector<8x64xf32> to vector<1x64xf32>
    %613 = vector.extract_strided_slice %611 {offsets = [1, 0], sizes = [1, 64], strides = [1, 1]} : vector<8x64xf32> to vector<1x64xf32>
    %614 = arith.maximumf %612, %613 : vector<1x64xf32>
    %615 = vector.extract_strided_slice %611 {offsets = [2, 0], sizes = [1, 64], strides = [1, 1]} : vector<8x64xf32> to vector<1x64xf32>
    %616 = vector.extract_strided_slice %611 {offsets = [3, 0], sizes = [1, 64], strides = [1, 1]} : vector<8x64xf32> to vector<1x64xf32>
    %617 = arith.maximumf %615, %616 : vector<1x64xf32>
    %618 = vector.extract_strided_slice %611 {offsets = [4, 0], sizes = [1, 64], strides = [1, 1]} : vector<8x64xf32> to vector<1x64xf32>
    %619 = vector.extract_strided_slice %611 {offsets = [5, 0], sizes = [1, 64], strides = [1, 1]} : vector<8x64xf32> to vector<1x64xf32>
    %620 = arith.maximumf %618, %619 : vector<1x64xf32>
    %621 = vector.extract_strided_slice %611 {offsets = [6, 0], sizes = [1, 64], strides = [1, 1]} : vector<8x64xf32> to vector<1x64xf32>
    %622 = vector.extract_strided_slice %611 {offsets = [7, 0], sizes = [1, 64], strides = [1, 1]} : vector<8x64xf32> to vector<1x64xf32>
    %623 = arith.maximumf %621, %622 : vector<1x64xf32>
    %624 = tpu.concatenate %614, %617, %620, %623 in 0 : vector<1x64xf32>, vector<1x64xf32>, vector<1x64xf32>, vector<1x64xf32> -> vector<4x64xf32>
    %c2_134 = arith.constant 2 : index
    %c1_135 = arith.constant 1 : index
    %c0_136 = arith.constant 0 : index
    %625 = vector.load %arg14[%c2_134, %c1_135, %c0_136] : memref<6x6x64xf32, #tpu.memory_space<vmem>>, vector<1x4x64xf32>
    %626 = vector.shape_cast %625 : vector<1x4x64xf32> to vector<4x64xf32>
    %627 = vector.shape_cast %624 : vector<4x64xf32> to vector<1x4x64xf32>
    tpu.vector_store %arg14[%c2_134, %c1_135, %c0_136], %627 {strides = array<i32>} : memref<6x6x64xf32, #tpu.memory_space<vmem>>, vector<1x4x64xf32>,
    %628 = vector.extract_strided_slice %589 {offsets = [32, 0], sizes = [8, 64], strides = [1, 1]} : vector<64x64xf32> to vector<8x64xf32>
    %629 = vector.extract_strided_slice %589 {offsets = [40, 0], sizes = [8, 64], strides = [1, 1]} : vector<64x64xf32> to vector<8x64xf32>
    %630 = arith.maximumf %628, %629 : vector<8x64xf32>
    %631 = vector.extract_strided_slice %630 {offsets = [0, 0], sizes = [1, 64], strides = [1, 1]} : vector<8x64xf32> to vector<1x64xf32>
    %632 = vector.extract_strided_slice %630 {offsets = [1, 0], sizes = [1, 64], strides = [1, 1]} : vector<8x64xf32> to vector<1x64xf32>
    %633 = arith.maximumf %631, %632 : vector<1x64xf32>
    %634 = vector.extract_strided_slice %630 {offsets = [2, 0], sizes = [1, 64], strides = [1, 1]} : vector<8x64xf32> to vector<1x64xf32>
    %635 = vector.extract_strided_slice %630 {offsets = [3, 0], sizes = [1, 64], strides = [1, 1]} : vector<8x64xf32> to vector<1x64xf32>
    %636 = arith.maximumf %634, %635 : vector<1x64xf32>
    %637 = vector.extract_strided_slice %630 {offsets = [4, 0], sizes = [1, 64], strides = [1, 1]} : vector<8x64xf32> to vector<1x64xf32>
    %638 = vector.extract_strided_slice %630 {offsets = [5, 0], sizes = [1, 64], strides = [1, 1]} : vector<8x64xf32> to vector<1x64xf32>
    %639 = arith.maximumf %637, %638 : vector<1x64xf32>
    %640 = vector.extract_strided_slice %630 {offsets = [6, 0], sizes = [1, 64], strides = [1, 1]} : vector<8x64xf32> to vector<1x64xf32>
    %641 = vector.extract_strided_slice %630 {offsets = [7, 0], sizes = [1, 64], strides = [1, 1]} : vector<8x64xf32> to vector<1x64xf32>
    %642 = arith.maximumf %640, %641 : vector<1x64xf32>
    %643 = tpu.concatenate %633, %636, %639, %642 in 0 : vector<1x64xf32>, vector<1x64xf32>, vector<1x64xf32>, vector<1x64xf32> -> vector<4x64xf32>
    %c3_137 = arith.constant 3 : index
    %c1_138 = arith.constant 1 : index
    %c0_139 = arith.constant 0 : index
    %644 = vector.load %arg14[%c3_137, %c1_138, %c0_139] : memref<6x6x64xf32, #tpu.memory_space<vmem>>, vector<1x4x64xf32>
    %645 = vector.shape_cast %644 : vector<1x4x64xf32> to vector<4x64xf32>
    %646 = vector.shape_cast %643 : vector<4x64xf32> to vector<1x4x64xf32>
    tpu.vector_store %arg14[%c3_137, %c1_138, %c0_139], %646 {strides = array<i32>} : memref<6x6x64xf32, #tpu.memory_space<vmem>>, vector<1x4x64xf32>,
    %647 = vector.extract_strided_slice %589 {offsets = [48, 0], sizes = [8, 64], strides = [1, 1]} : vector<64x64xf32> to vector<8x64xf32>
    %648 = vector.extract_strided_slice %589 {offsets = [56, 0], sizes = [8, 64], strides = [1, 1]} : vector<64x64xf32> to vector<8x64xf32>
    %649 = arith.maximumf %647, %648 : vector<8x64xf32>
    %650 = vector.extract_strided_slice %649 {offsets = [0, 0], sizes = [1, 64], strides = [1, 1]} : vector<8x64xf32> to vector<1x64xf32>
    %651 = vector.extract_strided_slice %649 {offsets = [1, 0], sizes = [1, 64], strides = [1, 1]} : vector<8x64xf32> to vector<1x64xf32>
    %652 = arith.maximumf %650, %651 : vector<1x64xf32>
    %653 = vector.extract_strided_slice %649 {offsets = [2, 0], sizes = [1, 64], strides = [1, 1]} : vector<8x64xf32> to vector<1x64xf32>
    %654 = vector.extract_strided_slice %649 {offsets = [3, 0], sizes = [1, 64], strides = [1, 1]} : vector<8x64xf32> to vector<1x64xf32>
    %655 = arith.maximumf %653, %654 : vector<1x64xf32>
    %656 = vector.extract_strided_slice %649 {offsets = [4, 0], sizes = [1, 64], strides = [1, 1]} : vector<8x64xf32> to vector<1x64xf32>
    %657 = vector.extract_strided_slice %649 {offsets = [5, 0], sizes = [1, 64], strides = [1, 1]} : vector<8x64xf32> to vector<1x64xf32>
    %658 = arith.maximumf %656, %657 : vector<1x64xf32>
    %659 = vector.extract_strided_slice %649 {offsets = [6, 0], sizes = [1, 64], strides = [1, 1]} : vector<8x64xf32> to vector<1x64xf32>
    %660 = vector.extract_strided_slice %649 {offsets = [7, 0], sizes = [1, 64], strides = [1, 1]} : vector<8x64xf32> to vector<1x64xf32>
    %661 = arith.maximumf %659, %660 : vector<1x64xf32>
    %662 = tpu.concatenate %652, %655, %658, %661 in 0 : vector<1x64xf32>, vector<1x64xf32>, vector<1x64xf32>, vector<1x64xf32> -> vector<4x64xf32>
    %c4_140 = arith.constant 4 : index
    %c1_141 = arith.constant 1 : index
    %c0_142 = arith.constant 0 : index
    %663 = vector.load %arg14[%c4_140, %c1_141, %c0_142] : memref<6x6x64xf32, #tpu.memory_space<vmem>>, vector<1x4x64xf32>
    %664 = vector.shape_cast %663 : vector<1x4x64xf32> to vector<4x64xf32>
    %665 = vector.shape_cast %662 : vector<4x64xf32> to vector<1x4x64xf32>
    tpu.vector_store %arg14[%c4_140, %c1_141, %c0_142], %665 {strides = array<i32>} : memref<6x6x64xf32, #tpu.memory_space<vmem>>, vector<1x4x64xf32>,
    %c0_143 = arith.constant 0 : index
    %c0_144 = arith.constant 0 : index
    %666 = vector.load %arg6[%c0_143, %c0_144] : memref<576x128xbf16, #tpu.memory_space<vmem>>, vector<576x128xbf16>
    %c0_145 = arith.constant 0 : index
    %c0_146 = arith.constant 0 : index
    %667 = vector.load %arg7[%c0_145, %c0_146] : memref<1x128xf32, #tpu.memory_space<vmem>>, vector<1x128xf32>
    %c0_147 = arith.constant 0 : index
    %c0_148 = arith.constant 0 : index
    %c0_149 = arith.constant 0 : index
    %668 = vector.load %arg14[%c0_147, %c0_148, %c0_149] : memref<6x6x64xf32, #tpu.memory_space<vmem>>, vector<1x6x64xf32>
    %669 = vector.shape_cast %668 : vector<1x6x64xf32> to vector<6x64xf32>
    %c1_150 = arith.constant 1 : index
    %c0_151 = arith.constant 0 : index
    %c0_152 = arith.constant 0 : index
    %670 = vector.load %arg14[%c1_150, %c0_151, %c0_152] : memref<6x6x64xf32, #tpu.memory_space<vmem>>, vector<1x6x64xf32>
    %671 = vector.shape_cast %670 : vector<1x6x64xf32> to vector<6x64xf32>
    %c2_153 = arith.constant 2 : index
    %c0_154 = arith.constant 0 : index
    %c0_155 = arith.constant 0 : index
    %672 = vector.load %arg14[%c2_153, %c0_154, %c0_155] : memref<6x6x64xf32, #tpu.memory_space<vmem>>, vector<1x6x64xf32>
    %673 = vector.shape_cast %672 : vector<1x6x64xf32> to vector<6x64xf32>
    %c3_156 = arith.constant 3 : index
    %c0_157 = arith.constant 0 : index
    %c0_158 = arith.constant 0 : index
    %674 = vector.load %arg14[%c3_156, %c0_157, %c0_158] : memref<6x6x64xf32, #tpu.memory_space<vmem>>, vector<1x6x64xf32>
    %675 = vector.shape_cast %674 : vector<1x6x64xf32> to vector<6x64xf32>
    %c4_159 = arith.constant 4 : index
    %c0_160 = arith.constant 0 : index
    %c0_161 = arith.constant 0 : index
    %676 = vector.load %arg14[%c4_159, %c0_160, %c0_161] : memref<6x6x64xf32, #tpu.memory_space<vmem>>, vector<1x6x64xf32>
    %677 = vector.shape_cast %676 : vector<1x6x64xf32> to vector<6x64xf32>
    %c5_162 = arith.constant 5 : index
    %c0_163 = arith.constant 0 : index
    %c0_164 = arith.constant 0 : index
    %678 = vector.load %arg14[%c5_162, %c0_163, %c0_164] : memref<6x6x64xf32, #tpu.memory_space<vmem>>, vector<1x6x64xf32>
    %679 = vector.shape_cast %678 : vector<1x6x64xf32> to vector<6x64xf32>
    %680 = vector.extract_strided_slice %669 {offsets = [0, 0], sizes = [4, 64], strides = [1, 1]} : vector<6x64xf32> to vector<4x64xf32>
    %681 = vector.extract_strided_slice %669 {offsets = [1, 0], sizes = [4, 64], strides = [1, 1]} : vector<6x64xf32> to vector<4x64xf32>
    %682 = vector.extract_strided_slice %669 {offsets = [2, 0], sizes = [4, 64], strides = [1, 1]} : vector<6x64xf32> to vector<4x64xf32>
    %683 = vector.extract_strided_slice %671 {offsets = [0, 0], sizes = [4, 64], strides = [1, 1]} : vector<6x64xf32> to vector<4x64xf32>
    %684 = vector.extract_strided_slice %671 {offsets = [1, 0], sizes = [4, 64], strides = [1, 1]} : vector<6x64xf32> to vector<4x64xf32>
    %685 = vector.extract_strided_slice %671 {offsets = [2, 0], sizes = [4, 64], strides = [1, 1]} : vector<6x64xf32> to vector<4x64xf32>
    %686 = vector.extract_strided_slice %673 {offsets = [0, 0], sizes = [4, 64], strides = [1, 1]} : vector<6x64xf32> to vector<4x64xf32>
    %687 = vector.extract_strided_slice %673 {offsets = [1, 0], sizes = [4, 64], strides = [1, 1]} : vector<6x64xf32> to vector<4x64xf32>
    %688 = vector.extract_strided_slice %673 {offsets = [2, 0], sizes = [4, 64], strides = [1, 1]} : vector<6x64xf32> to vector<4x64xf32>
    %689 = tpu.concatenate %680, %681, %682, %683, %684, %685, %686, %687, %688 in 1 : vector<4x64xf32>, vector<4x64xf32>, vector<4x64xf32>, vector<4x64xf32>, vector<4x64xf32>, vector<4x64xf32>, vector<4x64xf32>, vector<4x64xf32>, vector<4x64xf32> -> vector<4x576xf32>
    %690 = arith.truncf %689 : vector<4x576xf32> to vector<4x576xbf16>
    %691 = vector.extract_strided_slice %671 {offsets = [0, 0], sizes = [4, 64], strides = [1, 1]} : vector<6x64xf32> to vector<4x64xf32>
    %692 = vector.extract_strided_slice %671 {offsets = [1, 0], sizes = [4, 64], strides = [1, 1]} : vector<6x64xf32> to vector<4x64xf32>
    %693 = vector.extract_strided_slice %671 {offsets = [2, 0], sizes = [4, 64], strides = [1, 1]} : vector<6x64xf32> to vector<4x64xf32>
    %694 = vector.extract_strided_slice %673 {offsets = [0, 0], sizes = [4, 64], strides = [1, 1]} : vector<6x64xf32> to vector<4x64xf32>
    %695 = vector.extract_strided_slice %673 {offsets = [1, 0], sizes = [4, 64], strides = [1, 1]} : vector<6x64xf32> to vector<4x64xf32>
    %696 = vector.extract_strided_slice %673 {offsets = [2, 0], sizes = [4, 64], strides = [1, 1]} : vector<6x64xf32> to vector<4x64xf32>
    %697 = vector.extract_strided_slice %675 {offsets = [0, 0], sizes = [4, 64], strides = [1, 1]} : vector<6x64xf32> to vector<4x64xf32>
    %698 = vector.extract_strided_slice %675 {offsets = [1, 0], sizes = [4, 64], strides = [1, 1]} : vector<6x64xf32> to vector<4x64xf32>
    %699 = vector.extract_strided_slice %675 {offsets = [2, 0], sizes = [4, 64], strides = [1, 1]} : vector<6x64xf32> to vector<4x64xf32>
    %700 = tpu.concatenate %691, %692, %693, %694, %695, %696, %697, %698, %699 in 1 : vector<4x64xf32>, vector<4x64xf32>, vector<4x64xf32>, vector<4x64xf32>, vector<4x64xf32>, vector<4x64xf32>, vector<4x64xf32>, vector<4x64xf32>, vector<4x64xf32> -> vector<4x576xf32>
    %701 = arith.truncf %700 : vector<4x576xf32> to vector<4x576xbf16>
    %702 = vector.extract_strided_slice %673 {offsets = [0, 0], sizes = [4, 64], strides = [1, 1]} : vector<6x64xf32> to vector<4x64xf32>
    %703 = vector.extract_strided_slice %673 {offsets = [1, 0], sizes = [4, 64], strides = [1, 1]} : vector<6x64xf32> to vector<4x64xf32>
    %704 = vector.extract_strided_slice %673 {offsets = [2, 0], sizes = [4, 64], strides = [1, 1]} : vector<6x64xf32> to vector<4x64xf32>
    %705 = vector.extract_strided_slice %675 {offsets = [0, 0], sizes = [4, 64], strides = [1, 1]} : vector<6x64xf32> to vector<4x64xf32>
    %706 = vector.extract_strided_slice %675 {offsets = [1, 0], sizes = [4, 64], strides = [1, 1]} : vector<6x64xf32> to vector<4x64xf32>
    %707 = vector.extract_strided_slice %675 {offsets = [2, 0], sizes = [4, 64], strides = [1, 1]} : vector<6x64xf32> to vector<4x64xf32>
    %708 = vector.extract_strided_slice %677 {offsets = [0, 0], sizes = [4, 64], strides = [1, 1]} : vector<6x64xf32> to vector<4x64xf32>
    %709 = vector.extract_strided_slice %677 {offsets = [1, 0], sizes = [4, 64], strides = [1, 1]} : vector<6x64xf32> to vector<4x64xf32>
    %710 = vector.extract_strided_slice %677 {offsets = [2, 0], sizes = [4, 64], strides = [1, 1]} : vector<6x64xf32> to vector<4x64xf32>
    %711 = tpu.concatenate %702, %703, %704, %705, %706, %707, %708, %709, %710 in 1 : vector<4x64xf32>, vector<4x64xf32>, vector<4x64xf32>, vector<4x64xf32>, vector<4x64xf32>, vector<4x64xf32>, vector<4x64xf32>, vector<4x64xf32>, vector<4x64xf32> -> vector<4x576xf32>
    %712 = arith.truncf %711 : vector<4x576xf32> to vector<4x576xbf16>
    %713 = vector.extract_strided_slice %675 {offsets = [0, 0], sizes = [4, 64], strides = [1, 1]} : vector<6x64xf32> to vector<4x64xf32>
    %714 = vector.extract_strided_slice %675 {offsets = [1, 0], sizes = [4, 64], strides = [1, 1]} : vector<6x64xf32> to vector<4x64xf32>
    %715 = vector.extract_strided_slice %675 {offsets = [2, 0], sizes = [4, 64], strides = [1, 1]} : vector<6x64xf32> to vector<4x64xf32>
    %716 = vector.extract_strided_slice %677 {offsets = [0, 0], sizes = [4, 64], strides = [1, 1]} : vector<6x64xf32> to vector<4x64xf32>
    %717 = vector.extract_strided_slice %677 {offsets = [1, 0], sizes = [4, 64], strides = [1, 1]} : vector<6x64xf32> to vector<4x64xf32>
    %718 = vector.extract_strided_slice %677 {offsets = [2, 0], sizes = [4, 64], strides = [1, 1]} : vector<6x64xf32> to vector<4x64xf32>
    %719 = vector.extract_strided_slice %679 {offsets = [0, 0], sizes = [4, 64], strides = [1, 1]} : vector<6x64xf32> to vector<4x64xf32>
    %720 = vector.extract_strided_slice %679 {offsets = [1, 0], sizes = [4, 64], strides = [1, 1]} : vector<6x64xf32> to vector<4x64xf32>
    %721 = vector.extract_strided_slice %679 {offsets = [2, 0], sizes = [4, 64], strides = [1, 1]} : vector<6x64xf32> to vector<4x64xf32>
    %722 = tpu.concatenate %713, %714, %715, %716, %717, %718, %719, %720, %721 in 1 : vector<4x64xf32>, vector<4x64xf32>, vector<4x64xf32>, vector<4x64xf32>, vector<4x64xf32>, vector<4x64xf32>, vector<4x64xf32>, vector<4x64xf32>, vector<4x64xf32> -> vector<4x576xf32>
    %723 = arith.truncf %722 : vector<4x576xf32> to vector<4x576xbf16>
    %724 = tpu.concatenate %690, %701, %712, %723 in 0 : vector<4x576xbf16>, vector<4x576xbf16>, vector<4x576xbf16>, vector<4x576xbf16> -> vector<16x576xbf16>
    %cst_165 = arith.constant dense<0.000000e+00> : vector<16x128xf32>
    %725 = tpu.matmul %724, %666, %cst_165 {dimension_numbers = #tpu.dot_dimension_numbers<[1], [0], [0], [1], [0, 0, 1, 1], [], []>} : vector<16x576xbf16>, vector<576x128xbf16>, vector<16x128xf32> -> vector<16x128xf32>
    %726 = vector.broadcast %667 : vector<1x128xf32> to vector<16x128xf32>
    %727 = arith.addf %725, %726 : vector<16x128xf32>
    %cst_166 = arith.constant 0.000000e+00 : f32
    %728 = vector.broadcast %cst_166 : f32 to vector<16x128xf32>
    %729 = arith.maximumf %727, %728 : vector<16x128xf32>
    %730 = vector.extract_strided_slice %729 {offsets = [0, 0], sizes = [4, 128], strides = [1, 1]} : vector<16x128xf32> to vector<4x128xf32>
    %731 = vector.extract_strided_slice %729 {offsets = [4, 0], sizes = [4, 128], strides = [1, 1]} : vector<16x128xf32> to vector<4x128xf32>
    %732 = arith.maximumf %730, %731 : vector<4x128xf32>
    %733 = vector.extract_strided_slice %732 {offsets = [0, 0], sizes = [1, 128], strides = [1, 1]} : vector<4x128xf32> to vector<1x128xf32>
    %734 = vector.extract_strided_slice %732 {offsets = [1, 0], sizes = [1, 128], strides = [1, 1]} : vector<4x128xf32> to vector<1x128xf32>
    %735 = arith.maximumf %733, %734 : vector<1x128xf32>
    %736 = vector.extract_strided_slice %732 {offsets = [2, 0], sizes = [1, 128], strides = [1, 1]} : vector<4x128xf32> to vector<1x128xf32>
    %737 = vector.extract_strided_slice %732 {offsets = [3, 0], sizes = [1, 128], strides = [1, 1]} : vector<4x128xf32> to vector<1x128xf32>
    %738 = arith.maximumf %736, %737 : vector<1x128xf32>
    %739 = tpu.concatenate %735, %738 in 0 : vector<1x128xf32>, vector<1x128xf32> -> vector<2x128xf32>
    %c1_167 = arith.constant 1 : index
    %c1_168 = arith.constant 1 : index
    %c0_169 = arith.constant 0 : index
    %740 = vector.load %arg15[%c1_167, %c1_168, %c0_169] : memref<4x4x128xf32, #tpu.memory_space<vmem>>, vector<1x2x128xf32>
    %741 = vector.shape_cast %740 : vector<1x2x128xf32> to vector<2x128xf32>
    %742 = vector.shape_cast %739 : vector<2x128xf32> to vector<1x2x128xf32>
    tpu.vector_store %arg15[%c1_167, %c1_168, %c0_169], %742 {strides = array<i32>} : memref<4x4x128xf32, #tpu.memory_space<vmem>>, vector<1x2x128xf32>,
    %743 = vector.extract_strided_slice %729 {offsets = [8, 0], sizes = [4, 128], strides = [1, 1]} : vector<16x128xf32> to vector<4x128xf32>
    %744 = vector.extract_strided_slice %729 {offsets = [12, 0], sizes = [4, 128], strides = [1, 1]} : vector<16x128xf32> to vector<4x128xf32>
    %745 = arith.maximumf %743, %744 : vector<4x128xf32>
    %746 = vector.extract_strided_slice %745 {offsets = [0, 0], sizes = [1, 128], strides = [1, 1]} : vector<4x128xf32> to vector<1x128xf32>
    %747 = vector.extract_strided_slice %745 {offsets = [1, 0], sizes = [1, 128], strides = [1, 1]} : vector<4x128xf32> to vector<1x128xf32>
    %748 = arith.maximumf %746, %747 : vector<1x128xf32>
    %749 = vector.extract_strided_slice %745 {offsets = [2, 0], sizes = [1, 128], strides = [1, 1]} : vector<4x128xf32> to vector<1x128xf32>
    %750 = vector.extract_strided_slice %745 {offsets = [3, 0], sizes = [1, 128], strides = [1, 1]} : vector<4x128xf32> to vector<1x128xf32>
    %751 = arith.maximumf %749, %750 : vector<1x128xf32>
    %752 = tpu.concatenate %748, %751 in 0 : vector<1x128xf32>, vector<1x128xf32> -> vector<2x128xf32>
    %c2_170 = arith.constant 2 : index
    %c1_171 = arith.constant 1 : index
    %c0_172 = arith.constant 0 : index
    %753 = vector.load %arg15[%c2_170, %c1_171, %c0_172] : memref<4x4x128xf32, #tpu.memory_space<vmem>>, vector<1x2x128xf32>
    %754 = vector.shape_cast %753 : vector<1x2x128xf32> to vector<2x128xf32>
    %755 = vector.shape_cast %752 : vector<2x128xf32> to vector<1x2x128xf32>
    tpu.vector_store %arg15[%c2_170, %c1_171, %c0_172], %755 {strides = array<i32>} : memref<4x4x128xf32, #tpu.memory_space<vmem>>, vector<1x2x128xf32>,
    %c0_173 = arith.constant 0 : index
    %c0_174 = arith.constant 0 : index
    %756 = vector.load %arg8[%c0_173, %c0_174] : memref<1152x256xbf16, #tpu.memory_space<vmem>>, vector<1152x256xbf16>
    %c0_175 = arith.constant 0 : index
    %c0_176 = arith.constant 0 : index
    %757 = vector.load %arg9[%c0_175, %c0_176] : memref<1x256xf32, #tpu.memory_space<vmem>>, vector<1x256xf32>
    %c0_177 = arith.constant 0 : index
    %c0_178 = arith.constant 0 : index
    %c0_179 = arith.constant 0 : index
    %758 = vector.load %arg15[%c0_177, %c0_178, %c0_179] : memref<4x4x128xf32, #tpu.memory_space<vmem>>, vector<1x4x128xf32>
    %759 = vector.shape_cast %758 : vector<1x4x128xf32> to vector<4x128xf32>
    %c1_180 = arith.constant 1 : index
    %c0_181 = arith.constant 0 : index
    %c0_182 = arith.constant 0 : index
    %760 = vector.load %arg15[%c1_180, %c0_181, %c0_182] : memref<4x4x128xf32, #tpu.memory_space<vmem>>, vector<1x4x128xf32>
    %761 = vector.shape_cast %760 : vector<1x4x128xf32> to vector<4x128xf32>
    %c2_183 = arith.constant 2 : index
    %c0_184 = arith.constant 0 : index
    %c0_185 = arith.constant 0 : index
    %762 = vector.load %arg15[%c2_183, %c0_184, %c0_185] : memref<4x4x128xf32, #tpu.memory_space<vmem>>, vector<1x4x128xf32>
    %763 = vector.shape_cast %762 : vector<1x4x128xf32> to vector<4x128xf32>
    %c3_186 = arith.constant 3 : index
    %c0_187 = arith.constant 0 : index
    %c0_188 = arith.constant 0 : index
    %764 = vector.load %arg15[%c3_186, %c0_187, %c0_188] : memref<4x4x128xf32, #tpu.memory_space<vmem>>, vector<1x4x128xf32>
    %765 = vector.shape_cast %764 : vector<1x4x128xf32> to vector<4x128xf32>
    %766 = vector.extract_strided_slice %759 {offsets = [0, 0], sizes = [2, 128], strides = [1, 1]} : vector<4x128xf32> to vector<2x128xf32>
    %767 = vector.extract_strided_slice %759 {offsets = [1, 0], sizes = [2, 128], strides = [1, 1]} : vector<4x128xf32> to vector<2x128xf32>
    %768 = vector.extract_strided_slice %759 {offsets = [2, 0], sizes = [2, 128], strides = [1, 1]} : vector<4x128xf32> to vector<2x128xf32>
    %769 = vector.extract_strided_slice %761 {offsets = [0, 0], sizes = [2, 128], strides = [1, 1]} : vector<4x128xf32> to vector<2x128xf32>
    %770 = vector.extract_strided_slice %761 {offsets = [1, 0], sizes = [2, 128], strides = [1, 1]} : vector<4x128xf32> to vector<2x128xf32>
    %771 = vector.extract_strided_slice %761 {offsets = [2, 0], sizes = [2, 128], strides = [1, 1]} : vector<4x128xf32> to vector<2x128xf32>
    %772 = vector.extract_strided_slice %763 {offsets = [0, 0], sizes = [2, 128], strides = [1, 1]} : vector<4x128xf32> to vector<2x128xf32>
    %773 = vector.extract_strided_slice %763 {offsets = [1, 0], sizes = [2, 128], strides = [1, 1]} : vector<4x128xf32> to vector<2x128xf32>
    %774 = vector.extract_strided_slice %763 {offsets = [2, 0], sizes = [2, 128], strides = [1, 1]} : vector<4x128xf32> to vector<2x128xf32>
    %775 = tpu.concatenate %766, %767, %768, %769, %770, %771, %772, %773, %774 in 1 : vector<2x128xf32>, vector<2x128xf32>, vector<2x128xf32>, vector<2x128xf32>, vector<2x128xf32>, vector<2x128xf32>, vector<2x128xf32>, vector<2x128xf32>, vector<2x128xf32> -> vector<2x1152xf32>
    %776 = arith.truncf %775 : vector<2x1152xf32> to vector<2x1152xbf16>
    %777 = vector.extract_strided_slice %761 {offsets = [0, 0], sizes = [2, 128], strides = [1, 1]} : vector<4x128xf32> to vector<2x128xf32>
    %778 = vector.extract_strided_slice %761 {offsets = [1, 0], sizes = [2, 128], strides = [1, 1]} : vector<4x128xf32> to vector<2x128xf32>
    %779 = vector.extract_strided_slice %761 {offsets = [2, 0], sizes = [2, 128], strides = [1, 1]} : vector<4x128xf32> to vector<2x128xf32>
    %780 = vector.extract_strided_slice %763 {offsets = [0, 0], sizes = [2, 128], strides = [1, 1]} : vector<4x128xf32> to vector<2x128xf32>
    %781 = vector.extract_strided_slice %763 {offsets = [1, 0], sizes = [2, 128], strides = [1, 1]} : vector<4x128xf32> to vector<2x128xf32>
    %782 = vector.extract_strided_slice %763 {offsets = [2, 0], sizes = [2, 128], strides = [1, 1]} : vector<4x128xf32> to vector<2x128xf32>
    %783 = vector.extract_strided_slice %765 {offsets = [0, 0], sizes = [2, 128], strides = [1, 1]} : vector<4x128xf32> to vector<2x128xf32>
    %784 = vector.extract_strided_slice %765 {offsets = [1, 0], sizes = [2, 128], strides = [1, 1]} : vector<4x128xf32> to vector<2x128xf32>
    %785 = vector.extract_strided_slice %765 {offsets = [2, 0], sizes = [2, 128], strides = [1, 1]} : vector<4x128xf32> to vector<2x128xf32>
    %786 = tpu.concatenate %777, %778, %779, %780, %781, %782, %783, %784, %785 in 1 : vector<2x128xf32>, vector<2x128xf32>, vector<2x128xf32>, vector<2x128xf32>, vector<2x128xf32>, vector<2x128xf32>, vector<2x128xf32>, vector<2x128xf32>, vector<2x128xf32> -> vector<2x1152xf32>
    %787 = arith.truncf %786 : vector<2x1152xf32> to vector<2x1152xbf16>
    %788 = tpu.concatenate %776, %787 in 0 : vector<2x1152xbf16>, vector<2x1152xbf16> -> vector<4x1152xbf16>
    %cst_189 = arith.constant dense<0.000000e+00> : vector<4x256xf32>
    %789 = tpu.matmul %788, %756, %cst_189 {dimension_numbers = #tpu.dot_dimension_numbers<[1], [0], [0], [1], [0, 0, 1, 1], [], []>} : vector<4x1152xbf16>, vector<1152x256xbf16>, vector<4x256xf32> -> vector<4x256xf32>
    %790 = vector.broadcast %757 : vector<1x256xf32> to vector<4x256xf32>
    %791 = arith.addf %789, %790 : vector<4x256xf32>
    %cst_190 = arith.constant 0.000000e+00 : f32
    %792 = vector.broadcast %cst_190 : f32 to vector<4x256xf32>
    %793 = arith.maximumf %791, %792 : vector<4x256xf32>
    %794 = vector.extract_strided_slice %793 {offsets = [0, 0], sizes = [2, 256], strides = [1, 1]} : vector<4x256xf32> to vector<2x256xf32>
    %795 = vector.extract_strided_slice %793 {offsets = [2, 0], sizes = [2, 256], strides = [1, 1]} : vector<4x256xf32> to vector<2x256xf32>
    %796 = arith.maximumf %794, %795 : vector<2x256xf32>
    %797 = vector.extract_strided_slice %796 {offsets = [0, 0], sizes = [1, 256], strides = [1, 1]} : vector<2x256xf32> to vector<1x256xf32>
    %798 = vector.extract_strided_slice %796 {offsets = [1, 0], sizes = [1, 256], strides = [1, 1]} : vector<2x256xf32> to vector<1x256xf32>
    %799 = arith.maximumf %797, %798 : vector<1x256xf32>
    %cst_191 = arith.constant dense<0.000000e+00> : vector<256xf32>
    %800 = vector.multi_reduction <add>, %799, %cst_191 [0] : vector<1x256xf32> to vector<256xf32>
    %801 = vector.shape_cast %800 : vector<256xf32> to vector<1x256xf32>
    %cst_192 = arith.constant 1.000000e+00 : f32
    %802 = vector.broadcast %cst_192 : f32 to vector<1x256xf32>
    %803 = arith.mulf %801, %802 : vector<1x256xf32>
    %804 = arith.truncf %803 : vector<1x256xf32> to vector<1x256xbf16>
    %c0_193 = arith.constant 0 : index
    %c0_194 = arith.constant 0 : index
    %805 = vector.load %arg10[%c0_193, %c0_194] : memref<256x128xbf16, #tpu.memory_space<vmem>>, vector<256x128xbf16>
    %cst_195 = arith.constant dense<0.000000e+00> : vector<1x128xf32>
    %806 = tpu.matmul %804, %805, %cst_195 {dimension_numbers = #tpu.dot_dimension_numbers<[1], [0], [0], [1], [0, 0, 1, 1], [], []>} : vector<1x256xbf16>, vector<256x128xbf16>, vector<1x128xf32> -> vector<1x128xf32>
    %c0_196 = arith.constant 0 : index
    %c0_197 = arith.constant 0 : index
    %807 = vector.load %arg11[%c0_196, %c0_197] : memref<1x128xf32, #tpu.memory_space<vmem>>, vector<1x128xf32>
    %808 = arith.addf %806, %807 : vector<1x128xf32>
    %c0_198 = arith.constant 0 : index
    %c0_199 = arith.constant 0 : index
    %c0_200 = arith.constant 0 : index
    %809 = vector.load %arg12[%c0_198, %c0_199, %c0_200] : memref<1x1x128xf32, #tpu.memory_space<vmem>>, vector<1x1x128xf32>
    %810 = vector.shape_cast %809 : vector<1x1x128xf32> to vector<1x128xf32>
    %811 = vector.shape_cast %808 : vector<1x128xf32> to vector<1x1x128xf32>
    tpu.vector_store %arg12[%c0_198, %c0_199, %c0_200], %811 {strides = array<i32>} : memref<1x1x128xf32, #tpu.memory_space<vmem>>, vector<1x1x128xf32>,
    return
  }
  func.func @transform_0(%arg0: i32) -> (i32, i32, i32, i32) {
    %c0_i32 = arith.constant 0 : i32
    %c0_i32_0 = arith.constant 0 : i32
    %c0_i32_1 = arith.constant 0 : i32
    %c0_i32_2 = arith.constant 0 : i32
    return %arg0, %c0_i32, %c0_i32_0, %c0_i32_1 : i32, i32, i32, i32
  }
  func.func @transform_1(%arg0: i32) -> (i32, i32) {
    %c0_i32 = arith.constant 0 : i32
    %c0_i32_0 = arith.constant 0 : i32
    %c0_i32_1 = arith.constant 0 : i32
    return %c0_i32, %c0_i32_0 : i32, i32
  }
  func.func @transform_2(%arg0: i32) -> (i32, i32) {
    %c0_i32 = arith.constant 0 : i32
    %c0_i32_0 = arith.constant 0 : i32
    %c0_i32_1 = arith.constant 0 : i32
    return %c0_i32, %c0_i32_0 : i32, i32
  }
  func.func @transform_3(%arg0: i32) -> (i32, i32) {
    %c0_i32 = arith.constant 0 : i32
    %c0_i32_0 = arith.constant 0 : i32
    %c0_i32_1 = arith.constant 0 : i32
    return %c0_i32, %c0_i32_0 : i32, i32
  }
  func.func @transform_4(%arg0: i32) -> (i32, i32) {
    %c0_i32 = arith.constant 0 : i32
    %c0_i32_0 = arith.constant 0 : i32
    %c0_i32_1 = arith.constant 0 : i32
    return %c0_i32, %c0_i32_0 : i32, i32
  }
  func.func @transform_5(%arg0: i32) -> (i32, i32) {
    %c0_i32 = arith.constant 0 : i32
    %c0_i32_0 = arith.constant 0 : i32
    %c0_i32_1 = arith.constant 0 : i32
    return %c0_i32, %c0_i32_0 : i32, i32
  }
  func.func @transform_6(%arg0: i32) -> (i32, i32) {
    %c0_i32 = arith.constant 0 : i32
    %c0_i32_0 = arith.constant 0 : i32
    %c0_i32_1 = arith.constant 0 : i32
    return %c0_i32, %c0_i32_0 : i32, i32
  }
  func.func @transform_7(%arg0: i32) -> (i32, i32) {
    %c0_i32 = arith.constant 0 : i32
    %c0_i32_0 = arith.constant 0 : i32
    %c0_i32_1 = arith.constant 0 : i32
    return %c0_i32, %c0_i32_0 : i32, i32
  }
  func.func @transform_8(%arg0: i32) -> (i32, i32) {
    %c0_i32 = arith.constant 0 : i32
    %c0_i32_0 = arith.constant 0 : i32
    %c0_i32_1 = arith.constant 0 : i32
    return %c0_i32, %c0_i32_0 : i32, i32
  }
  func.func @transform_9(%arg0: i32) -> (i32, i32) {
    %c0_i32 = arith.constant 0 : i32
    %c0_i32_0 = arith.constant 0 : i32
    %c0_i32_1 = arith.constant 0 : i32
    return %c0_i32, %c0_i32_0 : i32, i32
  }
  func.func @transform_10(%arg0: i32) -> (i32, i32) {
    %c0_i32 = arith.constant 0 : i32
    %c0_i32_0 = arith.constant 0 : i32
    %c0_i32_1 = arith.constant 0 : i32
    return %c0_i32, %c0_i32_0 : i32, i32
  }
  func.func @transform_11(%arg0: i32) -> (i32, i32, i32) {
    %c0_i32 = arith.constant 0 : i32
    %c0_i32_0 = arith.constant 0 : i32
    %c0_i32_1 = arith.constant 0 : i32
    return %arg0, %c0_i32, %c0_i32_0 : i32, i32, i32
  }
}

</mosaic_0001>

<bundles_post_ra>
// kernel: encoder_forward.1
= control target key start
LH: loop header
LB: loop body
LE: loop exit
PB: predicated region body
PF: predicated region fallthrough
CT: control target
= control target key end

     0   :  { %s9098_s0 = inlined_call_operand.vmem [shape: f32[2,18,18,4], index: 0, kind: input, shape index: {}]   ;;  %s9099_s1 = inlined_call_operand.vmem [shape: bf16[36,32], index: 1, kind: input, shape index: {}]   ;;  %s9100_s2 = inlined_call_operand.vmem [shape: f32[1,32], index: 2, kind: input, shape index: {}]   ;;  %s9101_s3 = inlined_call_operand.vmem [shape: bf16[288,64], index: 3, kind: input, shape index: {}]   ;;  %s9102_s4 = inlined_call_operand.vmem [shape: f32[1,64], index: 4, kind: input, shape index: {}]   ;;  %s9103_s5 = inlined_call_operand.vmem [shape: bf16[576,128], index: 5, kind: input, shape index: {}]   ;;  %s9104_s6 = inlined_call_operand.vmem [shape: f32[1,128], index: 6, kind: input, shape index: {}]   ;;  %s9105_s7 = inlined_call_operand.vmem [shape: bf16[1152,256], index: 7, kind: input, shape index: {}]   ;;  %s9106_s8 = inlined_call_operand.vmem [shape: f32[1,256], index: 8, kind: input, shape index: {}]   ;;  %s9107_s9 = inlined_call_operand.vmem [shape: bf16[256,128], index: 9, kind: input, shape index: {}]   ;;  %s9108_s10 = inlined_call_operand.vmem [shape: f32[1,128], index: 10, kind: input, shape index: {}]   ;;  %s9109_s11 = inlined_call_operand.hbm [shape: f32[2,1,128], index: 11, kind: output, shape index: {}]  }
   0x1   :  { %9116 = sst [smem:[#allocation8_spill]] %s9098_s0 }
   0x2   :  { %16 = vsyncpa [#allocation6], 0 }
   0x3   :  { %18 = vsyncpa [#allocation6 + $0x1], 0  ;;  %s6978_s17 = smov 0   ;;  %s6980_s18 = smov 0  }
   0x4   :  { %s6982_s19 = smov 0   ;;  %s6984_s20 = smov 0  }
   0x5 LB: > { %s6999_s21 = sadd.s32 4294967295, %s6902_s20   ;;  %s5157_s22 = sadd.s32 4294967294, %s6902_s20   ;;  %s6902_s20 = sphi %s6984_s20, %s9126_s20   ;;  %s6898_s19 = sphi %s6982_s19, %s9125_s19   ;;  %s6894_s18 = sphi %s6980_s18, %s9124_s18   ;;  %s6890_s17 = sphi %s6978_s17, %s9123_s17  }
   0x6   : > { %s7003_s23 = sadd.s32 1, %s6902_s20   ;;  %s267_s24 = sadd.s32 1, %s6898_s19 }
   0x7   : > { %s264_s25 = ssub.s32 %s6902_s20, %s7003_s23  ;;  %p277_p0 = scmp.ne.s32.totalorder %s6898_s19, %s6894_s18 }
   0x8   : > { %p265_p1 = scmp.eq.s32.totalorder %s264_s25, 0  ;;  %p278_p2 = scmp.eq.s32.totalorder %s6999_s21, 1 }
   0x9   : > { %p283_p3 = scmp.ne.s32.totalorder %s6894_s18, %s6890_s17  ;;  %p284_p4 = scmp.eq.s32.totalorder %s5157_s22, 1 }
   0xa   : > { %s7014_s26 = scalar_select %p265_p1, %s6898_s19, %s267_s24  }
   0xb   : > { %p7016_p5 = por %p278_p2, %p277_p0  ;;  %p7020_p6 = por %p284_p4, %p283_p3 }
   0xc   : > { %p5160_p7 = scmp.ge.s32.totalorder %s6902_s20, 1  ;;  %p340_p8 = scmp.lt.s32.totalorder %s6902_s20, 3 }
   0xe   : > { %p341_p9 = pnand %p5160_p7, %p340_p8 }
   0xf   : > { %p379_p10 = scmp.lt.s32.totalorder (!%p341_p9), %s6999_s21, 1  ;;  %s9119_s0 = sld [smem:[#allocation8_spill]] (!%p341_p9)  ;;  %vm498_vm0 = vcmask (!%p341_p9), 1046528   ;;  %vm510_vm1 = vcmask (!%p341_p9), 1045504   ;;  %v6520_v38 = vld [vmem:[%s9099_s1] sm:$0xff] (!%p341_p9)   ;;  %v6521_v47 = vld [vmem:[%s9099_s1 + $0x8] sm:$0xff] (!%p341_p9)  }
  0x10   : > { %344 = sbr.rel (%p341_p9) target bundleno = 1982 (0x7be), region = 64  ;;  %s6904_s15 = smov (!%p341_p9), 12   ;;  %5593 = vmatprep.subr.bf16.mxu0 (!%p341_p9), %v6520_v38  ;;  %vm1848_vm2 = vcmask (!%p341_p9), 1041408   ;;  %vm584_vm3 = vcmask (!%p341_p9), 31744   ;;  %vm587_vm4 = vcmask (!%p341_p9), 64512   ;;  %vm590_vm5 = vcmask (!%p341_p9), 97280  }
  0x11   : > { %s6905_s16 = smov (!%p341_p9), 4   ;;  %s6906_s22 = smov (!%p341_p9), 8   ;;  %5594 = vmatpush3.bf16.msra.mxu0 (!%p341_p9), %v6520_v38  ;;  %vm593_vm6 = vcmask (!%p341_p9), 130048   ;;  %vm596_vm7 = vcmask (!%p341_p9), 162816   ;;  %vm599_vm8 = vcmask (!%p341_p9), 195584   ;;  %vm385_vm9 = vcmask (!%p341_p9), 261120  }
  0x12   : > { %s6907_s24 = smov (!%p341_p9), 16   ;;  %s9110_s25 = smov (!%p341_p9), 24   ;;  %5595 = vmatprep.subr.bf16.mxu0 (!%p341_p9), %v6521_v47  ;;  %vm602_vm10 = vcmask (!%p341_p9), 228352   ;;  %vm1799_vm11 = vcmask (!%p341_p9), 293888   ;;  %vm387_vm12 = vcmask (!%p341_p9), 254976   ;;  %vm2071_vm13 = vcmask (!%p341_p9), 1040384  }
  0x13   : > { %s6911_s12 = smov (!%p341_p9), 32   ;;  %vm2074_vm14 = vcmask (!%p341_p9), 1042432   ;;  %vm2076_vm15 = vcmask (!%p341_p9), 1043456   ;;  %s9112_s13 = smov (!%p341_p9), 96  }
  0x15   : > { %5596 = vmatpush3.bf16.msra.mxu0 (!%p341_p9), %v6521_v47 }
  0x17   : > { %s380_s29 = scalar_select %p379_p10, %s6999_s21, 1 }
  0x19   : > { %s5672_s30 = smul.u32 432, %s380_s29  ;;  %s6910_s29 = smov 28  }
  0x1b   : > { %s7031_s14 = scalar_lea.vmem %s9119_s0, %s5672_s30  ;;  %s6908_s30 = smov 20  }
  0x1c   : > { %v5162_v0 = vld [vmem:[%s7031_s14 + $0x18] sm:$0xff]  ;;  %v5163_v1 = vld [vmem:[%s7031_s14 + $0x20] sm:$0xff]  ;;  %v425_v4 = vld [vmem:[%s7031_s14 + $0x8] sm:$0xff] }
  0x1d   : > { %v424_v2 = vld [vmem:[%s7031_s14] sm:$0xff]  ;;  %v5725_v3 = vpack.i.bf16 %v5163_v1, %v5162_v0  ;;  %v426_v5 = vld [vmem:[%s7031_s14 + $0x10] sm:$0x3]  ;;  %v5164_v7 = vld [vmem:[%s7031_s14 + $0x28] sm:$0x3]  ;;  %v500_v8 = vrot.slane %v425_v4, 1 }
  0x1e   : > { %v499_v6 = vrot.slane %v424_v2, 1  ;;  %v502_v9 = vrot.slane %v426_v5, 1  ;;  %v514_v10 = vrot.slane %v426_v5, 2  ;;  %v531_v11 = vrot.slane %v5162_v0, 1  ;;  %v5165_v29 = vld [vmem:[%s7031_s14 + $0x30] sm:$0xff]  ;;  %v5166_v31 = vld [vmem:[%s7031_s14 + $0x38] sm:$0xff] }
  0x1f   : > { %5726 = vrot.lane.b32.xlu1 %v5725_v3, %s6904_s15  ;;  %v532_v12 = vrot.slane %v5163_v1, 1  ;;  %v534_v13 = vrot.slane %v5164_v7, 1  ;;  %v511_v14 = vrot.slane %v424_v2, 2  ;;  %v512_v15 = vrot.slane %v425_v4, 2  ;;  %v5167_v32 = vld [vmem:[%s7031_s14 + $0x40] sm:$0x3] }
  0x20   : > { %v501_v16 = vsel %vm498_vm0, %v499_v6, %v500_v8  ;;  %v503_v17 = vsel %vm498_vm0, %v500_v8, %v502_v9  ;;  %v542_v18 = vrot.slane %v5162_v0, 2  ;;  %v543_v19 = vrot.slane %v5163_v1, 2  ;;  %v5168_v44 = vld [vmem:[%s7031_s14 + $0x48] sm:$0xff]  ;;  %v5169_v45 = vld [vmem:[%s7031_s14 + $0x50] sm:$0xff]  ;;  %v5170_v46 = vld [vmem:[%s7031_s14 + $0x58] sm:$0x3] }
  0x21   : > { %v5730_v20 = vpack.i.bf16 %v503_v17, %v501_v16  ;;  %v533_v21 = vsel %vm498_vm0, %v531_v11, %v532_v12  ;;  %v535_v22 = vsel %vm498_vm0, %v532_v12, %v534_v13  ;;  %v513_v23 = vsel %vm510_vm1, %v511_v14, %v512_v15  ;;  %v5171_v1 = vld [vmem:[%s7031_s14 + $0x60] sm:$0xff]  ;;  %v5172_v2 = vld [vmem:[%s7031_s14 + $0x68] sm:$0xff]  ;;  %v5173_v3 = vld [vmem:[%s7031_s14 + $0x70] sm:$0x3] }
  0x22   : > { %v5740_v24 = vpack.i.bf16 %v535_v22, %v533_v21  ;;  %v515_v25 = vsel %vm510_vm1, %v512_v15, %v514_v10  ;;  %v545_v27 = vrot.slane %v5164_v7, 2  ;;  %v544_v28 = vsel %vm510_vm1, %v542_v18, %v543_v19  ;;  %v6522_v6 = vld [vmem:[%s9099_s1 + $0x10] ss:$0 sps:$4 sm:$0x33]   ;;  %v5174_v10 = vld [vmem:[%s7031_s14 + $0x78] sm:$0xff]  ;;  %v5175_v11 = vld [vmem:[%s7031_s14 + $0x80] sm:$0xff] }
  0x23   : > { %5731 = vrot.lane.b32.xlu0 %v5730_v20, %s6905_s16  ;;  %v5735_v26 = vpack.i.bf16 %v515_v25, %v513_v23  ;;  %v562_v34 = vrot.slane %v5165_v29, 1  ;;  %v563_v35 = vrot.slane %v5166_v31, 1  ;;  %v565_v36 = vrot.slane %v5167_v32, 1  ;;  %5671 = vmatprep.subr.msk.bf16.mxu0 %vm1848_vm2, %v6522_v6  ;;  %v5176_v17 = vld [vmem:[%s7031_s14 + $0x88] sm:$0x3] }
  0x24   : > { %5741 = vrot.lane.b32.xlu1 %v5740_v24, %s6905_s16  ;;  %v546_v30 = vsel %vm510_vm1, %v543_v19, %v545_v27  ;;  %v573_v37 = vrot.slane %v5165_v29, 2  ;;  %v5750_v39 = vpack.i.bf16 %v5166_v31, %v5165_v29  ;;  %v574_v42 = vrot.slane %v5166_v31, 2  ;;  %v5180_v47 = vld [vmem:[%s7031_s14 + $0xa8] sm:$0xff] }
  0x25   : > { %v5745_v33 = vpack.i.bf16 %v546_v30, %v544_v28  ;;  %v564_v40 = vsel %vm498_vm0, %v562_v34, %v563_v35  ;;  %v566_v41 = vsel %vm498_vm0, %v563_v35, %v565_v36  ;;  %v576_v43 = vrot.slane %v5167_v32, 2  ;;  %v5177_v35 = vld [vmem:[%s7031_s14 + $0x90] sm:$0xff]  ;;  %v5178_v36 = vld [vmem:[%s7031_s14 + $0x98] sm:$0xff] }
  0x26   : > { %v5765_v48 = vpack.i.bf16 %v566_v41, %v564_v40  ;;  %v658_v49 = vrot.slane %v5168_v44, 2  ;;  %v659_v50 = vrot.slane %v5169_v45, 2  ;;  %v575_v51 = vsel %vm510_vm1, %v573_v37, %v574_v42  ;;  %v5179_v37 = vld [vmem:[%s7031_s14 + $0xa0] sm:$0x3] }
  0x27   : > { %5736 = vrot.lane.b32.xlu0 %v5735_v26, %s6906_s22  ;;  %v577_v52 = vsel %vm510_vm1, %v574_v42, %v576_v43  ;;  %v661_v53 = vrot.slane %v5170_v46, 2  ;;  %v647_v54 = vrot.slane %v5168_v44, 1  ;;  %v648_v56 = vrot.slane %v5169_v45, 1 }
  0x28   : > { %5756 = vrot.lane.b32.xlu1 %v5740_v24, %s6907_s24  ;;  %v5775_v55 = vpack.i.bf16 %v577_v52, %v575_v51  ;;  %v650_v57 = vrot.slane %v5170_v46, 1  ;;  %v660_v58 = vsel %vm510_vm1, %v658_v49, %v659_v50  ;;  %v5785_v60 = vpack.i.bf16 %v5169_v45, %v5168_v44  ;;  %v5182_v49 = vld [vmem:[%s7031_s14 + $0xb8] sm:$0x3] }
  0x29   : > { %v662_v59 = vsel %vm510_vm1, %v659_v50, %v661_v53  ;;  %v649_v62 = vsel %vm498_vm0, %v647_v54, %v648_v56  ;;  %v725_v4 = vrot.slane %v5171_v1, 1  ;;  %v726_v5 = vrot.slane %v5172_v2, 1 }
  0x2a   : > { %v5800_v61 = vpack.i.bf16 %v662_v59, %v660_v58  ;;  %v651_v63 = vsel %vm498_vm0, %v648_v56, %v650_v57  ;;  %v728_v7 = vrot.slane %v5173_v3, 1  ;;  %v5835_v8 = vpack.i.bf16 %v5172_v2, %v5171_v1 }
  0x2b   : > { %5746 = vrot.lane.b32.xlu0 %v5745_v33, %s6906_s22  ;;  %v5795_v0 = vpack.i.bf16 %v651_v63, %v649_v62  ;;  %v736_v9 = vrot.slane %v5171_v1, 2  ;;  %v1850_v12 = vsel %vm1848_vm2, %v6522_v6, 0  ;;  %v727_v13 = vsel %vm498_vm0, %v725_v4, %v726_v5  ;;  %v5184_v4 = vld [vmem:[%s7031_s14 + $0xc8] sm:$0xff] }
  0x2c   : > { %5761 = vrot.lane.b32.xlu1 %v5745_v33, %s6908_s30  ;;  %v729_v14 = vsel %vm498_vm0, %v726_v5, %v728_v7  ;;  %v737_v15 = vrot.slane %v5172_v2, 2  ;;  %v739_v16 = vrot.slane %v5173_v3, 2  ;;  %5598 = vmatpush3.bf16.msra.mxu0 %v1850_v12  ;;  %v814_v19 = vrot.slane %v5174_v10, 2  ;;  %v5183_v3 = vld [vmem:[%s7031_s14 + $0xc0] sm:$0xff]  ;;  %v5185_v5 = vld [vmem:[%s7031_s14 + $0xd0] sm:$0x3] }
  0x2d   : > { %v5845_v18 = vpack.i.bf16 %v729_v14, %v727_v13  ;;  %v815_v20 = vrot.slane %v5175_v11, 2  ;;  %v817_v21 = vrot.slane %v5176_v17, 2  ;;  %v803_v25 = vrot.slane %v5174_v10, 1  ;;  %v5188_v12 = vld [vmem:[%s7031_s14 + $0xe8] sm:$0x3] }
  0x2e   : > { %v738_v22 = vsel %vm510_vm1, %v736_v9, %v737_v15  ;;  %v740_v23 = vsel %vm510_vm1, %v737_v15, %v739_v16  ;;  %v804_v26 = vrot.slane %v5175_v11, 1  ;;  %v806_v27 = vrot.slane %v5176_v17, 1 }
  0x2f   : > { %5751 = vrot.lane.b32.xlu0 %v5750_v39, %s6904_s15  ;;  %v5855_v24 = vpack.i.bf16 %v740_v23, %v738_v22  ;;  %v816_v28 = vsel %vm510_vm1, %v814_v19, %v815_v20  ;;  %v818_v29 = vsel %vm510_vm1, %v815_v20, %v817_v21  ;;  %v5865_v30 = vpack.i.bf16 %v5175_v11, %v5174_v10  ;;  %v5186_v10 = vld [vmem:[%s7031_s14 + $0xd8] sm:$0xff]  ;;  %v5187_v11 = vld [vmem:[%s7031_s14 + $0xe0] sm:$0xff] }
  0x30   : > { %5771 = vrot.lane.b32.xlu1 %v5750_v39, %s9110_s25  ;;  %v5880_v31 = vpack.i.bf16 %v818_v29, %v816_v28  ;;  %v805_v32 = vsel %vm498_vm0, %v803_v25, %v804_v26  ;;  %v807_v33 = vsel %vm498_vm0, %v804_v26, %v806_v27  ;;  %v881_v38 = vrot.slane %v5177_v35, 1 }
  0x31   : > { %v5875_v34 = vpack.i.bf16 %v807_v33, %v805_v32  ;;  %v882_v39 = vrot.slane %v5178_v36, 1  ;;  %v884_v40 = vrot.slane %v5179_v37, 1  ;;  %v5915_v41 = vpack.i.bf16 %v5178_v36, %v5177_v35 }
  0x32   : > { %v892_v42 = vrot.slane %v5177_v35, 2  ;;  %v893_v45 = vrot.slane %v5178_v36, 2  ;;  %v895_v46 = vrot.slane %v5179_v37, 2  ;;  %v970_v53 = vrot.slane %v5180_v47, 2 }
  0x33   : > { %5766 = vrot.lane.b32.xlu0 %v5765_v48, %s6907_s24  ;;  %v883_v43 = vsel %vm498_vm0, %v881_v38, %v882_v39  ;;  %v885_v44 = vsel %vm498_vm0, %v882_v39, %v884_v40  ;;  %v959_v57 = vrot.slane %v5180_v47, 1  ;;  %v962_v59 = vrot.slane %v5182_v49, 1  ;;  %v5189_v40 = vld [vmem:[%s7031_s14 + $0xf0] sm:$0xff] }
  0x34   : > { %5781 = vrot.lane.b32.xlu1 %v5765_v48, %s6910_s29  ;;  %v5925_v50 = vpack.i.bf16 %v885_v44, %v883_v43  ;;  %v894_v51 = vsel %vm510_vm1, %v892_v42, %v893_v45  ;;  %v896_v52 = vsel %vm510_vm1, %v893_v45, %v895_v46  ;;  %v1037_v6 = vrot.slane %v5183_v3, 1  ;;  %v5191_v43 = vld [vmem:[%s7031_s14 + $0x100] sm:$0x3] }
  0x35   : > { %v5935_v56 = vpack.i.bf16 %v896_v52, %v894_v51  ;;  %v1038_v7 = vrot.slane %v5184_v4, 1  ;;  %v1048_v9 = vrot.slane %v5183_v3, 2  ;;  %v5995_v13 = vpack.i.bf16 %v5184_v4, %v5183_v3 }
  0x36   : > { %v1049_v16 = vrot.slane %v5184_v4, 2  ;;  %v1051_v17 = vrot.slane %v5185_v5, 2  ;;  %v1127_v19 = vrot.slane %v5187_v11, 2  ;;  %v1129_v20 = vrot.slane %v5188_v12, 2 }
  0x37   : > { %5776 = vrot.lane.b32.xlu0 %v5775_v55, %s6908_s30  ;;  %v1039_v14 = vsel %vm498_vm0, %v1037_v6, %v1038_v7  ;;  %v1115_v25 = vrot.slane %v5186_v10, 1  ;;  %v1116_v27 = vrot.slane %v5187_v11, 1  ;;  %v1118_v28 = vrot.slane %v5188_v12, 1 }
  0x38   : > { %5791 = vrot.lane.b32.xlu1 %v5775_v55, %s6911_s12  ;;  %v1050_v22 = vsel %vm510_vm1, %v1048_v9, %v1049_v16  ;;  %v1052_v23 = vsel %vm510_vm1, %v1049_v16, %v1051_v17  ;;  %v6025_v33 = vpack.i.bf16 %v5187_v11, %v5186_v10  ;;  %v1196_v51 = vrot.slane %v5191_v43, 1 }
  0x39   : > { %v6015_v26 = vpack.i.bf16 %v1052_v23, %v1050_v22  ;;  %v1117_v35 = vsel %vm498_vm0, %v1115_v25, %v1116_v27  ;;  %v1119_v36 = vsel %vm498_vm0, %v1116_v27, %v1118_v28  ;;  %v1204_v52 = vrot.slane %v5189_v40, 2  ;;  %v6811_v23 = vld [vmem:[%s7031_s14 + $0x20] sm:$0xff] }
  0x3a   : > { %v6035_v39 = vpack.i.bf16 %v1119_v36, %v1117_v35 }
  0x3b   : > { %5786 = vrot.lane.b32.xlu0 %v5785_v60, %s9110_s25  ;;  %s9120_s25 = smov 24  }
  0x3c   : > { %5801 = vrot.lane.b32.xlu1 %v5800_v61, %s6911_s12 }
  0x3f   : > { %5796 = vrot.lane.b32.xlu0 %v5795_v0, %s6910_s29 }
  0x40   : > { %5811 = vrot.lane.b32.xlu1 %v5775_v55, %s6906_s22  ;;  %v973_v55 = vrot.slane %v5182_v49, 2  ;;  %v1193_v49 = vrot.slane %v5189_v40, 1 }
  0x43   : > { %5806 = vrot.lane.b32.xlu0 %v5765_v48, %s6905_s16  ;;  %v5181_v48 = vld [vmem:[%s7031_s14 + $0xb0] sm:$0xff] }
  0x44   : > { %5821 = vrot.lane.b32.xlu1 %v5785_v60, %s6904_s15  ;;  %v971_v54 = vrot.slane %v5181_v48, 2  ;;  %v960_v58 = vrot.slane %v5181_v48, 1  ;;  %v5945_v62 = vpack.i.bf16 %v5181_v48, %v5180_v47 }
  0x46   : > { %v972_v60 = vsel %vm510_vm1, %v970_v53, %v971_v54  ;;  %v963_v1 = vsel %vm498_vm0, %v960_v58, %v962_v59  ;;  %v6810_v59 = vld [vmem:[%s7031_s14] sm:$0xff] }
  0x47   : > { %5816 = vrot.lane.b32.xlu0 %v5795_v0, %s6905_s16 }
  0x48   : > { %5831 = vrot.lane.b32.xlu1 %v5795_v0, %s6907_s24  ;;  %v961_v0 = vsel %vm498_vm0, %v959_v57, %v960_v58  ;;  %v6809_v57 = vld [vmem:[%s7031_s14 + $0x8] sm:$0xff] }
  0x49   : > { %v5955_v2 = vpack.i.bf16 %v963_v1, %v961_v0 }
  0x4b   : > { %5826 = vrot.lane.b32.xlu0 %v5800_v61, %s6906_s22 }
  0x4c   : > { %5841 = vrot.lane.b32.xlu1 %v5800_v61, %s6908_s30  ;;  %v974_v61 = vsel %vm510_vm1, %v971_v54, %v973_v55 }
  0x4d   : > { %v5960_v63 = vpack.i.bf16 %v974_v61, %v972_v60 }
  0x4f   : > { %5836 = vrot.lane.b32.xlu0 %v5835_v8, %s6904_s15 }
  0x50   : > { %5851 = vrot.lane.b32.xlu1 %v5835_v8, %s9120_s25  ;;  %v1040_v8 = vrot.slane %v5185_v5, 1  ;;  %v7213_v5 = vld [vmem:[%s7031_s14 + $0x108] sm:$0xff] }
  0x52   : > { %v1041_v15 = vsel %vm498_vm0, %v1038_v7, %v1040_v8 }
  0x53   : > { %5846 = vrot.lane.b32.xlu0 %v5845_v18, %s6907_s24  ;;  %v6005_v21 = vpack.i.bf16 %v1041_v15, %v1039_v14 }
  0x54   : > { %5861 = vrot.lane.b32.xlu1 %v5845_v18, %s6910_s29 }
  0x57   : > { %5856 = vrot.lane.b32.xlu0 %v5855_v24, %s6908_s30 }
  0x58   : > { %5871 = vrot.lane.b32.xlu1 %v5855_v24, %s6911_s12 }
  0x5b   : > { %5866 = vrot.lane.b32.xlu0 %v5865_v30, %s9120_s25 }
  0x5c   : > { %5881 = vrot.lane.b32.xlu1 %v5880_v31, %s6911_s12 }
  0x5f   : > { %5876 = vrot.lane.b32.xlu0 %v5875_v34, %s6910_s29 }
  0x60   : > { %5891 = vrot.lane.b32.xlu1 %v5855_v24, %s6906_s22 }
  0x63   : > { %5886 = vrot.lane.b32.xlu0 %v5845_v18, %s6905_s16  ;;  %v1126_v18 = vrot.slane %v5186_v10, 2 }
  0x64   : > { %5901 = vrot.lane.b32.xlu1 %v5865_v30, %s6904_s15 }
  0x65   : > { %v1128_v30 = vsel %vm510_vm1, %v1126_v18, %v1127_v19 }
  0x67   : > { %5896 = vrot.lane.b32.xlu0 %v5875_v34, %s6905_s16 }
  0x68   : > { %5911 = vrot.lane.b32.xlu1 %v5875_v34, %s6907_s24 }
  0x6b   : > { %5906 = vrot.lane.b32.xlu0 %v5880_v31, %s6906_s22 }
  0x6c   : > { %5921 = vrot.lane.b32.xlu1 %v5880_v31, %s6908_s30  ;;  %v1130_v31 = vsel %vm510_vm1, %v1127_v19, %v1129_v20  ;;  %v1282_v19 = vrot.slane %v7213_v5, 2 }
  0x6d   : > { %v7177_v34 = vpack.i.bf16 %v1130_v31, %v1128_v30 }
  0x6f   : > { %5916 = vrot.lane.b32.xlu0 %v5915_v41, %s6904_s15 }
  0x70   : > { %5931 = vrot.lane.b32.xlu1 %v5915_v41, %s9120_s25  ;;  %v5190_v41 = vld [vmem:[%s7031_s14 + $0xf8] sm:$0xff] }
  0x71   : > { %v1205_v53 = vrot.slane %v5190_v41, 2  ;;  %v7197_v55 = vpack.i.bf16 %v5190_v41, %v5189_v40 }
  0x73   : > { %5926 = vrot.lane.b32.xlu0 %v5925_v50, %s6907_s24  ;;  %v1206_v4 = vsel %vm510_vm1, %v1204_v52, %v1205_v53 }
  0x74   : > { %5941 = vrot.lane.b32.xlu1 %v5925_v50, %s6910_s29 }
  0x77   : > { %5936 = vrot.lane.b32.xlu0 %v5935_v56, %s6908_s30 }
  0x78   : > { %5951 = vrot.lane.b32.xlu1 %v5935_v56, %s6911_s12 }
  0x7b   : > { %5946 = vrot.lane.b32.xlu0 %v5945_v62, %s9120_s25 }
  0x7c   : > { %5961 = vrot.lane.b32.xlu1 %v5960_v63, %s6911_s12 }
  0x7f   : > { %5956 = vrot.lane.b32.xlu0 %v5955_v2, %s6910_s29 }
  0x80   : > { %5971 = vrot.lane.b32.xlu1 %v5935_v56, %s6906_s22  ;;  %v1207_v56 = vrot.slane %v5191_v43, 2 }
  0x82   : > { %v1208_v10 = vsel %vm510_vm1, %v1205_v53, %v1207_v56 }
  0x83   : > { %5966 = vrot.lane.b32.xlu0 %v5925_v50, %s6905_s16  ;;  %v1194_v50 = vrot.slane %v5190_v41, 1  ;;  %v7230_v22 = vpack.i.bf16 %v1208_v10, %v1206_v4 }
  0x84   : > { %5981 = vrot.lane.b32.xlu1 %v5945_v62, %s6904_s15 }
  0x85   : > { %v1195_v0 = vsel %vm498_vm0, %v1193_v49, %v1194_v50  ;;  %v1197_v3 = vsel %vm498_vm0, %v1194_v50, %v1196_v51  ;;  %v5194_v49 = vld [vmem:[%s7031_s14 + $0x118] sm:$0x3] }
  0x86   : > { %v7226_v18 = vpack.i.bf16 %v1197_v3, %v1195_v0  ;;  %v6812_v50 = vld [vmem:[%s7031_s14 + $0x18] sm:$0xff] }
  0x87   : > { %5976 = vrot.lane.b32.xlu0 %v5955_v2, %s6905_s16 }
  0x88   : > { %5991 = vrot.lane.b32.xlu1 %v5955_v2, %s6907_s24 }
  0x8b   : > { %5986 = vrot.lane.b32.xlu0 %v5960_v63, %s6906_s22 }
  0x8c   : > { %6001 = vrot.lane.b32.xlu1 %v5960_v63, %s6908_s30 }
  0x8f   : > { %5996 = vrot.lane.b32.xlu0 %v5995_v13, %s6904_s15 }
  0x90   : > { %6011 = vrot.lane.b32.xlu1 %v5995_v13, %s9120_s25 }
  0x91   : > { %v7167_v24 = vpop.permute.xlu1 %5726 }
  0x92   : > { %v5729_v1 = vunpack.i.h.bf16 %v7167_v24  ;;  %v5728_v2 = vunpack.i.l.bf16 %v7167_v24 }
  0x93   : > { %6006 = vrot.lane.b32.xlu0 %v6005_v21, %s6907_s24 }
  0x94   : > { %6021 = vrot.lane.b32.xlu1 %v6005_v21, %s6910_s29 }
  0x95   : > { %v5732_v29 = vpop.permute.xlu0 %5731 }
  0x96   : > { %v7173_v32 = vpop.permute.xlu1 %5741  ;;  %v5734_v44 = vunpack.i.h.bf16 %v5732_v29  ;;  %v5733_v45 = vunpack.i.l.bf16 %v5732_v29 }
  0x97   : > { %6016 = vrot.lane.b32.xlu0 %v6015_v26, %s6908_s30  ;;  %v5744_v6 = vunpack.i.h.bf16 %v7173_v32  ;;  %v5743_v25 = vunpack.i.l.bf16 %v7173_v32 }
  0x98   : > { %6031 = vrot.lane.b32.xlu1 %v6015_v26, %s6911_s12  ;;  %v586_v58 = vsel %vm584_vm3, %v6809_v57, %v5734_v44  ;;  %v585_v60 = vsel %vm584_vm3, %v6810_v59, %v5733_v45 }
  0x99   : > { %v5737_v37 = vpop.permute.xlu0 %5736  ;;  %v670_v24 = vsel %vm584_vm3, %v6811_v23, %v5744_v6  ;;  %v669_v51 = vsel %vm584_vm3, %v6812_v50, %v5743_v25 }
  0x9a   : > { %v7181_v38 = vpop.permute.xlu1 %5756  ;;  %v5739_v47 = vunpack.i.h.bf16 %v5737_v37  ;;  %v5738_v48 = vunpack.i.l.bf16 %v5737_v37 }
  0x9b   : > { %6026 = vrot.lane.b32.xlu0 %v6025_v33, %s9120_s25  ;;  %v5759_v7 = vunpack.i.h.bf16 %v7181_v38  ;;  %v5758_v8 = vunpack.i.l.bf16 %v7181_v38 }
  0x9c   : > { %6041 = vrot.lane.b32.xlu1 %v7177_v34, %s6911_s12  ;;  %v588_v62 = vsel %vm587_vm4, %v585_v60, %v5738_v48  ;;  %v589_v63 = vsel %vm587_vm4, %v586_v58, %v5739_v47  ;;  %v5193_v48 = vld [vmem:[%s7031_s14 + $0x110] sm:$0xff] }
  0x9d   : > { %v7188_v42 = vpop.permute.xlu0 %5746  ;;  %v591_v11 = vsel %vm590_vm5, %v588_v62, %v5728_v2  ;;  %v592_v12 = vsel %vm590_vm5, %v589_v63, %v5729_v1  ;;  %v1283_v62 = vrot.slane %v5193_v48, 2  ;;  %v1285_v63 = vrot.slane %v5194_v49, 2 }
  0x9e   : > { %v7191_v46 = vpop.permute.xlu1 %5761  ;;  %v595_v27 = vsel %vm593_vm6, %v592_v12, %v5759_v7  ;;  %v5749_v29 = vunpack.i.h.bf16 %v7188_v42  ;;  %v5748_v30 = vunpack.i.l.bf16 %v7188_v42  ;;  %v1271_v12 = vrot.slane %v7213_v5, 1 }
  0x9f   : > { %6036 = vrot.lane.b32.xlu0 %v6035_v39, %s6910_s29  ;;  %v5764_v13 = vunpack.i.h.bf16 %v7191_v46  ;;  %v5763_v14 = vunpack.i.l.bf16 %v7191_v46  ;;  %v1284_v23 = vsel %vm510_vm1, %v1282_v19, %v1283_v62 }
  0xa0   : > { %6051 = vrot.lane.b32.xlu1 %v6015_v26, %s6906_s22  ;;  %v594_v26 = vsel %vm593_vm6, %v591_v11, %v5758_v8  ;;  %v672_v56 = vsel %vm587_vm4, %v670_v24, %v5749_v29  ;;  %v671_v57 = vsel %vm587_vm4, %v669_v51, %v5748_v30  ;;  %v1286_v24 = vsel %vm510_vm1, %v1283_v62, %v1285_v63  ;;  %v6814_v51 = vld [vmem:[%s7031_s14 + $0x38] sm:$0xff] }
  0xa1   : > { %v7195_v54 = vpop.permute.xlu0 %5751  ;;  %v597_v31 = vsel %vm596_vm7, %v594_v26, %v5763_v14 }
  0xa2   : > { %v5772_v61 = vpop.permute.xlu1 %5771  ;;  %v5753_v40 = vunpack.i.l.bf16 %v7195_v54 }
  0xa3   : > { %6046 = vrot.lane.b32.xlu0 %v6005_v21, %s6905_s16  ;;  %v5774_v16 = vunpack.i.h.bf16 %v5772_v61  ;;  %v5773_v17 = vunpack.i.l.bf16 %v5772_v61 }
  0xa4   : > { %6061 = vrot.lane.b32.xlu1 %v6025_v33, %s6904_s15  ;;  %v598_v33 = vsel %vm596_vm7, %v595_v27, %v5764_v13  ;;  %v673_v60 = vsel %vm590_vm5, %v671_v57, %v5753_v40  ;;  %v6105_v27 = vpack.i.bf16 %v5193_v48, %v7213_v5  ;;  %v5196_v5 = vld [vmem:[%s7031_s14 + $0x128] sm:$0xff] }
  0xa5   : > { %v7218_v9 = vpop.permute.xlu0 %5766  ;;  %v600_v32 = vsel %vm599_vm8, %v597_v31, %v5773_v17  ;;  %v601_v38 = vsel %vm599_vm8, %v598_v33, %v5774_v16  ;;  %v1274_v16 = vrot.slane %v5194_v49, 1 }
  0xa6   : > { %v5782_v15 = vpop.permute.xlu1 %5781  ;;  %v5769_v43 = vunpack.i.h.bf16 %v7218_v9  ;;  %v5768_v44 = vunpack.i.l.bf16 %v7218_v9 }
  0xa7   : > { %6056 = vrot.lane.b32.xlu0 %v6035_v39, %s6905_s16  ;;  %v5784_v20 = vunpack.i.h.bf16 %v5782_v15  ;;  %v5783_v21 = vunpack.i.l.bf16 %v5782_v15  ;;  %v1272_v15 = vrot.slane %v5193_v48, 1  ;;  %v6813_v48 = vld [vmem:[%s7031_s14 + $0x30] sm:$0xff] }
  0xa8   : > { %6071 = vrot.lane.b32.xlu1 %v6035_v39, %s6907_s24  ;;  %v5754_v39 = vunpack.i.h.bf16 %v7195_v54  ;;  %v675_v0 = vsel %vm593_vm6, %v673_v60, %v5768_v44  ;;  %v1361_v44 = vrot.slane %v5196_v5, 2 }
  0xa9   : > { %v5777_v28 = vpop.permute.xlu0 %5776  ;;  %v603_v41 = vsel %vm602_vm10, %v600_v32, %v5783_v21  ;;  %v604_v42 = vsel %vm602_vm10, %v601_v38, %v5784_v20  ;;  %v1273_v19 = vsel %vm498_vm0, %v1271_v12, %v1272_v15  ;;  %v1275_v29 = vsel %vm498_vm0, %v1272_v15, %v1274_v16 }
  0xaa   : > { %v5792_v35 = vpop.permute.xlu1 %5791  ;;  %v5779_v52 = vunpack.i.h.bf16 %v5777_v28  ;;  %v674_v61 = vsel %vm590_vm5, %v672_v56, %v5754_v39  ;;  %v6115_v33 = vpack.i.bf16 %v1275_v29, %v1273_v19 }
  0xab   : > { %v5794_v36 = vunpack.i.h.bf16 %v5792_v35  ;;  %v5793_v37 = vunpack.i.l.bf16 %v5792_v35  ;;  %6066 = vrot.lane.b32.xlu0 %v7177_v34, %s6906_s22  ;;  %v676_v1 = vsel %vm593_vm6, %v674_v61, %v5769_v43  ;;  %v5195_v35 = vld [vmem:[%s7031_s14 + $0x120] sm:$0xff]  ;;  %v7337_v61 = vld [vmem:[%s7031_s14 + $0x138] sm:$0xff] }
  0xac   : > { %6081 = vrot.lane.b32.xlu1 %v7177_v34, %s6908_s30  ;;  %v5778_v34 = vunpack.i.l.bf16 %v5777_v28  ;;  %v678_v7 = vsel %vm596_vm7, %v676_v1, %v5779_v52  ;;  %v7297_v28 = vpack.i.bf16 %v1286_v24, %v1284_v23  ;;  %v1349_v40 = vrot.slane %v5195_v35, 1 }
  0xad   : > { %v5787_v45 = vpop.permute.xlu0 %5786  ;;  %v605_v46 = vsel %vm385_vm9, %v603_v41, %v5793_v37  ;;  %v606_v47 = vsel %vm385_vm9, %v604_v42, %v5794_v36  ;;  %v5197_v36 = vld [vmem:[%s7031_s14 + $0x130] sm:$0x3]  ;;  %v1350_v41 = vrot.slane %v5196_v5, 1  ;;  %v1360_v43 = vrot.slane %v5195_v35, 2 }
  0xae   : > { %v5802_v53 = vpop.permute.xlu1 %5801  ;;  %v607_v54 = vpack.c.bf16 %v606_v47, %v605_v46  ;;  %v5789_v58 = vunpack.i.h.bf16 %v5787_v45  ;;  %v5788_v59 = vunpack.i.l.bf16 %v5787_v45  ;;  %v677_v6 = vsel %vm596_vm7, %v675_v0, %v5778_v34 }
  0xaf   : > { %6076 = vrot.lane.b32.xlu0 %v7197_v55, %s6904_s15  ;;  %v5804_v2 = vunpack.i.h.bf16 %v5802_v53  ;;  %v5803_v3 = vunpack.i.l.bf16 %v5802_v53  ;;  %v1352_v42 = vrot.slane %v5197_v36, 1  ;;  %v1363_v46 = vrot.slane %v5197_v36, 2 }
  0xb0   : > { %6091 = vrot.lane.b32.xlu1 %v7197_v55, %s9120_s25  ;;  %5599 = vmatprep.mubr.msk.bf16.mxu0 %vm1799_vm11, %v607_v54  ;;  %v679_v55 = vsel %vm599_vm8, %v677_v6, %v5788_v59  ;;  %v680_v11 = vsel %vm599_vm8, %v678_v7, %v5789_v58  ;;  %v7324_v53 = vpack.i.bf16 %v5196_v5, %v5195_v35 }
  0xb1   : > { %v5797_v4 = vpop.permute.xlu0 %5796  ;;  %v1353_v54 = vsel %vm498_vm0, %v1350_v41, %v1352_v42  ;;  %v1362_v56 = vsel %vm510_vm1, %v1360_v43, %v1361_v44  ;;  %v1364_v60 = vsel %vm510_vm1, %v1361_v44, %v1363_v46  ;;  %v5200_v42 = vld [vmem:[%s7031_s14 + $0x148] sm:$0x3] }
  0xb2   : > { %v5799_v8 = vunpack.i.h.bf16 %v5797_v4  ;;  %v5798_v9 = vunpack.i.l.bf16 %v5797_v4  ;;  %v7272_v10 = vpop.permute.xlu1 %5811  ;;  %v6816_v43 = vld [vmem:[%s7031_s14 + $0x48] sm:$0xff] }
  0xb3   : > { %6086 = vrot.lane.b32.xlu0 %v7226_v18, %s6907_s24  ;;  %v5813_v45 = vunpack.i.l.bf16 %v7272_v10  ;;  %v5814_v47 = vunpack.i.h.bf16 %v7272_v10  ;;  %v1438_v10 = vrot.slane %v7337_v61, 2 }
  0xb4   : > { %v681_v13 = vsel %vm602_vm10, %v679_v55, %v5798_v9  ;;  %v682_v14 = vsel %vm602_vm10, %v680_v11, %v5799_v8  ;;  %6101 = vrot.lane.b32.xlu1 %v7226_v18, %s6910_s29  ;;  %v7348_v9 = vpack.i.bf16 %v1364_v60, %v1362_v56 }
  0xb5   : > { %v5807_v17 = vpop.permute.xlu0 %5806  ;;  %v683_v20 = vsel %vm385_vm9, %v681_v13, %v5803_v3  ;;  %v684_v21 = vsel %vm385_vm9, %v682_v14, %v5804_v2  ;;  %v6815_v14 = vld [vmem:[%s7031_s14 + $0x50] sm:$0xff] }
  0xb6   : > { %v7289_v25 = vpop.permute.xlu1 %5821  ;;  %v685_v26 = vpack.c.bf16 %v684_v21, %v683_v20  ;;  %v5808_v37 = vunpack.i.l.bf16 %v5807_v17  ;;  %v5809_v38 = vunpack.i.h.bf16 %v5807_v17 }
  0xb7   : > { %6096 = vrot.lane.b32.xlu0 %v7230_v22, %s6908_s30  ;;  %v5824_v57 = vunpack.i.h.bf16 %v7289_v25  ;;  %v5823_v58 = vunpack.i.l.bf16 %v7289_v25 }
  0xb8   : > { %6111 = vrot.lane.b32.xlu1 %v7230_v22, %s6911_s12  ;;  %5600 = vmatmul.mubr.msk.bf16.vlgmr.msra.gmra.mrb[0].mxu0 %vm1799_vm11, %v685_v26  ;;  %v747_v49 = vsel %vm584_vm3, %v6813_v48, %v5808_v37  ;;  %v748_v52 = vsel %vm584_vm3, %v6814_v51, %v5809_v38 }
  0xb9   : > { %v7301_v30 = vpop.permute.xlu0 %5816  ;;  %v749_v59 = vsel %vm587_vm4, %v747_v49, %v5813_v45 }
  0xba   : > { %v7303_v31 = vpop.permute.xlu1 %5831  ;;  %v5819_v62 = vunpack.i.h.bf16 %v7301_v30  ;;  %v751_v55 = vsel %vm590_vm5, %v749_v59, %v5823_v58  ;;  %v5818_v16 = vunpack.i.l.bf16 %v7301_v30 }
  0xbb   : > { %6106 = vrot.lane.b32.xlu0 %v6105_v27, %s9120_s25  ;;  %v5834_v63 = vunpack.i.h.bf16 %v7303_v31  ;;  %v5833_v0 = vunpack.i.l.bf16 %v7303_v31 }
  0xbc   : > { %6121 = vrot.lane.b32.xlu1 %v7297_v28, %s6911_s12  ;;  %v826_v15 = vsel %vm584_vm3, %v6815_v14, %v5819_v62  ;;  %v825_v44 = vsel %vm584_vm3, %v6816_v43, %v5818_v16 }
  0xbd   : > { %v7311_v32 = vpop.permute.xlu0 %5826  ;;  %v753_v17 = vsel %vm593_vm6, %v751_v55, %v5833_v0  ;;  %v1430_v55 = vrot.slane %v5200_v42, 1 }
  0xbe   : > { %v5842_v39 = vpop.permute.xlu1 %5841  ;;  %v5829_v23 = vunpack.i.h.bf16 %v7311_v32  ;;  %v5828_v24 = vunpack.i.l.bf16 %v7311_v32 }
  0xbf   : > { %6116 = vrot.lane.b32.xlu0 %v6115_v33, %s6910_s29  ;;  %v5844_v2 = vunpack.i.h.bf16 %v5842_v39  ;;  %v5843_v3 = vunpack.i.l.bf16 %v5842_v39 }
  0xc0   : > { %6131 = vrot.lane.b32.xlu1 %v7230_v22, %s6906_s22  ;;  %v1351_v22 = vsel %vm498_vm0, %v1349_v40, %v1350_v41  ;;  %v5199_v41 = vld [vmem:[%s7031_s14 + $0x140] sm:$0xff]  ;;  %v828_v49 = vsel %vm587_vm4, %v826_v15, %v5829_v23 }
  0xc1   : > { %v7320_v50 = vpop.permute.xlu0 %5836  ;;  %v7345_v6 = vpack.i.bf16 %v1353_v54, %v1351_v22  ;;  %v755_v25 = vsel %vm596_vm7, %v753_v17, %v5843_v3  ;;  %v1439_v22 = vrot.slane %v5199_v41, 2  ;;  %v1441_v54 = vrot.slane %v5200_v42, 2 }
  0xc2   : > { %v5852_v34 = vpop.permute.xlu1 %5851  ;;  %v5838_v35 = vunpack.i.l.bf16 %v7320_v50  ;;  %v1427_v3 = vrot.slane %v7337_v61, 1 }
  0xc3   : > { %6126 = vrot.lane.b32.xlu0 %v7226_v18, %s6905_s16  ;;  %v750_v18 = vsel %vm587_vm4, %v748_v52, %v5814_v47  ;;  %v5854_v7 = vunpack.i.h.bf16 %v5852_v34  ;;  %v5853_v8 = vunpack.i.l.bf16 %v5852_v34  ;;  %v1440_v14 = vsel %vm510_vm1, %v1438_v10, %v1439_v22 }
  0xc4   : > { %6141 = vrot.lane.b32.xlu1 %v6105_v27, %s6904_s15  ;;  %v752_v11 = vsel %vm590_vm5, %v750_v18, %v5824_v57  ;;  %v1442_v15 = vsel %vm510_vm1, %v1439_v22, %v1441_v54 }
  0xc5   : > { %v7343_v1 = vpop.permute.xlu0 %5846  ;;  %v754_v20 = vsel %vm593_vm6, %v752_v11, %v5834_v63  ;;  %v757_v19 = vsel %vm599_vm8, %v755_v25, %v5853_v8  ;;  %v1428_v8 = vrot.slane %v5199_v41, 1 }
  0xc6   : > { %v5862_v4 = vpop.permute.xlu1 %5861  ;;  %v756_v26 = vsel %vm596_vm7, %v754_v20, %v5844_v2  ;;  %v5849_v37 = vunpack.i.h.bf16 %v7343_v1  ;;  %v5848_v32 = vunpack.i.l.bf16 %v7343_v1  ;;  %v6185_v20 = vpack.i.bf16 %v5199_v41, %v7337_v61  ;;  %v5202_v61 = vld [vmem:[%s7031_s14 + $0x158] sm:$0xff]  ;;  %v6817_v41 = vld [vmem:[%s7031_s14 + $0x60] sm:$0xff] }
  0xc7   : > { %6136 = vrot.lane.b32.xlu0 %v6115_v33, %s6905_s16  ;;  %v5864_v12 = vunpack.i.h.bf16 %v5862_v4  ;;  %v5863_v13 = vunpack.i.l.bf16 %v5862_v4  ;;  %v758_v29 = vsel %vm599_vm8, %v756_v26, %v5854_v7  ;;  %v1429_v10 = vsel %vm498_vm0, %v1427_v3, %v1428_v8 }
  0xc8   : > { %6151 = vrot.lane.b32.xlu1 %v6115_v33, %s6907_s24  ;;  %v5839_v33 = vunpack.i.h.bf16 %v7320_v50  ;;  %v1431_v23 = vsel %vm498_vm0, %v1428_v8, %v1430_v55 }
  0xc9   : > { %v5857_v21 = vpop.permute.xlu0 %5856  ;;  %v759_v5 = vsel %vm602_vm10, %v757_v19, %v5863_v13  ;;  %v760_v36 = vsel %vm602_vm10, %v758_v29, %v5864_v12  ;;  %v6195_v26 = vpack.i.bf16 %v1431_v23, %v1429_v10  ;;  %v5203_v19 = vld [vmem:[%s7031_s14 + $0x160] sm:$0x3] }
  0xca   : > { %v5872_v27 = vpop.permute.xlu1 %5871  ;;  %v5859_v45 = vunpack.i.h.bf16 %v5857_v21  ;;  %v5858_v46 = vunpack.i.l.bf16 %v5857_v21  ;;  %v830_v34 = vsel %vm590_vm5, %v828_v49, %v5839_v33  ;;  %v7419_v21 = vpack.i.bf16 %v1442_v15, %v1440_v14 }
  0xcb   : > { %v5874_v30 = vunpack.i.h.bf16 %v5872_v27  ;;  %v5873_v31 = vunpack.i.l.bf16 %v5872_v27  ;;  %6146 = vrot.lane.b32.xlu0 %v7297_v28, %s6906_s22  ;;  %v832_v57 = vsel %vm593_vm6, %v830_v34, %v5849_v37  ;;  %v5201_v27 = vld [vmem:[%s7031_s14 + $0x150] sm:$0xff]  ;;  %v7459_v34 = vld [vmem:[%s7031_s14 + $0x168] sm:$0xff] }
  0xcc   : > { %6161 = vrot.lane.b32.xlu1 %v7297_v28, %s6908_s30  ;;  %v827_v28 = vsel %vm587_vm4, %v825_v44, %v5828_v24  ;;  %v834_v62 = vsel %vm596_vm7, %v832_v57, %v5859_v45  ;;  %v1516_v37 = vrot.slane %v5201_v27, 2  ;;  %v6818_v44 = vld [vmem:[%s7031_s14 + $0x68] sm:$0xff] }
  0xcd   : > { %v761_v38 = vsel %vm385_vm9, %v759_v5, %v5873_v31  ;;  %v762_v39 = vsel %vm385_vm9, %v760_v36, %v5874_v30  ;;  %v5867_v40 = vpop.permute.xlu0 %5866  ;;  %v829_v52 = vsel %vm590_vm5, %v827_v28, %v5838_v35  ;;  %v1505_v35 = vrot.slane %v5201_v27, 1 }
  0xce   : > { %v5882_v47 = vpop.permute.xlu1 %5881  ;;  %v763_v48 = vpack.c.bf16 %v762_v39, %v761_v38  ;;  %v5869_v50 = vunpack.i.h.bf16 %v5867_v40  ;;  %v5868_v51 = vunpack.i.l.bf16 %v5867_v40  ;;  %v831_v56 = vsel %vm593_vm6, %v829_v52, %v5848_v32 }
  0xcf   : > { %6156 = vrot.lane.b32.xlu0 %v7324_v53, %s6904_s15  ;;  %v5884_v58 = vunpack.i.h.bf16 %v5882_v47  ;;  %v5883_v59 = vunpack.i.l.bf16 %v5882_v47  ;;  %v833_v18 = vsel %vm596_vm7, %v831_v56, %v5858_v46  ;;  %v1506_v5 = vrot.slane %v5202_v61, 1 }
  0xd0   : > { %6171 = vrot.lane.b32.xlu1 %v7324_v53, %s9120_s25  ;;  %5603 = vmatprep.mubr.msk.bf16.mxu0 %vm1799_vm11, %v763_v48  ;;  %v835_v53 = vsel %vm599_vm8, %v833_v18, %v5868_v51  ;;  %v836_v2 = vsel %vm599_vm8, %v834_v62, %v5869_v50  ;;  %v1508_v36 = vrot.slane %v5203_v19, 1  ;;  %v1517_v32 = vrot.slane %v5202_v61, 2 }
  0xd1   : > { %v5877_v60 = vpop.permute.xlu0 %5876  ;;  %v1519_v39 = vrot.slane %v5203_v19, 2  ;;  %v7446_v47 = vpack.i.bf16 %v5202_v61, %v5201_v27 }
  0xd2   : > { %v5879_v63 = vunpack.i.h.bf16 %v5877_v60  ;;  %v5878_v0 = vunpack.i.l.bf16 %v5877_v60  ;;  %v7394_v1 = vpop.permute.xlu1 %5891  ;;  %v1509_v48 = vsel %vm498_vm0, %v1506_v5, %v1508_v36  ;;  %v1518_v28 = vsel %vm510_vm1, %v1516_v37, %v1517_v32  ;;  %v5206_v36 = vld [vmem:[%s7031_s14 + $0x178] sm:$0x3] }
  0xd3   : > { %6166 = vrot.lane.b32.xlu0 %v7345_v6, %s6907_s24  ;;  %v5893_v38 = vunpack.i.l.bf16 %v7394_v1  ;;  %v5894_v40 = vunpack.i.h.bf16 %v7394_v1  ;;  %v1520_v52 = vsel %vm510_vm1, %v1517_v32, %v1519_v39  ;;  %v1594_v1 = vrot.slane %v7459_v34, 2  ;;  %v6820_v37 = vld [vmem:[%s7031_s14 + $0x78] sm:$0xff] }
  0xd4   : > { %v837_v4 = vsel %vm602_vm10, %v835_v53, %v5878_v0  ;;  %v838_v7 = vsel %vm602_vm10, %v836_v2, %v5879_v63  ;;  %6181 = vrot.lane.b32.xlu1 %v7345_v6, %s6910_s29  ;;  %v7470_v0 = vpack.i.bf16 %v1520_v52, %v1518_v28 }
  0xd5   : > { %v5887_v11 = vpop.permute.xlu0 %5886  ;;  %v839_v12 = vsel %vm385_vm9, %v837_v4, %v5883_v59  ;;  %v840_v13 = vsel %vm385_vm9, %v838_v7, %v5884_v58  ;;  %v6819_v7 = vld [vmem:[%s7031_s14 + $0x80] sm:$0xff] }
  0xd6   : > { %v7411_v16 = vpop.permute.xlu1 %5901  ;;  %v841_v17 = vpack.c.bf16 %v840_v13, %v839_v12  ;;  %v5888_v29 = vunpack.i.l.bf16 %v5887_v11  ;;  %v5889_v31 = vunpack.i.h.bf16 %v5887_v11 }
  0xd7   : > { %6176 = vrot.lane.b32.xlu0 %v7348_v9, %s6908_s30  ;;  %v5904_v49 = vunpack.i.h.bf16 %v7411_v16  ;;  %v5903_v50 = vunpack.i.l.bf16 %v7411_v16 }
  0xd8   : > { %6191 = vrot.lane.b32.xlu1 %v7348_v9, %s6911_s12  ;;  %5604 = vmatmul.mubr.msk.bf16.gmra.mrb[4].mxu0 %vm1799_vm11, %v841_v17  ;;  %v903_v42 = vsel %vm584_vm3, %v6817_v41, %v5888_v29  ;;  %v904_v45 = vsel %vm584_vm3, %v6818_v44, %v5889_v31 }
  0xd9   : > { %v7423_v24 = vpop.permute.xlu0 %5896  ;;  %v905_v51 = vsel %vm587_vm4, %v903_v42, %v5893_v38 }
  0xda   : > { %v7425_v25 = vpop.permute.xlu1 %5911  ;;  %v5899_v22 = vunpack.i.h.bf16 %v7423_v24  ;;  %v907_v53 = vsel %vm590_vm5, %v905_v51, %v5903_v50  ;;  %v5898_v55 = vunpack.i.l.bf16 %v7423_v24 }
  0xdb   : > { %6186 = vrot.lane.b32.xlu0 %v6185_v20, %s9120_s25  ;;  %v5914_v54 = vunpack.i.h.bf16 %v7425_v25  ;;  %v5913_v56 = vunpack.i.l.bf16 %v7425_v25 }
  0xdc   : > { %6201 = vrot.lane.b32.xlu1 %v7419_v21, %s6911_s12  ;;  %v982_v8 = vsel %vm584_vm3, %v6819_v7, %v5899_v22  ;;  %v981_v32 = vsel %vm584_vm3, %v6820_v37, %v5898_v55 }
  0xdd   : > { %v7433_v30 = vpop.permute.xlu0 %5906  ;;  %v909_v11 = vsel %vm593_vm6, %v907_v53, %v5913_v56  ;;  %v1586_v53 = vrot.slane %v5206_v36, 1 }
  0xde   : > { %v5922_v33 = vpop.permute.xlu1 %5921  ;;  %v5909_v14 = vunpack.i.h.bf16 %v7433_v30  ;;  %v5908_v15 = vunpack.i.l.bf16 %v7433_v30 }
  0xdf   : > { %6196 = vrot.lane.b32.xlu0 %v6195_v26, %s6910_s29  ;;  %v5924_v58 = vunpack.i.h.bf16 %v5922_v33  ;;  %v5923_v59 = vunpack.i.l.bf16 %v5922_v33 }
  0xe0   : > { %6211 = vrot.lane.b32.xlu1 %v7348_v9, %s6906_s22  ;;  %v1507_v9 = vsel %vm498_vm0, %v1505_v35, %v1506_v5  ;;  %v7500_v5 = vld [vmem:[%s7031_s14 + $0x170] sm:$0xff]  ;;  %v984_v42 = vsel %vm587_vm4, %v982_v8, %v5909_v14 }
  0xe1   : > { %v7442_v43 = vpop.permute.xlu0 %5916  ;;  %v7467_v18 = vpack.i.bf16 %v1509_v48, %v1507_v9  ;;  %v911_v16 = vsel %vm596_vm7, %v909_v11, %v5923_v59  ;;  %v1595_v9 = vrot.slane %v7500_v5, 2  ;;  %v1597_v48 = vrot.slane %v5206_v36, 2  ;;  %v6821_v36 = vld [vmem:[%s7031_s14 + $0x90] sm:$0xff] }
  0xe2   : > { %v5932_v46 = vpop.permute.xlu1 %5931  ;;  %v5918_v27 = vunpack.i.l.bf16 %v7442_v43  ;;  %v1583_v59 = vrot.slane %v7459_v34, 1 }
  0xe3   : > { %6206 = vrot.lane.b32.xlu0 %v7345_v6, %s6905_s16  ;;  %v906_v6 = vsel %vm587_vm4, %v904_v45, %v5894_v40  ;;  %v5934_v62 = vunpack.i.h.bf16 %v5932_v46  ;;  %v5933_v63 = vunpack.i.l.bf16 %v5932_v46  ;;  %v1596_v7 = vsel %vm510_vm1, %v1594_v1, %v1595_v9 }
  0xe4   : > { %6221 = vrot.lane.b32.xlu1 %v6185_v20, %s6904_s15  ;;  %v908_v2 = vsel %vm590_vm5, %v906_v6, %v5904_v49  ;;  %v1598_v8 = vsel %vm510_vm1, %v1595_v9, %v1597_v48 }
  0xe5   : > { %v7465_v57 = vpop.permute.xlu0 %5926  ;;  %v910_v12 = vsel %vm593_vm6, %v908_v2, %v5914_v54  ;;  %v913_v10 = vsel %vm599_vm8, %v911_v16, %v5933_v63  ;;  %v1584_v63 = vrot.slane %v7500_v5, 1 }
  0xe6   : > { %v5942_v60 = vpop.permute.xlu1 %5941  ;;  %v912_v17 = vsel %vm596_vm7, %v910_v12, %v5924_v58  ;;  %v5929_v29 = vunpack.i.h.bf16 %v7465_v57  ;;  %v5928_v30 = vunpack.i.l.bf16 %v7465_v57  ;;  %v6265_v12 = vpack.i.bf16 %v7500_v5, %v7459_v34  ;;  %v5208_v34 = vld [vmem:[%s7031_s14 + $0x188] sm:$0xff] }
  0xe7   : > { %6216 = vrot.lane.b32.xlu0 %v6195_v26, %s6905_s16  ;;  %v5944_v3 = vunpack.i.h.bf16 %v5942_v60  ;;  %v5943_v4 = vunpack.i.l.bf16 %v5942_v60  ;;  %v914_v23 = vsel %vm599_vm8, %v912_v17, %v5934_v62  ;;  %v1585_v1 = vsel %vm498_vm0, %v1583_v59, %v1584_v63 }
  0xe8   : > { %6231 = vrot.lane.b32.xlu1 %v6195_v26, %s6907_s24  ;;  %v5919_v26 = vunpack.i.h.bf16 %v7442_v43  ;;  %v1587_v14 = vsel %vm498_vm0, %v1584_v63, %v1586_v53  ;;  %v6823_v63 = vld [vmem:[%s7031_s14 + $0xb0] sm:$0xff] }
  0xe9   : > { %v5937_v13 = vpop.permute.xlu0 %5936  ;;  %v915_v61 = vsel %vm602_vm10, %v913_v10, %v5943_v4  ;;  %v916_v19 = vsel %vm602_vm10, %v914_v23, %v5944_v3  ;;  %v6275_v17 = vpack.i.bf16 %v1587_v14, %v1585_v1  ;;  %v5209_v10 = vld [vmem:[%s7031_s14 + $0x190] sm:$0x3] }
  0xea   : > { %v5952_v20 = vpop.permute.xlu1 %5951  ;;  %v5939_v38 = vunpack.i.h.bf16 %v5937_v13  ;;  %v5938_v39 = vunpack.i.l.bf16 %v5937_v13  ;;  %v986_v46 = vsel %vm590_vm5, %v984_v42, %v5919_v26  ;;  %v7546_v13 = vpack.i.bf16 %v1598_v8, %v1596_v7 }
  0xeb   : > { %v5954_v24 = vunpack.i.h.bf16 %v5952_v20  ;;  %v5953_v25 = vunpack.i.l.bf16 %v5952_v20  ;;  %6226 = vrot.lane.b32.xlu0 %v7419_v21, %s6906_s22  ;;  %v988_v49 = vsel %vm593_vm6, %v986_v46, %v5929_v29  ;;  %v5207_v20 = vld [vmem:[%s7031_s14 + $0x180] sm:$0xff] }
  0xec   : > { %6241 = vrot.lane.b32.xlu1 %v7419_v21, %s6908_s30  ;;  %v983_v21 = vsel %vm587_vm4, %v981_v32, %v5908_v15  ;;  %v990_v22 = vsel %vm596_vm7, %v988_v49, %v5939_v38  ;;  %v1672_v29 = vrot.slane %v5207_v20, 2  ;;  %v6822_v38 = vld [vmem:[%s7031_s14 + $0x98] sm:$0xff] }
  0xed   : > { %v917_v31 = vsel %vm385_vm9, %v915_v61, %v5953_v25  ;;  %v918_v33 = vsel %vm385_vm9, %v916_v19, %v5954_v24  ;;  %v5947_v35 = vpop.permute.xlu0 %5946  ;;  %v985_v45 = vsel %vm590_vm5, %v983_v21, %v5918_v27  ;;  %v1661_v27 = vrot.slane %v5207_v20, 1 }
  0xee   : > { %v5962_v40 = vpop.permute.xlu1 %5961  ;;  %v919_v41 = vpack.c.bf16 %v918_v33, %v917_v31  ;;  %v5949_v43 = vunpack.i.h.bf16 %v5947_v35  ;;  %v5948_v44 = vunpack.i.l.bf16 %v5947_v35  ;;  %v987_v28 = vsel %vm593_vm6, %v985_v45, %v5928_v30 }
  0xef   : > { %6236 = vrot.lane.b32.xlu0 %v7446_v47, %s6904_s15  ;;  %v5964_v50 = vunpack.i.h.bf16 %v5962_v40  ;;  %v5963_v51 = vunpack.i.l.bf16 %v5962_v40  ;;  %v989_v6 = vsel %vm596_vm7, %v987_v28, %v5938_v39  ;;  %v1662_v61 = vrot.slane %v5208_v34, 1 }
  0xf0   : > { %6251 = vrot.lane.b32.xlu1 %v7446_v47, %s9120_s25  ;;  %5607 = vmatprep.mubr.msk.bf16.mxu0 %vm1799_vm11, %v919_v41  ;;  %v991_v47 = vsel %vm599_vm8, %v989_v6, %v5948_v44  ;;  %v992_v58 = vsel %vm599_vm8, %v990_v22, %v5949_v43  ;;  %v1664_v19 = vrot.slane %v5209_v10, 1  ;;  %v1673_v30 = vrot.slane %v5208_v34, 2  ;;  %v7594_v22 = vld [vmem:[%s7031_s14 + $0x1a0] sm:$0xff] }
  0xf1   : > { %v5957_v52 = vpop.permute.xlu0 %5956  ;;  %v1675_v33 = vrot.slane %v5209_v10, 2  ;;  %v7573_v41 = vpack.i.bf16 %v5208_v34, %v5207_v20  ;;  %v1663_v21 = vsel %vm498_vm0, %v1661_v27, %v1662_v61 }
  0xf2   : > { %v5959_v54 = vunpack.i.h.bf16 %v5957_v52  ;;  %v5958_v56 = vunpack.i.l.bf16 %v5957_v52  ;;  %v7519_v57 = vpop.permute.xlu1 %5971  ;;  %v1674_v42 = vsel %vm510_vm1, %v1672_v29, %v1673_v30  ;;  %v6824_v29 = vld [vmem:[%s7031_s14 + $0xa8] sm:$0xff] }
  0xf3   : > { %6246 = vrot.lane.b32.xlu0 %v7467_v18, %s6907_s24  ;;  %v5973_v31 = vunpack.i.l.bf16 %v7519_v57  ;;  %v5974_v35 = vunpack.i.h.bf16 %v7519_v57  ;;  %v1676_v46 = vsel %vm510_vm1, %v1673_v30, %v1675_v33 }
  0xf4   : > { %v993_v60 = vsel %vm602_vm10, %v991_v47, %v5958_v56  ;;  %v994_v62 = vsel %vm602_vm10, %v992_v58, %v5959_v54  ;;  %6261 = vrot.lane.b32.xlu1 %v7467_v18, %s6910_s29  ;;  %v7597_v57 = vpack.i.bf16 %v1676_v46, %v1674_v42  ;;  %v1751_v47 = vrot.slane %v7594_v22, 2 }
  0xf5   : > { %v5967_v2 = vpop.permute.xlu0 %5966  ;;  %v995_v3 = vsel %vm385_vm9, %v993_v60, %v5963_v51  ;;  %v996_v4 = vsel %vm385_vm9, %v994_v62, %v5964_v50 }
  0xf6   : > { %v7537_v55 = vpop.permute.xlu1 %5981  ;;  %v997_v11 = vpack.c.bf16 %v996_v4, %v995_v3  ;;  %v5968_v23 = vunpack.i.l.bf16 %v5967_v2  ;;  %v5969_v25 = vunpack.i.h.bf16 %v5967_v2 }
  0xf7   : > { %6256 = vrot.lane.b32.xlu0 %v7470_v0, %s6908_s30  ;;  %v5984_v43 = vunpack.i.h.bf16 %v7537_v55  ;;  %v5983_v44 = vunpack.i.l.bf16 %v7537_v55 }
  0xf8   : > { %6271 = vrot.lane.b32.xlu1 %v7470_v0, %s6911_s12  ;;  %5608 = vmatmul.mubr.msk.bf16.gmra.mrb[8].mxu0 %vm1799_vm11, %v997_v11  ;;  %v1059_v37 = vsel %vm584_vm3, %v6821_v36, %v5968_v23  ;;  %v1060_v39 = vsel %vm584_vm3, %v6822_v38, %v5969_v25 }
  0xf9   : > { %v7550_v15 = vpop.permute.xlu0 %5976  ;;  %v1061_v45 = vsel %vm587_vm4, %v1059_v37, %v5973_v31  ;;  %v1062_v9 = vsel %vm587_vm4, %v1060_v39, %v5974_v35  ;;  %v5210_v39 = vld [vmem:[%s7031_s14 + $0x198] sm:$0xff] }
  0xfa   : > { %v7552_v16 = vpop.permute.xlu1 %5991  ;;  %v1063_v58 = vsel %vm590_vm5, %v1061_v45, %v5983_v44  ;;  %v1064_v59 = vsel %vm590_vm5, %v1062_v9, %v5984_v43  ;;  %v5978_v2 = vunpack.i.l.bf16 %v7550_v15 }
  0xfb   : > { %6266 = vrot.lane.b32.xlu0 %v6265_v12, %s9120_s25  ;;  %v5994_v48 = vunpack.i.h.bf16 %v7552_v16  ;;  %v5993_v28 = vunpack.i.l.bf16 %v7552_v16 }
  0xfc   : > { %6281 = vrot.lane.b32.xlu1 %v7546_v13, %s6911_s12  ;;  %v1137_v30 = vsel %vm584_vm3, %v6824_v29, %v5978_v2 }
  0xfd   : > { %v7560_v24 = vpop.permute.xlu0 %5986  ;;  %v1065_v3 = vsel %vm593_vm6, %v1063_v58, %v5993_v28  ;;  %v1066_v4 = vsel %vm593_vm6, %v1064_v59, %v5994_v48  ;;  %v1739_v58 = vrot.slane %v5210_v39, 1 }
  0xfe   : > { %v6002_v26 = vpop.permute.xlu1 %6001  ;;  %v5989_v8 = vunpack.i.h.bf16 %v7560_v24  ;;  %v5988_v55 = vunpack.i.l.bf16 %v7560_v24 }
  0xff   : > { %6276 = vrot.lane.b32.xlu0 %v6275_v17, %s6910_s29  ;;  %v6004_v50 = vunpack.i.h.bf16 %v6002_v26  ;;  %v6003_v51 = vunpack.i.l.bf16 %v6002_v26 }
 0x100   : > { %6291 = vrot.lane.b32.xlu1 %v7470_v0, %s6906_s22  ;;  %v1665_v0 = vsel %vm498_vm0, %v1662_v61, %v1664_v19  ;;  %v5212_v19 = vld [vmem:[%s7031_s14 + $0x1a8] sm:$0x3] }
 0x101   : > { %v7569_v32 = vpop.permute.xlu0 %5996  ;;  %v7591_v6 = vpack.i.bf16 %v1665_v0, %v1663_v21  ;;  %v1067_v11 = vsel %vm596_vm7, %v1065_v3, %v6003_v51  ;;  %v1750_v0 = vrot.slane %v5210_v39, 2  ;;  %v1753_v42 = vrot.slane %v5212_v19, 2 }
 0x102   : > { %v6012_v40 = vpop.permute.xlu1 %6011  ;;  %v5999_v20 = vunpack.i.h.bf16 %v7569_v32  ;;  %v5998_v34 = vunpack.i.l.bf16 %v7569_v32  ;;  %v1742_v59 = vrot.slane %v5212_v19, 1 }
 0x103   : > { %6286 = vrot.lane.b32.xlu0 %v7467_v18, %s6905_s16  ;;  %v5979_v18 = vunpack.i.h.bf16 %v7550_v15  ;;  %v6014_v54 = vunpack.i.h.bf16 %v6012_v40  ;;  %v6013_v56 = vunpack.i.l.bf16 %v6012_v40  ;;  %v1754_v2 = vsel %vm510_vm1, %v1751_v47, %v1753_v42 }
 0x104   : > { %6301 = vrot.lane.b32.xlu1 %v6265_v12, %s6904_s15  ;;  %v1068_v12 = vsel %vm596_vm7, %v1066_v4, %v6004_v50 }
 0x105   : > { %v7589_v49 = vpop.permute.xlu0 %6006  ;;  %v1138_v53 = vsel %vm584_vm3, %v6823_v63, %v5979_v18  ;;  %v1069_v14 = vsel %vm599_vm8, %v1067_v11, %v6013_v56  ;;  %v1070_v15 = vsel %vm599_vm8, %v1068_v12, %v6014_v54 }
 0x106   : > { %v6022_v52 = vpop.permute.xlu1 %6021  ;;  %v6009_v24 = vunpack.i.h.bf16 %v7589_v49  ;;  %v6008_v25 = vunpack.i.l.bf16 %v7589_v49  ;;  %v1140_v37 = vsel %vm587_vm4, %v1138_v53, %v5989_v8  ;;  %v1752_v53 = vsel %vm510_vm1, %v1750_v0, %v1751_v47  ;;  %v6827_v0 = vld [vmem:[%s7031_s14 + $0xe0] sm:$0xff] }
 0x107   : > { %6296 = vrot.lane.b32.xlu0 %v6275_v17, %s6905_s16  ;;  %v6024_v60 = vunpack.i.h.bf16 %v6022_v52  ;;  %v6023_v62 = vunpack.i.l.bf16 %v6022_v52  ;;  %v1142_v21 = vsel %vm590_vm5, %v1140_v37, %v5999_v20  ;;  %v1740_v52 = vrot.slane %v7594_v22, 1  ;;  %v6825_v20 = vld [vmem:[%s7031_s14 + $0xc0] sm:$0xff]  ;;  %s5454_s16 = sshll.u32 %s6999_s21, 4  ;;  %s6917_s21 = smov [#allocation5]  }
 0x108   : > { %6311 = vrot.lane.b32.xlu1 %v6275_v17, %s6907_s24  ;;  %v1144_v44 = vsel %vm593_vm6, %v1142_v21, %v6009_v24 }
 0x109   : > { %v6017_v7 = vpop.permute.xlu0 %6016  ;;  %v1071_v10 = vsel %vm602_vm10, %v1069_v14, %v6023_v62  ;;  %v1072_v23 = vsel %vm602_vm10, %v1070_v15, %v6024_v60  ;;  %v1743_v8 = vsel %vm498_vm0, %v1740_v52, %v1742_v59 }
 0x10a   : > { %v6032_v1 = vpop.permute.xlu1 %6031  ;;  %v6019_v31 = vunpack.i.h.bf16 %v6017_v7  ;;  %v6018_v33 = vunpack.i.l.bf16 %v6017_v7  ;;  %v1741_v7 = vsel %vm498_vm0, %v1739_v58, %v1740_v52 }
 0x10b   : > { %v6034_v16 = vunpack.i.h.bf16 %v6032_v1  ;;  %v6033_v17 = vunpack.i.l.bf16 %v6032_v1  ;;  %6306 = vrot.lane.b32.xlu0 %v7546_v13, %s6906_s22  ;;  %v6355_v12 = vpack.i.bf16 %v1743_v8, %v1741_v7  ;;  %s9121_s22 = smov 96  }
 0x10c   : > { %6321 = vrot.lane.b32.xlu1 %v7546_v13, %s6908_s30  ;;  %v1139_v13 = vsel %vm587_vm4, %v1137_v30, %v5988_v55  ;;  %v1146_v48 = vsel %vm596_vm7, %v1144_v44, %v6019_v31  ;;  %v6360_v55 = vpack.i.bf16 %v1754_v2, %v1752_v53 }
 0x10d   : > { %v1073_v26 = vsel %vm385_vm9, %v1071_v10, %v6033_v17  ;;  %v1074_v27 = vsel %vm385_vm9, %v1072_v23, %v6034_v16  ;;  %v6027_v61 = vpop.permute.xlu0 %6026  ;;  %v1141_v40 = vsel %vm590_vm5, %v1139_v13, %v5998_v34  ;;  %v6826_v23 = vld [vmem:[%s7031_s14 + $0xc8] sm:$0xff] }
 0x10e   : > { %v1075_v35 = vpack.c.bf16 %v1074_v27, %v1073_v26  ;;  %v6042_v36 = vpop.permute.xlu1 %6041  ;;  %v6029_v32 = vunpack.i.h.bf16 %v6027_v61  ;;  %v6028_v38 = vunpack.i.l.bf16 %v6027_v61  ;;  %v1143_v43 = vsel %vm593_vm6, %v1141_v40, %v6008_v25 }
 0x10f   : > { %6316 = vrot.lane.b32.xlu0 %v7573_v41, %s6904_s15  ;;  %v6044_v45 = vunpack.i.h.bf16 %v6042_v36  ;;  %v6043_v46 = vunpack.i.l.bf16 %v6042_v36  ;;  %v1145_v18 = vsel %vm596_vm7, %v1143_v43, %v6018_v33  ;;  %s6844_s15 = sshll.u32 %s6917_s21, 4  ;;  %s6845_s15 = int_to_ptr.vmem [resolvable:$false] %s6844_s15 }
 0x110   : > { %6331 = vrot.lane.b32.xlu1 %v7573_v41, %s9120_s25  ;;  %5611 = vmatprep.mubr.msk.bf16.mxu0 %vm1799_vm11, %v1075_v35  ;;  %v1147_v41 = vsel %vm599_vm8, %v1145_v18, %v6028_v38  ;;  %v1148_v51 = vsel %vm599_vm8, %v1146_v48, %v6029_v32  ;;  %s6846_s0 = scalar_lea.vmem %s6845_s15, 32 }
 0x111   : > { %v6037_v9 = vpop.permute.xlu0 %6036 }
 0x112   : > { %v6039_v28 = vunpack.i.h.bf16 %v6037_v9  ;;  %v6038_v49 = vunpack.i.l.bf16 %v6037_v9  ;;  %v7643_v50 = vpop.permute.xlu1 %6051 }
 0x113   : > { %6326 = vrot.lane.b32.xlu0 %v7591_v6, %s6907_s24  ;;  %v6053_v16 = vunpack.i.l.bf16 %v7643_v50  ;;  %v6054_v17 = vunpack.i.h.bf16 %v7643_v50  ;;  %s9114_s24 = smov 64  }
 0x114   : > { %v1149_v54 = vsel %vm602_vm10, %v1147_v41, %v6038_v49  ;;  %v1150_v56 = vsel %vm602_vm10, %v1148_v51, %v6039_v28  ;;  %6341 = vrot.lane.b32.xlu1 %v7591_v6, %s6910_s29  ;;  %v6345_v6 = vpack.i.bf16 %v7594_v22, %v5210_v39  ;;  %v6912_v22 = vmov 0.0  }
 0x115   : > { %v6047_v60 = vpop.permute.xlu0 %6046  ;;  %v1151_v62 = vsel %vm385_vm9, %v1149_v54, %v6043_v46  ;;  %v1152_v63 = vsel %vm385_vm9, %v1150_v56, %v6044_v45  ;;  %389 = vst.msk [vmem:[#allocation2 + $0x10] sm:$0xff] %vm385_vm9, %v6912_v22  ;;  %386 = vst.msk [vmem:[#allocation2] sm:$0xff] %vm385_vm9, %v6912_v22 }
 0x116   : > { %v7662_v3 = vpop.permute.xlu1 %6061  ;;  %v1153_v4 = vpack.c.bf16 %v1152_v63, %v1151_v62  ;;  %391 = vst.msk [vmem:[#allocation2 + $0x20] sm:$0xff] %vm385_vm9, %v6912_v22  ;;  %393 = vst.msk [vmem:[#allocation2 + $0x30] sm:$0xff] %vm385_vm9, %v6912_v22  ;;  %v6049_v14 = vunpack.i.h.bf16 %v6047_v60 }
 0x117   : > { %6336 = vrot.lane.b32.xlu0 %v7597_v57, %s6908_s30  ;;  %395 = vst.msk [vmem:[#allocation2 + $0x40] sm:$0xff] %vm385_vm9, %v6912_v22  ;;  %397 = vst.msk [vmem:[#allocation2 + $0x50] sm:$0xff] %vm385_vm9, %v6912_v22  ;;  %v6064_v26 = vunpack.i.h.bf16 %v7662_v3  ;;  %v6063_v27 = vunpack.i.l.bf16 %v7662_v3  ;;  %v6828_v3 = vld [vmem:[%s7031_s14 + $0xd8] sm:$0xff] }
 0x118   : > { %6351 = vrot.lane.b32.xlu1 %v7597_v57, %s6911_s12  ;;  %5612 = vmatmul.mubr.msk.bf16.gmra.mrb[12].mxu0 %vm1799_vm11, %v1153_v4  ;;  %399 = vst.msk [vmem:[#allocation2 + $0x60] sm:$0xff] %vm385_vm9, %v6912_v22  ;;  %401 = vst.msk [vmem:[#allocation2 + $0x70] sm:$0xff] %vm385_vm9, %v6912_v22  ;;  %v6048_v57 = vunpack.i.l.bf16 %v6047_v60  ;;  %v1216_v24 = vsel %vm584_vm3, %v6826_v23, %v6049_v14 }
 0x119   : > { %v7672_v11 = vpop.permute.xlu0 %6056  ;;  %403 = vst.msk [vmem:[#allocation2 + $0x80] sm:$0xff] %vm385_vm9, %v6912_v22  ;;  %405 = vst.msk [vmem:[#allocation2 + $0x90] sm:$0xff] %vm385_vm9, %v6912_v22  ;;  %v1218_v19 = vsel %vm587_vm4, %v1216_v24, %v6054_v17 }
 0x11a   : > { %v7674_v47 = vpop.permute.xlu1 %6071  ;;  %414 = vst [vmem:[#allocation4] sm:$0xf] %v6912_v22  ;;  %415 = vst [vmem:[#allocation4 + $0x4] sm:$0xf] %v6912_v22  ;;  %v1215_v34 = vsel %vm584_vm3, %v6825_v20, %v6048_v57  ;;  %v6059_v29 = vunpack.i.h.bf16 %v7672_v11  ;;  %v1220_v39 = vsel %vm590_vm5, %v1218_v19, %v6064_v26  ;;  %v6058_v43 = vunpack.i.l.bf16 %v7672_v11 }
 0x11b   : > { %6346 = vrot.lane.b32.xlu0 %v6345_v6, %s9120_s25  ;;  %416 = vst [vmem:[#allocation4 + $0x8] sm:$0xf] %v6912_v22  ;;  %417 = vst [vmem:[#allocation4 + $0xc] sm:$0xf] %v6912_v22  ;;  %v1217_v61 = vsel %vm587_vm4, %v1215_v34, %v6053_v16  ;;  %v6074_v30 = vunpack.i.h.bf16 %v7674_v47  ;;  %v6073_v31 = vunpack.i.l.bf16 %v7674_v47 }
 0x11c   : > { %6361 = vrot.lane.b32.xlu1 %v6360_v55, %s6911_s12  ;;  %390 = vst.msk [vmem:[#allocation2 + $0x18] sm:$0x3] %vm387_vm12, %v6912_v22  ;;  %388 = vst.msk [vmem:[#allocation2 + $0x8] sm:$0x3] %vm387_vm12, %v6912_v22  ;;  %v1219_v38 = vsel %vm590_vm5, %v1217_v61, %v6063_v27  ;;  %v1294_v42 = vsel %vm584_vm3, %v6827_v0, %v6059_v29  ;;  %v1293_v4 = vsel %vm584_vm3, %v6828_v3, %v6058_v43  ;;  %v6831_v3 = vld [vmem:[%s7031_s14 + $0x110] sm:$0xff] }
 0x11d   : > { %v7702_v1 = vpop.permute.xlu0 %6066  ;;  %392 = vst.msk [vmem:[#allocation2 + $0x28] sm:$0x3] %vm387_vm12, %v6912_v22  ;;  %394 = vst.msk [vmem:[#allocation2 + $0x38] sm:$0x3] %vm387_vm12, %v6912_v22  ;;  %v1221_v44 = vsel %vm593_vm6, %v1219_v38, %v6073_v31  ;;  %v1222_v45 = vsel %vm593_vm6, %v1220_v39, %v6074_v30 }
 0x11e   : > { %396 = vst.msk [vmem:[#allocation2 + $0x48] sm:$0x3] %vm387_vm12, %v6912_v22  ;;  %398 = vst.msk [vmem:[#allocation2 + $0x58] sm:$0x3] %vm387_vm12, %v6912_v22  ;;  %v6082_v15 = vpop.permute.xlu1 %6081  ;;  %v6069_v9 = vunpack.i.h.bf16 %v7702_v1  ;;  %v6068_v18 = vunpack.i.l.bf16 %v7702_v1 }
 0x11f   : > { %400 = vst.msk [vmem:[#allocation2 + $0x68] sm:$0x3] %vm387_vm12, %v6912_v22  ;;  %402 = vst.msk [vmem:[#allocation2 + $0x78] sm:$0x3] %vm387_vm12, %v6912_v22  ;;  %6356 = vrot.lane.b32.xlu0 %v6355_v12, %s6910_s29  ;;  %v6084_v35 = vunpack.i.h.bf16 %v6082_v15  ;;  %v6083_v36 = vunpack.i.l.bf16 %v6082_v15 }
 0x120   : > { %404 = vst.msk [vmem:[#allocation2 + $0x88] sm:$0x3] %vm387_vm12, %v6912_v22  ;;  %406 = vst.msk [vmem:[#allocation2 + $0x98] sm:$0x3] %vm387_vm12, %v6912_v22  ;;  %v1295_v11 = vsel %vm587_vm4, %v1293_v4, %v6068_v18  ;;  %v1296_v47 = vsel %vm587_vm4, %v1294_v42, %v6069_v9  ;;  %v6829_v42 = vld [vmem:[%s7031_s14 + $0xf0] sm:$0xff] }
 0x121   : > { %v6077_v10 = vpop.permute.xlu0 %6076  ;;  %v1223_v48 = vsel %vm596_vm7, %v1221_v44, %v6083_v36  ;;  %v1224_v28 = vsel %vm596_vm7, %v1222_v45, %v6084_v35  ;;  %v6830_v45 = vld [vmem:[%s7031_s14 + $0xf8] sm:$0xff] }
 0x122   : > { %v6092_v25 = vpop.permute.xlu1 %6091  ;;  %v6079_v54 = vunpack.i.h.bf16 %v6077_v10  ;;  %v6078_v56 = vunpack.i.l.bf16 %v6077_v10 }
 0x123   : > { %v6094_v37 = vunpack.i.h.bf16 %v6092_v25  ;;  %v6093_v32 = vunpack.i.l.bf16 %v6092_v25 }
 0x124   : > { %v1297_v1 = vsel %vm590_vm5, %v1295_v11, %v6078_v56  ;;  %v1298_v14 = vsel %vm590_vm5, %v1296_v47, %v6079_v54 }
 0x125   : > { %v6087_v33 = vpop.permute.xlu0 %6086  ;;  %v1225_v50 = vsel %vm599_vm8, %v1223_v48, %v6093_v32  ;;  %v1226_v41 = vsel %vm599_vm8, %v1224_v28, %v6094_v37 }
 0x126   : > { %v6102_v13 = vpop.permute.xlu1 %6101  ;;  %v6089_v60 = vunpack.i.h.bf16 %v6087_v33  ;;  %v6088_v62 = vunpack.i.l.bf16 %v6087_v33 }
 0x127   : > { %v6104_v40 = vunpack.i.h.bf16 %v6102_v13  ;;  %v6103_v21 = vunpack.i.l.bf16 %v6102_v13 }
 0x128   : > { %v1299_v15 = vsel %vm593_vm6, %v1297_v1, %v6088_v62  ;;  %v1300_v16 = vsel %vm593_vm6, %v1298_v14, %v6089_v60 }
 0x129   : > { %v6097_v46 = vpop.permute.xlu0 %6096  ;;  %v1227_v58 = vsel %vm602_vm10, %v1225_v50, %v6103_v21  ;;  %v1228_v59 = vsel %vm602_vm10, %v1226_v41, %v6104_v40 }
 0x12a   : > { %v6112_v49 = vpop.permute.xlu1 %6111  ;;  %v6099_v6 = vunpack.i.h.bf16 %v6097_v46  ;;  %v6098_v7 = vunpack.i.l.bf16 %v6097_v46 }
 0x12b   : > { %v6114_v51 = vunpack.i.h.bf16 %v6112_v49  ;;  %v6113_v52 = vunpack.i.l.bf16 %v6112_v49 }
 0x12c   : > { %v1301_v10 = vsel %vm596_vm7, %v1299_v15, %v6098_v7  ;;  %v1302_v23 = vsel %vm596_vm7, %v1300_v16, %v6099_v6 }
 0x12d   : > { %v1229_v63 = vsel %vm385_vm9, %v1227_v58, %v6113_v52  ;;  %v1230_v53 = vsel %vm385_vm9, %v1228_v59, %v6114_v51  ;;  %v6107_v2 = vpop.permute.xlu0 %6106 }
 0x12e   : > { %v1231_v8 = vpack.c.bf16 %v1230_v53, %v1229_v63  ;;  %v6122_v55 = vpop.permute.xlu1 %6121  ;;  %v6109_v12 = vunpack.i.h.bf16 %v6107_v2  ;;  %v6108_v57 = vunpack.i.l.bf16 %v6107_v2 }
 0x12f   : > { %v6124_v17 = vunpack.i.h.bf16 %v6122_v55  ;;  %v6123_v20 = vunpack.i.l.bf16 %v6122_v55 }
 0x130   : > { %5615 = vmatprep.mubr.msk.bf16.mxu0 %vm1799_vm11, %v1231_v8  ;;  %v1303_v27 = vsel %vm599_vm8, %v1301_v10, %v6108_v57  ;;  %v1304_v61 = vsel %vm599_vm8, %v1302_v23, %v6109_v12 }
 0x131   : > { %v6117_v34 = vpop.permute.xlu0 %6116 }
 0x132   : > { %v6119_v24 = vunpack.i.h.bf16 %v6117_v34  ;;  %v6118_v25 = vunpack.i.l.bf16 %v6117_v34  ;;  %v6132_v26 = vpop.permute.xlu1 %6131 }
 0x133   : > { %v6133_v21 = vunpack.i.l.bf16 %v6132_v26  ;;  %v6134_v0 = vunpack.i.h.bf16 %v6132_v26 }
 0x134   : > { %v1305_v19 = vsel %vm602_vm10, %v1303_v27, %v6118_v25  ;;  %v1306_v29 = vsel %vm602_vm10, %v1304_v61, %v6119_v24 }
 0x135   : > { %v6127_v30 = vpop.permute.xlu0 %6126  ;;  %v1307_v31 = vsel %vm385_vm9, %v1305_v19, %v6123_v20  ;;  %v1308_v33 = vsel %vm385_vm9, %v1306_v29, %v6124_v17  ;;  %v6832_v19 = vld [vmem:[%s7031_s14 + $0x108] sm:$0xff] }
 0x136   : > { %v6142_v35 = vpop.permute.xlu1 %6141  ;;  %v1309_v36 = vpack.c.bf16 %v1308_v33, %v1307_v31  ;;  %v6128_v32 = vunpack.i.l.bf16 %v6127_v30  ;;  %v6129_v39 = vunpack.i.h.bf16 %v6127_v30 }
 0x137   : > { %v6144_v18 = vunpack.i.h.bf16 %v6142_v35  ;;  %v6143_v48 = vunpack.i.l.bf16 %v6142_v35 }
 0x138   : > { %5616 = vmatmul.mubr.msk.bf16.gmra.mrb[16].mxu0 %vm1799_vm11, %v1309_v36  ;;  %v1371_v43 = vsel %vm584_vm3, %v6829_v42, %v6128_v32  ;;  %v1372_v46 = vsel %vm584_vm3, %v6830_v45, %v6129_v39 }
 0x139   : > { %v6137_v13 = vpop.permute.xlu0 %6136  ;;  %v1373_v28 = vsel %vm587_vm4, %v1371_v43, %v6133_v21  ;;  %v1374_v49 = vsel %vm587_vm4, %v1372_v46, %v6134_v0 }
 0x13a   : > { %v6152_v37 = vpop.permute.xlu1 %6151  ;;  %v6139_v50 = vunpack.i.h.bf16 %v6137_v13  ;;  %v1375_v62 = vsel %vm590_vm5, %v1373_v28, %v6143_v48  ;;  %v1376_v63 = vsel %vm590_vm5, %v1374_v49, %v6144_v18  ;;  %v6138_v6 = vunpack.i.l.bf16 %v6137_v13 }
 0x13b   : > { %v6154_v41 = vunpack.i.h.bf16 %v6152_v37  ;;  %v6153_v51 = vunpack.i.l.bf16 %v6152_v37 }
 0x13c   : > { %v1450_v4 = vsel %vm584_vm3, %v6831_v3, %v6139_v50  ;;  %v1449_v29 = vsel %vm584_vm3, %v6832_v19, %v6138_v6  ;;  %v6835_v19 = vld [vmem:[%s7031_s14 + $0x140] sm:$0xff] }
 0x13d   : > { %v6147_v38 = vpop.permute.xlu0 %6146  ;;  %v1377_v7 = vsel %vm593_vm6, %v1375_v62, %v6153_v51  ;;  %v1378_v8 = vsel %vm593_vm6, %v1376_v63, %v6154_v41 }
 0x13e   : > { %v6162_v40 = vpop.permute.xlu1 %6161  ;;  %v6149_v11 = vunpack.i.h.bf16 %v6147_v38  ;;  %v6148_v47 = vunpack.i.l.bf16 %v6147_v38 }
 0x13f   : > { %v6164_v54 = vunpack.i.h.bf16 %v6162_v40  ;;  %v6163_v56 = vunpack.i.l.bf16 %v6162_v40 }
 0x140   : > { %v1451_v36 = vsel %vm587_vm4, %v1449_v29, %v6148_v47  ;;  %v1452_v13 = vsel %vm587_vm4, %v1450_v4, %v6149_v11  ;;  %v6833_v4 = vld [vmem:[%s7031_s14 + $0x120] sm:$0xff] }
 0x141   : > { %v6157_v44 = vpop.permute.xlu0 %6156  ;;  %v1379_v12 = vsel %vm596_vm7, %v1377_v7, %v6163_v56  ;;  %v1380_v57 = vsel %vm596_vm7, %v1378_v8, %v6164_v54  ;;  %v6834_v8 = vld [vmem:[%s7031_s14 + $0x128] sm:$0xff] }
 0x142   : > { %v6172_v9 = vpop.permute.xlu1 %6171  ;;  %v6159_v20 = vunpack.i.h.bf16 %v6157_v44  ;;  %v6158_v34 = vunpack.i.l.bf16 %v6157_v44 }
 0x143   : > { %v6174_v59 = vunpack.i.h.bf16 %v6172_v9  ;;  %v6173_v60 = vunpack.i.l.bf16 %v6172_v9 }
 0x144   : > { %v1453_v38 = vsel %vm590_vm5, %v1451_v36, %v6158_v34  ;;  %v1454_v39 = vsel %vm590_vm5, %v1452_v13, %v6159_v20 }
 0x145   : > { %v6167_v52 = vpop.permute.xlu0 %6166  ;;  %v1381_v14 = vsel %vm599_vm8, %v1379_v12, %v6173_v60  ;;  %v1382_v15 = vsel %vm599_vm8, %v1380_v57, %v6174_v59 }
 0x146   : > { %v6182_v58 = vpop.permute.xlu1 %6181  ;;  %v6169_v24 = vunpack.i.h.bf16 %v6167_v52  ;;  %v6168_v25 = vunpack.i.l.bf16 %v6167_v52 }
 0x147   : > { %v6184_v53 = vunpack.i.h.bf16 %v6182_v58  ;;  %v6183_v2 = vunpack.i.l.bf16 %v6182_v58 }
 0x148   : > { %v1455_v40 = vsel %vm593_vm6, %v1453_v38, %v6168_v25  ;;  %v1456_v21 = vsel %vm593_vm6, %v1454_v39, %v6169_v24 }
 0x149   : > { %v6177_v55 = vpop.permute.xlu0 %6176  ;;  %v1383_v10 = vsel %vm602_vm10, %v1381_v14, %v6183_v2  ;;  %v1384_v23 = vsel %vm602_vm10, %v1382_v15, %v6184_v53 }
 0x14a   : > { %v6192_v1 = vpop.permute.xlu1 %6191  ;;  %v6179_v30 = vunpack.i.h.bf16 %v6177_v55  ;;  %v6178_v31 = vunpack.i.l.bf16 %v6177_v55 }
 0x14b   : > { %v6194_v16 = vunpack.i.h.bf16 %v6192_v1  ;;  %v6193_v17 = vunpack.i.l.bf16 %v6192_v1 }
 0x14c   : > { %v1457_v44 = vsel %vm596_vm7, %v1455_v40, %v6178_v31  ;;  %v1458_v45 = vsel %vm596_vm7, %v1456_v21, %v6179_v30 }
 0x14d   : > { %v1385_v26 = vsel %vm385_vm9, %v1383_v10, %v6193_v17  ;;  %v1386_v27 = vsel %vm385_vm9, %v1384_v23, %v6194_v16  ;;  %v6187_v61 = vpop.permute.xlu0 %6186 }
 0x14e   : > { %v1387_v33 = vpack.c.bf16 %v1386_v27, %v1385_v26  ;;  %v6202_v35 = vpop.permute.xlu1 %6201  ;;  %v6189_v37 = vunpack.i.h.bf16 %v6187_v61  ;;  %v6188_v32 = vunpack.i.l.bf16 %v6187_v61 }
 0x14f   : > { %v6204_v0 = vunpack.i.h.bf16 %v6202_v35  ;;  %v6203_v42 = vunpack.i.l.bf16 %v6202_v35 }
 0x150   : > { %5619 = vmatprep.mubr.msk.bf16.mxu0 %vm1799_vm11, %v1387_v33  ;;  %v1459_v48 = vsel %vm599_vm8, %v1457_v44, %v6188_v32  ;;  %v1460_v28 = vsel %vm599_vm8, %v1458_v45, %v6189_v37 }
 0x151   : > { %v6197_v43 = vpop.permute.xlu0 %6196 }
 0x152   : > { %v6199_v46 = vunpack.i.h.bf16 %v6197_v43  ;;  %v6198_v9 = vunpack.i.l.bf16 %v6197_v43  ;;  %v6212_v18 = vpop.permute.xlu1 %6211 }
 0x153   : > { %v6213_v2 = vunpack.i.l.bf16 %v6212_v18  ;;  %v6214_v3 = vunpack.i.h.bf16 %v6212_v18 }
 0x154   : > { %v1461_v49 = vsel %vm602_vm10, %v1459_v48, %v6198_v9  ;;  %v1462_v50 = vsel %vm602_vm10, %v1460_v28, %v6199_v46 }
 0x155   : > { %v6207_v41 = vpop.permute.xlu0 %6206  ;;  %v1463_v51 = vsel %vm385_vm9, %v1461_v49, %v6203_v42  ;;  %v1464_v52 = vsel %vm385_vm9, %v1462_v50, %v6204_v0  ;;  %v6836_v49 = vld [vmem:[%s7031_s14 + $0x138] sm:$0xff] }
 0x156   : > { %v6222_v54 = vpop.permute.xlu1 %6221  ;;  %v1465_v56 = vpack.c.bf16 %v1464_v52, %v1463_v51  ;;  %v6208_v60 = vunpack.i.l.bf16 %v6207_v41  ;;  %v6209_v63 = vunpack.i.h.bf16 %v6207_v41 }
 0x157   : > { %v6224_v47 = vunpack.i.h.bf16 %v6222_v54  ;;  %v6223_v12 = vunpack.i.l.bf16 %v6222_v54 }
 0x158   : > { %5620 = vmatmul.mubr.msk.bf16.gmra.mrb[20].mxu0 %vm1799_vm11, %v1465_v56  ;;  %v1527_v6 = vsel %vm584_vm3, %v6833_v4, %v6208_v60  ;;  %v1528_v55 = vsel %vm584_vm3, %v6834_v8, %v6209_v63 }
 0x159   : > { %v6217_v58 = vpop.permute.xlu0 %6216  ;;  %v1529_v57 = vsel %vm587_vm4, %v1527_v6, %v6213_v2  ;;  %v1530_v1 = vsel %vm587_vm4, %v1528_v55, %v6214_v3 }
 0x15a   : > { %v6232_v59 = vpop.permute.xlu1 %6231  ;;  %v6219_v14 = vunpack.i.h.bf16 %v6217_v58  ;;  %v1531_v25 = vsel %vm590_vm5, %v1529_v57, %v6223_v12  ;;  %v1532_v26 = vsel %vm590_vm5, %v1530_v1, %v6224_v47  ;;  %v6218_v30 = vunpack.i.l.bf16 %v6217_v58 }
 0x15b   : > { %v6234_v15 = vunpack.i.h.bf16 %v6232_v59  ;;  %v6233_v16 = vunpack.i.l.bf16 %v6232_v59 }
 0x15c   : > { %v1606_v29 = vsel %vm584_vm3, %v6835_v19, %v6219_v14  ;;  %v1605_v50 = vsel %vm584_vm3, %v6836_v49, %v6218_v30 }
 0x15d   : > { %v6227_v62 = vpop.permute.xlu0 %6226  ;;  %v1533_v31 = vsel %vm593_vm6, %v1531_v25, %v6233_v16  ;;  %v1534_v33 = vsel %vm593_vm6, %v1532_v26, %v6234_v15 }
 0x15e   : > { %v6242_v53 = vpop.permute.xlu1 %6241  ;;  %v6229_v36 = vunpack.i.h.bf16 %v6227_v62  ;;  %v6228_v13 = vunpack.i.l.bf16 %v6227_v62 }
 0x15f   : > { %v6244_v20 = vunpack.i.h.bf16 %v6242_v53  ;;  %v6243_v34 = vunpack.i.l.bf16 %v6242_v53 }
 0x160   : > { %v1607_v56 = vsel %vm587_vm4, %v1605_v50, %v6228_v13  ;;  %v1608_v58 = vsel %vm587_vm4, %v1606_v29, %v6229_v36  ;;  %v6837_v29 = vld [vmem:[%s7031_s14 + $0x158] sm:$0xff] }
 0x161   : > { %v6237_v7 = vpop.permute.xlu0 %6236  ;;  %v1535_v37 = vsel %vm596_vm7, %v1533_v31, %v6243_v34  ;;  %v1536_v32 = vsel %vm596_vm7, %v1534_v33, %v6244_v20  ;;  %v6838_v31 = vld [vmem:[%s7031_s14 + $0x150] sm:$0xff] }
 0x162   : > { %v6252_v11 = vpop.permute.xlu1 %6251  ;;  %v6239_v42 = vunpack.i.h.bf16 %v6237_v7  ;;  %v6238_v43 = vunpack.i.l.bf16 %v6237_v7 }
 0x163   : > { %v6254_v23 = vunpack.i.h.bf16 %v6252_v11  ;;  %v6253_v24 = vunpack.i.l.bf16 %v6252_v11 }
 0x164   : > { %v1609_v62 = vsel %vm590_vm5, %v1607_v56, %v6238_v43  ;;  %v1610_v63 = vsel %vm590_vm5, %v1608_v58, %v6239_v42 }
 0x165   : > { %v6247_v17 = vpop.permute.xlu0 %6246  ;;  %v1537_v39 = vsel %vm599_vm8, %v1535_v37, %v6253_v24  ;;  %v1538_v40 = vsel %vm599_vm8, %v1536_v32, %v6254_v23 }
 0x166   : > { %v6262_v10 = vpop.permute.xlu1 %6261  ;;  %v6249_v46 = vunpack.i.h.bf16 %v6247_v17  ;;  %v6248_v9 = vunpack.i.l.bf16 %v6247_v17 }
 0x167   : > { %v6264_v27 = vunpack.i.h.bf16 %v6262_v10  ;;  %v6263_v61 = vunpack.i.l.bf16 %v6262_v10 }
 0x168   : > { %v1611_v53 = vsel %vm593_vm6, %v1609_v62, %v6248_v9  ;;  %v1612_v2 = vsel %vm593_vm6, %v1610_v63, %v6249_v46 }
 0x169   : > { %v6257_v35 = vpop.permute.xlu0 %6256  ;;  %v1539_v44 = vsel %vm602_vm10, %v1537_v39, %v6263_v61  ;;  %v1540_v45 = vsel %vm602_vm10, %v1538_v40, %v6264_v27 }
 0x16a   : > { %v6272_v38 = vpop.permute.xlu1 %6271  ;;  %v6259_v41 = vunpack.i.h.bf16 %v6257_v35  ;;  %v6258_v51 = vunpack.i.l.bf16 %v6257_v35 }
 0x16b   : > { %v6274_v21 = vunpack.i.h.bf16 %v6272_v38  ;;  %v6273_v0 = vunpack.i.l.bf16 %v6272_v38 }
 0x16c   : > { %v1613_v7 = vsel %vm596_vm7, %v1611_v53, %v6258_v51  ;;  %v1614_v8 = vsel %vm596_vm7, %v1612_v2, %v6259_v41 }
 0x16d   : > { %v1541_v18 = vsel %vm385_vm9, %v1539_v44, %v6273_v0  ;;  %v1542_v48 = vsel %vm385_vm9, %v1540_v45, %v6274_v21  ;;  %v6267_v28 = vpop.permute.xlu0 %6266 }
 0x16e   : > { %v1543_v52 = vpack.c.bf16 %v1542_v48, %v1541_v18  ;;  %v6282_v54 = vpop.permute.xlu1 %6281  ;;  %v6269_v59 = vunpack.i.h.bf16 %v6267_v28  ;;  %v6268_v60 = vunpack.i.l.bf16 %v6267_v28 }
 0x16f   : > { %v6284_v3 = vunpack.i.h.bf16 %v6282_v54  ;;  %v6283_v4 = vunpack.i.l.bf16 %v6282_v54 }
 0x170   : > { %5623 = vmatprep.mubr.msk.bf16.mxu0 %vm1799_vm11, %v1543_v52  ;;  %v1615_v12 = vsel %vm599_vm8, %v1613_v7, %v6268_v60  ;;  %v1616_v57 = vsel %vm599_vm8, %v1614_v8, %v6269_v59  ;;  %v6839_v52 = vld [vmem:[%s7031_s14 + $0x168] sm:$0xff] }
 0x171   : > { %v6277_v6 = vpop.permute.xlu0 %6276 }
 0x172   : > { %v6279_v55 = vunpack.i.h.bf16 %v6277_v6  ;;  %v6278_v11 = vunpack.i.l.bf16 %v6277_v6  ;;  %v6292_v47 = vpop.permute.xlu1 %6291 }
 0x173   : > { %v6294_v61 = vunpack.i.h.bf16 %v6292_v47  ;;  %v6293_v19 = vunpack.i.l.bf16 %v6292_v47 }
 0x174   : > { %v1617_v1 = vsel %vm602_vm10, %v1615_v12, %v6278_v11  ;;  %v1618_v14 = vsel %vm602_vm10, %v1616_v57, %v6279_v55 }
 0x175   : > { %v6287_v15 = vpop.permute.xlu0 %6286  ;;  %v1619_v16 = vsel %vm385_vm9, %v1617_v1, %v6283_v4  ;;  %v1620_v17 = vsel %vm385_vm9, %v1618_v14, %v6284_v3 }
 0x176   : > { %v6302_v20 = vpop.permute.xlu1 %6301  ;;  %v1621_v34 = vpack.c.bf16 %v1620_v17, %v1619_v16  ;;  %v6289_v24 = vunpack.i.h.bf16 %v6287_v15  ;;  %v6288_v25 = vunpack.i.l.bf16 %v6287_v15 }
 0x177   : > { %v6304_v13 = vunpack.i.h.bf16 %v6302_v20  ;;  %v6303_v37 = vunpack.i.l.bf16 %v6302_v20 }
 0x178   : > { %5624 = vmatmul.mubr.msk.bf16.gmra.mrb[24].mxu0 %vm1799_vm11, %v1621_v34  ;;  %v1684_v30 = vsel %vm584_vm3, %v6837_v29, %v6289_v24  ;;  %v1683_v33 = vsel %vm584_vm3, %v6838_v31, %v6288_v25 }
 0x179   : > { %v6297_v10 = vpop.permute.xlu0 %6296  ;;  %v1685_v38 = vsel %vm587_vm4, %v1683_v33, %v6293_v19  ;;  %v1686_v39 = vsel %vm587_vm4, %v1684_v30, %v6294_v61 }
 0x17a   : > { %v6312_v23 = vpop.permute.xlu1 %6311  ;;  %v6299_v32 = vunpack.i.h.bf16 %v6297_v10  ;;  %v6298_v40 = vunpack.i.l.bf16 %v6297_v10  ;;  %v1687_v49 = vsel %vm590_vm5, %v1685_v38, %v6303_v37  ;;  %v1688_v50 = vsel %vm590_vm5, %v1686_v39, %v6304_v13 }
 0x17b   : > { %v6313_v21 = vunpack.i.l.bf16 %v6312_v23  ;;  %v6314_v0 = vunpack.i.h.bf16 %v6312_v23 }
 0x17c   : > { %v1762_v41 = vsel %vm584_vm3, %v7500_v5, %v6299_v32  ;;  %v1761_v54 = vsel %vm584_vm3, %v6839_v52, %v6298_v40  ;;  %v7869_v5 = vld [vmem:[%s9100_s2] ss:$0 sm:$0xff]  ;;  %vm2078_vm3 = vcmask 1044480  }
 0x17d   : > { %v6307_v26 = vpop.permute.xlu0 %6306  ;;  %v1689_v56 = vsel %vm593_vm6, %v1687_v49, %v6313_v21  ;;  %v1690_v60 = vsel %vm593_vm6, %v1688_v50, %v6314_v0 }
 0x17e   : > { %v6322_v27 = vpop.permute.xlu1 %6321  ;;  %v6309_v42 = vunpack.i.h.bf16 %v6307_v26  ;;  %v6308_v43 = vunpack.i.l.bf16 %v6307_v26 }
 0x17f   : > { %v6323_v44 = vunpack.i.l.bf16 %v6322_v27  ;;  %v6324_v46 = vunpack.i.h.bf16 %v6322_v27 }
 0x180   : > { %v1763_v62 = vsel %vm587_vm4, %v1761_v54, %v6308_v43  ;;  %v1764_v63 = vsel %vm587_vm4, %v1762_v41, %v6309_v42  ;;  %vm2432_vm4 = vcmask 523264  }
 0x181   : > { %v6317_v35 = vpop.permute.xlu0 %6316  ;;  %v1691_v53 = vsel %vm596_vm7, %v1689_v56, %v6323_v44  ;;  %v1692_v3 = vsel %vm596_vm7, %v1690_v60, %v6324_v46 }
 0x182   : > { %v6332_v36 = vpop.permute.xlu1 %6331  ;;  %v6319_v9 = vunpack.i.h.bf16 %v6317_v35  ;;  %v6318_v18 = vunpack.i.l.bf16 %v6317_v35 }
 0x183   : > { %v6333_v48 = vunpack.i.l.bf16 %v6332_v36  ;;  %v6334_v51 = vunpack.i.h.bf16 %v6332_v36 }
 0x184   : > { %v1765_v4 = vsel %vm590_vm5, %v1763_v62, %v6318_v18  ;;  %v1766_v6 = vsel %vm590_vm5, %v1764_v63, %v6319_v9  ;;  %vm2434_vm5 = vcmask 785408  }
 0x185   : > { %v6327_v45 = vpop.permute.xlu0 %6326  ;;  %v1693_v7 = vsel %vm599_vm8, %v1691_v53, %v6333_v48  ;;  %v1694_v55 = vsel %vm599_vm8, %v1692_v3, %v6334_v51 }
 0x186   : > { %v6342_v28 = vpop.permute.xlu1 %6341  ;;  %v6329_v11 = vunpack.i.h.bf16 %v6327_v45  ;;  %v6328_v1 = vunpack.i.l.bf16 %v6327_v45 }
 0x187   : > { %v6344_v58 = vunpack.i.h.bf16 %v6342_v28  ;;  %v6343_v59 = vunpack.i.l.bf16 %v6342_v28 }
 0x188   : > { %v1767_v13 = vsel %vm593_vm6, %v1765_v4, %v6328_v1  ;;  %v1768_v37 = vsel %vm593_vm6, %v1766_v6, %v6329_v11  ;;  %vm3045_vm6 = vcmask 519168  }
 0x189   : > { %v6337_v2 = vpop.permute.xlu0 %6336  ;;  %v1695_v14 = vsel %vm602_vm10, %v1693_v7, %v6343_v59  ;;  %v1696_v15 = vsel %vm602_vm10, %v1694_v55, %v6344_v58 }
 0x18a   : > { %v6352_v8 = vpop.permute.xlu1 %6351  ;;  %v6339_v20 = vunpack.i.h.bf16 %v6337_v2  ;;  %v6338_v26 = vunpack.i.l.bf16 %v6337_v2 }
 0x18b   : > { %v6354_v47 = vunpack.i.h.bf16 %v6352_v8  ;;  %v6353_v12 = vunpack.i.l.bf16 %v6352_v8  ;;  %v5601_v57 = vpop.f32.mrb[0].mxu0 }
 0x18c   : > { %v1895_v16 = vadd.f32 %v5601_v57, %v7869_v5  ;;  %v1886_v17 = vpop.f32.mrb[1].mxu0  ;;  %v1769_v42 = vsel %vm596_vm7, %v1767_v13, %v6338_v26  ;;  %v1770_v43 = vsel %vm596_vm7, %v1768_v37, %v6339_v20  ;;  %vm6915_vm7 = vmmov 0  }
 0x18d   : > { %v1697_v34 = vsel %vm385_vm9, %v1695_v14, %v6353_v12  ;;  %v1698_v10 = vsel %vm385_vm9, %v1696_v15, %v6354_v47  ;;  %v1887_v23 = vadd.f32 %v7869_v5, %v1886_v17  ;;  %v6347_v24 = vpop.permute.xlu0 %6346  ;;  %v5602_v25 = vpop.f32.mrb[2].mxu0  ;;  %v7904_v47 = vld [vmem:[#allocation2] sm:$0xff]  ;;  %v2367_v12 = vld [vmem:[#allocation2 + $0x8] sm:$0x3] }
 0x18e   : > { %v1699_v27 = vpack.c.bf16 %v1698_v10, %v1697_v34  ;;  %v2015_v61 = vmax.f32 %v1895_v16, 0.0  ;;  %v6349_v19 = vunpack.i.h.bf16 %v6347_v24  ;;  %v1889_v29 = vpop.f32.mrb[3].mxu0  ;;  %v6362_v30 = vpop.permute.xlu1 %6361  ;;  %v6348_v33 = vunpack.i.l.bf16 %v6347_v24 }
 0x18f   : > { %v2013_v31 = vmax.f32 %v1887_v23, 0.0  ;;  %v1898_v35 = vadd.f32 %v5602_v25, %v7869_v5  ;;  %v1890_v36 = vadd.f32 %v7869_v5, %v1889_v29  ;;  %v6364_v32 = vunpack.i.h.bf16 %v6362_v30 }
 0x190   : > { %5627 = vmatprep.mubr.msk.bf16.mxu0 %vm1799_vm11, %v1699_v27  ;;  %v6363_v0 = vunpack.i.l.bf16 %v6362_v30  ;;  %v1771_v9 = vsel %vm599_vm8, %v1769_v42, %v6348_v33  ;;  %v1772_v18 = vsel %vm599_vm8, %v1770_v43, %v6349_v19  ;;  %v2389_v57 = vrot.slane %v7904_v47, 1 }
 0x191   : > { %v2045_v38 = vmax.f32 %v2013_v31, %v2015_v61  ;;  %v2016_v39 = vmax.f32 %v1898_v35, 0.0  ;;  %v2014_v40 = vmax.f32 %v1890_v36, 0.0  ;;  %v6357_v21 = vpop.permute.xlu0 %6356  ;;  %v2390_v1 = vrot.slane %v2367_v12, 1 }
 0x192   : > { %v6359_v44 = vunpack.i.h.bf16 %v6357_v21  ;;  %v6358_v45 = vunpack.i.l.bf16 %v6357_v21 }
 0x193   : > { %v2048_v46 = vrot.slane %v2045_v38, 1  ;;  %v2046_v48 = vmax.f32 %v2014_v40, %v2016_v39  ;;  %v2391_v16 = vsel %vm498_vm0, %v2389_v57, %v2390_v1 }
 0x194   : > { %v1773_v28 = vsel %vm602_vm10, %v1771_v9, %v6358_v45  ;;  %v1774_v49 = vsel %vm602_vm10, %v1772_v18, %v6359_v44 }
 0x195   : > { %v2050_v50 = vmax.f32 %v2045_v38, %v2048_v46  ;;  %v2052_v41 = vrot.slane %v2046_v48, 1  ;;  %v1775_v51 = vsel %vm385_vm9, %v1773_v28, %v6363_v0  ;;  %v1776_v52 = vsel %vm385_vm9, %v1774_v49, %v6364_v32 }
 0x196   : > { %v1777_v54 = vpack.c.bf16 %v1776_v52, %v1775_v51  ;;  %v2396_v51 = vrot.slane %v2367_v12, 2  ;;  %v6523_v52 = vld [vmem:[%s9101_s3 + $0x40] sm:$0xff]  }
 0x197   : > { %v2056_v56 = vrot.slane %v2050_v50, 1  ;;  %v2058_v58 = vrot.slane %v2050_v50, 2  ;;  %v2054_v59 = vmax.f32 %v2046_v48, %v2052_v41  ;;  %v2060_v60 = vrot.slane %v2050_v50, 3  ;;  %5476 = vmatprep.subr.bf16.mxu1 %v6523_v52  ;;  %v6535_v52 = vld [vmem:[%s9101_s3 + $0x70] sm:$0xff]  }
 0x198   : > { %5628 = vmatmul.mubr.msk.bf16.gmra.mrb[28].mxu0 %vm1799_vm11, %v1777_v54  ;;  %v2395_v41 = vrot.slane %v7904_v47, 2 }
 0x199   : > { %v2072_v62 = vsel %vm2071_vm13, %v2050_v50, %v2056_v56  ;;  %v2063_v63 = vrot.slane %v2054_v59, 4  ;;  %v2065_v3 = vrot.slane %v2054_v59, 5  ;;  %v2067_v4 = vrot.slane %v2054_v59, 6 }
 0x19a   : > { %v2073_v53 = vsel %vm1848_vm2, %v2072_v62, %v2058_v58  ;;  %v2069_v7 = vrot.slane %v2054_v59, 7  ;;  %v2397_v54 = vsel %vm510_vm1, %v2395_v41, %v2396_v51  ;;  %v6534_v41 = vld [vmem:[%s9101_s3 + $0x28] sm:$0xff]  }
 0x19b   : > { %v2075_v2 = vsel %vm2074_vm14, %v2073_v53, %v2060_v60 }
 0x19c   : > { %v2077_v6 = vsel %vm2076_vm15, %v2075_v2, %v2063_v63 }
 0x19d   : > { %v2079_v8 = vsel %vm2078_vm3, %v2077_v6, %v2065_v3  ;;  %v6524_v6 = vld [vmem:[%s9101_s3] sm:$0xff]  }
 0x19e   : > { %v2080_v55 = vsel %vm510_vm1, %v2079_v8, %v2067_v4  ;;  %5477 = vmatpush3.bf16.msra.mxu1 %v6524_v6 }
 0x19f   : > { %v2081_v11 = vsel %vm498_vm0, %v2080_v55, %v2069_v7 }
 0x1a0   : > { %2083 = vst.msk [vmem:[#allocation2 + $0x11] sm:$0xff] %vm385_vm9, %v2081_v11 }
 0x1a7   : > { %v7907_v14 = vld [vmem:[#allocation2 + $0x10] sm:$0xff]  ;;  %v2369_v15 = vld [vmem:[#allocation2 + $0x18] sm:$0x3] }
 0x1a8   : > { %v2410_v17 = vrot.slane %v7907_v14, 2  ;;  %v2411_v20 = vrot.slane %v2369_v15, 2  ;;  %v2406_v59 = vrot.slane %v7907_v14, 1  ;;  %v2407_v60 = vrot.slane %v2369_v15, 1 }
 0x1aa   : > { %v7912_v34 = vsel %vm510_vm1, %v2410_v17, %v2411_v20  ;;  %v7949_v55 = vsel %vm498_vm0, %v2406_v59, %v2407_v60  ;;  %v6525_v17 = vld [vmem:[%s9101_s3 + $0x48] sm:$0xff]   ;;  %v6538_v59 = vld [vmem:[%s9101_s3 + $0x38] sm:$0xff]  }
 0x1ab   : > { %v5605_v10 = vpop.f32.mrb[4].mxu0  ;;  %v6365_v23 = vpack.i.bf16 %v2391_v16, %v7912_v34  ;;  %5478 = vmatprep.subr.bf16.mxu1 %v6525_v17 }
 0x1ac   : > { %v1911_v24 = vadd.f32 %v5605_v10, %v7869_v5  ;;  %v1902_v25 = vpop.f32.mrb[5].mxu0 }
 0x1ad   : > { %v1903_v26 = vadd.f32 %v7869_v5, %v1902_v25  ;;  %v5606_v27 = vpop.f32.mrb[6].mxu0  ;;  %6366 = vrot.lane.b32.xlu0 %v6365_v23, %s6911_s12 }
 0x1ae   : > { %v2019_v61 = vmax.f32 %v1911_v24, 0.0  ;;  %v1914_v19 = vadd.f32 %v5606_v27, %v7869_v5  ;;  %v1905_v29 = vpop.f32.mrb[7].mxu0  ;;  %v6526_v24 = vld [vmem:[%s9101_s3 + $0x8] sm:$0xff]  }
 0x1af   : > { %v2017_v30 = vmax.f32 %v1903_v26, 0.0  ;;  %v1906_v31 = vadd.f32 %v7869_v5, %v1905_v29  ;;  %5479 = vmatpush3.bf16.msra.mxu1 %v6526_v24  ;;  %v6527_v29 = vld [vmem:[%s9101_s3 + $0x50] sm:$0xff]  }
 0x1b0   : > { %v2020_v33 = vmax.f32 %v1914_v19, 0.0  ;;  %5480 = vmatprep.subr.bf16.mxu1 %v6527_v29 }
 0x1b1   : > { %v2084_v35 = vmax.f32 %v2017_v30, %v2019_v61  ;;  %v2018_v36 = vmax.f32 %v1906_v31, 0.0  ;;  %v6528_v30 = vld [vmem:[%s9101_s3 + $0x10] sm:$0xff]  }
 0x1b3   : > { %v2087_v13 = vrot.slane %v2084_v35, 1  ;;  %v2085_v37 = vmax.f32 %v2018_v36, %v2020_v33  ;;  %5481 = vmatpush3.bf16.msra.mxu1 %v6528_v30 }
 0x1b5   : > { %v2089_v32 = vmax.f32 %v2084_v35, %v2087_v13  ;;  %v2091_v38 = vrot.slane %v2085_v37, 1  ;;  %v6529_v13 = vld [vmem:[%s9101_s3 + $0x58] sm:$0xff]  }
 0x1b6   : > { %5482 = vmatprep.subr.bf16.mxu1 %v6529_v13 }
 0x1b7   : > { %v2095_v39 = vrot.slane %v2089_v32, 1  ;;  %v2097_v40 = vrot.slane %v2089_v32, 2  ;;  %v2093_v21 = vmax.f32 %v2085_v37, %v2091_v38  ;;  %v2099_v0 = vrot.slane %v2089_v32, 3  ;;  %v6530_v37 = vld [vmem:[%s9101_s3 + $0x18] sm:$0xff]  }
 0x1b8   : > { %5483 = vmatpush3.bf16.msra.mxu1 %v6530_v37 }
 0x1b9   : > { %v2110_v42 = vsel %vm2071_vm13, %v2089_v32, %v2095_v39  ;;  %v2102_v43 = vrot.slane %v2093_v21, 4  ;;  %v2104_v46 = vrot.slane %v2093_v21, 5  ;;  %v2106_v9 = vrot.slane %v2093_v21, 6 }
 0x1ba   : > { %v2111_v44 = vsel %vm1848_vm2, %v2110_v42, %v2097_v40  ;;  %v2108_v48 = vrot.slane %v2093_v21, 7  ;;  %v6531_v42 = vld [vmem:[%s9101_s3 + $0x60] sm:$0xff]  }
 0x1bb   : > { %v2112_v45 = vsel %vm2074_vm14, %v2111_v44, %v2099_v0  ;;  %v6532_v44 = vld [vmem:[%s9101_s3 + $0x20] sm:$0xff]   ;;  %5484 = vmatprep.subr.bf16.mxu1 %v6531_v42 }
 0x1bc   : > { %v2113_v18 = vsel %vm2076_vm15, %v2112_v45, %v2102_v43  ;;  %5485 = vmatpush3.bf16.msra.mxu1 %v6532_v44 }
 0x1bd   : > { %v2114_v28 = vsel %vm2078_vm3, %v2113_v18, %v2104_v46 }
 0x1be   : > { %v2115_v49 = vsel %vm510_vm1, %v2114_v28, %v2106_v9 }
 0x1bf   : > { %v2116_v50 = vsel %vm498_vm0, %v2115_v49, %v2108_v48  ;;  %v6533_v49 = vld [vmem:[%s9101_s3 + $0x68] sm:$0xff]  }
 0x1c0   : > { %2118 = vst.msk [vmem:[#allocation2 + $0x21] sm:$0xff] %vm385_vm9, %v2116_v50  ;;  %5486 = vmatprep.subr.bf16.mxu1 %v6533_v49 }
 0x1c1   : > { %5487 = vmatpush3.bf16.msra.mxu1 %v6534_v41 }
 0x1c2   : > { %5488 = vmatprep.subr.bf16.mxu1 %v6535_v52 }
 0x1c7   : > { %v7933_v56 = vld [vmem:[#allocation2 + $0x20] sm:$0xff]  ;;  %v2371_v58 = vld [vmem:[#allocation2 + $0x28] sm:$0x3] }
 0x1c8   : > { %v6370_v62 = vpack.i.bf16 %v2397_v54, %v7933_v56  ;;  %v2421_v63 = vrot.slane %v7933_v56, 1  ;;  %v2422_v53 = vrot.slane %v2371_v58, 1  ;;  %v2427_v2 = vrot.slane %v7933_v56, 2  ;;  %v6536_v54 = vld [vmem:[%s9101_s3 + $0x30] sm:$0xff]  }
 0x1c9   : > { %v2428_v3 = vrot.slane %v2371_v58, 2  ;;  %5489 = vmatpush3.bf16.msra.mxu1 %v6536_v54  ;;  %v6537_v58 = vld [vmem:[%s9101_s3 + $0x78] sm:$0xff]  }
 0x1ca   : > { %6371 = vrot.lane.b32.xlu0 %v6370_v62, %s9114_s24  ;;  %v7941_v4 = vsel %vm498_vm0, %v2421_v63, %v2422_v53  ;;  %5490 = vmatprep.subr.bf16.mxu1 %v6537_v58 }
 0x1cb   : > { %v5609_v7 = vpop.f32.mrb[8].mxu0  ;;  %v6380_v8 = vpack.i.bf16 %v7907_v14, %v7941_v4  ;;  %v7952_v11 = vsel %vm510_vm1, %v2427_v2, %v2428_v3 }
 0x1cc   : > { %v1927_v12 = vadd.f32 %v5609_v7, %v7869_v5  ;;  %v1918_v57 = vpop.f32.mrb[9].mxu0  ;;  %v6375_v1 = vpack.i.bf16 %v7949_v55, %v7952_v11 }
 0x1cd   : > { %v1919_v15 = vadd.f32 %v7869_v5, %v1918_v57  ;;  %v5610_v16 = vpop.f32.mrb[10].mxu0  ;;  %6381 = vrot.lane.b32.xlu1 %v6380_v8, %s9112_s13  ;;  %5491 = vmatpush3.bf16.msra.mxu1 %v6538_v59 }
 0x1ce   : > { %v2023_v20 = vmax.f32 %v1927_v12, 0.0  ;;  %v1930_v10 = vadd.f32 %v5610_v16, %v7869_v5  ;;  %v1921_v23 = vpop.f32.mrb[11].mxu0  ;;  %6376 = vrot.lane.b32.xlu0 %v6375_v1, %s6911_s12 }
 0x1cf   : > { %v2021_v25 = vmax.f32 %v1919_v15, 0.0  ;;  %v1922_v26 = vadd.f32 %v7869_v5, %v1921_v23 }
 0x1d0   : > { %v2024_v27 = vmax.f32 %v1930_v10, 0.0  ;;  %v2441_v10 = vpack.c.bf16 %v7952_v11, %v7952_v11 }
 0x1d1   : > { %v2119_v61 = vmax.f32 %v2021_v25, %v2023_v20  ;;  %v2022_v19 = vmax.f32 %v1922_v26, 0.0 }
 0x1d3   : > { %v2122_v31 = vrot.slane %v2119_v61, 1  ;;  %v2120_v33 = vmax.f32 %v2022_v19, %v2024_v27 }
 0x1d5   : > { %v2124_v35 = vmax.f32 %v2119_v61, %v2122_v31  ;;  %v2126_v36 = vrot.slane %v2120_v33, 1 }
 0x1d7   : > { %v2130_v32 = vrot.slane %v2124_v35, 1  ;;  %v2132_v38 = vrot.slane %v2124_v35, 2  ;;  %v2128_v39 = vmax.f32 %v2120_v33, %v2126_v36  ;;  %v2134_v40 = vrot.slane %v2124_v35, 3 }
 0x1d9   : > { %v2145_v21 = vsel %vm2071_vm13, %v2124_v35, %v2130_v32  ;;  %v2137_v0 = vrot.slane %v2128_v39, 4  ;;  %v2139_v46 = vrot.slane %v2128_v39, 5  ;;  %v2141_v9 = vrot.slane %v2128_v39, 6 }
 0x1da   : > { %v2146_v43 = vsel %vm1848_vm2, %v2145_v21, %v2132_v38  ;;  %v2143_v48 = vrot.slane %v2128_v39, 7 }
 0x1db   : > { %v2147_v45 = vsel %vm2074_vm14, %v2146_v43, %v2134_v40 }
 0x1dc   : > { %v2148_v18 = vsel %vm2076_vm15, %v2147_v45, %v2137_v0 }
 0x1dd   : > { %v2149_v28 = vsel %vm2078_vm3, %v2148_v18, %v2139_v46 }
 0x1de   : > { %v2150_v50 = vsel %vm510_vm1, %v2149_v28, %v2141_v9 }
 0x1df   : > { %v2151_v51 = vsel %vm498_vm0, %v2150_v50, %v2143_v48 }
 0x1e0   : > { %2153 = vst.msk [vmem:[#allocation2 + $0x31] sm:$0xff] %vm385_vm9, %v2151_v51 }
 0x1e7   : > { %v8012_v60 = vld [vmem:[#allocation2 + $0x30] sm:$0xff]  ;;  %v2373_v62 = vld [vmem:[#allocation2 + $0x38] sm:$0x3] }
 0x1e8   : > { %v6385_v63 = vpack.i.bf16 %v7912_v34, %v8012_v60  ;;  %v2466_v53 = vrot.slane %v8012_v60, 2  ;;  %v2467_v2 = vrot.slane %v2373_v62, 2  ;;  %v2460_v3 = vrot.slane %v8012_v60, 1 }
 0x1e9   : > { %v2461_v6 = vrot.slane %v2373_v62, 1 }
 0x1ea   : > { %6386 = vrot.lane.b32.xlu1 %v6385_v63, %s9114_s24  ;;  %v8020_v7 = vsel %vm510_vm1, %v2466_v53, %v2467_v2 }
 0x1eb   : > { %v5613_v8 = vpop.f32.mrb[12].mxu0  ;;  %v6395_v12 = vpack.i.bf16 %v7941_v4, %v8020_v7  ;;  %v8025_v57 = vsel %vm498_vm0, %v2460_v3, %v2461_v6  ;;  %v2478_v34 = vpack.c.bf16 %v8020_v7, %v8020_v7 }
 0x1ec   : > { %v1943_v1 = vadd.f32 %v5613_v8, %v7869_v5  ;;  %v1934_v15 = vpop.f32.mrb[13].mxu0  ;;  %v6390_v16 = vpack.i.bf16 %v7933_v56, %v8025_v57 }
 0x1ed   : > { %v1935_v17 = vadd.f32 %v7869_v5, %v1934_v15  ;;  %v5614_v20 = vpop.f32.mrb[14].mxu0  ;;  %6396 = vrot.lane.b32.xlu0 %v6395_v12, %s6911_s12  ;;  %v2706_v23 = vrot.slane %v2478_v34, 4 }
 0x1ee   : > { %v2027_v24 = vmax.f32 %v1943_v1, 0.0  ;;  %v1946_v25 = vadd.f32 %v5614_v20, %v7869_v5  ;;  %v1937_v26 = vpop.f32.mrb[15].mxu0  ;;  %6391 = vrot.lane.b32.xlu1 %v6390_v16, %s9121_s22 }
 0x1ef   : > { %v2025_v27 = vmax.f32 %v1935_v17, 0.0  ;;  %v1938_v61 = vadd.f32 %v7869_v5, %v1937_v26  ;;  %v8040_v19 = vsel %vm2076_vm15, %v2441_v10, %v2706_v23 }
 0x1f0   : > { %v2028_v29 = vmax.f32 %v1946_v25, 0.0 }
 0x1f1   : > { %v2154_v30 = vmax.f32 %v2025_v27, %v2027_v24  ;;  %v2026_v31 = vmax.f32 %v1938_v61, 0.0 }
 0x1f3   : > { %v2157_v33 = vrot.slane %v2154_v30, 1  ;;  %v2155_v35 = vmax.f32 %v2026_v31, %v2028_v29 }
 0x1f5   : > { %v2159_v36 = vmax.f32 %v2154_v30, %v2157_v33  ;;  %v2161_v13 = vrot.slane %v2155_v35, 1 }
 0x1f7   : > { %v2165_v37 = vrot.slane %v2159_v36, 1  ;;  %v2167_v32 = vrot.slane %v2159_v36, 2  ;;  %v2163_v38 = vmax.f32 %v2155_v35, %v2161_v13  ;;  %v2169_v39 = vrot.slane %v2159_v36, 3 }
 0x1f9   : > { %v2180_v40 = vsel %vm2071_vm13, %v2159_v36, %v2165_v37  ;;  %v2172_v21 = vrot.slane %v2163_v38, 4  ;;  %v2174_v43 = vrot.slane %v2163_v38, 5  ;;  %v2176_v44 = vrot.slane %v2163_v38, 6 }
 0x1fa   : > { %v2181_v0 = vsel %vm1848_vm2, %v2180_v40, %v2167_v32  ;;  %v2178_v46 = vrot.slane %v2163_v38, 7 }
 0x1fb   : > { %v2182_v42 = vsel %vm2074_vm14, %v2181_v0, %v2169_v39 }
 0x1fc   : > { %v2183_v45 = vsel %vm2076_vm15, %v2182_v42, %v2172_v21 }
 0x1fd   : > { %v2184_v9 = vsel %vm2078_vm3, %v2183_v45, %v2174_v43 }
 0x1fe   : > { %v2185_v18 = vsel %vm510_vm1, %v2184_v9, %v2176_v44 }
 0x1ff   : > { %v2186_v48 = vsel %vm498_vm0, %v2185_v18, %v2178_v46 }
 0x200   : > { %2188 = vst.msk [vmem:[#allocation2 + $0x41] sm:$0xff] %vm385_vm9, %v2186_v48 }
 0x207   : > { %v8050_v28 = vld [vmem:[#allocation2 + $0x40] sm:$0xff]  ;;  %v2375_v49 = vld [vmem:[#allocation2 + $0x48] sm:$0x3] }
 0x208   : > { %v6400_v50 = vpack.i.bf16 %v7952_v11, %v8050_v28  ;;  %v2497_v41 = vrot.slane %v8050_v28, 1  ;;  %v2498_v51 = vrot.slane %v2375_v49, 1  ;;  %v2503_v52 = vrot.slane %v8050_v28, 2 }
 0x209   : > { %v2504_v54 = vrot.slane %v2375_v49, 2 }
 0x20a   : > { %6401 = vrot.lane.b32.xlu0 %v6400_v50, %s9114_s24  ;;  %v8058_v58 = vsel %vm498_vm0, %v2497_v41, %v2498_v51 }
 0x20b   : > { %v5617_v59 = vpop.f32.mrb[16].mxu0  ;;  %v6410_v62 = vpack.i.bf16 %v8012_v60, %v8058_v58  ;;  %v8063_v63 = vsel %vm510_vm1, %v2503_v52, %v2504_v54 }
 0x20c   : > { %v1959_v11 = vadd.f32 %v5617_v59, %v7869_v5  ;;  %v1950_v53 = vpop.f32.mrb[17].mxu0  ;;  %v6405_v2 = vpack.i.bf16 %v8025_v57, %v8063_v63  ;;  %v2515_v52 = vpack.c.bf16 %v8063_v63, %v8063_v63 }
 0x20d   : > { %v1951_v3 = vadd.f32 %v7869_v5, %v1950_v53  ;;  %v5618_v6 = vpop.f32.mrb[18].mxu0  ;;  %6411 = vrot.lane.b32.xlu1 %v6410_v62, %s9121_s22 }
 0x20e   : > { %v2031_v8 = vmax.f32 %v1959_v11, 0.0  ;;  %v1962_v12 = vadd.f32 %v5618_v6, %v7869_v5  ;;  %v1953_v34 = vpop.f32.mrb[19].mxu0  ;;  %6406 = vrot.lane.b32.xlu0 %v6405_v2, %s6911_s12 }
 0x20f   : > { %v2029_v1 = vmax.f32 %v1951_v3, 0.0  ;;  %v1954_v15 = vadd.f32 %v7869_v5, %v1953_v34 }
 0x210   : > { %v2032_v16 = vmax.f32 %v1962_v12, 0.0 }
 0x211   : > { %v2189_v17 = vmax.f32 %v2029_v1, %v2031_v8  ;;  %v2030_v20 = vmax.f32 %v1954_v15, 0.0 }
 0x213   : > { %v2192_v10 = vrot.slane %v2189_v17, 1  ;;  %v2190_v23 = vmax.f32 %v2030_v20, %v2032_v16 }
 0x215   : > { %v2194_v24 = vmax.f32 %v2189_v17, %v2192_v10  ;;  %v2196_v25 = vrot.slane %v2190_v23, 1 }
 0x217   : > { %v2200_v26 = vrot.slane %v2194_v24, 1  ;;  %v2202_v27 = vrot.slane %v2194_v24, 2  ;;  %v2198_v61 = vmax.f32 %v2190_v23, %v2196_v25  ;;  %v2204_v29 = vrot.slane %v2194_v24, 3 }
 0x219   : > { %v2215_v30 = vsel %vm2071_vm13, %v2194_v24, %v2200_v26  ;;  %v2207_v31 = vrot.slane %v2198_v61, 4  ;;  %v2209_v36 = vrot.slane %v2198_v61, 5  ;;  %v2211_v13 = vrot.slane %v2198_v61, 6 }
 0x21a   : > { %v2216_v33 = vsel %vm1848_vm2, %v2215_v30, %v2202_v27  ;;  %v2213_v32 = vrot.slane %v2198_v61, 7 }
 0x21b   : > { %v2217_v35 = vsel %vm2074_vm14, %v2216_v33, %v2204_v29 }
 0x21c   : > { %v2218_v37 = vsel %vm2076_vm15, %v2217_v35, %v2207_v31 }
 0x21d   : > { %v2219_v38 = vsel %vm2078_vm3, %v2218_v37, %v2209_v36 }
 0x21e   : > { %v2220_v39 = vsel %vm510_vm1, %v2219_v38, %v2211_v13 }
 0x21f   : > { %v2221_v40 = vsel %vm498_vm0, %v2220_v39, %v2213_v32 }
 0x220   : > { %2223 = vst.msk [vmem:[#allocation2 + $0x51] sm:$0xff] %vm385_vm9, %v2221_v40 }
 0x227   : > { %v8081_v21 = vld [vmem:[#allocation2 + $0x50] sm:$0xff]  ;;  %v2377_v0 = vld [vmem:[#allocation2 + $0x58] sm:$0x3] }
 0x228   : > { %v6415_v42 = vpack.i.bf16 %v8020_v7, %v8081_v21  ;;  %v2540_v43 = vrot.slane %v8081_v21, 2  ;;  %v2541_v44 = vrot.slane %v2377_v0, 2  ;;  %v2534_v45 = vrot.slane %v8081_v21, 1 }
 0x229   : > { %v2535_v46 = vrot.slane %v2377_v0, 1 }
 0x22a   : > { %6416 = vrot.lane.b32.xlu1 %v6415_v42, %s9114_s24  ;;  %v8089_v9 = vsel %vm510_vm1, %v2540_v43, %v2541_v44 }
 0x22b   : > { %v5621_v18 = vpop.f32.mrb[20].mxu0  ;;  %v2552_v48 = vpack.c.bf16 %v8089_v9, %v8089_v9  ;;  %v6425_v49 = vpack.i.bf16 %v8058_v58, %v8089_v9  ;;  %v8096_v7 = vsel %vm498_vm0, %v2534_v45, %v2535_v46 }
 0x22c   : > { %v1975_v50 = vadd.f32 %v5621_v18, %v7869_v5  ;;  %v1966_v41 = vpop.f32.mrb[21].mxu0  ;;  %v6420_v51 = vpack.i.bf16 %v8050_v28, %v8096_v7 }
 0x22d   : > { %v1967_v54 = vadd.f32 %v7869_v5, %v1966_v41  ;;  %v5622_v59 = vpop.f32.mrb[22].mxu0  ;;  %v2712_v62 = vrot.slane %v2552_v48, 4  ;;  %6426 = vrot.lane.b32.xlu0 %v6425_v49, %s6911_s12 }
 0x22e   : > { %v2035_v11 = vmax.f32 %v1975_v50, 0.0  ;;  %v1978_v53 = vadd.f32 %v5622_v59, %v7869_v5  ;;  %v1969_v2 = vpop.f32.mrb[23].mxu0  ;;  %6421 = vrot.lane.b32.xlu1 %v6420_v51, %s9121_s22 }
 0x22f   : > { %v2033_v3 = vmax.f32 %v1967_v54, 0.0  ;;  %v1970_v6 = vadd.f32 %v7869_v5, %v1969_v2  ;;  %v8109_v8 = vsel %vm2076_vm15, %v2515_v52, %v2712_v62 }
 0x230   : > { %v2036_v12 = vmax.f32 %v1978_v53, 0.0 }
 0x231   : > { %v2224_v34 = vmax.f32 %v2033_v3, %v2035_v11  ;;  %v2034_v1 = vmax.f32 %v1970_v6, 0.0  ;;  %v6367_v11 = vpop.permute.xlu0 %6366 }
 0x233   : > { %v2227_v15 = vrot.slane %v2224_v34, 1  ;;  %v2225_v16 = vmax.f32 %v2034_v1, %v2036_v12 }
 0x235   : > { %v2229_v17 = vmax.f32 %v2224_v34, %v2227_v15  ;;  %v2231_v20 = vrot.slane %v2225_v16, 1 }
 0x237   : > { %v2235_v10 = vrot.slane %v2229_v17, 1  ;;  %v2237_v23 = vrot.slane %v2229_v17, 2  ;;  %v2233_v24 = vmax.f32 %v2225_v16, %v2231_v20  ;;  %v2239_v25 = vrot.slane %v2229_v17, 3 }
 0x239   : > { %v2250_v26 = vsel %vm2071_vm13, %v2229_v17, %v2235_v10  ;;  %v2242_v27 = vrot.slane %v2233_v24, 4  ;;  %v2244_v30 = vrot.slane %v2233_v24, 5  ;;  %v2246_v31 = vrot.slane %v2233_v24, 6 }
 0x23a   : > { %v2251_v61 = vsel %vm1848_vm2, %v2250_v26, %v2237_v23  ;;  %v2248_v35 = vrot.slane %v2233_v24, 7 }
 0x23b   : > { %v2252_v29 = vsel %vm2074_vm14, %v2251_v61, %v2239_v25  ;;  %v6369_v61 = vunpack.i.h.bf16 %v6367_v11 }
 0x23c   : > { %v2253_v33 = vsel %vm2076_vm15, %v2252_v29, %v2242_v27  ;;  %v6372_v34 = vpop.permute.xlu0 %6371 }
 0x23d   : > { %v2254_v36 = vsel %vm2078_vm3, %v2253_v33, %v2244_v30  ;;  %v6374_v33 = vunpack.i.h.bf16 %v6372_v34 }
 0x23e   : > { %v2255_v13 = vsel %vm510_vm1, %v2254_v36, %v2246_v31  ;;  %v6368_v31 = vunpack.i.l.bf16 %v6367_v11 }
 0x23f   : > { %v2256_v37 = vsel %vm498_vm0, %v2255_v13, %v2248_v35  ;;  %v6382_v10 = vpop.permute.xlu1 %6381 }
 0x240   : > { %2258 = vst.msk [vmem:[#allocation2 + $0x61] sm:$0xff] %vm385_vm9, %v2256_v37  ;;  %v6377_v26 = vpop.permute.xlu0 %6376 }
 0x241   : > { %v6379_v37 = vunpack.i.h.bf16 %v6377_v26 }
 0x247   : > { %v8119_v32 = vld [vmem:[#allocation2 + $0x60] sm:$0xff]  ;;  %v2379_v38 = vld [vmem:[#allocation2 + $0x68] sm:$0x3] }
 0x248   : > { %v6430_v39 = vpack.i.bf16 %v8063_v63, %v8119_v32  ;;  %v2571_v40 = vrot.slane %v8119_v32, 1  ;;  %v2572_v0 = vrot.slane %v2379_v38, 1  ;;  %v2577_v42 = vrot.slane %v8119_v32, 2 }
 0x249   : > { %v2578_v43 = vrot.slane %v2379_v38, 2  ;;  %v6378_v38 = vunpack.i.l.bf16 %v6377_v26 }
 0x24a   : > { %6431 = vrot.lane.b32.xlu0 %v6430_v39, %s9114_s24  ;;  %v8127_v44 = vsel %vm498_vm0, %v2571_v40, %v2572_v0  ;;  %v6373_v0 = vunpack.i.l.bf16 %v6372_v34 }
 0x24b   : > { %v5625_v45 = vpop.f32.mrb[24].mxu0  ;;  %v6440_v46 = vpack.i.bf16 %v8081_v21, %v8127_v44  ;;  %v8132_v18 = vsel %vm510_vm1, %v2577_v42, %v2578_v43 }
 0x24c   : > { %v1991_v63 = vadd.f32 %v5625_v45, %v7869_v5  ;;  %v1982_v48 = vpop.f32.mrb[25].mxu0  ;;  %v6435_v49 = vpack.i.bf16 %v8096_v7, %v8132_v18 }
 0x24d   : > { %v1983_v50 = vadd.f32 %v7869_v5, %v1982_v48  ;;  %v5626_v41 = vpop.f32.mrb[26].mxu0  ;;  %6441 = vrot.lane.b32.xlu1 %v6440_v46, %s9121_s22  ;;  %v6384_v46 = vunpack.i.h.bf16 %v6382_v10 }
 0x24e   : > { %v2039_v51 = vmax.f32 %v1991_v63, 0.0  ;;  %v1994_v52 = vadd.f32 %v5626_v41, %v7869_v5  ;;  %v1985_v54 = vpop.f32.mrb[27].mxu0  ;;  %6436 = vrot.lane.b32.xlu0 %v6435_v49, %s6911_s12  ;;  %v6383_v63 = vunpack.i.l.bf16 %v6382_v10  ;;  %v2431_v49 = vsel %vm385_vm9, %v7904_v47, %v6369_v61  ;;  %v6539_v61 = vld [vmem:[%s9101_s3 + $0x80] sm:$0xff]  }
 0x24f   : > { %v2037_v59 = vmax.f32 %v1983_v50, 0.0  ;;  %v1986_v62 = vadd.f32 %v7869_v5, %v1985_v54  ;;  %v2436_v50 = vsel %vm385_vm9, %v7949_v55, %v6368_v31  ;;  %5631 = vmatprep.subr.bf16.mxu1 %v6539_v61 }
 0x250   : > { %v2040_v53 = vmax.f32 %v1994_v52, 0.0  ;;  %v2473_v52 = vsel %vm385_vm9, %v7941_v4, %v6378_v38  ;;  %v2437_v11 = vsel %vm2432_vm4, %v2436_v50, %v6373_v0  ;;  %v2385_v38 = vld [vmem:[#allocation2 + $0x90] sm:$0xff] }
 0x251   : > { %v2259_v2 = vmax.f32 %v2037_v59, %v2039_v51  ;;  %v2038_v3 = vmax.f32 %v1986_v62, 0.0  ;;  %v2470_v51 = vsel %vm385_vm9, %v7907_v14, %v6379_v37  ;;  %v2433_v62 = vsel %vm2432_vm4, %v2431_v49, %v6374_v33 }
 0x253   : > { %v2262_v6 = vrot.slane %v2259_v2, 1  ;;  %v2260_v12 = vmax.f32 %v2038_v3, %v2040_v53  ;;  %v2435_v53 = vsel %vm2434_vm5, %v2433_v62, %v6384_v46  ;;  %v2438_v3 = vsel %vm2434_vm5, %v2437_v11, %v6383_v63 }
 0x254   : > { %v2589_v46 = vpack.c.bf16 %v8132_v18, %v8132_v18 }
 0x255   : > { %v2264_v1 = vmax.f32 %v2259_v2, %v2262_v6  ;;  %v2266_v15 = vrot.slane %v2260_v12, 1 }
 0x257   : > { %v2270_v16 = vrot.slane %v2264_v1, 1  ;;  %v2272_v17 = vrot.slane %v2264_v1, 2  ;;  %v2268_v20 = vmax.f32 %v2260_v12, %v2266_v15  ;;  %v2274_v23 = vrot.slane %v2264_v1, 3 }
 0x258   : > { %v2440_v12 = vpack.c.bf16 %v2438_v3, %v2438_v3 }
 0x259   : > { %v2285_v24 = vsel %vm2071_vm13, %v2264_v1, %v2270_v16  ;;  %v2277_v25 = vrot.slane %v2268_v20, 4  ;;  %v2279_v30 = vrot.slane %v2268_v20, 5  ;;  %v2281_v35 = vrot.slane %v2268_v20, 6 }
 0x25a   : > { %v2286_v27 = vsel %vm1848_vm2, %v2285_v24, %v2272_v17  ;;  %v2283_v39 = vrot.slane %v2268_v20, 7  ;;  %v2439_v1 = vpack.c.bf16 %v2435_v53, %v2435_v53 }
 0x25b   : > { %v2287_v29 = vsel %vm2074_vm14, %v2286_v27, %v2274_v23 }
 0x25c   : > { %v2288_v36 = vsel %vm2076_vm15, %v2287_v29, %v2277_v25  ;;  %v6387_v13 = vpop.permute.xlu1 %6386 }
 0x25d   : > { %v2289_v40 = vsel %vm2078_vm3, %v2288_v36, %v2279_v30  ;;  %v6389_v43 = vunpack.i.h.bf16 %v6387_v13  ;;  %v6388_v45 = vunpack.i.l.bf16 %v6387_v13 }
 0x25e   : > { %v2290_v42 = vsel %vm510_vm1, %v2289_v40, %v2281_v35 }
 0x25f   : > { %v2291_v48 = vsel %vm498_vm0, %v2290_v42, %v2283_v39  ;;  %v2471_v47 = vsel %vm2432_vm4, %v2470_v51, %v6389_v43  ;;  %v2474_v55 = vsel %vm2432_vm4, %v2473_v52, %v6388_v45 }
 0x260   : > { %2293 = vst.msk [vmem:[#allocation2 + $0x71] sm:$0xff] %vm385_vm9, %v2291_v48  ;;  %v6392_v41 = vpop.permute.xlu1 %6391 }
 0x261   : > { %v6394_v54 = vunpack.i.h.bf16 %v6392_v41  ;;  %v6393_v59 = vunpack.i.l.bf16 %v6392_v41 }
 0x263   : > { %v2472_v2 = vsel %vm2434_vm5, %v2471_v47, %v6394_v54  ;;  %v2475_v14 = vsel %vm2434_vm5, %v2474_v55, %v6393_v59 }
 0x264   : > { %v2476_v6 = vpack.c.bf16 %v2472_v2, %v2472_v2  ;;  %v2477_v4 = vpack.c.bf16 %v2475_v14, %v2475_v14 }
 0x266   : > { %v2705_v34 = vrot.slane %v2477_v4, 4  ;;  %v2704_v15 = vrot.slane %v2476_v6, 4  ;;  %v2386_v4 = vld [vmem:[#allocation2 + $0x98] sm:$0x3] }
 0x267   : > { %v8166_v16 = vld [vmem:[#allocation2 + $0x70] sm:$0xff]  ;;  %v2381_v17 = vld [vmem:[#allocation2 + $0x78] sm:$0x3] }
 0x268   : > { %v2731_v20 = vsel %vm2076_vm15, %v2440_v12, %v2705_v34  ;;  %v6445_v10 = vpack.i.bf16 %v8089_v9, %v8166_v16  ;;  %v2727_v23 = vsel %vm2076_vm15, %v2439_v1, %v2704_v15  ;;  %v2614_v24 = vrot.slane %v8166_v16, 2 }
 0x269   : > { %2923 = vmatprep.mubr.bf16.mxu1 %v2731_v20  ;;  %v2615_v25 = vrot.slane %v2381_v17, 2  ;;  %v2608_v26 = vrot.slane %v8166_v16, 1  ;;  %v2609_v27 = vrot.slane %v2381_v17, 1  ;;  %v2688_v20 = vrot.slane %v2385_v38, 2 }
 0x26a   : > { %6446 = vrot.lane.b32.xlu1 %v6445_v10, %s9114_s24  ;;  %2924 = vmatmul.mubr.bf16.vlgmr.msra.gmra.mrb[0].mxu1 %v2727_v23  ;;  %v2689_v10 = vrot.slane %v2386_v4, 2 }
 0x26b   : > { %v5629_v29 = vpop.f32.mrb[28].mxu0  ;;  %v2616_v30 = vsel %vm510_vm1, %v2614_v24, %v2615_v25  ;;  %v8180_v9 = vsel %vm498_vm0, %v2608_v26, %v2609_v27  ;;  %5632 = vmatpush3.bf16.msra.mxu1 %v6539_v61  ;;  %v2682_v24 = vrot.slane %v2385_v38, 1  ;;  %v2683_v25 = vrot.slane %v2386_v4, 1 }
 0x26c   : > { %v2007_v31 = vadd.f32 %v5629_v29, %v7869_v5  ;;  %v1998_v33 = vpop.f32.mrb[29].mxu0  ;;  %v6460_v35 = vpack.i.bf16 %v8127_v44, %v2616_v30  ;;  %v6450_v36 = vpack.i.bf16 %v8119_v32, %v8180_v9  ;;  %v2626_v39 = vpack.c.bf16 %v2616_v30, %v2616_v30  ;;  %v6540_v29 = vld [vmem:[%s9101_s3 + $0x88] sm:$0xff]  }
 0x26d   : > { %v1999_v13 = vadd.f32 %v7869_v5, %v1998_v33  ;;  %v5630_v37 = vpop.f32.mrb[30].mxu0  ;;  %v6455_v49 = vpack.i.bf16 %v2616_v30, %v2385_v38  ;;  %v2690_v26 = vsel %vm510_vm1, %v2688_v20, %v2689_v10  ;;  %v2684_v27 = vsel %vm498_vm0, %v2682_v24, %v2683_v25  ;;  %5633 = vmatprep.subr.bf16.mxu1 %v6540_v29 }
 0x26e   : > { %v2043_v40 = vmax.f32 %v2007_v31, 0.0  ;;  %v2010_v0 = vadd.f32 %v5630_v37, %v7869_v5  ;;  %6461 = vrot.lane.b32.xlu0 %v6460_v35, %s6911_s12  ;;  %v2001_v42 = vpop.f32.mrb[31].mxu0  ;;  %6451 = vrot.lane.b32.xlu1 %v6450_v36, %s9121_s22  ;;  %v2718_v63 = vrot.slane %v2626_v39, 4  ;;  %v2700_v61 = vpack.c.bf16 %v2690_v26, %v2690_v26 }
 0x26f   : > { %v2041_v43 = vmax.f32 %v1999_v13, 0.0  ;;  %v2002_v45 = vadd.f32 %v7869_v5, %v2001_v42  ;;  %5634 = vmatpush3.bf16.msra.mxu1 %v6540_v29 }
 0x270   : > { %v2044_v48 = vmax.f32 %v2010_v0, 0.0  ;;  %v8194_v51 = vsel %vm2076_vm15, %v2589_v46, %v2718_v63  ;;  %v2724_v38 = vrot.slane %v2700_v61, 4  ;;  %v6397_v63 = vpop.permute.xlu0 %6396 }
 0x271   : > { %v2294_v50 = vmax.f32 %v2041_v43, %v2043_v40  ;;  %v2042_v41 = vmax.f32 %v2002_v45, 0.0 }
 0x272   : > { %6456 = vrot.lane.b32.xlu1 %v6455_v49, %s9114_s24 }
 0x273   : > { %v2297_v52 = vrot.slane %v2294_v50, 1  ;;  %v2295_v54 = vmax.f32 %v2042_v41, %v2044_v48  ;;  %v6399_v41 = vunpack.i.h.bf16 %v6397_v63 }
 0x275   : > { %v2299_v59 = vmax.f32 %v2294_v50, %v2297_v52  ;;  %v2301_v62 = vrot.slane %v2295_v54, 1  ;;  %v6398_v52 = vunpack.i.l.bf16 %v6397_v63 }
 0x277   : > { %v2305_v11 = vrot.slane %v2299_v59, 1  ;;  %v2307_v47 = vrot.slane %v2299_v59, 2  ;;  %v2303_v5 = vmax.f32 %v2295_v54, %v2301_v62  ;;  %v2309_v55 = vrot.slane %v2299_v59, 3 }
 0x279   : > { %v2320_v53 = vsel %vm2071_vm13, %v2299_v59, %v2305_v11  ;;  %v2312_v2 = vrot.slane %v2303_v5, 4  ;;  %v2314_v6 = vrot.slane %v2303_v5, 5  ;;  %v2316_v12 = vrot.slane %v2303_v5, 6 }
 0x27a   : > { %v2321_v3 = vsel %vm1848_vm2, %v2320_v53, %v2307_v47  ;;  %v2318_v1 = vrot.slane %v2303_v5, 7 }
 0x27b   : > { %v2322_v14 = vsel %vm2074_vm14, %v2321_v3, %v2309_v55  ;;  %v2510_v3 = vsel %vm385_vm9, %v8025_v57, %v6398_v52 }
 0x27c   : > { %v2323_v34 = vsel %vm2076_vm15, %v2322_v14, %v2312_v2  ;;  %v6402_v48 = vpop.permute.xlu0 %6401 }
 0x27d   : > { %v2324_v15 = vsel %vm2078_vm3, %v2323_v34, %v2314_v6  ;;  %v6404_v11 = vunpack.i.h.bf16 %v6402_v48  ;;  %v6403_v47 = vunpack.i.l.bf16 %v6402_v48 }
 0x27e   : > { %v2325_v17 = vsel %vm510_vm1, %v2324_v15, %v2316_v12 }
 0x27f   : > { %v2326_v23 = vsel %vm498_vm0, %v2325_v17, %v2318_v1  ;;  %v6412_v49 = vpop.permute.xlu1 %6411  ;;  %v2511_v15 = vsel %vm2432_vm4, %v2510_v3, %v6403_v47 }
 0x280   : > { %2328 = vst.msk [vmem:[#allocation2 + $0x81] sm:$0xff] %vm385_vm9, %v2326_v23  ;;  %v6407_v50 = vpop.permute.xlu0 %6406  ;;  %v6414_v53 = vunpack.i.h.bf16 %v6412_v49  ;;  %v6413_v2 = vunpack.i.l.bf16 %v6412_v49 }
 0x281   : > { %v6409_v59 = vunpack.i.h.bf16 %v6407_v50  ;;  %v6408_v62 = vunpack.i.l.bf16 %v6407_v50 }
 0x282   : > { %v2512_v57 = vsel %vm2434_vm5, %v2511_v15, %v6413_v2 }
 0x283   : > { %v2544_v6 = vsel %vm385_vm9, %v8012_v60, %v6409_v59  ;;  %v2547_v4 = vsel %vm385_vm9, %v8058_v58, %v6408_v62  ;;  %v2514_v24 = vpack.c.bf16 %v2512_v57, %v2512_v57 }
 0x287   : > { %v2382_v30 = vld [vmem:[#allocation2 + $0x80] sm:$0xff]  ;;  %v2383_v31 = vld [vmem:[#allocation2 + $0x88] sm:$0x3] }
 0x288   : > { %v6465_v33 = vpack.i.bf16 %v2382_v30, %v2684_v27  ;;  %v2651_v35 = vrot.slane %v2382_v30, 2  ;;  %v2652_v36 = vrot.slane %v2383_v31, 2  ;;  %v2645_v13 = vrot.slane %v2382_v30, 1 }
 0x289   : > { %v2646_v37 = vrot.slane %v2383_v31, 1  ;;  %v6475_v46 = vpack.i.bf16 %v8132_v18, %v2382_v30  ;;  %v2507_v18 = vsel %vm385_vm9, %v7933_v56, %v6399_v41 }
 0x28a   : > { %6466 = vrot.lane.b32.xlu1 %v6465_v33, %s9121_s22  ;;  %v2653_v39 = vsel %vm510_vm1, %v2651_v35, %v2652_v36  ;;  %v2508_v1 = vsel %vm2432_vm4, %v2507_v18, %v6404_v11 }
 0x28b   : > { %v6470_v40 = vpack.i.bf16 %v8180_v9, %v2653_v39  ;;  %v8214_v0 = vsel %vm498_vm0, %v2645_v13, %v2646_v37  ;;  %v2663_v42 = vpack.c.bf16 %v2653_v39, %v2653_v39  ;;  %v2509_v20 = vsel %vm2434_vm5, %v2508_v1, %v6414_v53 }
 0x28c   : > { %v6480_v43 = vpack.i.bf16 %v8166_v16, %v8214_v0  ;;  %v2513_v26 = vpack.c.bf16 %v2509_v20, %v2509_v20  ;;  %vm407_vm0 = vcmask 521216  }
 0x28d   : > { %6471 = vrot.lane.b32.xlu0 %v6470_v40, %s6911_s12  ;;  %v8220_v45 = vsel %vm2076_vm15, %v2663_v42, %v2724_v38  ;;  %408 = vst.msk [vmem:[#allocation3] sm:$0x3f] %vm407_vm0, %v6912_v22  ;;  %410 = vst.msk [vmem:[#allocation3 + $0x10] sm:$0x3f] %vm407_vm0, %v6912_v22 }
 0x28e   : > { %6481 = vrot.lane.b32.xlu1 %v6480_v43, %s9121_s22  ;;  %413 = vst.msk [vmem:[#allocation3 + $0x28] sm:$0x3f] %vm407_vm0, %v6912_v22  ;;  %409 = vst.msk [vmem:[#allocation3 + $0x8] sm:$0x3f] %vm407_vm0, %v6912_v22  ;;  %s9122_s22 = smov 64  }
 0x28f   : > { %411 = vst.msk [vmem:[#allocation3 + $0x18] sm:$0x3f] %vm407_vm0, %v6912_v22  ;;  %412 = vst.msk [vmem:[#allocation3 + $0x20] sm:$0x3f] %vm407_vm0, %v6912_v22 }
 0x291   : > { %6476 = vrot.lane.b32.xlu0 %v6475_v46, %s9114_s24  ;;  %s9056_s24 = scalar_lea.hbm %s9109_s11, %s5454_s16 }
 0x29c   : > { %v6417_v54 = vpop.permute.xlu1 %6416 }
 0x29d   : > { %v6419_v5 = vunpack.i.h.bf16 %v6417_v54  ;;  %v6418_v55 = vunpack.i.l.bf16 %v6417_v54 }
 0x29f   : > { %v2545_v17 = vsel %vm2432_vm4, %v2544_v6, %v6419_v5  ;;  %v2548_v56 = vsel %vm2432_vm4, %v2547_v4, %v6418_v55  ;;  %v6427_v30 = vpop.permute.xlu0 %6426 }
 0x2a0   : > { %v6422_v14 = vpop.permute.xlu1 %6421  ;;  %v6429_v36 = vunpack.i.h.bf16 %v6427_v30  ;;  %v6428_v13 = vunpack.i.l.bf16 %v6427_v30 }
 0x2a1   : > { %v6424_v12 = vunpack.i.h.bf16 %v6422_v14  ;;  %v6423_v34 = vunpack.i.l.bf16 %v6422_v14 }
 0x2a2   : > { %v2581_v49 = vsel %vm385_vm9, %v8050_v28, %v6429_v36  ;;  %v2584_v50 = vsel %vm385_vm9, %v8096_v7, %v6428_v13 }
 0x2a3   : > { %v2546_v10 = vsel %vm2434_vm5, %v2545_v17, %v6424_v12  ;;  %v2549_v60 = vsel %vm2434_vm5, %v2548_v56, %v6423_v34 }
 0x2a4   : > { %v2550_v23 = vpack.c.bf16 %v2546_v10, %v2546_v10  ;;  %v2551_v58 = vpack.c.bf16 %v2549_v60, %v2549_v60 }
 0x2a6   : > { %v2711_v25 = vrot.slane %v2551_v58, 4  ;;  %v2710_v27 = vrot.slane %v2550_v23, 4 }
 0x2a8   : > { %v2742_v61 = vsel %vm2076_vm15, %v2514_v24, %v2711_v25  ;;  %v2738_v29 = vsel %vm2076_vm15, %v2513_v26, %v2710_v27 }
 0x2a9   : > { %2931 = vmatprep.mubr.bf16.mxu1 %v2742_v61 }
 0x2aa   : > { %2932 = vmatmul.mubr.bf16.gmra.mrb[4].mxu1 %v2738_v29 }
 0x2bc   : > { %v6432_v31 = vpop.permute.xlu0 %6431 }
 0x2bd   : > { %v6434_v40 = vunpack.i.h.bf16 %v6432_v31  ;;  %v6433_v42 = vunpack.i.l.bf16 %v6432_v31 }
 0x2bf   : > { %v6442_v33 = vpop.permute.xlu1 %6441  ;;  %v2582_v11 = vsel %vm2432_vm4, %v2581_v49, %v6434_v40  ;;  %v2585_v47 = vsel %vm2432_vm4, %v2584_v50, %v6433_v42 }
 0x2c0   : > { %v6437_v35 = vpop.permute.xlu0 %6436  ;;  %v6444_v63 = vunpack.i.h.bf16 %v6442_v33  ;;  %v6443_v48 = vunpack.i.l.bf16 %v6442_v33 }
 0x2c1   : > { %v6439_v38 = vunpack.i.h.bf16 %v6437_v35  ;;  %v6438_v39 = vunpack.i.l.bf16 %v6437_v35 }
 0x2c2   : > { %v2583_v55 = vsel %vm2434_vm5, %v2582_v11, %v6444_v63  ;;  %v2586_v7 = vsel %vm2434_vm5, %v2585_v47, %v6443_v48 }
 0x2c3   : > { %v2618_v52 = vsel %vm385_vm9, %v8081_v21, %v6439_v38  ;;  %v2621_v54 = vsel %vm385_vm9, %v8127_v44, %v6438_v39  ;;  %v2588_v18 = vpack.c.bf16 %v2586_v7, %v2586_v7  ;;  %v2587_v14 = vpack.c.bf16 %v2583_v55, %v2583_v55  ;;  %v6542_v55 = vld [vmem:[%s9103_s5] sm:$0xff]   ;;  %v6543_v7 = vld [vmem:[%s9103_s5 + $0x48] sm:$0xff]  }
 0x2dc   : > { %v6447_v37 = vpop.permute.xlu1 %6446 }
 0x2dd   : > { %v6449_v43 = vunpack.i.h.bf16 %v6447_v37  ;;  %v6448_v46 = vunpack.i.l.bf16 %v6447_v37 }
 0x2df   : > { %v2619_v5 = vsel %vm2432_vm4, %v2618_v52, %v6449_v43  ;;  %v2622_v28 = vsel %vm2432_vm4, %v2621_v54, %v6448_v46 }
 0x2e0   : > { %v6452_v41 = vpop.permute.xlu1 %6451  ;;  %v6462_v1 = vpop.permute.xlu0 %6461 }
 0x2e1   : > { %v6454_v59 = vunpack.i.h.bf16 %v6452_v41  ;;  %v6453_v62 = vunpack.i.l.bf16 %v6452_v41  ;;  %v6464_v17 = vunpack.i.h.bf16 %v6462_v1  ;;  %v6463_v56 = vunpack.i.l.bf16 %v6462_v1  ;;  %v6550_v1 = vld [vmem:[%s9103_s5 + $0x20] sm:$0xff]  }
 0x2e3   : > { %v2620_v53 = vsel %vm2434_vm5, %v2619_v5, %v6454_v59  ;;  %v2623_v21 = vsel %vm2434_vm5, %v2622_v28, %v6453_v62  ;;  %v2655_v61 = vsel %vm385_vm9, %v8119_v32, %v6464_v17  ;;  %v2658_v29 = vsel %vm385_vm9, %v8180_v9, %v6463_v56  ;;  %v6541_v28 = vld [vmem:[%s9103_s5 + $0x40] sm:$0xff]   ;;  %v6554_v17 = vld [vmem:[%s9103_s5 + $0x28] sm:$0xff]  }
 0x2e4   : > { %v2624_v2 = vpack.c.bf16 %v2620_v53, %v2620_v53  ;;  %v2625_v44 = vpack.c.bf16 %v2623_v21, %v2623_v21  ;;  %v6457_v34 = vpop.permute.xlu1 %6456  ;;  %5522 = vmatprep.subr.bf16.mxu0 %v6541_v28  ;;  %v6544_v53 = vld [vmem:[%s9103_s5 + $0x8] sm:$0xff]   ;;  %v6551_v21 = vld [vmem:[%s9103_s5 + $0xc0] sm:$0xff]  }
 0x2e5   : > { %v6459_v60 = vunpack.i.h.bf16 %v6457_v34  ;;  %v6458_v23 = vunpack.i.l.bf16 %v6457_v34  ;;  %5523 = vmatpush3.bf16.msra.mxu0 %v6542_v55  ;;  %5544 = vmatprep.subr.bf16.mxu1 %v6551_v21  ;;  %v6549_v34 = vld [vmem:[%s9103_s5 + $0x60] sm:$0xff]  }
 0x2e6   : > { %v2717_v3 = vrot.slane %v2625_v44, 4  ;;  %v2716_v6 = vrot.slane %v2624_v2, 4  ;;  %v6552_v2 = vld [vmem:[%s9103_s5 + $0x80] sm:$0xff]   ;;  %5524 = vmatprep.subr.bf16.mxu0 %v6543_v7  ;;  %v6545_v44 = vld [vmem:[%s9103_s5 + $0x50] sm:$0xff]  }
 0x2e8   : > { %v2753_v4 = vsel %vm2076_vm15, %v2588_v18, %v2717_v3  ;;  %v2749_v12 = vsel %vm2076_vm15, %v2587_v14, %v2716_v6  ;;  %v6555_v18 = vld [vmem:[%s9103_s5 + $0xc8] sm:$0xff]   ;;  %v6546_v14 = vld [vmem:[%s9103_s5 + $0x10] sm:$0xff]  }
 0x2e9   : > { %2939 = vmatprep.mubr.bf16.mxu1 %v2753_v4  ;;  %v6556_v3 = vld [vmem:[%s9103_s5 + $0x88] sm:$0xff]   ;;  %5525 = vmatpush3.bf16.msra.mxu0 %v6544_v53  ;;  %v6557_v6 = vld [vmem:[%s9103_s5 + $0xd0] sm:$0xff]   ;;  %v6547_v4 = vld [vmem:[%s9103_s5 + $0x58] sm:$0xff]  }
 0x2ea   : > { %2940 = vmatmul.mubr.bf16.gmra.mrb[8].mxu1 %v2749_v12  ;;  %5526 = vmatprep.subr.bf16.mxu0 %v6545_v44  ;;  %v6548_v12 = vld [vmem:[%s9103_s5 + $0x18] sm:$0xff]  }
 0x2ed   : > { %5527 = vmatpush3.bf16.msra.mxu0 %v6546_v14 }
 0x2ee   : > { %5528 = vmatprep.subr.bf16.mxu0 %v6547_v4 }
 0x2f1   : > { %5529 = vmatpush3.bf16.msra.mxu0 %v6548_v12 }
 0x2f2   : > { %5530 = vmatprep.subr.bf16.mxu0 %v6549_v34 }
 0x2f5   : > { %5531 = vmatpush3.bf16.msra.mxu0 %v6550_v1 }
 0x2fc   : > { %v6467_v15 = vpop.permute.xlu1 %6466 }
 0x2fd   : > { %v6469_v58 = vunpack.i.h.bf16 %v6467_v15  ;;  %v6468_v24 = vunpack.i.l.bf16 %v6467_v15  ;;  %v6553_v15 = vld [vmem:[%s9103_s5 + $0x68] sm:$0xff]  }
 0x2fe   : > { %5532 = vmatprep.subr.bf16.mxu0 %v6553_v15 }
 0x2ff   : > { %v6472_v20 = vpop.permute.xlu0 %6471  ;;  %5533 = vmatpush3.bf16.msra.mxu0 %v6554_v17 }
 0x300   : > { %v6474_v57 = vunpack.i.h.bf16 %v6472_v20  ;;  %v6473_v10 = vunpack.i.l.bf16 %v6472_v20  ;;  %v6482_v27 = vpop.permute.xlu1 %6481 }
 0x301   : > { %v6484_v37 = vunpack.i.h.bf16 %v6482_v27 }
 0x302   : > { %v2692_v25 = vsel %vm385_vm9, %v8166_v16, %v6474_v57  ;;  %v2695_v26 = vsel %vm385_vm9, %v8214_v0, %v6473_v10  ;;  %v6483_v0 = vunpack.i.l.bf16 %v6482_v27 }
 0x303   : > { %v2693_v30 = vsel %vm2432_vm4, %v2692_v25, %v6459_v60  ;;  %v2696_v31 = vsel %vm2432_vm4, %v2695_v26, %v6458_v23  ;;  %v6477_v33 = vpop.permute.xlu0 %6476 }
 0x304   : > { %v6479_v35 = vunpack.i.h.bf16 %v6477_v33  ;;  %v6478_v36 = vunpack.i.l.bf16 %v6477_v33  ;;  %v2697_v13 = vsel %vm2434_vm5, %v2696_v31, %v6468_v24  ;;  %v2694_v16 = vsel %vm2434_vm5, %v2693_v30, %v6469_v58 }
 0x305   : > { %v2699_v38 = vpack.c.bf16 %v2697_v13, %v2697_v13  ;;  %v2698_v39 = vpack.c.bf16 %v2694_v16, %v2694_v16 }
 0x306   : > { %v2656_v32 = vsel %vm2432_vm4, %v2655_v61, %v6479_v35  ;;  %v2659_v40 = vsel %vm2432_vm4, %v2658_v29, %v6478_v36  ;;  %v5233_v29 = vld [vmem:[%s9102_s4] ss:$0 sm:$0xff] }
 0x307   : > { %v2660_v9 = vsel %vm2434_vm5, %v2659_v40, %v6483_v0  ;;  %v2723_v42 = vrot.slane %v2699_v38, 4  ;;  %v2657_v43 = vsel %vm2434_vm5, %v2656_v32, %v6484_v37  ;;  %v2722_v46 = vrot.slane %v2698_v39, 4 }
 0x308   : > { %v2662_v63 = vpack.c.bf16 %v2660_v9, %v2660_v9  ;;  %v2661_v48 = vpack.c.bf16 %v2657_v43, %v2657_v43 }
 0x30a   : > { %v2764_v49 = vsel %vm2076_vm15, %v2662_v63, %v2723_v42  ;;  %v2760_v50 = vsel %vm2076_vm15, %v2661_v48, %v2722_v46 }
 0x30b   : > { %2947 = vmatprep.mubr.bf16.mxu1 %v2764_v49 }
 0x30c   : > { %2948 = vmatmul.mubr.bf16.gmra.mrb[12].mxu1 %v2760_v50 }
 0x30d   : > { %5635 = vmatprep.mubr.msk.bf16.mxu1 %vm385_vm9, %v8040_v19 }
 0x314   : > { %5636 = vmatmul.mubr.msk.bf16.vlgmr.msra.gmra.mrb[16].mxu1 %vm385_vm9, %v8109_v8 }
 0x315   : > { %5639 = vmatprep.mubr.msk.bf16.mxu1 %vm385_vm9, %v8194_v51  ;;  %5545 = vmatpush3.bf16.msra.mxu1 %v6552_v2 }
 0x316   : > { %5546 = vmatprep.subr.bf16.mxu1 %v6555_v18 }
 0x319   : > { %5547 = vmatpush3.bf16.msra.mxu1 %v6556_v3 }
 0x31a   : > { %5548 = vmatprep.subr.bf16.mxu1 %v6557_v6 }
 0x31c   : > { %5640 = vmatmul.mubr.msk.bf16.gmra.mrb[20].mxu1 %vm385_vm9, %v8220_v45 }
 0x33d   : > { %v5492_v41 = vpop.f32.mrb[0].mxu1 }
 0x33e   : > { %v5493_v52 = vpop.f32.mrb[1].mxu1 }
 0x33f   : > { %v8287_v54 = vadd.f32 %v5493_v52, %v5492_v41  ;;  %v5495_v59 = vpop.f32.mrb[2].mxu1 }
 0x340   : > { %v5496_v62 = vpop.f32.mrb[3].mxu1 }
 0x341   : > { %v8289_v11 = vadd.f32 %v5496_v62, %v5495_v59  ;;  %v2926_v33 = vadd.f32 %v8287_v54, %v5233_v29 }
 0x343   : > { %v2929_v0 = vadd.f32 %v8289_v11, %v5233_v29 }
 0x37d   : > { %v5498_v19 = vpop.f32.mrb[4].mxu1 }
 0x37e   : > { %v5499_v8 = vpop.f32.mrb[5].mxu1 }
 0x37f   : > { %v5500_v51 = vadd.f32 %v5499_v8, %v5498_v19  ;;  %v5501_v45 = vpop.f32.mrb[6].mxu1 }
 0x380   : > { %v5502_v47 = vpop.f32.mrb[7].mxu1 }
 0x381   : > { %v5503_v5 = vadd.f32 %v5502_v47, %v5501_v45  ;;  %v2934_v30 = vadd.f32 %v5500_v51, %v5233_v29 }
 0x383   : > { %v2937_v13 = vadd.f32 %v5503_v5, %v5233_v29 }
 0x3bd   : > { %v5504_v56 = vpop.f32.mrb[8].mxu1 }
 0x3be   : > { %v5505_v20 = vpop.f32.mrb[9].mxu1 }
 0x3bf   : > { %v5506_v57 = vadd.f32 %v5505_v20, %v5504_v56  ;;  %v5507_v10 = vpop.f32.mrb[10].mxu1 }
 0x3c0   : > { %v5508_v60 = vpop.f32.mrb[11].mxu1 }
 0x3c1   : > { %v5509_v23 = vadd.f32 %v5508_v60, %v5507_v10  ;;  %v2942_v50 = vadd.f32 %v5506_v57, %v5233_v29  ;;  %v6558_v60 = vld [vmem:[%s9103_s5 + $0x90] sm:$0xff]  }
 0x3c2   : > { %5549 = vmatpush3.bf16.msra.mxu1 %v6558_v60 }
 0x3c3   : > { %v2945_v11 = vadd.f32 %v5509_v23, %v5233_v29 }
 0x3df   : > { %v5510_v58 = vpop.f32.mrb[12].mxu1 }
 0x3e0   : > { %v5511_v24 = vpop.f32.mrb[13].mxu1 }
 0x3e1   : > { %v5512_v25 = vadd.f32 %v5511_v24, %v5510_v58  ;;  %v5513_v26 = vpop.f32.mrb[14].mxu1 }
 0x3e2   : > { %v5514_v27 = vpop.f32.mrb[15].mxu1 }
 0x3e3   : > { %v5515_v61 = vadd.f32 %v5514_v27, %v5513_v26  ;;  %v2950_v63 = vadd.f32 %v5512_v25, %v5233_v29  ;;  %v6561_v26 = vld [vmem:[%s9103_s5 + $0xd8] sm:$0xff]  }
 0x3e4   : > { %5550 = vmatprep.subr.bf16.mxu1 %v6561_v26 }
 0x3e5   : > { %v2953_v59 = vadd.f32 %v5515_v61, %v5233_v29  ;;  %v6562_v29 = vld [vmem:[%s9103_s5 + $0x98] sm:$0xff]  }
 0x3e6   : > { %5551 = vmatpush3.bf16.msra.mxu1 %v6562_v29 }
 0x3e7   : > { %v5637_v31 = vpop.f32.mrb[16].mxu1 }
 0x3e8   : > { %v2999_v35 = vadd.f32 %v5637_v31, %v2934_v30  ;;  %v2990_v36 = vpop.f32.mrb[17].mxu1 }
 0x3e9   : > { %v2991_v16 = vadd.f32 %v2990_v36, %v2926_v33  ;;  %v5638_v37 = vpop.f32.mrb[18].mxu1  ;;  %v6559_v33 = vld [vmem:[%s9103_s5 + $0x70] sm:$0xff]  }
 0x3ea   : > { %v3002_v38 = vadd.f32 %v5638_v37, %v2937_v13  ;;  %v2993_v39 = vpop.f32.mrb[19].mxu1  ;;  %v3023_v40 = vmax.f32 %v2999_v35, 0.0  ;;  %v6560_v35 = vld [vmem:[%s9103_s5 + $0x30] sm:$0xff]   ;;  %5534 = vmatprep.subr.bf16.mxu0 %v6559_v33 }
 0x3eb   : > { %v2994_v32 = vadd.f32 %v2993_v39, %v2929_v0  ;;  %v3021_v42 = vmax.f32 %v2991_v16, 0.0  ;;  %5535 = vmatpush3.bf16.msra.mxu0 %v6560_v35 }
 0x3ec   : > { %v3024_v9 = vmax.f32 %v3002_v38, 0.0  ;;  %v6563_v38 = vld [vmem:[%s9103_s5 + $0xe0] sm:$0xff]  }
 0x3ed   : > { %v3022_v43 = vmax.f32 %v2994_v32, 0.0  ;;  %5552 = vmatprep.subr.bf16.mxu1 %v6563_v38 }
 0x3ee   : > { %v3047_v46 = vmax.f32 %v3023_v40, %v3024_v9  ;;  %v6564_v40 = vld [vmem:[%s9103_s5 + $0xa0] sm:$0xff]  }
 0x3ef   : > { %v3029_v48 = vmax.f32 %v3021_v42, %v3022_v43  ;;  %v5641_v49 = vpop.f32.mrb[20].mxu1  ;;  %5553 = vmatpush3.bf16.msra.mxu1 %v6564_v40 }
 0x3f0   : > { %v3049_v41 = vrot.slane %v3047_v46, 1  ;;  %v3015_v52 = vadd.f32 %v5641_v49, %v2950_v63  ;;  %v3006_v54 = vpop.f32.mrb[21].mxu1  ;;  %v6568_v63 = vld [vmem:[%s9103_s5 + $0xa8] sm:$0xff]  }
 0x3f1   : > { %v3031_v62 = vrot.slane %v3029_v48, 1  ;;  %v3007_v19 = vadd.f32 %v3006_v54, %v2942_v50  ;;  %v5642_v8 = vpop.f32.mrb[22].mxu1  ;;  %v8409_v50 = vld [vmem:[#allocation3] sm:$0x3f] }
 0x3f2   : > { %v3051_v51 = vmax.f32 %v3047_v46, %v3049_v41  ;;  %v3018_v45 = vadd.f32 %v5642_v8, %v2953_v59  ;;  %v3009_v47 = vpop.f32.mrb[23].mxu1  ;;  %v3027_v53 = vmax.f32 %v3015_v52, 0.0  ;;  %v6567_v46 = vld [vmem:[%s9103_s5 + $0xe8] sm:$0xff]   ;;  %v6566_v41 = vld [vmem:[%s9103_s5 + $0x38] sm:$0xff]   ;;  %v3179_v8 = vrot.slane %v8409_v50, 1 }
 0x3f3   : > { %v3033_v5 = vmax.f32 %v3029_v48, %v3031_v62  ;;  %v3010_v28 = vadd.f32 %v3009_v47, %v2945_v11  ;;  %v3025_v18 = vmax.f32 %v3007_v19, 0.0  ;;  %v6565_v48 = vld [vmem:[%s9103_s5 + $0x78] sm:$0xff]   ;;  %5554 = vmatprep.subr.bf16.mxu1 %v6567_v46  ;;  %v8434_v47 = vld [vmem:[#allocation3 + $0x28] sm:$0x3f] }
 0x3f4   : > { %v3053_v55 = vrot.slane %v3051_v51, 1  ;;  %v3055_v7 = vrot.slane %v3051_v51, 2  ;;  %v3028_v21 = vmax.f32 %v3018_v45, 0.0  ;;  %v3057_v14 = vrot.slane %v3051_v51, 3  ;;  %5555 = vmatpush3.bf16.msra.mxu1 %v6568_v63  ;;  %5536 = vmatprep.subr.bf16.mxu0 %v6565_v48 }
 0x3f5   : > { %v3035_v2 = vrot.slane %v3033_v5, 1  ;;  %v3037_v44 = vrot.slane %v3033_v5, 2  ;;  %v3026_v3 = vmax.f32 %v3010_v28, 0.0  ;;  %v3039_v34 = vrot.slane %v3033_v5, 3  ;;  %5537 = vmatpush3.bf16.msra.mxu0 %v6566_v41 }
 0x3f6   : > { %v3059_v6 = vsel %vm2071_vm13, %v3051_v51, %v3053_v55  ;;  %v3081_v4 = vmax.f32 %v3027_v53, %v3028_v21  ;;  %v6569_v51 = vld [vmem:[%s9103_s5 + $0xf0] sm:$0xff]   ;;  %5643 = vmatprep.subr.bf16.mxu0 %v6912_v22  ;;  %v3267_v21 = vrot.slane %v8434_v47, 1 }
 0x3f7   : > { %v3060_v12 = vsel %vm1848_vm2, %v3059_v6, %v3055_v7  ;;  %v3041_v1 = vsel %vm2071_vm13, %v3033_v5, %v3035_v2  ;;  %v3064_v15 = vmax.f32 %v3025_v18, %v3026_v3  ;;  %v6570_v5 = vld [vmem:[%s9103_s5 + $0xb0] sm:$0xff]   ;;  %5556 = vmatprep.subr.bf16.mxu1 %v6569_v51  ;;  %v6572_v2 = vld [vmem:[%s9103_s5 + $0xf8] sm:$0xff]   ;;  %v6579_v6 = vld [vmem:[%s9105_s7 + $0x4] ss:$8 sps:$4 sm:$0xff]  }
 0x3f8   : > { %v3061_v17 = vsel %vm2074_vm14, %v3060_v12, %v3057_v14  ;;  %v3042_v56 = vsel %vm1848_vm2, %v3041_v1, %v3037_v44  ;;  %v3083_v20 = vrot.slane %v3081_v4, 1  ;;  %5557 = vmatpush3.bf16.msra.mxu1 %v6570_v5  ;;  %v6573_v44 = vld [vmem:[%s9103_s5 + $0xb8] sm:$0xff]  }
 0x3f9   : > { %3063 = vst.msk [vmem:[#allocation3 + $0x11] sm:$0xf] %vm3045_vm6, %v3061_v17  ;;  %v3043_v57 = vsel %vm2074_vm14, %v3042_v56, %v3039_v34  ;;  %v3066_v10 = vrot.slane %v3064_v15, 1  ;;  %5558 = vmatprep.subr.bf16.mxu1 %v6572_v2  ;;  %v3183_v56 = vrot.slane %v8409_v50, 2 }
 0x3fa   : > { %3046 = vst.msk [vmem:[#allocation3 + $0x9] sm:$0xf] %vm3045_vm6, %v3043_v57  ;;  %v3085_v23 = vmax.f32 %v3081_v4, %v3083_v20 }
 0x3fb   : > { %v3068_v58 = vmax.f32 %v3064_v15, %v3066_v10 }
 0x3fc   : > { %v3087_v24 = vrot.slane %v3085_v23, 1  ;;  %v3089_v25 = vrot.slane %v3085_v23, 2  ;;  %v3091_v30 = vrot.slane %v3085_v23, 3  ;;  %5559 = vmatpush3.bf16.msra.mxu1 %v6573_v44 }
 0x3fd   : > { %v3070_v27 = vrot.slane %v3068_v58, 1  ;;  %v3072_v61 = vrot.slane %v3068_v58, 2  ;;  %v3074_v13 = vrot.slane %v3068_v58, 3  ;;  %4692 = vmatprep.subr.bf16.mxu1 %v6579_v6 }
 0x3fe   : > { %v3093_v31 = vsel %vm2071_vm13, %v3085_v23, %v3087_v24 }
 0x3ff   : > { %v3094_v36 = vsel %vm1848_vm2, %v3093_v31, %v3089_v25  ;;  %v3076_v16 = vsel %vm2071_vm13, %v3068_v58, %v3070_v27 }
 0x400   : > { %v3095_v37 = vsel %vm2074_vm14, %v3094_v36, %v3091_v30  ;;  %v3077_v0 = vsel %vm1848_vm2, %v3076_v16, %v3072_v61  ;;  %v8393_v42 = vld [vmem:[#allocation3 + $0x10] sm:$0x3f] }
 0x401   : > { %3097 = vst.msk [vmem:[#allocation3 + $0x21] sm:$0xf] %vm3045_vm6, %v3095_v37  ;;  %v3078_v39 = vsel %vm2074_vm14, %v3077_v0, %v3074_v13  ;;  %v8386_v32 = vld [vmem:[#allocation3 + $0x8] sm:$0x3f]  ;;  %v3196_v49 = vrot.slane %v8393_v42, 1  ;;  %v8432_v45 = vrot.slane %v8393_v42, 2 }
 0x402   : > { %3080 = vst.msk [vmem:[#allocation3 + $0x19] sm:$0xf] %vm3045_vm6, %v3078_v39  ;;  %v3189_v9 = vrot.slane %v8386_v32, 1  ;;  %v3191_v18 = vrot.slane %v8386_v32, 2 }
 0x404   : > { %v6485_v43 = vpack.i.bf16 %v3189_v9, %v8393_v42 }
 0x406   : > { %6486 = vrot.lane.b32.xlu0 %v6485_v43, %s9122_s22 }
 0x408   : > { %v8414_v52 = vld [vmem:[#allocation3 + $0x20] sm:$0x3f] }
 0x409   : > { %v6490_v54 = vpack.i.bf16 %v8414_v52, %v3196_v49  ;;  %v8419_v59 = vld [vmem:[#allocation3 + $0x18] sm:$0x3f]  ;;  %v3246_v62 = vrot.slane %v8414_v52, 1  ;;  %v8444_v55 = vrot.slane %v8414_v52, 2 }
 0x40a   : > { %v6495_v19 = vpack.i.bf16 %v8386_v32, %v8419_v59  ;;  %v3223_v11 = vrot.slane %v8419_v59, 1  ;;  %v8449_v53 = vrot.slane %v8419_v59, 2 }
 0x40b   : > { %6491 = vrot.lane.b32.xlu0 %v6490_v54, %s9122_s22  ;;  %v6505_v28 = vpack.i.bf16 %v3246_v62, %v8432_v45  ;;  %v6515_v3 = vpack.i.bf16 %v8444_v55, %v3191_v18 }
 0x40c   : > { %6496 = vrot.lane.b32.xlu1 %v6495_v19, %s9122_s22  ;;  %v6500_v7 = vpack.i.bf16 %v3223_v11, %v3179_v8  ;;  %v6510_v14 = vpack.i.bf16 %v3267_v21, %v8449_v53 }
 0x40f   : > { %6506 = vrot.lane.b32.xlu0 %v6505_v28, %s9122_s22 }
 0x410   : > { %6501 = vrot.lane.b32.xlu1 %v6500_v7, %s9122_s22 }
 0x413   : > { %6516 = vrot.lane.b32.xlu0 %v6515_v3, %s9122_s22 }
 0x414   : > { %6511 = vrot.lane.b32.xlu1 %v6510_v14, %s9122_s22  ;;  %s377_s22 = sand.u32 1, %s6894_s18  }
 0x415   : > { %s378_s14 = scalar_lea.vmem [#allocation5], %s377_s22  ;;  %s5090_s13 = scalar_lea.sflag [#allocation6], %s377_s22 }
 0x416   : > { %s5102_s30 = sshll.u32 %s378_s14, 4  ;;  %s9058_s30 = int_to_ptr.vmem [resolvable:$true] %s5102_s30 }
 0x417   : > { %s6840_s12 = scalar_lea.vmem %s9058_s30, 16  ;;  %p6847_p0 = scmp.lt.s32.totalorder %s9058_s30, %s6845_s15 }
 0x418   : > { %p6841_p11 = scmp.ne.s32.totalorder %s9058_s30, %s6840_s12  ;;  %p6848_p1 = scmp.lt.s32.totalorder %s6846_s0, %s6840_s12 }
 0x41a   : > { %p6842_p12 = pnand %p6841_p11, %p7016_p5  ;;  %p6849_p2 = por %p6848_p1, %p6847_p0 }
 0x41c   : > { %p6843_p13 = pneg %p6842_p12 }
 0x41e   : > { %p6850_p3 = pnand %p6849_p2, %p6843_p13 }
 0x478   : > { %v6487_v4 = vpop.permute.xlu0 %6486 }
 0x479   : > { %v6489_v12 = vunpack.i.h.bf16 %v6487_v4  ;;  %v6488_v34 = vunpack.i.l.bf16 %v6487_v4 }
 0x47b   : > { %v3229_v1 = vsel %vm2432_vm4, %v8386_v32, %v6489_v12  ;;  %v3230_v15 = vsel %vm2432_vm4, %v3191_v18, %v6488_v34  ;;  %v6571_v32 = vld [vmem:[%s9103_s5 + $0x100] sm:$0xff]  }
 0x47c   : > { %v3233_v60 = vpack.c.bf16 %v3229_v1, %v3229_v1  ;;  %v3234_v23 = vpack.c.bf16 %v3230_v15, %v3230_v15 }
 0x47d   : > { %v6492_v17 = vpop.permute.xlu0 %6491 }
 0x47e   : > { %v6494_v20 = vunpack.i.h.bf16 %v6492_v17  ;;  %v6493_v57 = vunpack.i.l.bf16 %v6492_v17  ;;  %v6497_v10 = vpop.permute.xlu1 %6496  ;;  %v3285_v37 = vrot.slane %v3233_v60, 6  ;;  %v3286_v0 = vrot.slane %v3234_v23, 6 }
 0x47f   : > { %v6499_v58 = vunpack.i.h.bf16 %v6497_v10  ;;  %v6498_v24 = vunpack.i.l.bf16 %v6497_v10 }
 0x480   : > { %v3273_v25 = vsel %vm2432_vm4, %v8449_v53, %v6494_v20  ;;  %v3205_v26 = vsel %vm2432_vm4, %v8393_v42, %v6493_v57 }
 0x481   : > { %v3276_v27 = vpack.c.bf16 %v3273_v25, %v3273_v25  ;;  %v3209_v61 = vpack.c.bf16 %v3205_v26, %v3205_v26  ;;  %v3203_v29 = vsel %vm2432_vm4, %v3183_v56, %v6499_v58  ;;  %v3252_v30 = vsel %vm2432_vm4, %v8432_v45, %v6498_v24  ;;  %v6507_v31 = vpop.permute.xlu0 %6506  ;;  %v6577_v24 = vld [vmem:[%s9105_s7] ss:$8 sps:$4 sm:$0xff]  }
 0x482   : > { %v3207_v33 = vpack.c.bf16 %v3203_v29, %v3203_v29  ;;  %v3255_v35 = vpack.c.bf16 %v3252_v30, %v3252_v30  ;;  %v6509_v36 = vunpack.i.h.bf16 %v6507_v31  ;;  %v6508_v13 = vunpack.i.l.bf16 %v6507_v31  ;;  %v6502_v16 = vpop.permute.xlu1 %6501  ;;  %v6574_v26 = vld [vmem:[%s9103_s5 + $0x108] sm:$0xff]   ;;  %v6585_v29 = vld [vmem:[%s9105_s7 + $0x14] ss:$8 sps:$4 sm:$0xff]  }
 0x483   : > { %v6504_v38 = vunpack.i.h.bf16 %v6502_v16  ;;  %v6503_v39 = vunpack.i.l.bf16 %v6502_v16  ;;  %v3295_v40 = vrot.slane %v3209_v61, 4  ;;  %v3305_v63 = vrot.slane %v3276_v27, 2 }
 0x484   : > { %v3254_v43 = vsel %vm2432_vm4, %v8414_v52, %v6509_v36  ;;  %v3231_v46 = vsel %vm2432_vm4, %v3196_v49, %v6508_v13  ;;  %v3296_v48 = vrot.slane %v3255_v35, 4  ;;  %v3314_v8 = vsel %vm1848_vm2, %v3207_v33, %v3286_v0  ;;  %v6583_v33 = vld [vmem:[%s9105_s7 + $0x10] ss:$8 sps:$4 sm:$0xff]   ;;  %v6591_v36 = vld [vmem:[%s9105_s7 + $0x24] ss:$8 sps:$4 sm:$0xff]  }
 0x485   : > { %v3232_v41 = vsel %vm2432_vm4, %v8419_v59, %v6504_v38  ;;  %v3202_v54 = vsel %vm2432_vm4, %v8409_v50, %v6503_v39  ;;  %v6517_v19 = vpop.permute.xlu0 %6516  ;;  %v3257_v2 = vpack.c.bf16 %v3254_v43, %v3254_v43  ;;  %v3235_v42 = vpack.c.bf16 %v3231_v46, %v3231_v46  ;;  %v6576_v0 = vld [vmem:[%s9103_s5 + $0x118] sm:$0xff]  }
 0x486   : > { %v3236_v51 = vpack.c.bf16 %v3232_v41, %v3232_v41  ;;  %v3206_v5 = vpack.c.bf16 %v3202_v54, %v3202_v54  ;;  %v6519_v28 = vunpack.i.h.bf16 %v6517_v19  ;;  %v6518_v7 = vunpack.i.l.bf16 %v6517_v19  ;;  %v6512_v21 = vpop.permute.xlu1 %6511  ;;  %v6595_v46 = vld [vmem:[%s9105_s7 + $0x30] ss:$8 sps:$4 sm:$0xff]   ;;  %v6601_v54 = vld [vmem:[%s9105_s7 + $0x40] ss:$8 sps:$4 sm:$0xff]  }
 0x487   : > { %v6514_v44 = vunpack.i.h.bf16 %v6512_v21  ;;  %v6513_v49 = vunpack.i.l.bf16 %v6512_v21  ;;  %v3327_v17 = vsel %vm2076_vm15, %v3314_v8, %v3296_v48  ;;  %v3271_v31 = vrot.slane %v8434_v47, 2  ;;  %v6588_v48 = vld [vmem:[%s9105_s7 + $0x214] ss:$8 sps:$4 sm:$0xff]   ;;  %v6586_v19 = vld [vmem:[%s9105_s7 + $0x210] ss:$8 sps:$4 sm:$0xff]  }
 0x488   : > { %v3288_v18 = vrot.slane %v3236_v51, 6  ;;  %v3304_v3 = vrot.slane %v3236_v51, 2  ;;  %v3274_v14 = vsel %vm2432_vm4, %v3246_v62, %v6519_v28  ;;  %v3204_v50 = vsel %vm2432_vm4, %v3189_v9, %v6518_v7  ;;  %v6594_v8 = vld [vmem:[%s9105_s7 + $0x224] ss:$8 sps:$4 sm:$0xff]   ;;  %v6592_v51 = vld [vmem:[%s9105_s7 + $0x220] ss:$8 sps:$4 sm:$0xff]  }
 0x489   : > { %v3277_v6 = vpack.c.bf16 %v3274_v14, %v3274_v14  ;;  %v3208_v4 = vpack.c.bf16 %v3204_v50, %v3204_v50  ;;  %v3275_v12 = vsel %vm2432_vm4, %v8434_v47, %v6514_v44  ;;  %v3253_v34 = vsel %vm2432_vm4, %v3223_v11, %v6513_v49  ;;  %v6598_v28 = vld [vmem:[%s9105_s7 + $0x230] ss:$8 sps:$4 sm:$0xff]   ;;  %v6604_v7 = vld [vmem:[%s9105_s7 + $0x240] ss:$8 sps:$4 sm:$0xff]   ;;  %v6606_v21 = vld [vmem:[%s9105_s7 + $0x244] ss:$8 sps:$4 sm:$0xff]  }
 0x48a   : > { %v3278_v1 = vpack.c.bf16 %v3275_v12, %v3275_v12  ;;  %v3256_v15 = vpack.c.bf16 %v3253_v34, %v3253_v34  ;;  %v3311_v52 = vsel %vm1848_vm2, %v3206_v5, %v3285_v37  ;;  %v3298_v9 = vrot.slane %v3257_v2, 4  ;;  %v6589_v37 = vld [vmem:[%s9105_s7 + $0x20] ss:$8 sps:$4 sm:$0xff]   ;;  %v6600_v5 = vld [vmem:[%s9105_s7 + $0x234] ss:$8 sps:$4 sm:$0xff]  }
 0x48b   : > { %v3287_v62 = vrot.slane %v3235_v42, 6  ;;  %v3338_v56 = vsel %vm510_vm1, %v3327_v17, %v3305_v63  ;;  %v3325_v20 = vsel %vm2076_vm15, %v3311_v52, %v3295_v40  ;;  %v3320_v10 = vsel %vm1848_vm2, %v3209_v61, %v3288_v18  ;;  %v6580_v63 = vld [vmem:[%s9105_s7 + $0x200] ss:$8 sps:$4 sm:$0xff]   ;;  %v6609_v2 = vld [vmem:[%s9105_s7 + $0x54] ss:$8 sps:$4 sm:$0xff]  }
 0x48c   : > { %v3307_v57 = vrot.slane %v3278_v1, 2  ;;  %v3297_v59 = vrot.slane %v3256_v15, 4  ;;  %3604 = vmatprep.mubr.bf16.mxu0 %v3338_v56  ;;  %v3335_v11 = vsel %vm510_vm1, %v3325_v20, %v3304_v3  ;;  %v3306_v60 = vrot.slane %v3277_v6, 2  ;;  %v6607_v42 = vld [vmem:[%s9105_s7 + $0x50] ss:$8 sps:$4 sm:$0xff]  }
 0x48d   : > { %v3317_v23 = vsel %vm1848_vm2, %v3208_v4, %v3287_v62  ;;  %3605 = vmatmul.mubr.bf16.vlgmr.msra.gmra.mrb[32].mxu0 %v3335_v11  ;;  %v3331_v58 = vsel %vm2076_vm15, %v3320_v10, %v3298_v9  ;;  %v3237_v61 = vpack.c.bf16 %v8449_v53, %v8449_v53  ;;  %v6575_v53 = vld [vmem:[%s9103_s5 + $0x110] sm:$0xff]   ;;  %v3258_v13 = vpack.c.bf16 %v8444_v55, %v8444_v55  ;;  %v6613_v18 = vld [vmem:[%s9105_s7 + $0x60] ss:$8 sps:$4 sm:$0xff]   ;;  %v6615_v3 = vld [vmem:[%s9105_s7 + $0x64] ss:$8 sps:$4 sm:$0xff]  }
 0x48e   : > { %5644 = vmatpush3.bf16.msra.mxu0 %v6571_v32  ;;  %v3344_v25 = vsel %vm510_vm1, %v3331_v58, %v3307_v57  ;;  %v3329_v27 = vsel %vm2076_vm15, %v3317_v23, %v3297_v59  ;;  %5651 = vmatprep.mubr.msk.bf16.mxu0 %vm6915_vm7, %v6912_v22  ;;  %v3210_v47 = vpack.c.bf16 %v8432_v45, %v8432_v45  ;;  %v6597_v55 = vld [vmem:[%s9105_s7 + $0x34] ss:$8 sps:$4 sm:$0xff]   ;;  %v6582_v45 = vld [vmem:[%s9105_s7 + $0x204] ss:$8 sps:$4 sm:$0xff]   ;;  %v6610_v49 = vld [vmem:[%s9105_s7 + $0x250] ss:$8 sps:$4 sm:$0xff]  }
 0x48f   : > { %5645 = vmatprep.subr.bf16.mxu0 %v6912_v22  ;;  %3645 = vmatprep.mubr.bf16.mxu1 %v3344_v25  ;;  %v3341_v30 = vsel %vm510_vm1, %v3329_v27, %v3306_v60  ;;  %v3289_v35 = vrot.slane %v3237_v61, 6  ;;  %v3279_v16 = vpack.c.bf16 %v3271_v31, %v3271_v31  ;;  %v3299_v39 = vrot.slane %v3258_v13, 4  ;;  %v6612_v44 = vld [vmem:[%s9105_s7 + $0x254] ss:$8 sps:$4 sm:$0xff]   ;;  %v6616_v14 = vld [vmem:[%s9105_s7 + $0x260] ss:$8 sps:$4 sm:$0xff]  }
 0x490   : > { %3646 = vmatmul.mubr.bf16.vlgmr.msra.gmra.mrb[24].mxu1 %v3341_v30  ;;  %v6618_v50 = vld [vmem:[%s9105_s7 + $0x264] ss:$8 sps:$4 sm:$0xff]   ;;  %v6621_v6 = vld [vmem:[%s9105_s7 + $0x74] ss:$8 sps:$4 sm:$0xff]   ;;  %v6619_v12 = vld [vmem:[%s9105_s7 + $0x70] ss:$8 sps:$4 sm:$0xff]  }
 0x491   : > { %4693 = vmatpush1.bf16.msra.mxu1 %v6577_v24  ;;  %v3323_v38 = vsel %vm1848_vm2, %v3210_v47, %v3289_v35  ;;  %v3308_v40 = vrot.slane %v3279_v16, 2  ;;  %v6624_v4 = vld [vmem:[%s9105_s7 + $0x274] ss:$8 sps:$4 sm:$0xff]   ;;  %v6627_v34 = vld [vmem:[%s9105_s7 + $0x84] ss:$8 sps:$4 sm:$0xff]  }
 0x492   : > { %5646 = vmatpush3.bf16.msra.mxu0 %v6574_v26  ;;  %4694 = vmatprep.subr.bf16.mxu1 %v6585_v29  ;;  %v3333_v43 = vsel %vm2076_vm15, %v3323_v38, %v3299_v39  ;;  %v6622_v1 = vld [vmem:[%s9105_s7 + $0x270] ss:$8 sps:$4 sm:$0xff]   ;;  %v6625_v15 = vld [vmem:[%s9105_s7 + $0x80] ss:$8 sps:$4 sm:$0xff]   ;;  %v6630_v17 = vld [vmem:[%s9105_s7 + $0x284] ss:$8 sps:$4 sm:$0xff]  }
 0x493   : > { %5647 = vmatprep.subr.bf16.mxu0 %v6912_v22  ;;  %v3347_v41 = vsel %vm510_vm1, %v3333_v43, %v3308_v40  ;;  %v6628_v52 = vld [vmem:[%s9105_s7 + $0x280] ss:$8 sps:$4 sm:$0xff]   ;;  %v6633_v32 = vld [vmem:[%s9105_s7 + $0x94] ss:$8 sps:$4 sm:$0xff]   ;;  %v6631_v9 = vld [vmem:[%s9105_s7 + $0x90] ss:$8 sps:$4 sm:$0xff]  }
 0x494   : > { %v6636_v62 = vld [vmem:[%s9105_s7 + $0x294] ss:$8 sps:$4 sm:$0xff]   ;;  %v6634_v56 = vld [vmem:[%s9105_s7 + $0x290] ss:$8 sps:$4 sm:$0xff]   ;;  %v6639_v20 = vld [vmem:[%s9105_s7 + $0xa4] ss:$8 sps:$4 sm:$0xff]  }
 0x495   : > { %4695 = vmatpush1.bf16.msra.mxu1 %v6583_v33  ;;  %v6637_v57 = vld [vmem:[%s9105_s7 + $0xa0] ss:$8 sps:$4 sm:$0xff]   ;;  %v6642_v59 = vld [vmem:[%s9105_s7 + $0x2a4] ss:$8 sps:$4 sm:$0xff]   ;;  %v6645_v10 = vld [vmem:[%s9105_s7 + $0xb4] ss:$8 sps:$4 sm:$0xff]  }
 0x496   : > { %5648 = vmatpush3.bf16.msra.mxu0 %v6575_v53  ;;  %4696 = vmatprep.subr.bf16.mxu1 %v6591_v36  ;;  %v6640_v11 = vld [vmem:[%s9105_s7 + $0x2a0] ss:$8 sps:$4 sm:$0xff]   ;;  %v6643_v60 = vld [vmem:[%s9105_s7 + $0xb0] ss:$8 sps:$4 sm:$0xff]   ;;  %v6648_v23 = vld [vmem:[%s9105_s7 + $0x2b4] ss:$8 sps:$4 sm:$0xff]  }
 0x497   : > { %5649 = vmatprep.subr.bf16.mxu0 %v6912_v22  ;;  %v6603_v22 = vld [vmem:[%s9105_s7 + $0x44] ss:$8 sps:$4 sm:$0xff]   ;;  %v6646_v58 = vld [vmem:[%s9105_s7 + $0x2b0] ss:$8 sps:$4 sm:$0xff]   ;;  %v6649_v25 = vld [vmem:[%s9105_s7 + $0xc0] ss:$8 sps:$4 sm:$0xff]  }
 0x498   : > { %v6651_v24 = vld [vmem:[%s9105_s7 + $0xc4] ss:$8 sps:$4 sm:$0xff]   ;;  %v6652_v27 = vld [vmem:[%s9105_s7 + $0x2c0] ss:$8 sps:$4 sm:$0xff]   ;;  %v6655_v61 = vld [vmem:[%s9105_s7 + $0xd0] ss:$8 sps:$4 sm:$0xff]  }
 0x499   : > { %4697 = vmatpush1.bf16.msra.mxu1 %v6589_v37  ;;  %v6654_v26 = vld [vmem:[%s9105_s7 + $0x2c4] ss:$8 sps:$4 sm:$0xff]   ;;  %v6657_v29 = vld [vmem:[%s9105_s7 + $0xd4] ss:$8 sps:$4 sm:$0xff]   ;;  %v6658_v30 = vld [vmem:[%s9105_s7 + $0x2d0] ss:$8 sps:$4 sm:$0xff]  }
 0x49a   : > { %5650 = vmatpush3.bf16.msra.mxu0 %v6576_v0  ;;  %4698 = vmatprep.subr.bf16.mxu1 %v6597_v55  ;;  %v6660_v31 = vld [vmem:[%s9105_s7 + $0x2d4] ss:$8 sps:$4 sm:$0xff]   ;;  %v6663_v33 = vld [vmem:[%s9105_s7 + $0xe4] ss:$8 sps:$4 sm:$0xff]   ;;  %v6661_v35 = vld [vmem:[%s9105_s7 + $0xe0] ss:$8 sps:$4 sm:$0xff]  }
 0x49b   : > { %4774 = vmatprep.subr.bf16.mxu0 %v6582_v45  ;;  %v6666_v53 = vld [vmem:[%s9105_s7 + $0x2e4] ss:$8 sps:$4 sm:$0xff]   ;;  %v6669_v36 = vld [vmem:[%s9105_s7 + $0xf4] ss:$8 sps:$4 sm:$0xff]   ;;  %v6664_v13 = vld [vmem:[%s9105_s7 + $0x2e0] ss:$8 sps:$4 sm:$0xff]  }
 0x49c   : > { %v6672_v47 = vld [vmem:[%s9105_s7 + $0x2f4] ss:$8 sps:$4 sm:$0xff]   ;;  %v6667_v16 = vld [vmem:[%s9105_s7 + $0xf0] ss:$8 sps:$4 sm:$0xff]   ;;  %v6675_v0 = vld [vmem:[%s9105_s7 + $0x104] ss:$8 sps:$4 sm:$0xff]  }
 0x49d   : > { %5652 = vmatmul.mubr.msk.bf16.vlgmr.msra.gmra.mrb[36].mxu0 %vm2432_vm4, %v3347_v41  ;;  %4699 = vmatpush1.bf16.msra.mxu1 %v6595_v46  ;;  %v6670_v37 = vld [vmem:[%s9105_s7 + $0x2f0] ss:$8 sps:$4 sm:$0xff]   ;;  %v6678_v38 = vld [vmem:[%s9105_s7 + $0x304] ss:$8 sps:$4 sm:$0xff]   ;;  %v5256_v45 = vld [vmem:[%s9104_s6] ss:$0 sm:$0xff] }
 0x49e   : > { %4775 = vmatpush1.bf16.msra.mxu0 %v6580_v63  ;;  %4700 = vmatprep.subr.bf16.mxu1 %v6603_v22 }
 0x49f   : > { %4776 = vmatprep.subr.bf16.mxu0 %v6588_v48 }
 0x4a1   : > { %4701 = vmatpush1.bf16.msra.mxu1 %v6601_v54 }
 0x4a2   : > { %4777 = vmatpush1.bf16.msra.mxu0 %v6586_v19  ;;  %4702 = vmatprep.subr.bf16.mxu1 %v6609_v2 }
 0x4a3   : > { %4778 = vmatprep.subr.bf16.mxu0 %v6594_v8 }
 0x4a5   : > { %4703 = vmatpush1.bf16.msra.mxu1 %v6607_v42 }
 0x4a6   : > { %4779 = vmatpush1.bf16.msra.mxu0 %v6592_v51  ;;  %4704 = vmatprep.subr.bf16.mxu1 %v6615_v3 }
 0x4a7   : > { %4780 = vmatprep.subr.bf16.mxu0 %v6600_v5 }
 0x4a9   : > { %4705 = vmatpush1.bf16.msra.mxu1 %v6613_v18 }
 0x4aa   : > { %4781 = vmatpush1.bf16.msra.mxu0 %v6598_v28  ;;  %4706 = vmatprep.subr.bf16.mxu1 %v6621_v6 }
 0x4ab   : > { %4782 = vmatprep.subr.bf16.mxu0 %v6606_v21 }
 0x4ad   : > { %4707 = vmatpush1.bf16.msra.mxu1 %v6619_v12 }
 0x4ae   : > { %4783 = vmatpush1.bf16.msra.mxu0 %v6604_v7  ;;  %4708 = vmatprep.subr.bf16.mxu1 %v6627_v34 }
 0x4af   : > { %4784 = vmatprep.subr.bf16.mxu0 %v6612_v44 }
 0x4b1   : > { %4709 = vmatpush1.bf16.msra.mxu1 %v6625_v15 }
 0x4b2   : > { %4785 = vmatpush1.bf16.msra.mxu0 %v6610_v49  ;;  %4710 = vmatprep.subr.bf16.mxu1 %v6633_v32  ;;  %v3874_v32 = vld [vmem:[#allocation4 + $0xc] sm:$0xf] }
 0x4b3   : > { %4786 = vmatprep.subr.bf16.mxu0 %v6618_v50 }
 0x4b5   : > { %4711 = vmatpush1.bf16.msra.mxu1 %v6631_v9 }
 0x4b6   : > { %4787 = vmatpush1.bf16.msra.mxu0 %v6616_v14  ;;  %4712 = vmatprep.subr.bf16.mxu1 %v6639_v20  ;;  %v3902_v20 = vrot.slane %v3874_v32, 2 }
 0x4b7   : > { %4788 = vmatprep.subr.bf16.mxu0 %v6624_v4 }
 0x4b9   : > { %4713 = vmatpush1.bf16.msra.mxu1 %v6637_v57  ;;  %v8738_v57 = vld [vmem:[#allocation4] sm:$0xf] }
 0x4ba   : > { %4789 = vmatpush1.bf16.msra.mxu0 %v6622_v1  ;;  %4714 = vmatprep.subr.bf16.mxu1 %v6645_v10  ;;  %v3906_v10 = vpack.c.bf16 %v3902_v20, %v3902_v20  ;;  %v6715_v20 = vld [vmem:[%s9105_s7 + $0x170] ss:$8 sps:$4 sm:$0xff]  }
 0x4bb   : > { %4790 = vmatprep.subr.bf16.mxu0 %v6630_v17 }
 0x4bd   : > { %4715 = vmatpush1.bf16.msra.mxu1 %v6643_v60 }
 0x4be   : > { %4791 = vmatpush1.bf16.msra.mxu0 %v6628_v52  ;;  %4716 = vmatprep.subr.bf16.mxu1 %v6651_v24 }
 0x4bf   : > { %4792 = vmatprep.subr.bf16.mxu0 %v6636_v62 }
 0x4c1   : > { %4717 = vmatpush1.bf16.msra.mxu1 %v6649_v25 }
 0x4c2   : > { %4793 = vmatpush1.bf16.msra.mxu0 %v6634_v56  ;;  %4718 = vmatprep.subr.bf16.mxu1 %v6657_v29 }
 0x4c3   : > { %4794 = vmatprep.subr.bf16.mxu0 %v6642_v59  ;;  %v3876_v59 = vrot.slane %v8738_v57, 1 }
 0x4c5   : > { %4719 = vmatpush1.bf16.msra.mxu1 %v6655_v61  ;;  %v3891_v25 = vpack.c.bf16 %v3876_v59, %v3876_v59  ;;  %v3924_v61 = vrot.slane %v3906_v10, 7  ;;  %v6720_v59 = vld [vmem:[%s9105_s7 + $0x374] ss:$8 sps:$4 sm:$0xff]   ;;  %v6718_v10 = vld [vmem:[%s9105_s7 + $0x370] ss:$8 sps:$4 sm:$0xff]  }
 0x4c6   : > { %4795 = vmatpush1.bf16.msra.mxu0 %v6640_v11  ;;  %4720 = vmatprep.subr.bf16.mxu1 %v6663_v33  ;;  %v3904_v11 = vpack.c.bf16 %v3874_v32, %v3874_v32 }
 0x4c7   : > { %4796 = vmatprep.subr.bf16.mxu0 %v6648_v23  ;;  %v3900_v23 = vrot.slane %v3874_v32, 1  ;;  %v6709_v32 = vld [vmem:[%s9105_s7 + $0x160] ss:$8 sps:$4 sm:$0xff]  }
 0x4c9   : > { %4721 = vmatpush1.bf16.msra.mxu1 %v6661_v35 }
 0x4ca   : > { %4797 = vmatpush1.bf16.msra.mxu0 %v6646_v58  ;;  %4722 = vmatprep.subr.bf16.mxu1 %v6669_v36 }
 0x4cb   : > { %4798 = vmatprep.subr.bf16.mxu0 %v6654_v26 }
 0x4cd   : > { %4723 = vmatpush1.bf16.msra.mxu1 %v6667_v16 }
 0x4ce   : > { %4799 = vmatpush1.bf16.msra.mxu0 %v6652_v27  ;;  %4733 = vmatprep.subr.bf16.mxu1 %v6675_v0  ;;  %v3922_v27 = vrot.slane %v3904_v11, 7  ;;  %v6673_v0 = vld [vmem:[%s9105_s7 + $0x100] ss:$8 sps:$4 sm:$0xff]   ;;  %v6723_v11 = vld [vmem:[%s9105_s7 + $0x184] ss:$8 sps:$4 sm:$0xff]  }
 0x4cf   : > { %4800 = vmatprep.subr.bf16.mxu0 %v6660_v31 }
 0x4d2   : > { %4801 = vmatpush1.bf16.msra.mxu0 %v6658_v30 }
 0x4d3   : > { %4802 = vmatprep.subr.bf16.mxu0 %v6666_v53  ;;  %v3890_v53 = vpack.c.bf16 %v8738_v57, %v8738_v57 }
 0x4d6   : > { %4803 = vmatpush1.bf16.msra.mxu0 %v6664_v13  ;;  %v3905_v13 = vpack.c.bf16 %v3900_v23, %v3900_v23  ;;  %v6726_v23 = vld [vmem:[%s9105_s7 + $0x384] ss:$8 sps:$4 sm:$0xff]  }
 0x4d7   : > { %4804 = vmatprep.subr.bf16.mxu0 %v6672_v47 }
 0x4da   : > { %4805 = vmatpush1.bf16.msra.mxu0 %v6670_v37 }
 0x4db   : > { %4815 = vmatprep.subr.bf16.mxu0 %v6678_v38 }
 0x560   : > { %v5538_v55 = vpop.f32.mrb[32].mxu0 }
 0x561   : > { %v5539_v39 = vpop.f32.mrb[33].mxu0 }
 0x562   : > { %v5540_v40 = vadd.f32 %v5539_v39, %v5538_v55  ;;  %v5541_v43 = vpop.f32.mrb[34].mxu0 }
 0x563   : > { %v5542_v46 = vpop.f32.mrb[35].mxu0  ;;  %v5560_v63 = vpop.f32.mrb[24].mxu1 }
 0x564   : > { %v5543_v22 = vadd.f32 %v5542_v46, %v5541_v43  ;;  %v5561_v48 = vpop.f32.mrb[25].mxu1  ;;  %v3607_v41 = vadd.f32 %v5540_v40, %v5256_v45  ;;  %v6681_v43 = vld [vmem:[%s9105_s7 + $0x114] ss:$8 sps:$4 sm:$0xff]  }
 0x565   : > { %v5562_v54 = vadd.f32 %v5561_v48, %v5560_v63  ;;  %v5563_v19 = vpop.f32.mrb[26].mxu1  ;;  %v3923_v48 = vrot.slane %v3905_v13, 7  ;;  %v6742_v13 = vld [vmem:[%s9105_s7 + $0x3b0] ss:$8 sps:$4 sm:$0xff]  }
 0x566   : > { %v5564_v8 = vpop.f32.mrb[27].mxu1  ;;  %v3610_v51 = vadd.f32 %v5543_v22, %v5256_v45 }
 0x567   : > { %v5565_v5 = vadd.f32 %v5564_v8, %v5563_v19  ;;  %v3648_v28 = vadd.f32 %v5562_v54, %v3607_v41  ;;  %v6676_v19 = vld [vmem:[%s9105_s7 + $0x300] ss:$8 sps:$4 sm:$0xff]  }
 0x569   : > { %v3651_v7 = vadd.f32 %v5565_v5, %v3610_v51  ;;  %v6679_v51 = vld [vmem:[%s9105_s7 + $0x110] ss:$8 sps:$4 sm:$0xff]   ;;  %v6684_v5 = vld [vmem:[%s9105_s7 + $0x314] ss:$8 sps:$4 sm:$0xff]  }
 0x570   : > { %v3688_v21 = vpop.f32.mrb[36].mxu0 }
 0x571   : > { %v3689_v2 = vadd.f32 %v3688_v21, %v3648_v28  ;;  %v5653_v42 = vpop.f32.mrb[37].mxu0  ;;  %v6687_v28 = vld [vmem:[%s9105_s7 + $0x124] ss:$8 sps:$4 sm:$0xff]   ;;  %v6682_v21 = vld [vmem:[%s9105_s7 + $0x310] ss:$8 sps:$4 sm:$0xff]  }
 0x572   : > { %v3691_v44 = vpop.f32.mrb[38].mxu0  ;;  %v6690_v42 = vld [vmem:[%s9105_s7 + $0x324] ss:$8 sps:$4 sm:$0xff]  }
 0x573   : > { %v3695_v49 = vmax.f32 %v3689_v2, 0.0  ;;  %v3692_v18 = vadd.f32 %v3691_v44, %v3651_v7  ;;  %v5654_v3 = vpop.f32.mrb[39].mxu0  ;;  %v6685_v2 = vld [vmem:[%s9105_s7 + $0x120] ss:$8 sps:$4 sm:$0xff]   ;;  %v6693_v44 = vld [vmem:[%s9105_s7 + $0x134] ss:$8 sps:$4 sm:$0xff]  }
 0x574   : > { %v6696_v3 = vld [vmem:[%s9105_s7 + $0x334] ss:$8 sps:$4 sm:$0xff]  }
 0x575   : > { %v3698_v14 = vrot.slane %v3695_v49, 4  ;;  %v3696_v50 = vmax.f32 %v3692_v18, 0.0  ;;  %v6691_v18 = vld [vmem:[%s9105_s7 + $0x130] ss:$8 sps:$4 sm:$0xff]  }
 0x577   : > { %v3700_v6 = vmax.f32 %v3695_v49, %v3698_v14  ;;  %v3712_v4 = vrot.slane %v3696_v50, 4  ;;  %v6688_v49 = vld [vmem:[%s9105_s7 + $0x320] ss:$8 sps:$4 sm:$0xff]   ;;  %v6699_v14 = vld [vmem:[%s9105_s7 + $0x144] ss:$8 sps:$4 sm:$0xff]  }
 0x579   : > { %v3702_v12 = vrot.slane %v3700_v6, 1  ;;  %v3714_v34 = vmax.f32 %v3696_v50, %v3712_v4  ;;  %v6694_v50 = vld [vmem:[%s9105_s7 + $0x330] ss:$8 sps:$4 sm:$0xff]   ;;  %v6702_v4 = vld [vmem:[%s9105_s7 + $0x344] ss:$8 sps:$4 sm:$0xff]  }
 0x57b   : > { %v3704_v1 = vmax.f32 %v3700_v6, %v3702_v12  ;;  %v3716_v15 = vrot.slane %v3714_v34, 1  ;;  %v6697_v6 = vld [vmem:[%s9105_s7 + $0x140] ss:$8 sps:$4 sm:$0xff]   ;;  %v6705_v12 = vld [vmem:[%s9105_s7 + $0x154] ss:$8 sps:$4 sm:$0xff]  }
 0x57d   : > { %v3706_v17 = vrot.slane %v3704_v1, 1  ;;  %v3718_v52 = vmax.f32 %v3714_v34, %v3716_v15  ;;  %v6700_v34 = vld [vmem:[%s9105_s7 + $0x340] ss:$8 sps:$4 sm:$0xff]   ;;  %v6708_v15 = vld [vmem:[%s9105_s7 + $0x354] ss:$8 sps:$4 sm:$0xff]  }
 0x57f   : > { %v3708_v9 = vsel %vm2071_vm13, %v3704_v1, %v3706_v17  ;;  %v3720_v62 = vrot.slane %v3718_v52, 1  ;;  %v6703_v1 = vld [vmem:[%s9105_s7 + $0x150] ss:$8 sps:$4 sm:$0xff]   ;;  %v6711_v17 = vld [vmem:[%s9105_s7 + $0x164] ss:$8 sps:$4 sm:$0xff]  }
 0x580   : > { %3710 = vst [vmem:[#allocation4 + $0x5] sm:$0x3] %v3708_v9  ;;  %v6714_v9 = vld [vmem:[%s9105_s7 + $0x364] ss:$8 sps:$4 sm:$0xff]  }
 0x581   : > { %v3722_v56 = vsel %vm2071_vm13, %v3718_v52, %v3720_v62  ;;  %v6706_v52 = vld [vmem:[%s9105_s7 + $0x350] ss:$8 sps:$4 sm:$0xff]   ;;  %v6717_v62 = vld [vmem:[%s9105_s7 + $0x174] ss:$8 sps:$4 sm:$0xff]  }
 0x582   : > { %3724 = vst [vmem:[#allocation4 + $0x9] sm:$0x3] %v3722_v56  ;;  %v6712_v56 = vld [vmem:[%s9105_s7 + $0x360] ss:$8 sps:$4 sm:$0xff]  }
 0x587   : > { %v3871_v60 = vld [vmem:[#allocation4 + $0x4] sm:$0xf] }
 0x588   : > { %v3881_v58 = vrot.slane %v3871_v60, 1  ;;  %v3893_v24 = vpack.c.bf16 %v3871_v60, %v3871_v60  ;;  %v3883_v31 = vrot.slane %v3871_v60, 2  ;;  %v6721_v60 = vld [vmem:[%s9105_s7 + $0x180] ss:$8 sps:$4 sm:$0xff]  }
 0x589   : > { %v3872_v26 = vld [vmem:[#allocation4 + $0x8] sm:$0xf] }
 0x58a   : > { %v3894_v29 = vpack.c.bf16 %v3881_v58, %v3881_v58  ;;  %v3896_v30 = vpack.c.bf16 %v3872_v26, %v3872_v26  ;;  %v3888_v33 = vrot.slane %v3872_v26, 2  ;;  %v3916_v35 = vrot.slane %v3893_v24, 7  ;;  %v6729_v58 = vld [vmem:[%s9105_s7 + $0x194] ss:$8 sps:$4 sm:$0xff]  }
 0x58b   : > { %v3886_v36 = vrot.slane %v3872_v26, 1  ;;  %v8750_v45 = vpack.c.bf16 %v3883_v31, %v3883_v31  ;;  %v6732_v26 = vld [vmem:[%s9105_s7 + $0x394] ss:$8 sps:$4 sm:$0xff]  }
 0x58c   : > { %v3917_v47 = vrot.slane %v3894_v29, 7  ;;  %v3919_v16 = vrot.slane %v3896_v30, 7  ;;  %v3898_v37 = vpack.c.bf16 %v3888_v33, %v3888_v33  ;;  %v8747_v55 = vsel %vm2071_vm13, %v3896_v30, %v3922_v27  ;;  %v6735_v27 = vld [vmem:[%s9105_s7 + $0x1a4] ss:$8 sps:$4 sm:$0xff]   ;;  %v6741_v31 = vld [vmem:[%s9105_s7 + $0x1b4] ss:$8 sps:$4 sm:$0xff]  }
 0x58d   : > { %v3897_v38 = vpack.c.bf16 %v3886_v36, %v3886_v36  ;;  %v3927_v63 = vsel %vm2071_vm13, %v3890_v53, %v3916_v35  ;;  %v6738_v30 = vld [vmem:[%s9105_s7 + $0x3a4] ss:$8 sps:$4 sm:$0xff]   ;;  %v6736_v33 = vld [vmem:[%s9105_s7 + $0x3a0] ss:$8 sps:$4 sm:$0xff]   ;;  %v6739_v53 = vld [vmem:[%s9105_s7 + $0x1b0] ss:$8 sps:$4 sm:$0xff]  }
 0x58e   : > { %v3931_v39 = vsel %vm2071_vm13, %v3891_v25, %v3917_v47  ;;  %v3921_v40 = vrot.slane %v3898_v37, 7  ;;  %v8756_v46 = vsel %vm2071_vm13, %v3898_v37, %v3924_v61  ;;  %v3939_v41 = vsel %vm2071_vm13, %v3893_v24, %v3919_v16  ;;  %v6724_v24 = vld [vmem:[%s9105_s7 + $0x380] ss:$8 sps:$4 sm:$0xff]   ;;  %v6727_v25 = vld [vmem:[%s9105_s7 + $0x190] ss:$8 sps:$4 sm:$0xff]  }
 0x58f   : > { %4724 = vmatprep.mubr.bf16.mxu1 %v3931_v39  ;;  %v3920_v22 = vrot.slane %v3897_v38, 7  ;;  %v3955_v7 = vsel %vm2071_vm13, %v3897_v38, %v3923_v48  ;;  %v6730_v61 = vld [vmem:[%s9105_s7 + $0x390] ss:$8 sps:$4 sm:$0xff]   ;;  %v6744_v35 = vld [vmem:[%s9105_s7 + $0x3b4] ss:$8 sps:$4 sm:$0xff]  }
 0x590   : > { %4725 = vmatmul.mubr.bf16.vlgmr.msra.gmra.mrb[28].mxu1 %v3927_v63  ;;  %v3947_v54 = vsel %vm2071_vm13, %v8750_v45, %v3921_v40  ;;  %v6747_v36 = vld [vmem:[%s9105_s7 + $0x1c4] ss:$8 sps:$4 sm:$0xff]   ;;  %v6745_v47 = vld [vmem:[%s9105_s7 + $0x1c0] ss:$8 sps:$4 sm:$0xff]   ;;  %v6753_v37 = vld [vmem:[%s9105_s7 + $0x1d4] ss:$8 sps:$4 sm:$0xff]  }
 0x591   : > { %4734 = vmatpush1.bf16.msra.mxu1 %v6673_v0  ;;  %4765 = vmatprep.mubr.bf16.mxu1 %v3939_v41  ;;  %v3943_v8 = vsel %vm2071_vm13, %v3894_v29, %v3920_v22  ;;  %v6733_v29 = vld [vmem:[%s9105_s7 + $0x1a0] ss:$8 sps:$4 sm:$0xff]   ;;  %v6750_v16 = vld [vmem:[%s9105_s7 + $0x3c4] ss:$8 sps:$4 sm:$0xff]   ;;  %v6751_v38 = vld [vmem:[%s9105_s7 + $0x1d0] ss:$8 sps:$4 sm:$0xff]  }
 0x592   : > { %4806 = vmatprep.mubr.bf16.mxu0 %v3947_v54  ;;  %4735 = vmatprep.subr.bf16.mxu1 %v6681_v43  ;;  %v6748_v0 = vld [vmem:[%s9105_s7 + $0x3c0] ss:$8 sps:$4 sm:$0xff]   ;;  %v6756_v39 = vld [vmem:[%s9105_s7 + $0x3d4] ss:$8 sps:$4 sm:$0xff]   ;;  %v6759_v40 = vld [vmem:[%s9105_s7 + $0x1e4] ss:$8 sps:$4 sm:$0xff]  }
 0x593   : > { %4807 = vmatmul.mubr.bf16.vlgmr.msra.gmra.mrb[40].mxu0 %v3943_v8  ;;  %v6754_v43 = vld [vmem:[%s9105_s7 + $0x3d0] ss:$8 sps:$4 sm:$0xff]   ;;  %v6757_v63 = vld [vmem:[%s9105_s7 + $0x1e0] ss:$8 sps:$4 sm:$0xff]   ;;  %v6762_v22 = vld [vmem:[%s9105_s7 + $0x3e4] ss:$8 sps:$4 sm:$0xff]  }
 0x594   : > { %4816 = vmatpush1.bf16.msra.mxu0 %v6676_v19  ;;  %4847 = vmatprep.mubr.bf16.mxu0 %v3955_v7  ;;  %v6765_v48 = vld [vmem:[%s9105_s7 + $0x1f4] ss:$8 sps:$4 sm:$0xff]   ;;  %v3878_v41 = vrot.slane %v8738_v57, 2  ;;  %v6760_v54 = vld [vmem:[%s9105_s7 + $0x3e0] ss:$8 sps:$4 sm:$0xff]  }
 0x595   : > { %4736 = vmatpush1.bf16.msra.mxu1 %v6679_v51  ;;  %4817 = vmatprep.subr.bf16.mxu0 %v6684_v5  ;;  %v6763_v19 = vld [vmem:[%s9105_s7 + $0x1f0] ss:$8 sps:$4 sm:$0xff]   ;;  %v6768_v8 = vld [vmem:[%s9105_s7 + $0x3f4] ss:$8 sps:$4 sm:$0xff]   ;;  %v3918_v5 = vrot.slane %v8750_v45, 7 }
 0x596   : > { %4737 = vmatprep.subr.bf16.mxu1 %v6687_v28  ;;  %v3892_v51 = vpack.c.bf16 %v3878_v41, %v3878_v41  ;;  %v6766_v57 = vld [vmem:[%s9105_s7 + $0x3f0] ss:$8 sps:$4 sm:$0xff]   ;;  %v6771_v28 = vld [vmem:[%s9105_s7 + $0x404] ss:$8 sps:$4 sm:$0xff]   ;;  %v6774_v45 = vld [vmem:[%s9105_s7 + $0x414] ss:$8 sps:$4 sm:$0xff]  }
 0x598   : > { %4818 = vmatpush1.bf16.msra.mxu0 %v6682_v21  ;;  %v3935_v7 = vsel %vm2071_vm13, %v3892_v51, %v3918_v5  ;;  %v6769_v21 = vld [vmem:[%s9105_s7 + $0x400] ss:$8 sps:$4 sm:$0xff]  }
 0x599   : > { %4738 = vmatpush1.bf16.msra.mxu1 %v6685_v2  ;;  %4819 = vmatprep.subr.bf16.mxu0 %v6690_v42  ;;  %v6772_v2 = vld [vmem:[%s9105_s7 + $0x410] ss:$8 sps:$4 sm:$0xff]   ;;  %v6916_v42 = vmov 0  }
 0x59a   : > { %4739 = vmatprep.subr.bf16.mxu1 %v6693_v44  ;;  %v6777_v44 = vld [vmem:[%s9105_s7 + $0x424] ss:$8 sps:$4 sm:$0xff]  }
 0x59c   : > { %4820 = vmatpush1.bf16.msra.mxu0 %v6688_v49  ;;  %v6775_v49 = vld [vmem:[%s9105_s7 + $0x420] ss:$8 sps:$4 sm:$0xff]  }
 0x59d   : > { %4740 = vmatpush1.bf16.msra.mxu1 %v6691_v18  ;;  %4821 = vmatprep.subr.bf16.mxu0 %v6696_v3  ;;  %v6778_v18 = vld [vmem:[%s9105_s7 + $0x430] ss:$8 sps:$4 sm:$0xff]   ;;  %v6783_v3 = vld [vmem:[%s9105_s7 + $0x444] ss:$8 sps:$4 sm:$0xff]  }
 0x59e   : > { %4741 = vmatprep.subr.bf16.mxu1 %v6699_v14  ;;  %v6781_v14 = vld [vmem:[%s9105_s7 + $0x440] ss:$8 sps:$4 sm:$0xff]  }
 0x5a0   : > { %4822 = vmatpush1.bf16.msra.mxu0 %v6694_v50  ;;  %v6786_v50 = vld [vmem:[%s9105_s7 + $0x454] ss:$8 sps:$4 sm:$0xff]  }
 0x5a1   : > { %4742 = vmatpush1.bf16.msra.mxu1 %v6697_v6  ;;  %4823 = vmatprep.subr.bf16.mxu0 %v6702_v4  ;;  %v6784_v6 = vld [vmem:[%s9105_s7 + $0x450] ss:$8 sps:$4 sm:$0xff]   ;;  %v6789_v4 = vld [vmem:[%s9105_s7 + $0x464] ss:$8 sps:$4 sm:$0xff]  }
 0x5a2   : > { %4743 = vmatprep.subr.bf16.mxu1 %v6705_v12  ;;  %v6787_v12 = vld [vmem:[%s9105_s7 + $0x460] ss:$8 sps:$4 sm:$0xff]  }
 0x5a4   : > { %4824 = vmatpush1.bf16.msra.mxu0 %v6700_v34  ;;  %v6792_v34 = vld [vmem:[%s9105_s7 + $0x474] ss:$8 sps:$4 sm:$0xff]  }
 0x5a5   : > { %4744 = vmatpush1.bf16.msra.mxu1 %v6703_v1  ;;  %4825 = vmatprep.subr.bf16.mxu0 %v6708_v15  ;;  %v6790_v1 = vld [vmem:[%s9105_s7 + $0x470] ss:$8 sps:$4 sm:$0xff]   ;;  %v6793_v15 = vld [vmem:[%s9107_s9 + $0x40] sm:$0xff]  }
 0x5a6   : > { %4745 = vmatprep.subr.bf16.mxu1 %v6711_v17  ;;  %v6794_v17 = vld [vmem:[%s9107_s9] sm:$0xff]  }
 0x5a8   : > { %4826 = vmatpush1.bf16.msra.mxu0 %v6706_v52  ;;  %v6795_v52 = vld [vmem:[%s9107_s9 + $0x48] sm:$0xff]  }
 0x5a9   : > { %4746 = vmatpush1.bf16.msra.mxu1 %v6709_v32  ;;  %4827 = vmatprep.subr.bf16.mxu0 %v6714_v9  ;;  %v6796_v32 = vld [vmem:[%s9107_s9 + $0x8] sm:$0xff]   ;;  %v6798_v9 = vld [vmem:[%s9107_s9 + $0x10] sm:$0xff]  }
 0x5aa   : > { %4747 = vmatprep.subr.bf16.mxu1 %v6717_v62  ;;  %v6799_v62 = vld [vmem:[%s9107_s9 + $0x58] sm:$0xff]  }
 0x5ac   : > { %4828 = vmatpush1.bf16.msra.mxu0 %v6712_v56  ;;  %v6800_v56 = vld [vmem:[%s9107_s9 + $0x18] sm:$0xff]  }
 0x5ad   : > { %4748 = vmatpush1.bf16.msra.mxu1 %v6715_v20  ;;  %4829 = vmatprep.subr.bf16.mxu0 %v6720_v59  ;;  %v6801_v20 = vld [vmem:[%s9107_s9 + $0x60] sm:$0xff]  }
 0x5ae   : > { %4749 = vmatprep.subr.bf16.mxu1 %v6723_v11  ;;  %v6802_v59 = vld [vmem:[%s9107_s9 + $0x20] sm:$0xff]   ;;  %v6803_v11 = vld [vmem:[%s9107_s9 + $0x68] sm:$0xff]  }
 0x5b0   : > { %4830 = vmatpush1.bf16.msra.mxu0 %v6718_v10  ;;  %v6804_v10 = vld [vmem:[%s9107_s9 + $0x28] sm:$0xff]  }
 0x5b1   : > { %4750 = vmatpush1.bf16.msra.mxu1 %v6721_v60  ;;  %4831 = vmatprep.subr.bf16.mxu0 %v6726_v23  ;;  %v6805_v60 = vld [vmem:[%s9107_s9 + $0x70] sm:$0xff]  }
 0x5b2   : > { %4751 = vmatprep.subr.bf16.mxu1 %v6729_v58  ;;  %v6806_v23 = vld [vmem:[%s9107_s9 + $0x30] sm:$0xff]   ;;  %v6807_v58 = vld [vmem:[%s9107_s9 + $0x78] sm:$0xff]  }
 0x5b4   : > { %4832 = vmatpush1.bf16.msra.mxu0 %v6724_v24  ;;  %v6808_v24 = vld [vmem:[%s9107_s9 + $0x38] sm:$0xff]  }
 0x5b5   : > { %4752 = vmatpush1.bf16.msra.mxu1 %v6727_v25  ;;  %4833 = vmatprep.subr.bf16.mxu0 %v6732_v26 }
 0x5b6   : > { %4753 = vmatprep.subr.bf16.mxu1 %v6735_v27 }
 0x5b8   : > { %4834 = vmatpush1.bf16.msra.mxu0 %v6730_v61 }
 0x5b9   : > { %4754 = vmatpush1.bf16.msra.mxu1 %v6733_v29  ;;  %4835 = vmatprep.subr.bf16.mxu0 %v6738_v30  ;;  %v3962_v29 = vlaneseq }
 0x5ba   : > { %4755 = vmatprep.subr.bf16.mxu1 %v6741_v31 }
 0x5bb   : > { %v3963_v30 = vshrl.u32 %v3962_v29, 7 }
 0x5bc   : > { %4836 = vmatpush1.bf16.msra.mxu0 %v6736_v33  ;;  %v3869_v33 = vld [vmem:[%s9106_s8] sm:$0x3] }
 0x5bd   : > { %4756 = vmatpush1.bf16.msra.mxu1 %v6739_v53  ;;  %4837 = vmatprep.subr.bf16.mxu0 %v6744_v35  ;;  %v3964_v31 = vsub.s32 0, %v3963_v30  ;;  %v3968_v53 = vsub.s32 1, %v3963_v30 }
 0x5be   : > { %4757 = vmatprep.subr.bf16.mxu1 %v6747_v36 }
 0x5bf   : > { %v3965_v35 = vrot.slane %v3869_v33, %v3964_v31  ;;  %v3969_v36 = vrot.slane %v3869_v33, %v3968_v53 }
 0x5c0   : > { %4838 = vmatpush1.bf16.msra.mxu0 %v6742_v13 }
 0x5c1   : > { %4758 = vmatpush1.bf16.msra.mxu1 %v6745_v47  ;;  %4839 = vmatprep.subr.bf16.mxu0 %v6750_v16 }
 0x5c2   : > { %4759 = vmatprep.subr.bf16.mxu1 %v6753_v37 }
 0x5c4   : > { %4840 = vmatpush1.bf16.msra.mxu0 %v6748_v0 }
 0x5c5   : > { %4760 = vmatpush1.bf16.msra.mxu1 %v6751_v38  ;;  %4841 = vmatprep.subr.bf16.mxu0 %v6756_v39 }
 0x5c6   : > { %4761 = vmatprep.subr.bf16.mxu1 %v6759_v40 }
 0x5c8   : > { %4842 = vmatpush1.bf16.msra.mxu0 %v6754_v43 }
 0x5c9   : > { %4762 = vmatpush1.bf16.msra.mxu1 %v6757_v63  ;;  %4843 = vmatprep.subr.bf16.mxu0 %v6762_v22 }
 0x5ca   : > { %4763 = vmatprep.subr.bf16.mxu1 %v6765_v48 }
 0x5cc   : > { %4844 = vmatpush1.bf16.msra.mxu0 %v6760_v54 }
 0x5cd   : > { %4764 = vmatpush1.bf16.msra.mxu1 %v6763_v19  ;;  %4845 = vmatprep.subr.bf16.mxu0 %v6768_v8 }
 0x5ce   : > { %5571 = vmatprep.subr.bf16.mxu1 %v6793_v15 }
 0x5d0   : > { %4846 = vmatpush1.bf16.msra.mxu0 %v6766_v57  ;;  %4766 = vmatmul.mubr.bf16.vlgmr.msra.gmra.mrb[28].mxu1 %v3935_v7 }
 0x5d1   : > { %4856 = vmatprep.subr.bf16.mxu0 %v6771_v28  ;;  %5572 = vmatpush3.bf16.msra.mxu1 %v6794_v17 }
 0x5d2   : > { %5573 = vmatprep.subr.bf16.mxu1 %v6795_v52 }
 0x5d3   : > { %4848 = vmatmul.mubr.bf16.vlgmr.msra.gmra.mrb[40].mxu0 %v8747_v55  ;;  %v6780_v55 = vld [vmem:[%s9105_s7 + $0x434] ss:$8 sps:$4 sm:$0xff]  }
 0x5d4   : > { %4857 = vmatpush1.bf16.msra.mxu0 %v6769_v21  ;;  %4888 = vmatprep.mubr.bf16.mxu0 %v6916_v42  ;;  %v4951_v21 = vld [vmem:[%s9108_s10] sm:$0x1] }
 0x5d5   : > { %4858 = vmatprep.subr.bf16.mxu0 %v6774_v45  ;;  %5574 = vmatpush3.bf16.msra.mxu1 %v6796_v32 }
 0x5d8   : > { %4859 = vmatpush1.bf16.msra.mxu0 %v6772_v2 }
 0x5d9   : > { %4860 = vmatprep.subr.bf16.mxu0 %v6777_v44 }
 0x5dc   : > { %4861 = vmatpush1.bf16.msra.mxu0 %v6775_v49 }
 0x5dd   : > { %4862 = vmatprep.subr.bf16.mxu0 %v6780_v55 }
 0x5e0   : > { %4863 = vmatpush1.bf16.msra.mxu0 %v6778_v18 }
 0x5e1   : > { %4864 = vmatprep.subr.bf16.mxu0 %v6783_v3 }
 0x5e4   : > { %4865 = vmatpush1.bf16.msra.mxu0 %v6781_v14 }
 0x5e5   : > { %4866 = vmatprep.subr.bf16.mxu0 %v6786_v50 }
 0x5e8   : > { %4867 = vmatpush1.bf16.msra.mxu0 %v6784_v6 }
 0x5e9   : > { %4868 = vmatprep.subr.bf16.mxu0 %v6789_v4 }
 0x5ec   : > { %4869 = vmatpush1.bf16.msra.mxu0 %v6787_v12 }
 0x5ed   : > { %4870 = vmatprep.subr.bf16.mxu0 %v6792_v34 }
 0x5f0   : > { %4871 = vmatpush1.bf16.msra.mxu0 %v6790_v1 }
 0x5f3   : > { %4889 = vmatmul.mubr.bf16.vlgmr.msra.gmra.mrb[40].mxu0 %v8756_v46  ;;  %v6797_v46 = vld [vmem:[%s9107_s9 + $0x50] sm:$0xff]  }
 0x5f4   : > { %5575 = vmatprep.subr.bf16.mxu1 %v6797_v46 }
 0x5f5   : > { %5576 = vmatpush3.bf16.msra.mxu1 %v6798_v9 }
 0x5f6   : > { %5577 = vmatprep.subr.bf16.mxu1 %v6799_v62 }
 0x5f9   : > { %5578 = vmatpush3.bf16.msra.mxu1 %v6800_v56 }
 0x5fa   : > { %5579 = vmatprep.subr.bf16.mxu1 %v6801_v20 }
 0x5fd   : > { %5580 = vmatpush3.bf16.msra.mxu1 %v6802_v59 }
 0x5fe   : > { %5581 = vmatprep.subr.bf16.mxu1 %v6803_v11 }
 0x601   : > { %5582 = vmatpush3.bf16.msra.mxu1 %v6804_v10 }
 0x602   : > { %5583 = vmatprep.subr.bf16.mxu1 %v6805_v60 }
 0x605   : > { %5584 = vmatpush3.bf16.msra.mxu1 %v6806_v23 }
 0x606   : > { %5585 = vmatprep.subr.bf16.mxu1 %v6807_v58 }
 0x609   : > { %5586 = vmatpush3.bf16.msra.mxu1 %v6808_v24 }
 0x6a3   : > { %v4767_v25 = vpop.f32.mrb[28].mxu1 }
 0x6a4   : > { %v4769_v26 = vpop.f32.mrb[29].mxu1  ;;  %v5655_v13 = vadd.f32 %v4767_v25, %v3965_v35 }
 0x6a5   : > { %v4771_v27 = vpop.f32.mrb[30].mxu1  ;;  %v5657_v47 = vadd.f32 %v4769_v26, %v3969_v36 }
 0x6a6   : > { %v4772_v61 = vpop.f32.mrb[31].mxu1 }
 0x6c6   : > { %v4890_v16 = vpop.f32.mrb[40].mxu0 }
 0x6c7   : > { %v5656_v37 = vadd.f32 %v5655_v13, %v4890_v16  ;;  %v4892_v0 = vpop.f32.mrb[41].mxu0 }
 0x6c8   : > { %v5658_v38 = vadd.f32 %v5657_v47, %v4892_v0  ;;  %v4894_v39 = vpop.f32.mrb[42].mxu0 }
 0x6c9   : > { %v4897_v40 = vmax.f32 %v5656_v37, 0.0  ;;  %v4895_v43 = vpop.f32.mrb[43].mxu0 }
 0x6ca   : > { %v4898_v63 = vmax.f32 %v5658_v38, 0.0 }
 0x6cb   : > { %v4901_v22 = vrot.slane %v4897_v40, 2 }
 0x6cc   : > { %v4902_v48 = vrot.slane %v4898_v63, 2 }
 0x6cd   : > { %v4905_v41 = vmax.f32 %v4897_v40, %v4901_v22 }
 0x6ce   : > { %v4906_v54 = vmax.f32 %v4898_v63, %v4902_v48 }
 0x6cf   : > { %v4909_v19 = vrot.slane %v4905_v41, 1 }
 0x6d0   : > { %v4910_v8 = vrot.slane %v4906_v54, 1 }
 0x6d1   : > { %v4913_v51 = vmax.f32 %v4905_v41, %v4909_v19 }
 0x6d2   : > { %v4914_v5 = vmax.f32 %v4906_v54, %v4910_v8 }
 0x6d3   : > { %v4917_v28 = vpack.c.bf16 %v4913_v51, %v4913_v51 }
 0x6d4   : > { %v4918_v57 = vpack.c.bf16 %v4914_v5, %v4914_v5 }
 0x6d6   : > { %5080 = vmatprep.mubr.bf16.mxu1 %v4918_v57 }
 0x6d7   : > { %5081 = vmatmul.mubr.bf16.vlgmr.msra.gmra.mrb[32].mxu1 %v4917_v28 }
 0x7aa   : > { %v5587_v7 = vpop.f32.mrb[32].mxu1 }
 0x7ab   : > { %v5588_v45 = vpop.f32.mrb[33].mxu1 }
 0x7ac   : > { %v5589_v2 = vadd.f32 %v5588_v45, %v5587_v7  ;;  %v5590_v42 = vpop.f32.mrb[34].mxu1 }
 0x7ad   : > { %v5591_v44 = vpop.f32.mrb[35].mxu1 }
 0x7ae   : > { %v5083_v49 = vadd.f32 %v5589_v2, %v4951_v21 }
 0x7b0   : > { %5088 = vst [vmem:[%s378_s14] sm:$0x1] %v5083_v49 }
 0x7b1   : > { %6853 = shalt.err (!%p6850_p3)
}
 0x7b2   : > { %s6854_s22 = scalar_lea.hbm %s9056_s24, 16  ;;  %s6858_s29 = scalar_lea.hbm %s9109_s11, 32 }
 0x7b3   : > { %p6855_p4 = scmp.ne.s32.totalorder %s9056_s24, %s6854_s22  ;;  %p6859_p9 = scmp.lt.u32.totalorder %s9056_s24, %s9109_s11 }
 0x7b4   : > { %p6860_p10 = scmp.lt.u32.totalorder %s6858_s29, %s6854_s22  ;;  %p6862_p12 = scmp.lt.u32.totalorder %s6854_s22, %s9056_s24 }
 0x7b5   : > { %p6856_p7 = pnand %p6855_p4, %p7016_p5 }
 0x7b6   : > { %p6861_p11 = por %p6860_p10, %p6859_p9 }
 0x7b7   : > { %p6857_p8 = pneg %p6856_p7 }
 0x7b8   : > { %p6863_p13 = por %p6862_p12, %p6861_p11 }
 0x7ba   : > { %p6864_p0 = pnand %p6863_p13, %p6857_p8 }
 0x7bc   : > { %6867 = shalt.err (!%p6864_p0)
}
 0x7bd   : > { %5673 = dma.vmem_to_hbm [thread:$0]  (%p7016_p5), %s9058_s30, 16, %s9056_s24, %s5090_s13  }
 0x7be PF: > { %p5679_p1 = scmp.ge.s32.totalorder %s6902_s20, 2  ;;  %s5114_s0 = sand.u32 1, %s6890_s17  }
 0x7bf   : > { %s5115_s12 = scalar_lea.sflag [#allocation6], %s5114_s0 }
 0x7c0   : > { %p5676_p2 = pnand %p5679_p1, %p7020_p6 }
 0x7c2   : > { %6885 = dma.done.wait (!%p5676_p2), %s5115_s12, 16  }
 0x7c3   : > { %6887 = vsyncadd (!%p5676_p2), %s5115_s12, 4294967280  ;;  %p21_p3 = scmp.ge.s32.totalorder %s7003_s23, 4   ;;  %s9123_s17 = smov %s6894_s18 }
 0x7c4   : > { %s9124_s18 = smov %s6898_s19  ;;  %s9125_s19 = smov %s7014_s26 }
 0x7c5   : > { %s9126_s20 = smov %s7003_s23  ;;  %23 = sbr.rel (!%p21_p3) target bundleno = 5 (0x5), region = 133 }
 0x7cc   :  { %5119 = vsyncpa [#allocation6], 1 }
 0x7cd   :  { %5121 = vsyncpa [#allocation6 + $0x1], 1 }

</bundles_post_ra>
